<compile_context>
chip_gen: v5e
topology: v5e:2x2
jax: 0.10.0
libtpu: 0.0.40
codegen_flags: <defaults>
</compile_context>

<pallas_src>
import functools
import math

import jax
import jax.numpy as jnp
from jax.experimental import pallas as pl
from jax.experimental.pallas import tpu as pltpu

_MIB = 1024 * 1024
_INV_SQRT2 = 1.0 / math.sqrt(2.0)


def _round_up(x, m):
    return (x + m - 1) // m * m


def _gelu_erf(a):
    # Exact (erf) GELU in f32 — matches torch.nn.functional.gelu default.
    return 0.5 * a * (1.0 + jax.lax.erf(a * _INV_SQRT2))


def _residual_layernorm(x_f32, a_f32, out_dtype):
    # residual + LayerNorm(eps=1e-5, no affine) over the feature axis, in f32.
    y = x_f32 + a_f32
    mean = jnp.mean(y, axis=-1, keepdims=True)
    ctr = y - mean
    var = jnp.mean(ctr * ctr, axis=-1, keepdims=True)
    return (ctr * jax.lax.rsqrt(var + 1e-5)).astype(out_dtype)


# ---------------------------------------------------------------------------
# Kernels
# ---------------------------------------------------------------------------
def ffn_fast_kernel(x_ref, w1t_ref, w2t_ref, o_ref):
    """Single-pass FFN: whole weights VMEM-resident, grid=(token tiles,)."""
    a = jnp.dot(x_ref[...], w1t_ref[...], preferred_element_type=jnp.float32)
    a = _gelu_erf(a)
    a2 = jnp.dot(a.astype(w2t_ref.dtype), w2t_ref[...],
                 preferred_element_type=jnp.float32)
    # TODO(synk): training-mode dropout (p>0) not implemented; identity (p=0 /
    # eval) as in the reference forward. Would use pltpu.prng_seed +
    # pltpu.stateful_bernoulli on a2.
    o_ref[...] = _residual_layernorm(x_ref[...].astype(jnp.float32), a2,
                                     o_ref.dtype)


def ffn_tiled_kernel(x_ref, w1t_ref, w2t_ref, o_ref, acc_ref):
    """Hidden-tiled FFN: grid=(token tiles, hidden tiles); hidden is the
    (last, "arbitrary") reduction axis with an f32 VMEM accumulator."""
    h = pl.program_id(1)

    # lin1 on this hidden tile: [tm, D] @ [D, th] -> [tm, th], f32 MXU acc.
    a = jnp.dot(x_ref[...], w1t_ref[...], preferred_element_type=jnp.float32)
    a = _gelu_erf(a)
    partial = jnp.dot(a.astype(w2t_ref.dtype), w2t_ref[...],
                      preferred_element_type=jnp.float32)

    @pl.when(h == 0)
    def _store_first():
        # Direct store on the first hidden tile: no zero-fill + RMW add.
        acc_ref[...] = partial

    @pl.when(h != 0)
    def _accumulate():
        acc_ref[...] += partial

    @pl.when(h == pl.num_programs(1) - 1)
    def _finalize():
        o_ref[...] = _residual_layernorm(x_ref[...].astype(jnp.float32),
                                         acc_ref[...], o_ref.dtype)


# ---------------------------------------------------------------------------
# Parameter prep & tile / VMEM budgeting helpers
# ---------------------------------------------------------------------------
def prepare_ffn_params(w1, w2, dtype=None):
    """One-time parameter prep (do NOT call per forward step).

    w1: lin1.weight [H, D] -> W1.T [D, H]
    w2: lin2.weight [D, H] -> W2.T [H, D]
    Optionally cast weights once to `dtype` (e.g. jnp.bfloat16 for MXU-native
    operands; accumulation / epilogue stay f32 in the kernel).
    """
    w1t, w2t = w1.T, w2.T
    if dtype is not None:
        w1t = w1t.astype(dtype)
        w2t = w2t.astype(dtype)
    return w1t, w2t


def _vmem_capacity_bytes():
    try:
        return int(pltpu.get_tpu_info().vmem_capacity_bytes)
    except Exception:
        return 64 * _MIB  # v7x-safe fallback


def _pick_th(H_pad, th_req):
    """Largest multiple of 128 that divides H_pad and is <= th_req."""
    k = H_pad // 128
    th_req = max(128, min(th_req, H_pad))
    best = 1
    for d in range(1, k + 1):
        if k % d == 0 and 128 * d <= th_req:
            best = d
    return 128 * best


def _vmem_bytes_fast(tm, D, H_pad, x_bytes, w_bytes, out_bytes):
    return (2 * tm * D * x_bytes              # x tile (double-buffered)
            + 2 * 2 * D * H_pad * w_bytes     # both full weights (pessimistic 2x)
            + 2 * tm * D * out_bytes          # output tile (double-buffered)
            + tm * H_pad * 4)                 # f32 activation temporaries


def _vmem_bytes_tiled(tm, th, D, x_bytes, w_bytes, out_bytes):
    return (2 * tm * D * x_bytes              # x tile
            + 2 * 2 * D * th * w_bytes        # W1.T + W2.T hidden tiles
            + tm * D * 4                      # f32 accumulator scratch
            + 2 * tm * D * out_bytes          # output tile
            + tm * th * 4)                    # f32 activation temporaries


# ---------------------------------------------------------------------------
# Wrapper
# ---------------------------------------------------------------------------
@functools.partial(jax.jit,
                   static_argnames=("tm", "th", "use_fast_path",
                                    "vmem_limit_bytes"))
def feedforward_layer(x, w1t, w2t, *, tm=256, th=512, use_fast_path=None,
                      vmem_limit_bytes=None):
    """x: [M, D] tokens; w1t: [D, H] (= lin1.weight.T); w2t: [H, D]."""
    M, D = x.shape
    H = w1t.shape[1]
    assert w1t.shape == (D, H) and w2t.shape == (H, D)

    x_bytes = jnp.dtype(x.dtype).itemsize
    w_bytes = jnp.dtype(w1t.dtype).itemsize
    out_bytes = x_bytes
    row_mult = 8 if x_bytes == 4 else 16

    H_pad = _round_up(H, 128)

    vmem_cap = _vmem_capacity_bytes()
    vmem_budget = max(16 * _MIB, vmem_cap - 8 * _MIB)

    # Token tile: big (it amortizes weight re-streaming in the tiled path),
    # but keep >= 2 tiles so both v7x TensorCores get work on the parallel axis.
    tm = _round_up(min(tm, _round_up(M, row_mult)), row_mult)
    if _round_up(M, tm) // tm < 2 and tm > row_mult:
        tm = max(row_mult, _round_up(tm // 2, row_mult))

    # Fast path: whole weights resident in VMEM, no hidden reduction axis.
    fast_vmem = _vmem_bytes_fast(tm, D, H_pad, x_bytes, w_bytes, out_bytes)
    if use_fast_path is None:
        use_fast_path = (2 * D * H_pad * w_bytes <= 16 * _MIB
                         and fast_vmem + 4 * _MIB <= vmem_budget)

    if use_fast_path:
        needed = fast_vmem
    else:
        # Hidden tile divides round_up(H,128) -> no over-padded FLOPs.
        th = _pick_th(H_pad, min(th, H_pad))
        # Shrink tiles (th first, then tm) until the footprint fits the budget
        # (generation-aware: v7x 64 MiB/TC vs 128 MiB on v5e/v6e).
        while (_vmem_bytes_tiled(tm, th, D, x_bytes, w_bytes, out_bytes)
               + 4 * _MIB > vmem_budget):
            if th > 128:
                th = _pick_th(H_pad, th // 2)
            elif tm > row_mult:
                tm = max(row_mult, _round_up(tm // 2, row_mult))
            else:
                break
        needed = _vmem_bytes_tiled(tm, th, D, x_bytes, w_bytes, out_bytes)

    M_pad = _round_up(M, tm)

    # Zero-padding is exact: zero token rows are sliced off afterwards, zero
    # hidden units contribute nothing to either matmul.
    if M_pad != M:
        x = jnp.pad(x, ((0, M_pad - M), (0, 0)))
    if H_pad != H:
        w1t = jnp.pad(w1t, ((0, 0), (0, H_pad - H)))
        w2t = jnp.pad(w2t, ((0, H_pad - H), (0, 0)))

    if vmem_limit_bytes is None:
        vmem_limit = int(min(max(needed + 16 * _MIB, 32 * _MIB), vmem_budget))
    else:
        vmem_limit = int(vmem_limit_bytes)

    n_token_tiles = M_pad // tm

    if use_fast_path:
        cost = pl.CostEstimate(
            flops=4 * M_pad * D * H_pad,                   # two matmuls
            transcendentals=M_pad * H_pad,                 # erf per activation
            bytes_accessed=(M_pad * D * (x_bytes + out_bytes)
                            + 2 * D * H_pad * w_bytes))    # weights once
        out = pl.pallas_call(
            ffn_fast_kernel,
            out_shape=jax.ShapeDtypeStruct((M_pad, D), x.dtype),
            grid_spec=pltpu.PrefetchScalarGridSpec(
                num_scalar_prefetch=0,
                grid=(n_token_tiles,),
                in_specs=[
                    pl.BlockSpec((tm, D), lambda i: (i, 0)),     # token tile
                    pl.BlockSpec((D, H_pad), lambda i: (0, 0)),  # full W1.T
                    pl.BlockSpec((H_pad, D), lambda i: (0, 0)),  # full W2.T
                ],
                out_specs=pl.BlockSpec((tm, D), lambda i: (i, 0)),
            ),
            compiler_params=pltpu.CompilerParams(
                dimension_semantics=("parallel",),
                vmem_limit_bytes=vmem_limit),
            cost_estimate=cost,
        )(x, w1t, w2t)
    else:
        cost = pl.CostEstimate(
            flops=4 * M_pad * D * H_pad,
            transcendentals=M_pad * H_pad,
            bytes_accessed=(M_pad * D * (x_bytes + out_bytes)
                            # weights are re-streamed once per token tile
                            + n_token_tiles * 2 * D * H_pad * w_bytes))
        out = pl.pallas_call(
            ffn_tiled_kernel,
            out_shape=jax.ShapeDtypeStruct((M_pad, D), x.dtype),
            grid_spec=pltpu.PrefetchScalarGridSpec(
                num_scalar_prefetch=0,
                grid=(n_token_tiles, H_pad // th),
                in_specs=[
                    pl.BlockSpec((tm, D), lambda i, h: (i, 0)),  # token tile (resident over h)
                    pl.BlockSpec((D, th), lambda i, h: (0, h)),  # W1.T hidden tile
                    pl.BlockSpec((th, D), lambda i, h: (h, 0)),  # W2.T hidden tile
                ],
                out_specs=pl.BlockSpec((tm, D), lambda i, h: (i, 0)),
                scratch_shapes=[pltpu.VMEM((tm, D), jnp.float32)],  # f32 acc
            ),
            compiler_params=pltpu.CompilerParams(
                dimension_semantics=("parallel", "arbitrary"),
                vmem_limit_bytes=vmem_limit),
            cost_estimate=cost,
        )(x, w1t, w2t)

    return out[:M] if M_pad != M else out


# ---------------------------------------------------------------------------
# Pure-JAX reference & self-test
# ---------------------------------------------------------------------------
def _reference(x, w1, w2):
    hp = jax.lax.Precision.HIGHEST
    xf = x.astype(jnp.float32)
    a = jax.nn.gelu(jnp.dot(xf, w1.T.astype(jnp.float32), precision=hp),
                    approximate=False)
    y = xf + jnp.dot(a, w2.T.astype(jnp.float32), precision=hp)
    mean = jnp.mean(y, axis=-1, keepdims=True)
    var = jnp.mean((y - mean) ** 2, axis=-1, keepdims=True)
    return (y - mean) * jax.lax.rsqrt(var + 1e-5)


if __name__ == "__main__":
    # Module config: input_width=128, hidden_width=384, arity=1, dropout=0.0.
    # batch=4, seq=75 -> M=300 token rows: exercises the M-remainder (pad to
    # 512 -> 2 token tiles) and an H that is a non-power-of-two multiple of 128.
    batch, seq = 4, 75
    input_width, hidden_width = 128, 384
    M = batch * seq

    key = jax.random.PRNGKey(0)
    kx, k1, k2 = jax.random.split(key, 3)
    x = jax.random.normal(kx, (M, input_width), dtype=jnp.float32)

    # Deterministic parameter init with the module's weight shapes:
    # lin1.weight [hidden, input], lin2.weight [input, hidden].
    # NOTE: the module zero-inits lin2.weight; random values are used so the
    # second matmul / residual path is actually exercised.
    bound1 = 1.0 / math.sqrt(input_width)
    bound2 = 1.0 / math.sqrt(hidden_width)
    w1 = jax.random.uniform(k1, (hidden_width, input_width),
                            minval=-bound1, maxval=bound1, dtype=jnp.float32)
    w2 = jax.random.uniform(k2, (input_width, hidden_width),
                            minval=-bound2, maxval=bound2, dtype=jnp.float32)

    ref = _reference(x, w1, w2)

    # Tolerance note: XLA's / Mosaic's default f32 matmul on TPU may use
    # reduced-precision MXU passes, so compare against a HIGHEST-precision
    # reference with a tolerance that covers single-pass bf16 matmuls.
    f32_tol = dict(atol=5e-2, rtol=5e-2)

    # --- f32 operands, fast path (weights fully VMEM-resident) -------------
    w1t, w2t = prepare_ffn_params(w1, w2)          # one-time transpose
    out_fast = jax.block_until_ready(feedforward_layer(x, w1t, w2t))
    assert out_fast.shape == (M, input_width)
    assert jnp.allclose(out_fast.astype(jnp.float32), ref, **f32_tol), \
        "fast path mismatch vs reference"

    # --- f32 operands, forced hidden-tiled reduction path (th=128 -> 3 tiles)
    out_tiled = jax.block_until_ready(
        feedforward_layer(x, w1t, w2t, th=128, use_fast_path=False))
    assert out_tiled.shape == (M, input_width)
    assert jnp.allclose(out_tiled.astype(jnp.float32), ref, **f32_tol), \
        "tiled path mismatch vs reference"
    assert jnp.allclose(out_tiled, out_fast, atol=1e-5, rtol=1e-5), \
        "fast vs tiled path mismatch"

    # --- bf16 MXU operands (f32 accumulation / f32 GELU + LayerNorm) -------
    w1t_bf, w2t_bf = prepare_ffn_params(w1, w2, dtype=jnp.bfloat16)
    out_bf16 = jax.block_until_ready(
        feedforward_layer(x.astype(jnp.bfloat16), w1t_bf, w2t_bf))
    assert out_bf16.shape == (M, input_width)
    assert jnp.allclose(out_bf16.astype(jnp.float32), ref, atol=0.1, rtol=0.1), \
        "bf16 path mismatch vs reference"

    print("KERNEL_OK")
</pallas_src>

<mosaic_0001>
module attributes {stable_mosaic.version = 11 : i64} {
  func.func @ffn_fast_kernel(%arg0: i32, %arg1: memref<256x128xf32, #tpu.memory_space<vmem>>, %arg2: memref<128x384xf32, #tpu.memory_space<vmem>>, %arg3: memref<384x128xf32, #tpu.memory_space<vmem>>, %arg4: memref<256x128xf32, #tpu.memory_space<vmem>>) attributes {dimension_semantics = [#tpu.dimension_semantics<parallel>], iteration_bounds = array<i64: 2>, scalar_prefetch = 0 : i64, scratch_operands = 0 : i64, tpu.core_type = #tpu.core_type<tc>, window_params = [{transform_indices = @transform_0, window_bounds = array<i64: 256, 128>}, {pipeline_mode = #tpu.pipeline_mode<synchronous>, transform_indices = @transform_1, window_bounds = array<i64: 128, 384>}, {pipeline_mode = #tpu.pipeline_mode<synchronous>, transform_indices = @transform_2, window_bounds = array<i64: 384, 128>}, {transform_indices = @transform_3, window_bounds = array<i64: 256, 128>}]} {
    %c0 = arith.constant 0 : index
    %c0_0 = arith.constant 0 : index
    %0 = vector.load %arg1[%c0, %c0_0] : memref<256x128xf32, #tpu.memory_space<vmem>>, vector<256x128xf32>
    %c0_1 = arith.constant 0 : index
    %c0_2 = arith.constant 0 : index
    %1 = vector.load %arg2[%c0_1, %c0_2] : memref<128x384xf32, #tpu.memory_space<vmem>>, vector<128x384xf32>
    %cst = arith.constant dense<0.000000e+00> : vector<256x384xf32>
    %2 = tpu.matmul %0, %1, %cst {dimension_numbers = #tpu.dot_dimension_numbers<[1], [0], [0], [1], [0, 0, 1, 1], [], []>} : vector<256x128xf32>, vector<128x384xf32>, vector<256x384xf32> -> vector<256x384xf32>
    %cst_3 = arith.constant 5.000000e-01 : f32
    %3 = vector.broadcast %cst_3 : f32 to vector<256x384xf32>
    %4 = arith.mulf %3, %2 : vector<256x384xf32>
    %cst_4 = arith.constant 0.707106769 : f32
    %5 = vector.broadcast %cst_4 : f32 to vector<256x384xf32>
    %6 = arith.mulf %2, %5 : vector<256x384xf32>
    %7 = math.erf %6 : vector<256x384xf32>
    %cst_5 = arith.constant 1.000000e+00 : f32
    %8 = vector.broadcast %cst_5 : f32 to vector<256x384xf32>
    %9 = arith.addf %8, %7 : vector<256x384xf32>
    %10 = arith.mulf %4, %9 : vector<256x384xf32>
    %c0_6 = arith.constant 0 : index
    %c0_7 = arith.constant 0 : index
    %11 = vector.load %arg3[%c0_6, %c0_7] : memref<384x128xf32, #tpu.memory_space<vmem>>, vector<384x128xf32>
    %cst_8 = arith.constant dense<0.000000e+00> : vector<256x128xf32>
    %12 = tpu.matmul %10, %11, %cst_8 {dimension_numbers = #tpu.dot_dimension_numbers<[1], [0], [0], [1], [0, 0, 1, 1], [], []>} : vector<256x384xf32>, vector<384x128xf32>, vector<256x128xf32> -> vector<256x128xf32>
    %c0_9 = arith.constant 0 : index
    %c0_10 = arith.constant 0 : index
    %13 = vector.load %arg1[%c0_9, %c0_10] : memref<256x128xf32, #tpu.memory_space<vmem>>, vector<256x128xf32>
    %14 = arith.addf %13, %12 : vector<256x128xf32>
    %cst_11 = arith.constant dense<0.000000e+00> : vector<256xf32>
    %15 = vector.multi_reduction <add>, %14, %cst_11 [1] : vector<256x128xf32> to vector<256xf32>
    %16 = vector.shape_cast %15 : vector<256xf32> to vector<256x1xf32>
    %cst_12 = arith.constant 1.280000e+02 : f32
    %17 = vector.broadcast %cst_12 : f32 to vector<256x1xf32>
    %18 = arith.divf %16, %17 : vector<256x1xf32>
    %19 = vector.broadcast %18 : vector<256x1xf32> to vector<256x128xf32>
    %20 = arith.subf %14, %19 : vector<256x128xf32>
    %21 = arith.mulf %20, %20 : vector<256x128xf32>
    %cst_13 = arith.constant dense<0.000000e+00> : vector<256xf32>
    %22 = vector.multi_reduction <add>, %21, %cst_13 [1] : vector<256x128xf32> to vector<256xf32>
    %23 = vector.shape_cast %22 : vector<256xf32> to vector<256x1xf32>
    %cst_14 = arith.constant 1.280000e+02 : f32
    %24 = vector.broadcast %cst_14 : f32 to vector<256x1xf32>
    %25 = arith.divf %23, %24 : vector<256x1xf32>
    %cst_15 = arith.constant 9.99999974E-6 : f32
    %26 = vector.broadcast %cst_15 : f32 to vector<256x1xf32>
    %27 = arith.addf %25, %26 : vector<256x1xf32>
    %28 = math.rsqrt %27 : vector<256x1xf32>
    %29 = vector.broadcast %28 : vector<256x1xf32> to vector<256x128xf32>
    %30 = arith.mulf %20, %29 : vector<256x128xf32>
    %c0_16 = arith.constant 0 : index
    %c0_17 = arith.constant 0 : index
    %31 = vector.load %arg4[%c0_16, %c0_17] : memref<256x128xf32, #tpu.memory_space<vmem>>, vector<256x128xf32>
    tpu.vector_store %arg4[%c0_16, %c0_17], %30 {strides = array<i32>} : memref<256x128xf32, #tpu.memory_space<vmem>>, vector<256x128xf32>,
    return
  }
  func.func @transform_0(%arg0: i32) -> (i32, i32) {
    %c0_i32 = arith.constant 0 : i32
    %c0_i32_0 = arith.constant 0 : i32
    return %arg0, %c0_i32 : i32, i32
  }
  func.func @transform_1(%arg0: i32) -> (i32, i32) {
    %c0_i32 = arith.constant 0 : i32
    %c0_i32_0 = arith.constant 0 : i32
    %c0_i32_1 = arith.constant 0 : i32
    return %c0_i32, %c0_i32_0 : i32, i32
  }
  func.func @transform_2(%arg0: i32) -> (i32, i32) {
    %c0_i32 = arith.constant 0 : i32
    %c0_i32_0 = arith.constant 0 : i32
    %c0_i32_1 = arith.constant 0 : i32
    return %c0_i32, %c0_i32_0 : i32, i32
  }
  func.func @transform_3(%arg0: i32) -> (i32, i32) {
    %c0_i32 = arith.constant 0 : i32
    %c0_i32_0 = arith.constant 0 : i32
    return %arg0, %c0_i32 : i32, i32
  }
}

</mosaic_0001>

<bundles_post_ra>
// kernel: feedforward_layer.1
= control target key start
LH: loop header
LB: loop body
LE: loop exit
PB: predicated region body
PF: predicated region fallthrough
CT: control target
= control target key end

     0   :  { %s6454_s12 = smov 0   ;;  %s11266_s0 = inlined_call_operand.vmem [shape: f32[512,128], index: 0, kind: input, shape index: {}]   ;;  %s11267_s1 = inlined_call_operand.vmem [shape: f32[128,384], index: 1, kind: input, shape index: {}]   ;;  %s11268_s2 = inlined_call_operand.vmem [shape: f32[384,128], index: 2, kind: input, shape index: {}]   ;;  %s11269_s3 = inlined_call_operand.vmem [shape: f32[512,128], index: 3, kind: output, shape index: {}]  }
   0x1 LB: > { %s5971_s13 = sadd.s32 4294967295, %s6431_s12   ;;  %p5975_p0 = scmp.ge.s32.totalorder %s6431_s12, 1  ;;  %s6431_s12 = sphi %s6454_s12, %s13_s12  }
   0x2   : > { %p138_p1 = scmp.lt.s32.totalorder %s6431_s12, 3 }
   0x4   : > { %p139_p2 = pnand %p5975_p0, %p138_p1 }
   0x6   : > { %142 = sbr.rel (%p139_p2) target bundleno = 1644 (0x66c), region = 32 }
   0xb   : > { %v251_v0 = vld [vmem:[%s11267_s1 + $0x168] sm:$0xff]  ;;  %v248_v1 = vld [vmem:[%s11267_s1 + $0x150] sm:$0xff]  ;;  %v245_v3 = vld [vmem:[%s11267_s1 + $0x138] sm:$0xff]  ;;  %s5976_s19 = sshll.u32 %s5971_s13, 5 }
   0xc   : > { %254 = vmatpush.msra.mxu0 %v251_v0  ;;  %6078 = vmatpush.msra.mxu2 %v251_v0  ;;  %v252_v2 = vld [vmem:[%s11267_s1 + $0x170] sm:$0xff]  ;;  %v249_v4 = vld [vmem:[%s11267_s1 + $0x158] sm:$0xff]  ;;  %v246_v5 = vld [vmem:[%s11267_s1 + $0x140] sm:$0xff]  ;;  %p163_p3 = scmp.lt.s32.totalorder %s5976_s19, 63 }
   0xd   : > { %367 = vmatpush.msra.mxu1 %v252_v2  ;;  %6094 = vmatpush.msra.mxu3 %v252_v2  ;;  %v242_v6 = vld [vmem:[%s11267_s1 + $0x120] sm:$0xff]  ;;  %v243_v7 = vld [vmem:[%s11267_s1 + $0x128] sm:$0xff]  ;;  %v240_v9 = vld [vmem:[%s11267_s1 + $0x110] sm:$0xff] }
   0xe   : > { %255 = vmatpush.msra.mxu0 %v248_v1  ;;  %6079 = vmatpush.msra.mxu2 %v248_v1  ;;  %v239_v8 = vld [vmem:[%s11267_s1 + $0x108] sm:$0xff]  ;;  %v236_v10 = vld [vmem:[%s11267_s1 + $0xf0] sm:$0xff]  ;;  %v237_v11 = vld [vmem:[%s11267_s1 + $0xf8] sm:$0xff]  ;;  %s11719_s19 = smov (!%p163_p3, %s5976_s19), 63 }
   0xf   : > { %368 = vmatpush.msra.mxu1 %v249_v4  ;;  %6095 = vmatpush.msra.mxu3 %v249_v4  ;;  %v233_v12 = vld [vmem:[%s11267_s1 + $0xd8] sm:$0xff]  ;;  %v234_v13 = vld [vmem:[%s11267_s1 + $0xe0] sm:$0xff]  ;;  %v231_v15 = vld [vmem:[%s11267_s1 + $0xc8] sm:$0xff]  ;;  %s5977_s16 = sshll.u32 %s11719_s19, 3 }
  0x10   : > { %256 = vmatpush.msra.mxu0 %v245_v3  ;;  %6080 = vmatpush.msra.mxu2 %v245_v3  ;;  %v230_v14 = vld [vmem:[%s11267_s1 + $0xc0] sm:$0xff]  ;;  %v227_v16 = vld [vmem:[%s11267_s1 + $0xa8] sm:$0xff]  ;;  %v228_v17 = vld [vmem:[%s11267_s1 + $0xb0] sm:$0xff]  ;;  %s6559_s13 = scalar_lea.vmem %s11266_s0, %s5977_s16  ;;  %s11072_s24 = scalar_lea.vmem %s11269_s3, %s5977_s16 }
  0x11   : > { %369 = vmatpush.msra.mxu1 %v246_v5  ;;  %6096 = vmatpush.msra.mxu3 %v246_v5  ;;  %v224_v18 = vld [vmem:[%s11267_s1 + $0x90] sm:$0xff]  ;;  %v225_v19 = vld [vmem:[%s11267_s1 + $0x98] sm:$0xff]  ;;  %v222_v21 = vld [vmem:[%s11267_s1 + $0x80] sm:$0xff] }
  0x12   : > { %257 = vmatpush.msra.mxu0 %v242_v6  ;;  %6081 = vmatpush.msra.mxu2 %v242_v6  ;;  %v221_v20 = vld [vmem:[%s11267_s1 + $0x78] sm:$0xff]  ;;  %v218_v22 = vld [vmem:[%s11267_s1 + $0x60] sm:$0xff]  ;;  %v219_v23 = vld [vmem:[%s11267_s1 + $0x68] sm:$0xff] }
  0x13   : > { %370 = vmatpush.msra.mxu1 %v243_v7  ;;  %6097 = vmatpush.msra.mxu3 %v243_v7  ;;  %v215_v24 = vld [vmem:[%s11267_s1 + $0x48] sm:$0xff]  ;;  %v216_v25 = vld [vmem:[%s11267_s1 + $0x50] sm:$0xff]  ;;  %v213_v27 = vld [vmem:[%s11267_s1 + $0x38] sm:$0xff] }
  0x14   : > { %258 = vmatpush.msra.mxu0 %v239_v8  ;;  %6082 = vmatpush.msra.mxu2 %v239_v8  ;;  %v212_v26 = vld [vmem:[%s11267_s1 + $0x30] sm:$0xff]  ;;  %v209_v28 = vld [vmem:[%s11267_s1 + $0x18] sm:$0xff]  ;;  %v210_v29 = vld [vmem:[%s11267_s1 + $0x20] sm:$0xff] }
  0x15   : > { %371 = vmatpush.msra.mxu1 %v240_v9  ;;  %6098 = vmatpush.msra.mxu3 %v240_v9  ;;  %v206_v30 = vld [vmem:[%s11267_s1] sm:$0xff]  ;;  %v253_v33 = vld [vmem:[%s11267_s1 + $0x178] sm:$0xff]  ;;  %v207_v34 = vld [vmem:[%s11267_s1 + $0x8] sm:$0xff] }
  0x16   : > { %259 = vmatpush.msra.mxu0 %v236_v10  ;;  %6083 = vmatpush.msra.mxu2 %v236_v10  ;;  %v6568_v31 = vld [vmem:[%s6559_s13] sm:$0xff]  ;;  %v247_v36 = vld [vmem:[%s11267_s1 + $0x148] sm:$0xff]  ;;  %v244_v37 = vld [vmem:[%s11267_s1 + $0x130] sm:$0xff] }
  0x17   : > { %372 = vmatpush.msra.mxu1 %v237_v11  ;;  %6099 = vmatpush.msra.mxu3 %v237_v11  ;;  %v190_v32 = vld [vmem:[%s6559_s13 + $0x80] sm:$0xff]  ;;  %v6589_v38 = vld [vmem:[%s6559_s13 + $0x8] sm:$0xff]  ;;  %v241_v40 = vld [vmem:[%s11267_s1 + $0x118] sm:$0xff] }
  0x18   : > { %260 = vmatpush.msra.mxu0 %v233_v12  ;;  %6084 = vmatpush.msra.mxu2 %v233_v12  ;;  %v250_v35 = vld [vmem:[%s11267_s1 + $0x160] sm:$0xff]  ;;  %v191_v39 = vld [vmem:[%s6559_s13 + $0x88] sm:$0xff]  ;;  %v6601_v42 = vld [vmem:[%s6559_s13 + $0x10] sm:$0xff] }
  0x19   : > { %373 = vmatpush.msra.mxu1 %v234_v13  ;;  %6100 = vmatpush.msra.mxu3 %v234_v13  ;;  %v238_v41 = vld [vmem:[%s11267_s1 + $0x100] sm:$0xff]  ;;  %v192_v43 = vld [vmem:[%s6559_s13 + $0x90] sm:$0xff]  ;;  %v235_v44 = vld [vmem:[%s11267_s1 + $0xe8] sm:$0xff] }
  0x1a   : > { %261 = vmatpush.msra.mxu0 %v230_v14  ;;  %6085 = vmatpush.msra.mxu2 %v230_v14  ;;  %v6610_v45 = vld [vmem:[%s6559_s13 + $0x18] sm:$0xff]  ;;  %v232_v47 = vld [vmem:[%s11267_s1 + $0xd0] sm:$0xff]  ;;  %v6619_v48 = vld [vmem:[%s6559_s13 + $0x20] sm:$0xff] }
  0x1b   : > { %374 = vmatpush.msra.mxu1 %v231_v15  ;;  %6101 = vmatpush.msra.mxu3 %v231_v15  ;;  %v193_v46 = vld [vmem:[%s6559_s13 + $0x98] sm:$0xff]  ;;  %v194_v49 = vld [vmem:[%s6559_s13 + $0xa0] sm:$0xff]  ;;  %v6628_v51 = vld [vmem:[%s6559_s13 + $0x28] sm:$0xff] }
  0x1c   : > { %262 = vmatpush.msra.mxu0 %v227_v16  ;;  %6086 = vmatpush.msra.mxu2 %v227_v16  ;;  %v229_v50 = vld [vmem:[%s11267_s1 + $0xb8] sm:$0xff]  ;;  %v195_v52 = vld [vmem:[%s6559_s13 + $0xa8] sm:$0xff]  ;;  %v226_v53 = vld [vmem:[%s11267_s1 + $0xa0] sm:$0xff] }
  0x1d   : > { %375 = vmatpush.msra.mxu1 %v228_v17  ;;  %6102 = vmatpush.msra.mxu3 %v228_v17  ;;  %v6637_v54 = vld [vmem:[%s6559_s13 + $0x30] sm:$0xff]  ;;  %v223_v56 = vld [vmem:[%s11267_s1 + $0x88] sm:$0xff]  ;;  %v6646_v57 = vld [vmem:[%s6559_s13 + $0x38] sm:$0xff] }
  0x1e   : > { %263 = vmatpush.msra.mxu0 %v224_v18  ;;  %6087 = vmatpush.msra.mxu2 %v224_v18  ;;  %v196_v55 = vld [vmem:[%s6559_s13 + $0xb0] sm:$0xff]  ;;  %v197_v58 = vld [vmem:[%s6559_s13 + $0xb8] sm:$0xff]  ;;  %v6655_v60 = vld [vmem:[%s6559_s13 + $0x40] sm:$0xff] }
  0x1f   : > { %376 = vmatpush.msra.mxu1 %v225_v19  ;;  %6103 = vmatpush.msra.mxu3 %v225_v19  ;;  %v220_v59 = vld [vmem:[%s11267_s1 + $0x70] sm:$0xff]  ;;  %v198_v61 = vld [vmem:[%s6559_s13 + $0xc0] sm:$0xff]  ;;  %v217_v62 = vld [vmem:[%s11267_s1 + $0x58] sm:$0xff] }
  0x20   : > { %264 = vmatpush.msra.mxu0 %v221_v20  ;;  %6088 = vmatpush.msra.mxu2 %v221_v20  ;;  %v6664_v63 = vld [vmem:[%s6559_s13 + $0x48] sm:$0xff]  ;;  %v214_v1 = vld [vmem:[%s11267_s1 + $0x40] sm:$0xff]  ;;  %v6673_v2 = vld [vmem:[%s6559_s13 + $0x50] sm:$0xff] }
  0x21   : > { %377 = vmatpush.msra.mxu1 %v222_v21  ;;  %6104 = vmatpush.msra.mxu3 %v222_v21  ;;  %v199_v0 = vld [vmem:[%s6559_s13 + $0xc8] sm:$0xff]  ;;  %v200_v3 = vld [vmem:[%s6559_s13 + $0xd0] sm:$0xff]  ;;  %v6682_v5 = vld [vmem:[%s6559_s13 + $0x58] sm:$0xff] }
  0x22   : > { %265 = vmatpush.msra.mxu0 %v218_v22  ;;  %6089 = vmatpush.msra.mxu2 %v218_v22  ;;  %v211_v4 = vld [vmem:[%s11267_s1 + $0x28] sm:$0xff]  ;;  %v201_v6 = vld [vmem:[%s6559_s13 + $0xd8] sm:$0xff]  ;;  %v208_v7 = vld [vmem:[%s11267_s1 + $0x10] sm:$0xff] }
  0x23   : > { %378 = vmatpush.msra.mxu1 %v219_v23  ;;  %6105 = vmatpush.msra.mxu3 %v219_v23  ;;  %v6691_v8 = vld [vmem:[%s6559_s13 + $0x60] sm:$0xff]  ;;  %v6697_v10 = vld [vmem:[%s6559_s13 + $0x68] sm:$0xff]  ;;  %v6703_v12 = vld [vmem:[%s6559_s13 + $0x70] sm:$0xff] }
  0x24   : > { %266 = vmatpush.msra.mxu0 %v215_v24  ;;  %6090 = vmatpush.msra.mxu2 %v215_v24  ;;  %v202_v9 = vld [vmem:[%s6559_s13 + $0xe0] sm:$0xff]  ;;  %v203_v11 = vld [vmem:[%s6559_s13 + $0xe8] sm:$0xff]  ;;  %v204_v13 = vld [vmem:[%s6559_s13 + $0xf0] sm:$0xff] }
  0x25   : > { %379 = vmatpush.msra.mxu1 %v216_v25  ;;  %6106 = vmatpush.msra.mxu3 %v216_v25  ;;  %v4832_v14 = vld [vmem:[%s11268_s2 + $0x78] sm:$0xff]  ;;  %v4831_v17 = vld [vmem:[%s11268_s2 + $0x70] sm:$0xff]  ;;  %v4830_v18 = vld [vmem:[%s11268_s2 + $0x68] sm:$0xff] }
  0x26   : > { %267 = vmatpush.msra.mxu0 %v212_v26  ;;  %6091 = vmatpush.msra.mxu2 %v212_v26  ;;  %v6712_v15 = vld [vmem:[%s6559_s13 + $0x78] sm:$0xff]  ;;  %v4829_v19 = vld [vmem:[%s11268_s2 + $0x60] sm:$0xff]  ;;  %v4847_v22 = vld [vmem:[%s11268_s2 + $0xf0] sm:$0xff] }
  0x27   : > { %380 = vmatpush.msra.mxu1 %v213_v27  ;;  %6107 = vmatpush.msra.mxu3 %v213_v27  ;;  %v205_v16 = vld [vmem:[%s6559_s13 + $0xf8] sm:$0xff]  ;;  %v4827_v23 = vld [vmem:[%s11268_s2 + $0x50] sm:$0xff]  ;;  %v4846_v24 = vld [vmem:[%s11268_s2 + $0xe8] sm:$0xff] }
  0x28   : > { %268 = vmatpush.msra.mxu0 %v209_v28  ;;  %6092 = vmatpush.msra.mxu2 %v209_v28  ;;  %v4848_v20 = vld [vmem:[%s11268_s2 + $0xf8] sm:$0xff]  ;;  %v4826_v25 = vld [vmem:[%s11268_s2 + $0x48] sm:$0xff]  ;;  %v4845_v26 = vld [vmem:[%s11268_s2 + $0xe0] sm:$0xff] }
  0x29   : > { %381 = vmatpush.msra.mxu1 %v210_v29  ;;  %6108 = vmatpush.msra.mxu3 %v210_v29  ;;  %v4828_v21 = vld [vmem:[%s11268_s2 + $0x58] sm:$0xff]  ;;  %v4825_v27 = vld [vmem:[%s11268_s2 + $0x40] sm:$0xff] }
  0x2a   : > { %269 = vmatpush.msra.mxu0 %v206_v30  ;;  %6093 = vmatpush.msra.mxu2 %v206_v30  ;;  %v4844_v28 = vld [vmem:[%s11268_s2 + $0xd8] sm:$0xff]  ;;  %v4843_v30 = vld [vmem:[%s11268_s2 + $0xd0] sm:$0xff] }
  0x2b   : > { %270 = vmatmul.f32.vlgmr.msra.gmra.mxu0 %v6568_v31  ;;  %318 = vmatmul.f32.vlgmr.msra.gmra.mxu2 %v190_v32  ;;  %v4824_v29 = vld [vmem:[%s11268_s2 + $0x38] sm:$0xff] }
  0x2c   : > { %480 = vmatpush.msrb.mxu2 %v253_v33  ;;  %382 = vmatpush.msra.mxu1 %v207_v34  ;;  %v4842_v33 = vld [vmem:[%s11268_s2 + $0xc8] sm:$0xff] }
  0x2d   : > { %383 = vmatmul.f32.vlgmr.msra.gmra.mxu1 %v6568_v31  ;;  %6109 = vmatpush.msra.mxu3 %v207_v34 }
  0x2e   : > { %481 = vmatpush.msrb.mxu2 %v250_v35  ;;  %431 = vmatmul.f32.vlgmr.msra.gmra.mxu3 %v190_v32  ;;  %v4823_v32 = vld [vmem:[%s11268_s2 + $0x30] sm:$0xff] }
  0x2f   : > { %4865 = vmatpush.msrb.mxu3 %v4832_v14  ;;  %4978 = vmatpush.msrb.mxu0 %v4848_v20 }
  0x30   : > { %482 = vmatpush.msrb.mxu2 %v247_v36  ;;  %v4822_v36 = vld [vmem:[%s11268_s2 + $0x28] sm:$0xff] }
  0x31   : > { %4866 = vmatpush.msrb.mxu3 %v4831_v17  ;;  %4979 = vmatpush.msrb.mxu0 %v4847_v22 }
  0x32   : > { %483 = vmatpush.msrb.mxu2 %v244_v37  ;;  %v4841_v37 = vld [vmem:[%s11268_s2 + $0xc0] sm:$0xff] }
  0x33   : > { %273 = vmatmul.f32.gmra.mxu0 %v6589_v38  ;;  %321 = vmatmul.f32.gmra.mxu2 %v191_v39 }
  0x34   : > { %484 = vmatpush.msrb.mxu2 %v241_v40  ;;  %4867 = vmatpush.msrb.mxu3 %v4830_v18  ;;  %v4840_v40 = vld [vmem:[%s11268_s2 + $0xb8] sm:$0xff] }
  0x35   : > { %386 = vmatmul.f32.gmra.mxu1 %v6589_v38  ;;  %4980 = vmatpush.msrb.mxu0 %v4846_v24 }
  0x36   : > { %485 = vmatpush.msrb.mxu2 %v238_v41  ;;  %434 = vmatmul.f32.gmra.mxu3 %v191_v39  ;;  %v4821_v39 = vld [vmem:[%s11268_s2 + $0x20] sm:$0xff] }
  0x37   : > { %4868 = vmatpush.msrb.mxu3 %v4829_v19  ;;  %4981 = vmatpush.msrb.mxu0 %v4845_v26 }
  0x38   : > { %486 = vmatpush.msrb.mxu2 %v235_v44  ;;  %v4839_v44 = vld [vmem:[%s11268_s2 + $0xb0] sm:$0xff] }
  0x39   : > { %4869 = vmatpush.msrb.mxu3 %v4828_v21  ;;  %4982 = vmatpush.msrb.mxu0 %v4844_v28 }
  0x3a   : > { %487 = vmatpush.msrb.mxu2 %v232_v47 }
  0x3b   : > { %276 = vmatmul.f32.gmra.mxu0 %v6601_v42  ;;  %324 = vmatmul.f32.gmra.mxu2 %v192_v43 }
  0x3c   : > { %488 = vmatpush.msrb.mxu2 %v229_v50  ;;  %4870 = vmatpush.msrb.mxu3 %v4827_v23  ;;  %v4819_v50 = vld [vmem:[%s11268_s2 + $0x10] sm:$0xff] }
  0x3d   : > { %389 = vmatmul.f32.gmra.mxu1 %v6601_v42  ;;  %4983 = vmatpush.msrb.mxu0 %v4843_v30 }
  0x3e   : > { %437 = vmatmul.f32.gmra.mxu3 %v192_v43  ;;  %489 = vmatpush.msrb.mxu2 %v226_v53  ;;  %v4820_v43 = vld [vmem:[%s11268_s2 + $0x18] sm:$0xff] }
  0x3f   : > { %4871 = vmatpush.msrb.mxu3 %v4826_v25  ;;  %4984 = vmatpush.msrb.mxu0 %v4842_v33 }
  0x40   : > { %490 = vmatpush.msrb.mxu2 %v223_v56 }
  0x41   : > { %4872 = vmatpush.msrb.mxu3 %v4825_v27  ;;  %4985 = vmatpush.msrb.mxu0 %v4841_v37 }
  0x42   : > { %491 = vmatpush.msrb.mxu2 %v220_v59 }
  0x43   : > { %279 = vmatmul.f32.gmra.mxu0 %v6610_v45  ;;  %327 = vmatmul.f32.gmra.mxu2 %v193_v46 }
  0x44   : > { %492 = vmatpush.msrb.mxu2 %v217_v62  ;;  %4873 = vmatpush.msrb.mxu3 %v4824_v29 }
  0x45   : > { %392 = vmatmul.f32.gmra.mxu1 %v6610_v45  ;;  %4986 = vmatpush.msrb.mxu0 %v4840_v40 }
  0x46   : > { %440 = vmatmul.f32.gmra.mxu3 %v193_v46  ;;  %493 = vmatpush.msrb.mxu2 %v214_v1  ;;  %v4818_v1 = vld [vmem:[%s11268_s2 + $0x8] sm:$0xff] }
  0x47   : > { %4874 = vmatpush.msrb.mxu3 %v4823_v32  ;;  %4987 = vmatpush.msrb.mxu0 %v4839_v44 }
  0x48   : > { %494 = vmatpush.msrb.mxu2 %v211_v4  ;;  %v4837_v4 = vld [vmem:[%s11268_s2 + $0xa0] sm:$0xff] }
  0x49   : > { %4875 = vmatpush.msrb.mxu3 %v4822_v36 }
  0x4a   : > { %495 = vmatpush.msrb.mxu2 %v208_v7  ;;  %v4817_v7 = vld [vmem:[%s11268_s2] sm:$0xff] }
  0x4b   : > { %282 = vmatmul.f32.gmra.mxu0 %v6619_v48  ;;  %330 = vmatmul.f32.gmra.mxu2 %v194_v49 }
  0x4c   : > { %4876 = vmatpush.msrb.mxu3 %v4821_v39 }
  0x4d   : > { %395 = vmatmul.f32.gmra.mxu1 %v6619_v48 }
  0x4e   : > { %443 = vmatmul.f32.gmra.mxu3 %v194_v49 }
  0x4f   : > { %4877 = vmatpush.msrb.mxu3 %v4820_v43 }
  0x51   : > { %4878 = vmatpush.msrb.mxu3 %v4819_v50 }
  0x53   : > { %285 = vmatmul.f32.gmra.mxu0 %v6628_v51  ;;  %333 = vmatmul.f32.gmra.mxu2 %v195_v52 }
  0x54   : > { %4879 = vmatpush.msrb.mxu3 %v4818_v1 }
  0x55   : > { %398 = vmatmul.f32.gmra.mxu1 %v6628_v51 }
  0x56   : > { %446 = vmatmul.f32.gmra.mxu3 %v195_v52  ;;  %v4838_v52 = vld [vmem:[%s11268_s2 + $0xa8] sm:$0xff] }
  0x57   : > { %4988 = vmatpush.msrb.mxu0 %v4838_v52  ;;  %4880 = vmatpush.msrb.mxu3 %v4817_v7 }
  0x59   : > { %4989 = vmatpush.msrb.mxu0 %v4837_v4 }
  0x5b   : > { %288 = vmatmul.f32.gmra.mxu0 %v6637_v54  ;;  %336 = vmatmul.f32.gmra.mxu2 %v196_v55 }
  0x5d   : > { %401 = vmatmul.f32.gmra.mxu1 %v6637_v54 }
  0x5e   : > { %449 = vmatmul.f32.gmra.mxu3 %v196_v55 }
  0x63   : > { %291 = vmatmul.f32.gmra.mxu0 %v6646_v57  ;;  %339 = vmatmul.f32.gmra.mxu2 %v197_v58 }
  0x65   : > { %404 = vmatmul.f32.gmra.mxu1 %v6646_v57 }
  0x66   : > { %452 = vmatmul.f32.gmra.mxu3 %v197_v58 }
  0x6b   : > { %294 = vmatmul.f32.gmra.mxu0 %v6655_v60  ;;  %342 = vmatmul.f32.gmra.mxu2 %v198_v61 }
  0x6d   : > { %407 = vmatmul.f32.gmra.mxu1 %v6655_v60 }
  0x6e   : > { %455 = vmatmul.f32.gmra.mxu3 %v198_v61 }
  0x73   : > { %297 = vmatmul.f32.gmra.mxu0 %v6664_v63  ;;  %345 = vmatmul.f32.gmra.mxu2 %v199_v0 }
  0x75   : > { %410 = vmatmul.f32.gmra.mxu1 %v6664_v63 }
  0x76   : > { %458 = vmatmul.f32.gmra.mxu3 %v199_v0 }
  0x7b   : > { %300 = vmatmul.f32.gmra.mxu0 %v6673_v2  ;;  %348 = vmatmul.f32.gmra.mxu2 %v200_v3 }
  0x7d   : > { %413 = vmatmul.f32.gmra.mxu1 %v6673_v2 }
  0x7e   : > { %461 = vmatmul.f32.gmra.mxu3 %v200_v3 }
  0x83   : > { %303 = vmatmul.f32.gmra.mxu0 %v6682_v5  ;;  %351 = vmatmul.f32.gmra.mxu2 %v201_v6 }
  0x85   : > { %416 = vmatmul.f32.gmra.mxu1 %v6682_v5 }
  0x86   : > { %464 = vmatmul.f32.gmra.mxu3 %v201_v6 }
  0x8b   : > { %306 = vmatmul.f32.gmra.mxu0 %v6691_v8  ;;  %354 = vmatmul.f32.gmra.mxu2 %v202_v9 }
  0x8d   : > { %419 = vmatmul.f32.gmra.mxu1 %v6691_v8 }
  0x8e   : > { %467 = vmatmul.f32.gmra.mxu3 %v202_v9  ;;  %v4836_v9 = vld [vmem:[%s11268_s2 + $0x98] sm:$0xff] }
  0x8f   : > { %4990 = vmatpush.msrb.mxu0 %v4836_v9 }
  0x93   : > { %309 = vmatmul.f32.gmra.mxu0 %v6697_v10  ;;  %357 = vmatmul.f32.gmra.mxu2 %v203_v11 }
  0x95   : > { %422 = vmatmul.f32.gmra.mxu1 %v6697_v10 }
  0x96   : > { %470 = vmatmul.f32.gmra.mxu3 %v203_v11 }
  0x9b   : > { %312 = vmatmul.f32.gmra.mxu0 %v6703_v12  ;;  %360 = vmatmul.f32.gmra.mxu2 %v204_v13 }
  0x9d   : > { %425 = vmatmul.f32.gmra.mxu1 %v6703_v12 }
  0x9e   : > { %473 = vmatmul.f32.gmra.mxu3 %v204_v13 }
  0xa3   : > { %315 = vmatmul.f32.gmra.mxu0 %v6712_v15  ;;  %363 = vmatmul.f32.gmra.mxu2 %v205_v16 }
  0xa5   : > { %428 = vmatmul.f32.gmra.mxu1 %v6712_v15 }
  0xa6   : > { %476 = vmatmul.f32.gmra.mxu3 %v205_v16 }
  0xaa   : > { %v6772_v35 = vpop.f32.mrf.mxu1 }
  0xab   : > { %496 = vmatmul.f32.vlgmr.msrb.gmra.mxu2 %v6568_v31  ;;  %v6761_v31 = vpop.f32.mrf.mxu0  ;;  %v6803_v47 = vmul.f32 0.70710677, %v6772_v35 }
  0xae   : > { %v6769_v34 = vpop.f32.mrf.mxu2 }
  0xaf   : > { %v6790_v41 = vmul.f32 0.70710677, %v6769_v34 }
  0xb1   : > { %v2705_v53 = vmul.f32 %v6790_v41, %v6790_v41 }
  0xb2   : > { %v6823_v58 = vpop.f32.mrf.mxu1 }
  0xb3   : > { %499 = vmatmul.f32.gmra.mxu2 %v6589_v38  ;;  %v6781_v38 = vmul.f32 0.70710677, %v6761_v31  ;;  %v6828_v62 = vmin.f32 %v2705_v53, 16.0  ;;  %v6837_v3 = vmul.f32 0.70710677, %v6823_v58 }
  0xb5   : > { %v785_v46 = vmul.f32 %v6781_v38, %v6781_v38  ;;  %11348 = vst [vmem:[#allocation2_spill] sm:$0xff] %v6828_v62  ;;  %v2707_v14 = vmul.f32 2.1237322e-06, %v6828_v62  ;;  %v945_v20 = vmul.f32 %v6837_v3, %v6837_v3 }
  0xb6   : > { %v6817_v55 = vpop.f32.mrf.mxu2 }
  0xb7   : > { %v6819_v56 = vmin.f32 %v785_v46, 16.0  ;;  %v6831_v0 = vmul.f32 0.70710677, %v6817_v55  ;;  %v2708_v23 = vadd.f32 0.00028619796, %v2707_v14  ;;  %v6869_v27 = vmin.f32 %v945_v20, 16.0 }
  0xb9   : > { %v787_v61 = vmul.f32 2.1237322e-06, %v6819_v56  ;;  %v2825_v17 = vmul.f32 %v6831_v0, %v6831_v0  ;;  %v947_v28 = vmul.f32 2.1237322e-06, %v6869_v27  ;;  %v2709_v33 = vmul.f32 %v2708_v23, %v6828_v62 }
  0xbb   : > { %502 = vmatmul.f32.gmra.mxu2 %v6601_v42  ;;  %v6792_v42 = vpop.f32.mrf.mxu0  ;;  %v788_v13 = vadd.f32 0.00028619796, %v787_v61  ;;  %v6867_v25 = vmin.f32 %v2825_v17, 16.0  ;;  %v948_v40 = vadd.f32 0.00028619796, %v947_v28  ;;  %v6886_v61 = vpop.f32.mrf.mxu1 }
  0xbc   : > { %v6806_v49 = vmul.f32 0.70710677, %v6792_v42  ;;  %v2710_v50 = vadd.f32 0.0036580483, %v2709_v33  ;;  %11351 = vst [vmem:[#allocation5_spill] sm:$0xff] %v6886_v61 }
  0xbd   : > { %v789_v22 = vmul.f32 %v788_v13, %v6819_v56  ;;  %11350 = vst [vmem:[#allocation4_spill] sm:$0xff] %v6867_v25  ;;  %v2827_v37 = vmul.f32 2.1237322e-06, %v6867_v25  ;;  %v949_v1 = vmul.f32 %v948_v40, %v6869_v27 }
  0xbe   : > { %v905_v59 = vmul.f32 %v6806_v49, %v6806_v49  ;;  %v6883_v53 = vpop.f32.mrf.mxu2  ;;  %v2711_v9 = vmul.f32 %v2710_v50, %v6828_v62 }
  0xbf   : > { %v790_v32 = vadd.f32 0.0036580483, %v789_v22 }
  0xc0   : > { %v6850_v11 = vmin.f32 %v905_v59, 16.0  ;;  %v2712_v23 = vadd.f32 0.05243302, %v2711_v9 }
  0xc1   : > { %v791_v46 = vmul.f32 %v790_v32, %v6819_v56  ;;  %v6905_v32 = vmul.f32 0.70710677, %v6883_v53 }
  0xc2   : > { %v907_v19 = vmul.f32 2.1237322e-06, %v6850_v11  ;;  %v2713_v40 = vmul.f32 %v2712_v23, %v6828_v62 }
  0xc3   : > { %505 = vmatmul.f32.gmra.mxu2 %v6610_v45  ;;  %v825_v45 = vmul.f32 %v6803_v47, %v6803_v47  ;;  %v6857_v18 = vpop.f32.mrf.mxu0  ;;  %v792_v7 = vadd.f32 0.05243302, %v791_v46  ;;  %v6929_v9 = vpop.f32.mrf.mxu1 }
  0xc4   : > { %11349 = vst [vmem:[#allocation3_spill] sm:$0xff] %v6857_v18  ;;  %v6863_v21 = vmul.f32 0.70710677, %v6857_v18  ;;  %v908_v26 = vadd.f32 0.00028619796, %v907_v19 }
  0xc5   : > { %v6842_v6 = vmin.f32 %v825_v45, 16.0  ;;  %v6895_v19 = vmul.f32 0.70710677, %v6886_v61  ;;  %11353 = vst [vmem:[#allocation7_spill] sm:$0xff] %v6929_v9 }
  0xc6   : > { %v1025_v29 = vmul.f32 %v6863_v21, %v6863_v21  ;;  %v909_v39 = vmul.f32 %v908_v26, %v6850_v11  ;;  %v6907_v33 = vpop.f32.mrf.mxu2 }
  0xc7   : > { %v827_v16 = vmul.f32 2.1237322e-06, %v6842_v6 }
  0xc8   : > { %v6879_v43 = vmin.f32 %v1025_v29, 16.0  ;;  %v910_v45 = vadd.f32 0.0036580483, %v909_v39 }
  0xc9   : > { %v828_v24 = vadd.f32 0.00028619796, %v827_v16 }
  0xca   : > { %v1027_v59 = vmul.f32 2.1237322e-06, %v6879_v43  ;;  %v911_v16 = vmul.f32 %v910_v45, %v6850_v11  ;;  %v6918_v45 = vmul.f32 0.70710677, %v6907_v33 }
  0xcb   : > { %508 = vmatmul.f32.gmra.mxu2 %v6619_v48  ;;  %v798_v48 = vmul.f32 3.8918573e-05, %v6819_v56  ;;  %v829_v36 = vmul.f32 %v828_v24, %v6842_v6  ;;  %v6897_v20 = vpop.f32.mrf.mxu0 }
  0xcc   : > { %v1028_v17 = vadd.f32 0.00028619796, %v1027_v59  ;;  %11352 = vst [vmem:[#allocation6_spill] sm:$0xff] %v6897_v20  ;;  %v912_v28 = vadd.f32 0.05243302, %v911_v16  ;;  %v6921_v59 = vmul.f32 0.5, %v6761_v31 }
  0xcd   : > { %v799_v30 = vadd.f32 0.001143296, %v798_v48  ;;  %v830_v52 = vadd.f32 0.0036580483, %v829_v36  ;;  %v950_v48 = vadd.f32 0.0036580483, %v949_v1 }
  0xce   : > { %v1029_v29 = vmul.f32 %v1028_v17, %v6879_v43  ;;  %v913_v50 = vmul.f32 %v912_v28, %v6850_v11  ;;  %v6936_v31 = vmul.f32 0.5, %v6772_v35 }
  0xcf   : > { %v800_v44 = vmul.f32 %v799_v30, %v6819_v56  ;;  %v831_v13 = vmul.f32 %v830_v52, %v6842_v6  ;;  %v1065_v30 = vmul.f32 %v6895_v19, %v6895_v19  ;;  %v951_v36 = vmul.f32 %v950_v48, %v6869_v27 }
  0xd0   : > { %v1030_v52 = vadd.f32 0.0036580483, %v1029_v29  ;;  %v6947_v29 = vmul.f32 0.70710677, %v6929_v9 }
  0xd1   : > { %v801_v4 = vadd.f32 0.014752088, %v800_v44  ;;  %v832_v24 = vadd.f32 0.05243302, %v831_v13  ;;  %v952_v1 = vadd.f32 0.05243302, %v951_v36 }
  0xd2   : > { %v1031_v23 = vmul.f32 %v1030_v52, %v6879_v43 }
  0xd3   : > { %511 = vmatmul.f32.gmra.mxu2 %v6628_v51  ;;  %v2828_v51 = vadd.f32 0.00028619796, %v2827_v37  ;;  %v802_v22 = vmul.f32 %v801_v4, %v6819_v56  ;;  %v833_v44 = vmul.f32 %v832_v24, %v6842_v6  ;;  %v6931_v13 = vpop.f32.mrf.mxu0  ;;  %v3065_v24 = vmul.f32 %v6918_v45, %v6918_v45 }
  0xd4   : > { %11354 = vst [vmem:[#allocation8_spill] sm:$0xff] %v6931_v13  ;;  %v6950_v35 = vmul.f32 0.70710677, %v6931_v13  ;;  %v1032_v52 = vadd.f32 0.05243302, %v1031_v23 }
  0xd5   : > { %v2829_v14 = vmul.f32 %v2828_v51, %v6867_v25  ;;  %v803_v37 = vadd.f32 0.112945676, %v802_v22  ;;  %v6915_v51 = vmin.f32 %v1065_v30, 16.0  ;;  %v834_v17 = vadd.f32 0.18741608, %v833_v44 }
  0xd6   : > { %v2714_v22 = vadd.f32 0.18741608, %v2713_v40  ;;  %v953_v30 = vmul.f32 %v952_v1, %v6869_v27  ;;  %v6958_v44 = vmul.f32 0.5, %v6817_v55  ;;  %v6967_v1 = vmin.f32 %v3065_v24, 16.0  ;;  %v4834_v55 = vld [vmem:[%s11268_s2 + $0x88] sm:$0xff] }
  0xd7   : > { %v2830_v26 = vadd.f32 0.0036580483, %v2829_v14  ;;  %v1067_v4 = vmul.f32 2.1237322e-06, %v6915_v51  ;;  %v804_v14 = vmul.f32 %v803_v37, %v6819_v56 }
  0xd8   : > { %11357 = vst [vmem:[#allocation11_spill] sm:$0xff] %v6958_v44  ;;  %v1033_v44 = vmul.f32 %v1032_v52, %v6879_v43 }
  0xd9   : > { %v2831_v46 = vmul.f32 %v2830_v26, %v6867_v25  ;;  %v6942_v26 = vmul.f32 0.5, %v6769_v34  ;;  %v1068_v36 = vadd.f32 0.00028619796, %v1067_v4  ;;  %v835_v34 = vmul.f32 %v834_v17, %v6842_v6  ;;  %11359 = vst [vmem:[#allocation13_spill] sm:$0xff] %v6967_v1  ;;  %v6979_v17 = vpop.f32.mrf.mxu2 }
  0xda   : > { %v2715_v4 = vmul.f32 %v2714_v22, %v6828_v62 }
  0xdb   : > { %514 = vmatmul.f32.gmra.mxu2 %v6637_v54  ;;  %v793_v54 = vmul.f32 %v792_v7, %v6819_v56  ;;  %v6927_v7 = vmul.f32 0.70710677, %v6897_v20  ;;  %v2832_v48 = vadd.f32 0.05243302, %v2831_v46  ;;  %11355 = vst [vmem:[#allocation9_spill] sm:$0xff] %v6942_v26  ;;  %v1069_v23 = vmul.f32 %v1068_v36, %v6915_v51  ;;  %v6996_v36 = vpop.f32.mrf.mxu1 }
  0xdc   : > { %11360 = vst [vmem:[#allocation14_spill] sm:$0xff] %v6996_v36 }
  0xdd   : > { %v794_v39 = vadd.f32 0.18741608, %v793_v54  ;;  %v914_v54 = vadd.f32 0.18741608, %v913_v50  ;;  %v1145_v37 = vmul.f32 %v6927_v7, %v6927_v7  ;;  %v2833_v46 = vmul.f32 %v2832_v48, %v6867_v25  ;;  %v4835_v50 = vld [vmem:[%s11268_s2 + $0x90] sm:$0xff] }
  0xde   : > { %4991 = vmatpush.msrb.mxu0 %v4835_v50  ;;  %v1070_v62 = vadd.f32 0.0036580483, %v1069_v23 }
  0xdf   : > { %v795_v16 = vmul.f32 %v794_v39, %v6819_v56  ;;  %v805_v39 = vadd.f32 0.4994258, %v804_v14  ;;  %v915_v48 = vmul.f32 %v914_v54, %v6850_v11  ;;  %v6983_v24 = vmin.f32 %v1145_v37, 16.0 }
  0xe0   : > { %4992 = vmatpush.msrb.mxu0 %v4834_v55  ;;  %v2834_v22 = vadd.f32 0.18741608, %v2833_v46  ;;  %v3067_v54 = vmul.f32 2.1237322e-06, %v6967_v1 }
  0xe1   : > { %v796_v40 = vadd.f32 1.1283791, %v795_v16  ;;  %v1185_v16 = vmul.f32 %v6947_v29, %v6947_v29  ;;  %v1147_v26 = vmul.f32 2.1237322e-06, %v6983_v24  ;;  %v916_v55 = vadd.f32 1.1283791, %v915_v48 }
  0xe3   : > { %517 = vmatmul.f32.gmra.mxu2 %v6646_v57  ;;  %v2945_v57 = vmul.f32 %v6905_v32, %v6905_v32 }
  0xe5   : > { %v6944_v28 = vmin.f32 %v2945_v57, 16.0  ;;  %v6965_v57 = vmul.f32 0.5, %v6883_v53  ;;  %v1265_v53 = vmul.f32 %v6950_v35, %v6950_v35 }
  0xe7   : > { %11356 = vst [vmem:[#allocation10_spill] sm:$0xff] %v6944_v28  ;;  %v2947_v14 = vmul.f32 2.1237322e-06, %v6944_v28  ;;  %v7000_v46 = vmin.f32 %v1265_v53, 16.0  ;;  %v3068_v53 = vadd.f32 0.00028619796, %v3067_v54  ;;  %v1071_v54 = vmul.f32 %v1070_v62, %v6915_v51 }
  0xe8   : > { %11358 = vst [vmem:[#allocation12_spill] sm:$0xff] %v6965_v57  ;;  %v4833_v57 = vld [vmem:[%s11268_s2 + $0x80] sm:$0xff] }
  0xe9   : > { %4993 = vmatpush.msrb.mxu0 %v4833_v57  ;;  %v2948_v37 = vadd.f32 0.00028619796, %v2947_v14  ;;  %v1267_v9 = vmul.f32 2.1237322e-06, %v7000_v46  ;;  %v7008_v57 = vmul.f32 0.70710677, %v6996_v36  ;;  %v797_v14 = vmul.f32 %v796_v40, %v6781_v38 }
  0xea   : > { %v7022_v36 = vmul.f32 %v916_v55, %v6806_v49 }
  0xeb   : > { %520 = vmatmul.f32.gmra.mxu2 %v6655_v60  ;;  %v806_v60 = vmul.f32 %v805_v39, %v6819_v56  ;;  %v954_v56 = vadd.f32 0.18741608, %v953_v30  ;;  %v836_v39 = vadd.f32 1.1283791, %v835_v34  ;;  %v6994_v30 = vmul.f32 0.70710677, %v6979_v17 }
  0xec   : > { %v6998_v34 = vmin.f32 %v1185_v16, 16.0  ;;  %v1148_v16 = vadd.f32 0.00028619796, %v1147_v26  ;;  %v2949_v23 = vmul.f32 %v2948_v37, %v6944_v28  ;;  %v7025_v26 = vmul.f32 0.5, %v6907_v33 }
  0xed   : > { %v6985_v50 = vadd.f32 1.0, %v806_v60  ;;  %v2716_v60 = vadd.f32 1.1283791, %v2715_v4  ;;  %v955_v52 = vmul.f32 %v954_v56, %v6869_v27  ;;  %v3185_v4 = vmul.f32 %v6994_v30, %v6994_v30 }
  0xee   : > { %v1187_v13 = vmul.f32 2.1237322e-06, %v6998_v34  ;;  %v7014_v48 = vmul.f32 %v836_v39, %v6803_v47  ;;  %v2835_v56 = vmul.f32 %v2834_v22, %v6867_v25  ;;  %11362 = vst [vmem:[#allocation16_spill] sm:$0xff] %v7025_v26  ;;  %v1268_v39 = vadd.f32 0.00028619796, %v1267_v9 }
  0xef   : > { %6119 = vrcp.f32 %v6985_v50  ;;  %v7019_v20 = vmul.f32 %v2716_v60, %v6790_v41  ;;  %v956_v38 = vadd.f32 1.1283791, %v955_v52  ;;  %v1149_v22 = vmul.f32 %v1148_v16, %v6983_v24 }
  0xf0   : > { %v1188_v47 = vadd.f32 0.00028619796, %v1187_v13  ;;  %v3069_v41 = vmul.f32 %v3068_v53, %v6967_v1  ;;  %v7032_v37 = vmin.f32 %v3185_v4, 16.0  ;;  %v2836_v60 = vadd.f32 1.1283791, %v2835_v56 }
  0xf1   : > { %11361 = vst [vmem:[#allocation15_spill] sm:$0xff] %v7019_v20  ;;  %v2950_v55 = vadd.f32 0.0036580483, %v2949_v23  ;;  %v819_v52 = vand.u32 2147483648, %v6985_v50  ;;  %vm813_vm0 = vweird.f32 %v6985_v50  ;;  %v817_v9 = vand.u32 2147483647, %v6985_v50 }
  0xf2   : > { %11363 = vst [vmem:[#allocation17_spill] sm:$0xff] %v7032_v37  ;;  %v1072_v13 = vadd.f32 0.05243302, %v1071_v54  ;;  %v1189_v16 = vmul.f32 %v1188_v47, %v6998_v34  ;;  %v1269_v53 = vmul.f32 %v1268_v39, %v7000_v46  ;;  %v1150_v56 = vadd.f32 0.0036580483, %v1149_v22 }
  0xf3   : > { %523 = vmatmul.f32.gmra.mxu2 %v6664_v63  ;;  %v1034_v63 = vadd.f32 0.18741608, %v1033_v44  ;;  %v1305_v44 = vmul.f32 %v7008_v57, %v7008_v57  ;;  %v3187_v23 = vmul.f32 2.1237322e-06, %v7032_v37  ;;  %v838_v54 = vmul.f32 3.8918573e-05, %v6842_v6 }
  0xf4   : > { %v7055_v47 = vmul.f32 %v2836_v60, %v6831_v0  ;;  %vm818_vm3 = vcmp.eq.f32.partialorder %v817_v9, 8.507059e+37  ;;  %v2951_v22 = vmul.f32 %v2950_v55, %v6944_v28  ;;  %v1151_v0 = vmul.f32 %v1150_v56, %v6983_v24 }
  0xf5   : > { %v6120_v40 = vpop.eup %6119  ;;  %v1035_v33 = vmul.f32 %v1034_v63, %v6879_v43  ;;  %v7042_v4 = vmin.f32 %v1305_v44, 16.0  ;;  %v3070_v63 = vadd.f32 0.0036580483, %v3069_v41  ;;  %v918_v44 = vmul.f32 3.8918573e-05, %v6850_v11  ;;  %v7059_v41 = vpop.f32.mrf.mxu0 }
  0xf6   : > { %v809_v49 = vmul.f32 %v6120_v40, %v6985_v50  ;;  %vm814_vm1 = vweird.f32 %v6120_v40  ;;  %11366 = vst [vmem:[#allocation18_spill] sm:$0xff] %v7055_v47  ;;  %v3188_v61 = vadd.f32 0.00028619796, %v3187_v23  ;;  %v1073_v55 = vmul.f32 %v1072_v13, %v6915_v51 }
  0xf7   : > { %v1307_v20 = vmul.f32 2.1237322e-06, %v7042_v4  ;;  %vm7049_vm2 = vmor %vm813_vm0, %vm814_vm1  ;;  %11367 = vst [vmem:[#allocation19_spill] sm:$0xff] %v7059_v41  ;;  %v7061_v25 = vadd.f32 1.1283791, %v1035_v33 }
  0xf8   : > { %v810_v62 = vsub.f32 1.0, %v809_v49  ;;  %v7046_v49 = vmul.f32 %v956_v38, %v6837_v3  ;;  %v1190_v3 = vadd.f32 0.0036580483, %v1189_v16  ;;  %v1270_v38 = vadd.f32 0.0036580483, %v1269_v53 }
  0xf9   : > { %v919_v18 = vadd.f32 0.001143296, %v918_v44  ;;  %v1308_v60 = vadd.f32 0.00028619796, %v1307_v20  ;;  %v7069_v16 = vmul.f32 0.70710677, %v7059_v41  ;;  %v3189_v20 = vmul.f32 %v3188_v61, %v7032_v37 }
  0xfa   : > { %v811_v26 = vmul.f32 %v6120_v40, %v810_v62  ;;  %v839_v62 = vadd.f32 0.001143296, %v838_v54  ;;  %v2952_v23 = vadd.f32 0.05243302, %v2951_v22  ;;  %v1271_v50 = vmul.f32 %v1270_v38, %v7000_v46  ;;  %v7081_v22 = vpop.f32.mrf.mxu2 }
  0xfb   : > { %526 = vmatmul.f32.gmra.mxu2 %v6673_v2  ;;  %v820_v2 = vor.u32 1.1754944e-38, %v819_v52  ;;  %v920_v56 = vmul.f32 %v919_v18, %v6850_v11  ;;  %v958_v13 = vmul.f32 3.8918573e-05, %v6869_v27  ;;  %v1152_v54 = vadd.f32 0.05243302, %v1151_v0 }
  0xfc   : > { %v812_v39 = vadd.f32 %v6120_v40, %v811_v26  ;;  %v3071_v26 = vmul.f32 %v3070_v63, %v6967_v1  ;;  %v840_v33 = vmul.f32 %v839_v62, %v6842_v6  ;;  %v2953_v61 = vmul.f32 %v2952_v23, %v6944_v28 }
  0xfd   : > { %v921_v44 = vadd.f32 0.014752088, %v920_v56  ;;  %v959_v18 = vadd.f32 0.001143296, %v958_v13  ;;  %v3190_v0 = vadd.f32 0.0036580483, %v3189_v20  ;;  %v1153_v56 = vmul.f32 %v1152_v54, %v6983_v24 }
  0xfe   : > { %v816_v52 = vsel %vm7049_vm2, %v6120_v40, %v812_v39  ;;  %v1191_v40 = vmul.f32 %v1190_v3, %v6998_v34  ;;  %v3072_v39 = vadd.f32 0.05243302, %v3071_v26  ;;  %v2954_v20 = vadd.f32 0.18741608, %v2953_v61  ;;  %v4864_v54 = vld [vmem:[%s11268_s2 + $0x178] sm:$0xff] }
  0xff   : > { %v821_v9 = vsel %vm818_vm3, %v820_v2, %v816_v52  ;;  %v841_v2 = vadd.f32 0.014752088, %v840_v33  ;;  %v1272_v52 = vadd.f32 0.05243302, %v1271_v50  ;;  %v1074_v33 = vadd.f32 0.18741608, %v1073_v55  ;;  %5091 = vmatpush.msrb.mxu1 %v4864_v54 }
 0x100   : > { %v822_v53 = vmul.f32 %v821_v9, %v797_v14  ;;  %v1309_v14 = vmul.f32 %v1308_v60, %v7042_v4  ;;  %v1192_v62 = vadd.f32 0.05243302, %v1191_v40  ;;  %v922_v9 = vmul.f32 %v921_v44, %v6850_v11  ;;  %v7095_v40 = vpop.f32.mrf.mxu1 }
 0x101   : > { %v842_v38 = vmul.f32 %v841_v2, %v6842_v6  ;;  %v3073_v2 = vmul.f32 %v3072_v39, %v6967_v1  ;;  %11368 = vst [vmem:[#allocation20_spill] sm:$0xff] %v7095_v40  ;;  %v1273_v13 = vmul.f32 %v1272_v52, %v7000_v46  ;;  %v7112_v61 = vmul.f32 0.70710677, %v7095_v40 }
 0x102   : > { %v5980_v63 = vclamps-f32 %v822_v53, 1.0  ;;  %v960_v53 = vmul.f32 %v959_v18, %v6869_v27  ;;  %v1310_v47 = vadd.f32 0.0036580483, %v1309_v14  ;;  %v1193_v55 = vmul.f32 %v1192_v62, %v6998_v34 }
 0x103   : > { %529 = vmatmul.f32.gmra.mxu2 %v6682_v5  ;;  %v1385_v5 = vmul.f32 %v7069_v16, %v7069_v16  ;;  %v843_v60 = vadd.f32 0.112945676, %v842_v38  ;;  %v3191_v14 = vmul.f32 %v3190_v0, %v7032_v37  ;;  %v1154_v62 = vadd.f32 0.18741608, %v1153_v56 }
 0x104   : > { %v4625_v3 = vadd.f32 1.0, %v5980_v63  ;;  %v7090_v63 = vmul.f32 0.70710677, %v7081_v22  ;;  %v961_v39 = vadd.f32 0.014752088, %v960_v53  ;;  %v1311_v38 = vmul.f32 %v1310_v47, %v7042_v4 }
 0x105   : > { %v7093_v23 = vmin.f32 %v1385_v5, 16.0  ;;  %v844_v50 = vmul.f32 %v843_v60, %v6842_v6  ;;  %v3074_v52 = vadd.f32 0.18741608, %v3073_v2  ;;  %v1194_v60 = vadd.f32 0.18741608, %v1193_v55 }
 0x106   : > { %v4721_v26 = vmul.f32 %v4625_v3, %v6921_v59  ;;  %v923_v59 = vadd.f32 0.112945676, %v922_v9  ;;  %v3305_v18 = vmul.f32 %v7090_v63, %v7090_v63  ;;  %v1274_v53 = vadd.f32 0.18741608, %v1273_v13 }
 0x107   : > { %v1387_v44 = vmul.f32 2.1237322e-06, %v7093_v23  ;;  %v845_v5 = vadd.f32 0.4994258, %v844_v50  ;;  %v962_v50 = vmul.f32 %v961_v39, %v6869_v27  ;;  %v7122_v40 = vmul.f32 %v7061_v25, %v6863_v21 }
 0x108   : > { %4881 = vmatmul.f32.vlgmr.msrb.gmra.mxu3 %v4721_v26  ;;  %v924_v3 = vmul.f32 %v923_v59, %v6850_v11  ;;  %v2955_v26 = vmul.f32 %v2954_v20, %v6944_v28  ;;  %v1312_v56 = vadd.f32 0.05243302, %v1311_v38  ;;  %v7124_v2 = vmin.f32 %v3305_v18, 16.0  ;;  %v7145_v18 = vpop.f32.mrf.mxu0 }
 0x109   : > { %v846_v9 = vmul.f32 %v845_v5, %v6842_v6  ;;  %v1388_v59 = vadd.f32 0.00028619796, %v1387_v44  ;;  %v1425_v6 = vmul.f32 %v7112_v61, %v7112_v61  ;;  %v1155_v55 = vmul.f32 %v1154_v62, %v6983_v24  ;;  %11371 = vst [vmem:[#allocation23_spill] sm:$0xff] %v7145_v18 }
 0x10a   : > { %v925_v0 = vadd.f32 0.4994258, %v924_v3  ;;  %11369 = vst [vmem:[#allocation21_spill] sm:$0xff] %v7124_v2  ;;  %v3075_v13 = vmul.f32 %v3074_v52, %v6967_v1  ;;  %v1275_v21 = vmul.f32 %v1274_v53, %v7000_v46  ;;  %v963_v39 = vadd.f32 0.112945676, %v962_v50 }
 0x10b   : > { %532 = vmatmul.f32.gmra.mxu2 %v6691_v8  ;;  %v1075_v8 = vmul.f32 %v1074_v33, %v6915_v51  ;;  %v3192_v33 = vadd.f32 0.05243302, %v3191_v14  ;;  %v7117_v47 = vadd.f32 1.0, %v846_v9  ;;  %v2956_v14 = vadd.f32 1.1283791, %v2955_v26 }
 0x10c   : > { %v926_v54 = vmul.f32 %v925_v0, %v6850_v11  ;;  %v1195_v11 = vmul.f32 %v1194_v60, %v6998_v34  ;;  %v7137_v44 = vmul.f32 0.5, %v6979_v17  ;;  %v1389_v3 = vmul.f32 %v1388_v59, %v7093_v23 }
 0x10d   : > { %v1076_v20 = vadd.f32 1.1283791, %v1075_v8  ;;  %6121 = vrcp.f32 %v7117_v47  ;;  %v3193_v5 = vmul.f32 %v3192_v33, %v7032_v37  ;;  %v1313_v8 = vmul.f32 %v1312_v56, %v7042_v4  ;;  %v7166_v56 = vpop.f32.mrf.mxu2 }
 0x10e   : > { %v7134_v25 = vadd.f32 1.0, %v926_v54  ;;  %11370 = vst [vmem:[#allocation22_spill] sm:$0xff] %v7137_v44  ;;  %v3307_v38 = vmul.f32 2.1237322e-06, %v7124_v2  ;;  %v1156_v52 = vadd.f32 1.1283791, %v1155_v55  ;;  %v964_v53 = vmul.f32 %v963_v39, %v6869_v27 }
 0x10f   : > { %v7149_v62 = vmul.f32 %v1076_v20, %v6895_v19  ;;  %v3076_v17 = vadd.f32 1.1283791, %v3075_v13  ;;  %v7152_v9 = vmul.f32 0.5, %v7081_v22  ;;  %v7154_v0 = vadd.f32 1.1283791, %v1195_v11 }
 0x110   : > { %6123 = vrcp.f32 %v7134_v25  ;;  %v7156_v26 = vadd.f32 1.1283791, %v1275_v21  ;;  %v7161_v33 = vmul.f32 %v2956_v14, %v6905_v32  ;;  %v3194_v59 = vadd.f32 0.18741608, %v3193_v5  ;;  %v4863_v21 = vld [vmem:[%s11268_s2 + $0x170] sm:$0xff] }
 0x111   : > { %11372 = vst [vmem:[#allocation24_spill] sm:$0xff] %v7152_v9  ;;  %v1390_v19 = vadd.f32 0.0036580483, %v1389_v3  ;;  %v7164_v54 = vmul.f32 0.70710677, %v7145_v18  ;;  %v859_v55 = vand.u32 2147483648, %v7117_v47  ;;  %v7171_v13 = vmul.f32 %v1156_v52, %v6927_v7  ;;  %5092 = vmatpush.msrb.mxu1 %v4863_v21 }
 0x112   : > { %11373 = vst [vmem:[#allocation25_spill] sm:$0xff] %v7161_v33  ;;  %v1314_v22 = vadd.f32 0.18741608, %v1313_v8  ;;  %v7174_v11 = vmul.f32 %v3076_v17, %v6918_v45  ;;  %v965_v32 = vadd.f32 0.4994258, %v964_v53  ;;  %vm853_vm4 = vweird.f32 %v7117_v47 }
 0x113   : > { %535 = vmatmul.f32.gmra.mxu2 %v6697_v10  ;;  %v7143_v10 = vmin.f32 %v1425_v6, 16.0  ;;  %v6122_v50 = vpop.eup %6121  ;;  %v3308_v6 = vadd.f32 0.00028619796, %v3307_v38  ;;  %v1038_v39 = vmul.f32 3.8918573e-05, %v6879_v43  ;;  %v1505_v45 = vmul.f32 %v7164_v54, %v7164_v54 }
 0x114   : > { %v849_v20 = vmul.f32 %v6122_v50, %v7117_v47  ;;  %11374 = vst [vmem:[#allocation26_spill] sm:$0xff] %v7174_v11  ;;  %vm854_vm5 = vweird.f32 %v6122_v50  ;;  %v857_v7 = vand.u32 2147483647, %v7117_v47  ;;  %v7186_v8 = vmul.f32 0.70710677, %v7166_v56 }
 0x115   : > { %v1427_v60 = vmul.f32 2.1237322e-06, %v7143_v10  ;;  %v860_v17 = vor.u32 1.1754944e-38, %v859_v55  ;;  %v966_v53 = vmul.f32 %v965_v32, %v6869_v27  ;;  %vm7191_vm6 = vmor %vm853_vm4, %vm854_vm5  ;;  %vm933_vm7 = vweird.f32 %v7134_v25  ;;  %v7203_v32 = vpop.f32.mrf.mxu1 }
 0x116   : > { %v6124_v14 = vpop.eup %6123  ;;  %v850_v5 = vsub.f32 1.0, %v849_v20  ;;  %vm858_vm9 = vcmp.eq.f32.partialorder %v857_v7, 8.507059e+37  ;;  %v3195_v55 = vmul.f32 %v3194_v59, %v7032_v37  ;;  %v1391_v44 = vmul.f32 %v1390_v19, %v7093_v23  ;;  %11377 = vst [vmem:[#allocation27_spill] sm:$0xff] %v7203_v32 }
 0x117   : > { %v1428_v3 = vadd.f32 0.00028619796, %v1427_v60  ;;  %v929_v38 = vmul.f32 %v6124_v14, %v7134_v25  ;;  %vm934_vm8 = vweird.f32 %v6124_v14  ;;  %v937_v60 = vand.u32 2147483647, %v7134_v25 }
 0x118   : > { %v851_v52 = vmul.f32 %v6122_v50, %v850_v5  ;;  %v7197_v9 = vadd.f32 1.0, %v966_v53  ;;  %v1039_v5 = vadd.f32 0.001143296, %v1038_v39  ;;  %v7201_v27 = vmin.f32 %v1505_v45, 16.0  ;;  %vm7209_vm10 = vmor %vm933_vm7, %vm934_vm8 }
 0x119   : > { %v930_v47 = vsub.f32 1.0, %v929_v38  ;;  %v3425_v38 = vmul.f32 %v7186_v8, %v7186_v8  ;;  %v3309_v59 = vmul.f32 %v3308_v6, %v7124_v2  ;;  %vm938_vm11 = vcmp.eq.f32.partialorder %v937_v60, 8.507059e+37 }
 0x11a   : > { %v852_v21 = vadd.f32 %v6122_v50, %v851_v52  ;;  %6125 = vrcp.f32 %v7197_v9  ;;  %v7215_v52 = vpop.f32.mrf.mxu2  ;;  %v1507_v53 = vmul.f32 2.1237322e-06, %v7201_v27  ;;  %v7230_v6 = vmul.f32 %v7156_v26, %v6950_v35 }
 0x11b   : > { %538 = vmatmul.f32.gmra.mxu2 %v6703_v12  ;;  %v939_v12 = vand.u32 2147483648, %v7134_v25  ;;  %v931_v11 = vmul.f32 %v6124_v14, %v930_v47  ;;  %v7226_v47 = vmul.f32 %v7154_v0, %v6947_v29  ;;  %v7236_v60 = vmin.f32 %v3425_v38, 16.0 }
 0x11c   : > { %v856_v25 = vsel %vm7191_vm6, %v6122_v50, %v852_v21  ;;  %v7220_v50 = vmul.f32 0.70710677, %v7203_v32  ;;  %v3310_v29 = vadd.f32 0.0036580483, %v3309_v59  ;;  %v1508_v35 = vadd.f32 0.00028619796, %v1507_v53  ;;  %v7250_v59 = vpop.f32.mrf.mxu3 }
 0x11d   : > { %v940_v39 = vor.u32 1.1754944e-38, %v939_v12  ;;  %v861_v19 = vsel %vm858_vm9, %v860_v17, %v856_v25  ;;  %v932_v45 = vadd.f32 %v6124_v14, %v931_v11  ;;  %v1040_v12 = vmul.f32 %v1039_v5, %v6879_v43  ;;  %11380 = vst [vmem:[#allocation28_spill] sm:$0xff] %v7236_v60 }
 0x11e   : > { %v862_v20 = vmul.f32 %v861_v19, %v7014_v48  ;;  %v1315_v11 = vmul.f32 %v1314_v22, %v7042_v4  ;;  %v1429_v17 = vmul.f32 %v1428_v3, %v7143_v10  ;;  %v7238_v5 = vadd.f32 1.1283791, %v3195_v55 }
 0x11f   : > { %v1392_v25 = vadd.f32 0.05243302, %v1391_v44  ;;  %v1545_v26 = vmul.f32 %v7220_v50, %v7220_v50  ;;  %v1041_v7 = vadd.f32 0.014752088, %v1040_v12  ;;  %v3427_v55 = vmul.f32 2.1237322e-06, %v7236_v60 }
 0x120   : > { %v5981_v48 = vclamps-f32 %v862_v20, 1.0  ;;  %v6126_v19 = vpop.eup %6125  ;;  %vm973_vm12 = vweird.f32 %v7197_v9  ;;  %v3311_v20 = vmul.f32 %v3310_v29, %v7124_v2  ;;  %v1430_v12 = vadd.f32 0.0036580483, %v1429_v17 }
 0x121   : > { %v969_v38 = vmul.f32 %v6126_v19, %v7197_v9  ;;  %vm974_vm13 = vweird.f32 %v6126_v19 }
 0x122   : > { %v4626_v22 = vadd.f32 1.0, %v5981_v48  ;;  %v7258_v48 = vmin.f32 %v1545_v26, 16.0  ;;  %vm7263_vm14 = vmor %vm973_vm12, %vm974_vm13 }
 0x123   : > { %541 = vmatmul.f32.gmra.mxu2 %v6712_v15  ;;  %v936_v15 = vsel %vm7209_vm10, %v6124_v14, %v932_v45  ;;  %v596_v14 = vmul.f32 0.5, %v6792_v42  ;;  %v970_v53 = vsub.f32 1.0, %v969_v38  ;;  %v977_v42 = vand.u32 2147483647, %v7197_v9 }
 0x124   : > { %v941_v21 = vsel %vm938_vm11, %v940_v39, %v936_v15  ;;  %v1078_v39 = vmul.f32 3.8918573e-05, %v6915_v51  ;;  %v4722_v44 = vmul.f32 %v4626_v22, %v6936_v31  ;;  %v7255_v15 = vmul.f32 0.70710677, %v7250_v59 }
 0x125   : > { %v942_v0 = vmul.f32 %v941_v21, %v7022_v36  ;;  %v979_v36 = vand.u32 2147483648, %v7197_v9  ;;  %v1042_v31 = vmul.f32 %v1041_v7, %v6879_v43  ;;  %v3428_v38 = vadd.f32 0.00028619796, %v3427_v55  ;;  %v7272_v9 = vpop.f32.mrf.mxu0 }
 0x126   : > { %4994 = vmatmul.f32.vlgmr.msrb.gmra.mxu0 %v4722_v44  ;;  %v1079_v22 = vadd.f32 0.001143296, %v1078_v39  ;;  %v1547_v44 = vmul.f32 2.1237322e-06, %v7258_v48  ;;  %vm978_vm15 = vcmp.eq.f32.partialorder %v977_v42, 8.507059e+37  ;;  %11383 = vst [vmem:[#allocation29_spill] sm:$0xff] %v7272_v9 }
 0x127   : > { %v5983_v3 = vclamps-f32 %v942_v0, 1.0  ;;  %v971_v0 = vmul.f32 %v6126_v19, %v970_v53  ;;  %v980_v17 = vor.u32 1.1754944e-38, %v979_v36  ;;  %v1043_v29 = vadd.f32 0.112945676, %v1042_v31  ;;  %v7279_v31 = vpop.f32.mrf.mxu2 }
 0x128   : > { %v1080_v7 = vmul.f32 %v1079_v22, %v6915_v51  ;;  %v1158_v55 = vmul.f32 3.8918573e-05, %v6983_v24  ;;  %v1316_v36 = vadd.f32 1.1283791, %v1315_v11  ;;  %v1431_v53 = vmul.f32 %v1430_v12, %v7143_v10 }
 0x129   : > { %v4628_v45 = vadd.f32 1.0, %v5983_v3  ;;  %v1509_v3 = vmul.f32 %v1508_v35, %v7201_v27  ;;  %v972_v26 = vadd.f32 %v6126_v19, %v971_v0  ;;  %v2745_v35 = vmul.f32 %v7255_v15, %v7255_v15 }
 0x12a   : > { %v1044_v39 = vmul.f32 %v1043_v29, %v6879_v43  ;;  %v1081_v37 = vadd.f32 0.014752088, %v1080_v7  ;;  %v3429_v1 = vmul.f32 %v3428_v38, %v7236_v60  ;;  %v1548_v29 = vadd.f32 0.00028619796, %v1547_v44 }
 0x12b   : > { %v4724_v21 = vmul.f32 %v4628_v45, %v596_v14  ;;  %v1393_v14 = vmul.f32 %v1392_v25, %v7093_v23  ;;  %v3312_v45 = vadd.f32 0.05243302, %v3311_v20  ;;  %v976_v42 = vsel %vm7263_vm14, %v6126_v19, %v972_v26 }
 0x12c   : > { %v1510_v25 = vadd.f32 0.0036580483, %v1509_v3  ;;  %v981_v0 = vsel %vm978_vm15, %v980_v17, %v976_v42  ;;  %v1045_v22 = vadd.f32 0.4994258, %v1044_v39  ;;  %v7284_v28 = vmul.f32 0.70710677, %v7272_v9 }
 0x12d   : > { %4884 = vmatmul.f32.gmra.mxu3 %v4724_v21  ;;  %v6377_v21 = vld [vmem:[%s6559_s13 + $0x80] sm:$0xff]  ;;  %v982_v11 = vmul.f32 %v981_v0, %v7046_v49  ;;  %v1394_v20 = vadd.f32 0.18741608, %v1393_v14  ;;  %v7287_v12 = vmin.f32 %v2745_v35, 16.0  ;;  %v1159_v19 = vadd.f32 0.001143296, %v1158_v55 }
 0x12e   : > { %544 = vmatmul.f32.gmra.mxu2 %v6377_v21  ;;  %v1046_v33 = vmul.f32 %v1045_v22, %v6879_v43  ;;  %v3313_v26 = vmul.f32 %v3312_v45, %v7124_v2  ;;  %v1432_v3 = vadd.f32 0.05243302, %v1431_v53  ;;  %v597_v17 = vmul.f32 0.5, %v6823_v58 }
 0x12f   : > { %11384 = vst [vmem:[#allocation30_spill] sm:$0xff] %v7287_v12  ;;  %v5984_v7 = vclamps-f32 %v982_v11, 1.0  ;;  %v1511_v38 = vmul.f32 %v1510_v25, %v7201_v27  ;;  %v2747_v44 = vmul.f32 2.1237322e-06, %v7287_v12  ;;  %v1082_v49 = vmul.f32 %v1081_v37, %v6915_v51 }
 0x130   : > { %v7294_v39 = vadd.f32 1.0, %v1046_v33  ;;  %v3430_v14 = vadd.f32 0.0036580483, %v3429_v1  ;;  %v1549_v35 = vmul.f32 %v1548_v29, %v7258_v48  ;;  %v1625_v43 = vmul.f32 %v7284_v28, %v7284_v28 }
 0x131   : > { %v4629_v55 = vadd.f32 1.0, %v5984_v7  ;;  %v1395_v45 = vmul.f32 %v1394_v20, %v7093_v23  ;;  %v1160_v58 = vmul.f32 %v1159_v19, %v6983_v24  ;;  %v1198_v53 = vmul.f32 3.8918573e-05, %v6998_v34  ;;  %v4862_v7 = vld [vmem:[%s11268_s2 + $0x168] sm:$0xff] }
 0x132   : > { %6127 = vrcp.f32 %v7294_v39  ;;  %v3314_v42 = vadd.f32 0.18741608, %v3313_v26  ;;  %v1433_v21 = vmul.f32 %v1432_v3, %v7143_v10  ;;  %v7306_v37 = vmul.f32 0.5, %v7166_v56  ;;  %5093 = vmatpush.msrb.mxu1 %v4862_v7 }
 0x133   : > { %v4725_v1 = vmul.f32 %v4629_v55, %v597_v17  ;;  %v7310_v25 = vmul.f32 %v7238_v5, %v6994_v30  ;;  %v7313_v0 = vmul.f32 %v1316_v36, %v7008_v57  ;;  %v2748_v22 = vadd.f32 0.00028619796, %v2747_v44 }
 0x134   : > { %11385 = vst [vmem:[#allocation31_spill] sm:$0xff] %v7306_v37  ;;  %v1083_v29 = vadd.f32 0.112945676, %v1082_v49  ;;  %v1512_v11 = vadd.f32 0.05243302, %v1511_v38  ;;  %v3431_v20 = vmul.f32 %v3430_v14, %v7236_v60  ;;  %v7316_v19 = vmin.f32 %v1625_v43, 16.0 }
 0x135   : > { %11386 = vst [vmem:[#allocation32_spill] sm:$0xff] %v7310_v25  ;;  %v1550_v33 = vadd.f32 0.0036580483, %v1549_v35  ;;  %4997 = vmatmul.f32.gmra.mxu0 %v4725_v1  ;;  %v1396_v26 = vadd.f32 1.1283791, %v1395_v45  ;;  %v3315_v30 = vmul.f32 %v3314_v42, %v7124_v2  ;;  %v7321_v57 = vmul.f32 0.5, %v7250_v59 }
 0x136   : > { %v1084_v56 = vmul.f32 %v1083_v29, %v6915_v51  ;;  %v1161_v3 = vadd.f32 0.014752088, %v1160_v58  ;;  %v1199_v17 = vadd.f32 0.001143296, %v1198_v53  ;;  %v1434_v5 = vadd.f32 0.18741608, %v1433_v21  ;;  %v7335_v58 = vpop.f32.mrf.mxu1 }
 0x137   : > { %11387 = vst [vmem:[#allocation33_spill] sm:$0xff] %v7321_v57  ;;  %v1627_v36 = vmul.f32 2.1237322e-06, %v7316_v19  ;;  %v2749_v44 = vmul.f32 %v2748_v22, %v7287_v12  ;;  %v7329_v49 = vmul.f32 0.70710677, %v7215_v52  ;;  %v1513_v43 = vmul.f32 %v1512_v11, %v7201_v27 }
 0x138   : > { %v6128_v38 = vpop.eup %6127  ;;  %v1085_v14 = vadd.f32 0.4994258, %v1084_v56  ;;  %v1162_v35 = vmul.f32 %v1161_v3, %v6983_v24  ;;  %v3432_v59 = vadd.f32 0.05243302, %v3431_v20  ;;  %v1551_v55 = vmul.f32 %v1550_v33, %v7258_v48  ;;  %11388 = vst [vmem:[#allocation34_spill] sm:$0xff] %v7335_v58 }
 0x139   : > { %v1049_v45 = vmul.f32 %v6128_v38, %v7294_v39  ;;  %vm1053_vm0 = vweird.f32 %v7294_v39  ;;  %v1059_v53 = vand.u32 2147483648, %v7294_v39  ;;  %v1200_v21 = vmul.f32 %v1199_v17, %v6998_v34 }
 0x13a   : > { %v1086_v42 = vmul.f32 %v1085_v14, %v6915_v51  ;;  %vm1054_vm1 = vweird.f32 %v6128_v38  ;;  %v1057_v22 = vand.u32 2147483647, %v7294_v39  ;;  %v1163_v29 = vadd.f32 0.112945676, %v1162_v35 }
 0x13b   : > { %v1050_v1 = vsub.f32 1.0, %v1049_v45  ;;  %v2750_v11 = vadd.f32 0.0036580483, %v2749_v44  ;;  %v1628_v20 = vadd.f32 0.00028619796, %v1627_v36  ;;  %v3545_v33 = vmul.f32 %v7329_v49, %v7329_v49  ;;  %vm7353_vm2 = vmor %vm1053_vm0, %vm1054_vm1  ;;  %v7358_v45 = vpop.f32.mrf.mxu3 }
 0x13c   : > { %v7344_v56 = vadd.f32 1.0, %v1086_v42  ;;  %v1435_v3 = vmul.f32 %v1434_v5, %v7143_v10  ;;  %v1514_v7 = vadd.f32 0.18741608, %v1513_v43  ;;  %v7348_v37 = vmul.f32 0.70710677, %v7335_v58 }
 0x13d   : > { %v1051_v51 = vmul.f32 %v6128_v38, %v1050_v1  ;;  %v3433_v17 = vmul.f32 %v3432_v59, %v7236_v60  ;;  %v1060_v36 = vor.u32 1.1754944e-38, %v1059_v53  ;;  %v1201_v44 = vadd.f32 0.014752088, %v1200_v21 }
 0x13e   : > { %6129 = vrcp.f32 %v7344_v56  ;;  %v1552_v35 = vadd.f32 0.05243302, %v1551_v55  ;;  %vm1058_vm3 = vcmp.eq.f32.partialorder %v1057_v22, 8.507059e+37  ;;  %v1164_v43 = vmul.f32 %v1163_v29, %v6983_v24 }
 0x13f   : > { %v1052_v5 = vadd.f32 %v6128_v38, %v1051_v51  ;;  %v2751_v42 = vmul.f32 %v2750_v11, %v7287_v12  ;;  %v1629_v59 = vmul.f32 %v1628_v20, %v7316_v19  ;;  %v7363_v39 = vmin.f32 %v3545_v33, 16.0 }
 0x140   : > { %v7366_v1 = vmul.f32 0.70710677, %v7358_v45  ;;  %v7369_v53 = vmul.f32 %v1396_v26, %v7069_v16  ;;  %v3316_v55 = vadd.f32 1.1283791, %v3315_v30  ;;  %v1665_v21 = vmul.f32 %v7348_v37, %v7348_v37  ;;  %v7379_v26 = vpop.f32.mrf.mxu2  ;;  %v6378_v30 = vld [vmem:[%s6559_s13 + $0x88] sm:$0xff] }
 0x141   : > { %11391 = vst [vmem:[#allocation35_spill] sm:$0xff] %v7363_v39  ;;  %v1056_v22 = vsel %vm7353_vm2, %v6128_v38, %v1052_v5  ;;  %v1436_v29 = vadd.f32 1.1283791, %v1435_v3  ;;  %v1515_v11 = vmul.f32 %v1514_v7, %v7201_v27  ;;  %v1202_v33 = vmul.f32 %v1201_v44, %v6998_v34  ;;  %547 = vmatmul.f32.gmra.mxu2 %v6378_v30 }
 0x142   : > { %v1061_v20 = vsel %vm1058_vm3, %v1060_v36, %v1056_v22  ;;  %v3434_v51 = vadd.f32 0.18741608, %v3433_v17  ;;  %v1553_v25 = vmul.f32 %v1552_v35, %v7258_v48  ;;  %v1165_v16 = vadd.f32 0.4994258, %v1164_v43  ;;  %v7387_v17 = vpop.f32.mrf.mxu0  ;;  %v11392_v36 = vld [vmem:[#allocation3_spill] sm:$0xff] }
 0x143   : > { %v1062_v57 = vmul.f32 %v1061_v20, %v7122_v40  ;;  %v2752_v58 = vadd.f32 0.05243302, %v2751_v42  ;;  %v1630_v14 = vadd.f32 0.0036580483, %v1629_v59  ;;  %v3547_v38 = vmul.f32 2.1237322e-06, %v7363_v39 }
 0x144   : > { %v6130_v2 = vpop.eup %6129  ;;  %v2865_v3 = vmul.f32 %v7366_v1, %v7366_v1  ;;  %v7385_v7 = vmin.f32 %v1665_v21, 16.0  ;;  %v599_v44 = vmul.f32 0.5, %v11392_v36  ;;  %vm1093_vm4 = vweird.f32 %v7344_v56 }
 0x145   : > { %v5986_v40 = vclamps-f32 %v1062_v57, 1.0  ;;  %v1089_v35 = vmul.f32 %v6130_v2, %v7344_v56  ;;  %v1099_v5 = vand.u32 2147483648, %v7344_v56  ;;  %v1166_v43 = vmul.f32 %v1165_v16, %v6983_v24 }
 0x146   : > { %v1203_v42 = vadd.f32 0.112945676, %v1202_v33  ;;  %vm1094_vm5 = vweird.f32 %v6130_v2  ;;  %v1097_v21 = vand.u32 2147483647, %v7344_v56  ;;  %v1631_v20 = vmul.f32 %v1630_v14, %v7316_v19 }
 0x147   : > { %v4631_v59 = vadd.f32 1.0, %v5986_v40  ;;  %v1090_v22 = vsub.f32 1.0, %v1089_v35  ;;  %v3548_v30 = vadd.f32 0.00028619796, %v3547_v38  ;;  %v7397_v36 = vmul.f32 0.70710677, %v7387_v17  ;;  %vm7407_vm6 = vmor %vm1093_vm4, %vm1094_vm5 }
 0x148   : > { %v7399_v57 = vadd.f32 1.0, %v1166_v43  ;;  %v1554_v9 = vadd.f32 0.18741608, %v1553_v25  ;;  %v1667_v32 = vmul.f32 2.1237322e-06, %v7385_v7  ;;  %v2753_v24 = vmul.f32 %v2752_v58, %v7287_v12 }
 0x149   : > { %v4727_v18 = vmul.f32 %v4631_v59, %v599_v44  ;;  %v1091_v41 = vmul.f32 %v6130_v2, %v1090_v22  ;;  %v7403_v33 = vmin.f32 %v2865_v3, 16.0  ;;  %v1100_v14 = vor.u32 1.1754944e-38, %v1099_v5 }
 0x14a   : > { %6131 = vrcp.f32 %v7399_v57  ;;  %vm1098_vm7 = vcmp.eq.f32.partialorder %v1097_v21, 8.507059e+37  ;;  %v1204_v25 = vmul.f32 %v1203_v42, %v6998_v34  ;;  %v1278_v44 = vmul.f32 3.8918573e-05, %v7000_v46 }
 0x14b   : > { %11393 = vst [vmem:[#allocation3_spill] sm:$0xff] %v7403_v33  ;;  %4887 = vmatmul.f32.gmra.mxu3 %v4727_v18  ;;  %v1092_v38 = vadd.f32 %v6130_v2, %v1091_v41  ;;  %v1632_v40 = vadd.f32 0.05243302, %v1631_v20  ;;  %v3549_v58 = vmul.f32 %v3548_v30, %v7363_v39  ;;  %v2867_v3 = vmul.f32 2.1237322e-06, %v7403_v33 }
 0x14c   : > { %v1745_v56 = vmul.f32 %v7397_v36, %v7397_v36  ;;  %v7419_v35 = vmul.f32 %v3316_v55, %v7090_v63  ;;  %v7422_v5 = vmul.f32 %v1436_v29, %v7112_v61  ;;  %v1668_v41 = vadd.f32 0.00028619796, %v1667_v32  ;;  %v4861_v63 = vld [vmem:[%s11268_s2 + $0x160] sm:$0xff] }
 0x14d   : > { %v1096_v18 = vsel %vm7407_vm6, %v6130_v2, %v1092_v38  ;;  %v1516_v43 = vadd.f32 1.1283791, %v1515_v11  ;;  %v3435_v42 = vmul.f32 %v3434_v51, %v7236_v60  ;;  %v2754_v59 = vadd.f32 0.18741608, %v2753_v24  ;;  %5094 = vmatpush.msrb.mxu1 %v4861_v63  ;;  %v11397_v24 = vld [vmem:[#allocation5_spill] sm:$0xff] }
 0x14e   : > { %11396 = vst [vmem:[#allocation36_spill] sm:$0xff] %v7419_v35  ;;  %v1101_v22 = vsel %vm1098_vm7, %v1100_v14, %v1096_v18  ;;  %v1555_v21 = vmul.f32 %v1554_v9, %v7258_v48  ;;  %v1205_v30 = vadd.f32 0.4994258, %v1204_v25  ;;  %v1279_v61 = vadd.f32 0.001143296, %v1278_v44 }
 0x14f   : > { %v1102_v20 = vmul.f32 %v1101_v22, %v7149_v62  ;;  %v1633_v32 = vmul.f32 %v1632_v40, %v7316_v19  ;;  %v3550_v29 = vadd.f32 0.0036580483, %v3549_v58  ;;  %v2868_v2 = vadd.f32 0.00028619796, %v2867_v3 }
 0x150   : > { %v6132_v55 = vpop.eup %6131  ;;  %v7433_v11 = vmin.f32 %v1745_v56, 16.0  ;;  %v1669_v51 = vmul.f32 %v1668_v41, %v7385_v7  ;;  %v600_v9 = vmul.f32 0.5, %v11397_v24  ;;  %vm1173_vm8 = vweird.f32 %v7399_v57 }
 0x151   : > { %v5987_v16 = vclamps-f32 %v1102_v20, 1.0  ;;  %v1169_v62 = vmul.f32 %v6132_v55, %v7399_v57  ;;  %v1177_v14 = vand.u32 2147483647, %v7399_v57  ;;  %v1179_v38 = vand.u32 2147483648, %v7399_v57 }
 0x152   : > { %v1206_v25 = vmul.f32 %v1205_v30, %v6998_v34  ;;  %vm1174_vm9 = vweird.f32 %v6132_v55  ;;  %v1280_v58 = vmul.f32 %v1279_v61, %v7000_v46  ;;  %v3436_v3 = vadd.f32 1.1283791, %v3435_v42 }
 0x153   : > { %v4632_v44 = vadd.f32 1.0, %v5987_v16  ;;  %v1170_v40 = vsub.f32 1.0, %v1169_v62  ;;  %v2869_v56 = vmul.f32 %v2868_v2, %v7403_v33  ;;  %v1747_v41 = vmul.f32 2.1237322e-06, %v7433_v11  ;;  %vm7450_vm10 = vmor %vm1173_vm8, %vm1174_vm9  ;;  %v7456_v2 = vpop.f32.mrf.mxu1 }
 0x154   : > { %v7445_v18 = vadd.f32 1.0, %v1206_v25  ;;  %v1556_v22 = vadd.f32 1.1283791, %v1555_v21  ;;  %v1281_v24 = vadd.f32 0.014752088, %v1280_v58  ;;  %v2755_v35 = vmul.f32 %v2754_v59, %v7287_v12 }
 0x155   : > { %v4728_v20 = vmul.f32 %v4632_v44, %v600_v9  ;;  %v1171_v63 = vmul.f32 %v6132_v55, %v1170_v40  ;;  %v1634_v60 = vadd.f32 0.18741608, %v1633_v32  ;;  %v1180_v42 = vor.u32 1.1754944e-38, %v1179_v38 }
 0x156   : > { %6133 = vrcp.f32 %v7445_v18  ;;  %v3551_v30 = vmul.f32 %v3550_v29, %v7363_v39  ;;  %v1670_v61 = vadd.f32 0.0036580483, %v1669_v51  ;;  %vm1178_vm11 = vcmp.eq.f32.partialorder %v1177_v14, 8.507059e+37 }
 0x157   : > { %5000 = vmatmul.f32.gmra.mxu0 %v4728_v20  ;;  %v1172_v21 = vadd.f32 %v6132_v55, %v1171_v63  ;;  %v7459_v59 = vmul.f32 %v1516_v43, %v7164_v54  ;;  %v2870_v32 = vadd.f32 0.0036580483, %v2869_v56  ;;  %v1748_v57 = vadd.f32 0.00028619796, %v1747_v41 }
 0x158   : > { %v7462_v9 = vmul.f32 0.70710677, %v7279_v31  ;;  %v7465_v16 = vmul.f32 %v3436_v3, %v7186_v8  ;;  %v7468_v62 = vmul.f32 %v1556_v22, %v7220_v50  ;;  %v1282_v51 = vmul.f32 %v1281_v24, %v7000_v46  ;;  %v7486_v3 = vpop.f32.mrf.mxu3 }
 0x159   : > { %v1176_v29 = vsel %vm7450_vm10, %v6132_v55, %v1172_v21  ;;  %v2756_v14 = vadd.f32 1.1283791, %v2755_v35  ;;  %v7474_v54 = vmul.f32 0.5, %v7215_v52  ;;  %v7477_v43 = vmul.f32 0.70710677, %v7456_v2  ;;  %v7501_v21 = vpop.f32.mrf.mxu2 }
 0x15a   : > { %11400 = vst [vmem:[#allocation5_spill] sm:$0xff] %v7465_v16  ;;  %v1181_v38 = vsel %vm1178_vm11, %v1180_v42, %v1176_v29  ;;  %v1635_v25 = vmul.f32 %v1634_v60, %v7316_v19  ;;  %v3552_v8 = vadd.f32 0.05243302, %v3551_v30  ;;  %v1283_v50 = vadd.f32 0.112945676, %v1282_v51  ;;  %v7491_v60 = vpop.f32.mrf.mxu0 }
 0x15b   : > { %11401 = vst [vmem:[#allocation37_spill] sm:$0xff] %v7474_v54  ;;  %v1182_v44 = vmul.f32 %v1181_v38, %v7171_v13  ;;  %v1671_v58 = vmul.f32 %v1670_v61, %v7385_v7  ;;  %v2871_v55 = vmul.f32 %v2870_v32, %v7403_v33  ;;  %v1749_v35 = vmul.f32 %v1748_v57, %v7433_v11  ;;  %v11402_v13 = vld [vmem:[#allocation6_spill] sm:$0xff]  ;;  %v6379_v32 = vld [vmem:[%s6559_s13 + $0x90] sm:$0xff] }
 0x15c   : > { %v6134_v40 = vpop.eup %6133  ;;  %v3665_v52 = vmul.f32 %v7462_v9, %v7462_v9  ;;  %v7489_v56 = vmul.f32 0.70710677, %v7486_v3  ;;  %v602_v41 = vmul.f32 0.5, %v11402_v13  ;;  %v1785_v63 = vmul.f32 %v7477_v43, %v7477_v43  ;;  %550 = vmatmul.f32.gmra.mxu2 %v6379_v32 }
 0x15d   : > { %v5989_v22 = vclamps-f32 %v1182_v44, 1.0  ;;  %v1209_v20 = vmul.f32 %v6134_v40, %v7445_v18  ;;  %vm1213_vm12 = vweird.f32 %v7445_v18  ;;  %v1219_v24 = vand.u32 2147483648, %v7445_v18 }
 0x15e   : > { %v1284_v34 = vmul.f32 %v1283_v50, %v7000_v46  ;;  %vm1214_vm13 = vweird.f32 %v6134_v40  ;;  %v1217_v61 = vand.u32 2147483647, %v7445_v18  ;;  %v3553_v57 = vmul.f32 %v3552_v8, %v7363_v39 }
 0x15f   : > { %v4634_v42 = vadd.f32 1.0, %v5989_v22  ;;  %v1210_v30 = vsub.f32 1.0, %v1209_v20  ;;  %v7505_v29 = vmin.f32 %v3665_v52, 16.0  ;;  %v7508_v51 = vmul.f32 0.70710677, %v7491_v60  ;;  %vm7515_vm14 = vmor %vm1213_vm12, %vm1214_vm13 }
 0x160   : > { %v1285_v38 = vadd.f32 0.4994258, %v1284_v34  ;;  %v1672_v44 = vadd.f32 0.05243302, %v1671_v58  ;;  %v1750_v13 = vadd.f32 0.0036580483, %v1749_v35  ;;  %v2985_v54 = vmul.f32 %v7489_v56, %v7489_v56 }
 0x161   : > { %11403 = vst [vmem:[#allocation6_spill] sm:$0xff] %v7505_v29  ;;  %v4730_v50 = vmul.f32 %v4634_v42, %v602_v41  ;;  %v1211_v22 = vmul.f32 %v6134_v40, %v1210_v30  ;;  %v2872_v20 = vadd.f32 0.05243302, %v2871_v55  ;;  %v1220_v8 = vor.u32 1.1754944e-38, %v1219_v24 }
 0x162   : > { %v1286_v52 = vmul.f32 %v1285_v38, %v7000_v46  ;;  %v7520_v16 = vmin.f32 %v1785_v63, 16.0  ;;  %vm1218_vm15 = vcmp.eq.f32.partialorder %v1217_v61, 8.507059e+37  ;;  %v1318_v55 = vmul.f32 3.8918573e-05, %v7042_v4 }
 0x163   : > { %4890 = vmatmul.f32.gmra.mxu3 %v4730_v50  ;;  %v1212_v58 = vadd.f32 %v6134_v40, %v1211_v22  ;;  %v3554_v35 = vadd.f32 0.18741608, %v3553_v57  ;;  %v3667_v41 = vmul.f32 2.1237322e-06, %v7505_v29  ;;  %v1865_v18 = vmul.f32 %v7508_v51, %v7508_v51 }
 0x164   : > { %11406 = vst [vmem:[#allocation38_spill] sm:$0xff] %v7520_v16  ;;  %v1287_v34 = vadd.f32 1.0, %v1286_v52  ;;  %v7527_v42 = vmul.f32 %v2756_v14, %v7255_v15  ;;  %v1751_v24 = vmul.f32 %v1750_v13, %v7433_v11  ;;  %v1787_v46 = vmul.f32 2.1237322e-06, %v7520_v16 }
 0x165   : > { %v1216_v63 = vsel %vm7515_vm14, %v6134_v40, %v1212_v58  ;;  %v1636_v30 = vadd.f32 1.1283791, %v1635_v25  ;;  %v7533_v61 = vmin.f32 %v2985_v54, 16.0  ;;  %v1673_v38 = vmul.f32 %v1672_v44, %v7385_v7  ;;  %v11409_v54 = vld [vmem:[#allocation7_spill] sm:$0xff] }
 0x166   : > { %11407 = vst [vmem:[#allocation39_spill] sm:$0xff] %v7527_v42  ;;  %v1221_v57 = vsel %vm1218_vm15, %v1220_v8, %v1216_v63  ;;  %6135 = vrcp.f32 %v1287_v34  ;;  %v2873_v50 = vmul.f32 %v2872_v20, %v7403_v33  ;;  %v1319_v15 = vadd.f32 0.001143296, %v1318_v55 }
 0x167   : > { %11408 = vst [vmem:[#allocation40_spill] sm:$0xff] %v7533_v61  ;;  %v1222_v22 = vmul.f32 %v1221_v57, %v7226_v47  ;;  %v3555_v14 = vmul.f32 %v3554_v35, %v7363_v39  ;;  %v3668_v13 = vadd.f32 0.00028619796, %v3667_v41  ;;  %v2987_v52 = vmul.f32 2.1237322e-06, %v7533_v61 }
 0x168   : > { %v7540_v42 = vmin.f32 %v1865_v18, 16.0  ;;  %v1752_v40 = vadd.f32 0.05243302, %v1751_v24  ;;  %v1788_v25 = vadd.f32 0.00028619796, %v1787_v46  ;;  %v603_v32 = vmul.f32 0.5, %v11409_v54 }
 0x169   : > { %v5990_v8 = vclamps-f32 %v1222_v22, 1.0  ;;  %v7544_v58 = vmul.f32 %v1636_v30, %v7284_v28  ;;  %v7547_v44 = vmul.f32 0.5, %v7358_v45  ;;  %v7550_v47 = vmul.f32 0.5, %v7387_v17 }
 0x16a   : > { %v1867_v20 = vmul.f32 2.1237322e-06, %v7540_v42  ;;  %v1674_v55 = vadd.f32 0.18741608, %v1673_v38  ;;  %v1320_v41 = vmul.f32 %v1319_v15, %v7042_v4  ;;  %v1398_v18 = vmul.f32 3.8918573e-05, %v7093_v23 }
 0x16b   : > { %11410 = vst [vmem:[#allocation7_spill] sm:$0xff] %v7547_v44  ;;  %v4635_v35 = vadd.f32 1.0, %v5990_v8  ;;  %v7555_v46 = vadd.f32 1.1283791, %v3555_v14  ;;  %v2874_v63 = vadd.f32 0.18741608, %v2873_v50  ;;  %v3669_v28 = vmul.f32 %v3668_v13, %v7505_v29 }
 0x16c   : > { %11411 = vst [vmem:[#allocation41_spill] sm:$0xff] %v7550_v47  ;;  %v6136_v24 = vpop.eup %6135  ;;  %v2988_v30 = vadd.f32 0.00028619796, %v2987_v52  ;;  %v1753_v45 = vmul.f32 %v1752_v40, %v7433_v11  ;;  %v1789_v17 = vmul.f32 %v1788_v25, %v7520_v16  ;;  %v1868_v54 = vadd.f32 0.00028619796, %v1867_v20 }
 0x16d   : > { %v4731_v57 = vmul.f32 %v4635_v35, %v603_v32  ;;  %v1289_v22 = vmul.f32 %v6136_v24, %v1287_v34  ;;  %vm1293_vm0 = vweird.f32 %v1287_v34  ;;  %v1299_v38 = vand.u32 2147483648, %v1287_v34 }
 0x16e   : > { %v1321_v8 = vadd.f32 0.014752088, %v1320_v41  ;;  %vm1294_vm1 = vweird.f32 %v6136_v24  ;;  %v1297_v44 = vand.u32 2147483647, %v1287_v34  ;;  %v1399_v14 = vadd.f32 0.001143296, %v1398_v18 }
 0x16f   : > { %5003 = vmatmul.f32.gmra.mxu0 %v4731_v57  ;;  %v1290_v15 = vsub.f32 1.0, %v1289_v22  ;;  %v1675_v50 = vmul.f32 %v1674_v55, %v7385_v7  ;;  %v3670_v39 = vadd.f32 0.0036580483, %v3669_v28  ;;  %v2989_v13 = vmul.f32 %v2988_v30, %v7533_v61  ;;  %vm7567_vm2 = vmor %vm1293_vm0, %vm1294_vm1  ;;  %v7571_v28 = vpop.f32.mrf.mxu1 }
 0x170   : > { %v1322_v52 = vmul.f32 %v1321_v8, %v7042_v4  ;;  %v2875_v40 = vmul.f32 %v2874_v63, %v7403_v33  ;;  %v1754_v25 = vadd.f32 0.18741608, %v1753_v45  ;;  %v1400_v20 = vmul.f32 %v1399_v14, %v7093_v23 }
 0x171   : > { %v1291_v32 = vmul.f32 %v6136_v24, %v1290_v15  ;;  %v1790_v35 = vadd.f32 0.0036580483, %v1789_v17  ;;  %v1869_v41 = vmul.f32 %v1868_v54, %v7540_v42  ;;  %v1300_v55 = vor.u32 1.1754944e-38, %v1299_v38 }
 0x172   : > { %v1323_v18 = vadd.f32 0.112945676, %v1322_v52  ;;  %vm1298_vm3 = vcmp.eq.f32.partialorder %v1297_v44, 8.507059e+37  ;;  %v1401_v22 = vadd.f32 0.014752088, %v1400_v20  ;;  %v3671_v45 = vmul.f32 %v3670_v39, %v7505_v29 }
 0x173   : > { %v1292_v30 = vadd.f32 %v6136_v24, %v1291_v32  ;;  %v1438_v63 = vmul.f32 3.8918573e-05, %v7143_v10  ;;  %v2990_v8 = vadd.f32 0.0036580483, %v2989_v13  ;;  %v7576_v17 = vmul.f32 0.70710677, %v7379_v26 }
 0x174   : > { %v1324_v34 = vmul.f32 %v1323_v18, %v7042_v4  ;;  %v1676_v54 = vadd.f32 1.1283791, %v1675_v50  ;;  %v2876_v15 = vadd.f32 1.1283791, %v2875_v40  ;;  %v1402_v14 = vmul.f32 %v1401_v22, %v7093_v23  ;;  %v4860_v13 = vld [vmem:[%s11268_s2 + $0x158] sm:$0xff] }
 0x175   : > { %v1296_v38 = vsel %vm7567_vm2, %v6136_v24, %v1292_v30  ;;  %v1791_v44 = vmul.f32 %v1790_v35, %v7520_v16  ;;  %v1870_v52 = vadd.f32 0.0036580483, %v1869_v41  ;;  %v7584_v32 = vmul.f32 0.70710677, %v7571_v28  ;;  %5095 = vmatpush.msrb.mxu1 %v4860_v13  ;;  %v7594_v30 = vpop.f32.mrf.mxu3 }
 0x176   : > { %v1301_v39 = vsel %vm1298_vm3, %v1300_v55, %v1296_v38  ;;  %v1325_v50 = vadd.f32 0.4994258, %v1324_v34  ;;  %v1403_v40 = vadd.f32 0.112945676, %v1402_v14  ;;  %v1439_v57 = vadd.f32 0.001143296, %v1438_v63 }
 0x177   : > { %v1302_v20 = vmul.f32 %v1301_v39, %v7230_v6  ;;  %v1755_v24 = vmul.f32 %v1754_v25, %v7433_v11  ;;  %v3672_v18 = vadd.f32 0.05243302, %v3671_v45  ;;  %v2991_v35 = vmul.f32 %v2990_v8, %v7533_v61  ;;  %v11414_v55 = vld [vmem:[#allocation8_spill] sm:$0xff]  ;;  %v7605_v8 = vpop.f32.mrf.mxu0 }
 0x178   : > { %v3785_v41 = vmul.f32 %v7576_v17, %v7576_v17  ;;  %v605_v22 = vmul.f32 0.5, %v11414_v55  ;;  %v1326_v33 = vmul.f32 %v1325_v50, %v7042_v4  ;;  %v1404_v6 = vmul.f32 %v1403_v40, %v7093_v23  ;;  %v6380_v55 = vld [vmem:[%s6559_s13 + $0x98] sm:$0xff] }
 0x179   : > { %v5992_v38 = vclamps-f32 %v1302_v20, 1.0  ;;  %v1792_v34 = vadd.f32 0.05243302, %v1791_v44  ;;  %v1871_v63 = vmul.f32 %v1870_v52, %v7540_v42  ;;  %v1905_v25 = vmul.f32 %v7584_v32, %v7584_v32  ;;  %v7613_v52 = vpop.f32.mrf.mxu2  ;;  %553 = vmatmul.f32.gmra.mxu2 %v6380_v55 }
 0x17a   : > { %v7603_v45 = vmul.f32 0.70710677, %v7594_v30  ;;  %v7607_v39 = vadd.f32 1.0, %v1326_v33  ;;  %v1405_v13 = vadd.f32 0.4994258, %v1404_v6  ;;  %v1440_v4 = vmul.f32 %v1439_v57, %v7143_v10 }
 0x17b   : > { %v4637_v14 = vadd.f32 1.0, %v5992_v38  ;;  %v1756_v20 = vadd.f32 1.1283791, %v1755_v24  ;;  %v3673_v50 = vmul.f32 %v3672_v18, %v7505_v29  ;;  %v2992_v44 = vadd.f32 0.05243302, %v2991_v35 }
 0x17c   : > { %v7611_v40 = vmin.f32 %v3785_v41, 16.0  ;;  %v7618_v12 = vmul.f32 %v7555_v46, %v7329_v49  ;;  %v7621_v33 = vmul.f32 0.70710677, %v7605_v8  ;;  %6137 = vrcp.f32 %v7607_v39 }
 0x17d   : > { %v4733_v38 = vmul.f32 %v4637_v14, %v605_v22  ;;  %v7625_v57 = vmul.f32 %v1676_v54, %v7348_v37  ;;  %v7628_v24 = vmul.f32 %v2876_v15, %v7366_v1  ;;  %v1793_v18 = vmul.f32 %v1792_v34, %v7520_v16 }
 0x17e   : > { %11415 = vst [vmem:[#allocation8_spill] sm:$0xff] %v7611_v40  ;;  %v1872_v35 = vadd.f32 0.05243302, %v1871_v63  ;;  %v7631_v41 = vmin.f32 %v1905_v25, 16.0  ;;  %v3105_v49 = vmul.f32 %v7603_v45, %v7603_v45  ;;  %v1406_v46 = vmul.f32 %v1405_v13, %v7093_v23 }
 0x17f   : > { %11416 = vst [vmem:[#allocation42_spill] sm:$0xff] %v7618_v12  ;;  %4893 = vmatmul.f32.gmra.mxu3 %v4733_v38  ;;  %v1441_v22 = vadd.f32 0.014752088, %v1440_v4  ;;  %v7637_v6 = vmul.f32 %v1756_v20, %v7397_v36  ;;  %v3674_v37 = vadd.f32 0.18741608, %v3673_v50  ;;  %v2993_v54 = vmul.f32 %v2992_v44, %v7533_v61 }
 0x180   : > { %11417 = vst [vmem:[#allocation43_spill] sm:$0xff] %v7625_v57  ;;  %v3787_v1 = vmul.f32 2.1237322e-06, %v7611_v40  ;;  %v7642_v15 = vmul.f32 0.5, %v7279_v31  ;;  %v1907_v34 = vmul.f32 2.1237322e-06, %v7631_v41  ;;  %v1985_v63 = vmul.f32 %v7621_v33, %v7621_v33 }
 0x181   : > { %11418 = vst [vmem:[#allocation44_spill] sm:$0xff] %v7628_v24  ;;  %v7647_v25 = vadd.f32 1.0, %v1406_v46  ;;  %v7650_v23 = vmul.f32 0.5, %v7456_v2  ;;  %v1794_v36 = vadd.f32 0.18741608, %v1793_v18  ;;  %v7653_v14 = vmul.f32 0.5, %v7486_v3 }
 0x182   : > { %11419 = vst [vmem:[#allocation45_spill] sm:$0xff] %v7637_v6  ;;  %v7656_v13 = vmul.f32 0.5, %v7491_v60  ;;  %v6138_v4 = vpop.eup %6137  ;;  %v1873_v31 = vmul.f32 %v1872_v35, %v7540_v42  ;;  %v7659_v20 = vmin.f32 %v3105_v49, 16.0  ;;  %v1442_v50 = vmul.f32 %v1441_v22, %v7143_v10 }
 0x183   : > { %11420 = vst [vmem:[#allocation46_spill] sm:$0xff] %v7642_v15  ;;  %6139 = vrcp.f32 %v7647_v25  ;;  %v3675_v44 = vmul.f32 %v3674_v37, %v7505_v29  ;;  %v2994_v2 = vadd.f32 0.18741608, %v2993_v54  ;;  %v3788_v55 = vadd.f32 0.00028619796, %v3787_v1 }
 0x184   : > { %11421 = vst [vmem:[#allocation47_spill] sm:$0xff] %v7650_v23  ;;  %v1329_v38 = vmul.f32 %v6138_v4, %v7607_v39  ;;  %v1908_v3 = vadd.f32 0.00028619796, %v1907_v34  ;;  %v3107_v18 = vmul.f32 2.1237322e-06, %v7659_v20  ;;  %v7666_v60 = vmin.f32 %v1985_v63, 16.0 }
 0x185   : > { %11422 = vst [vmem:[#allocation48_spill] sm:$0xff] %v7653_v14  ;;  %v1339_v46 = vand.u32 2147483648, %v7607_v39  ;;  %vm1333_vm4 = vweird.f32 %v7607_v39  ;;  %vm1334_vm5 = vweird.f32 %v6138_v4  ;;  %v1337_v49 = vand.u32 2147483647, %v7607_v39  ;;  %v11428_v39 = vld [vmem:[#allocation14_spill] sm:$0xff] }
 0x186   : > { %11423 = vst [vmem:[#allocation49_spill] sm:$0xff] %v7656_v13  ;;  %v1330_v35 = vsub.f32 1.0, %v1329_v38  ;;  %v1795_v22 = vmul.f32 %v1794_v36, %v7520_v16  ;;  %v1874_v37 = vadd.f32 0.18741608, %v1873_v31  ;;  %v7673_v54 = vmul.f32 0.5, %v7379_v26  ;;  %vm7681_vm6 = vmor %vm1333_vm4, %vm1334_vm5 }
 0x187   : > { %11424 = vst [vmem:[#allocation50_spill] sm:$0xff] %v7659_v20  ;;  %v1443_v1 = vadd.f32 0.112945676, %v1442_v50  ;;  %v3676_v34 = vadd.f32 1.1283791, %v3675_v44  ;;  %v3789_v15 = vmul.f32 %v3788_v55, %v7611_v40  ;;  %v1909_v38 = vmul.f32 %v1908_v3, %v7631_v41 }
 0x188   : > { %11425 = vst [vmem:[#allocation51_spill] sm:$0xff] %v7673_v54  ;;  %v1987_v63 = vmul.f32 2.1237322e-06, %v7666_v60  ;;  %v1331_v12 = vmul.f32 %v6138_v4, %v1330_v35  ;;  %v7679_v29 = vmul.f32 0.70710677, %v7501_v21  ;;  %v1340_v36 = vor.u32 1.1754944e-38, %v1339_v46 }
 0x189   : > { %v6140_v14 = vpop.eup %6139  ;;  %v1444_v26 = vmul.f32 %v1443_v1, %v7143_v10  ;;  %v3108_v31 = vadd.f32 0.00028619796, %v3107_v18  ;;  %vm1338_vm7 = vcmp.eq.f32.partialorder %v1337_v49, 8.507059e+37  ;;  %vm1413_vm8 = vweird.f32 %v7647_v25  ;;  %v4859_v35 = vld [vmem:[%s11268_s2 + $0x150] sm:$0xff] }
 0x18a   : > { %v1332_v50 = vadd.f32 %v6138_v4, %v1331_v12  ;;  %v1409_v44 = vmul.f32 %v6140_v14, %v7647_v25  ;;  %v1417_v55 = vand.u32 2147483647, %v7647_v25  ;;  %v1419_v3 = vand.u32 2147483648, %v7647_v25  ;;  %5096 = vmatpush.msrb.mxu1 %v4859_v35 }
 0x18b   : > { %v1518_v54 = vmul.f32 3.8918573e-05, %v7201_v27  ;;  %vm1414_vm9 = vweird.f32 %v6140_v14  ;;  %v1445_v12 = vadd.f32 0.4994258, %v1444_v26  ;;  %v3790_v49 = vadd.f32 0.0036580483, %v3789_v15 }
 0x18c   : > { %v1336_v46 = vsel %vm7681_vm6, %v6138_v4, %v1332_v50  ;;  %v1410_v18 = vsub.f32 1.0, %v1409_v44  ;;  %v1988_v1 = vadd.f32 0.00028619796, %v1987_v63  ;;  %v3905_v24 = vmul.f32 %v7679_v29, %v7679_v29  ;;  %vm7704_vm10 = vmor %vm1413_vm8, %vm1414_vm9  ;;  %v7714_v44 = vpop.f32.mrf.mxu1 }
 0x18d   : > { %v1341_v13 = vsel %vm1338_vm7, %v1340_v36, %v1336_v46  ;;  %v1910_v23 = vadd.f32 0.0036580483, %v1909_v38  ;;  %v1446_v57 = vmul.f32 %v1445_v12, %v7143_v10  ;;  %v3109_v16 = vmul.f32 %v3108_v31, %v7659_v20 }
 0x18e   : > { %v1342_v47 = vmul.f32 %v1341_v13, %v7313_v0  ;;  %v1411_v6 = vmul.f32 %v6140_v14, %v1410_v18  ;;  %v606_v4 = vmul.f32 0.5, %v11428_v39  ;;  %v1420_v15 = vor.u32 1.1754944e-38, %v1419_v3 }
 0x18f   : > { %v1519_v63 = vadd.f32 0.001143296, %v1518_v54  ;;  %vm1418_vm11 = vcmp.eq.f32.partialorder %v1417_v55, 8.507059e+37  ;;  %v7708_v38 = vadd.f32 1.0, %v1446_v57  ;;  %v1796_v0 = vadd.f32 1.1283791, %v1795_v22 }
 0x190   : > { %v5993_v50 = vclamps-f32 %v1342_v47, 1.0  ;;  %v1412_v36 = vadd.f32 %v6140_v14, %v1411_v6  ;;  %v2995_v10 = vmul.f32 %v2994_v2, %v7533_v61  ;;  %v1989_v13 = vmul.f32 %v1988_v1, %v7666_v60 }
 0x191   : > { %v7712_v31 = vmin.f32 %v3905_v24, 16.0  ;;  %6141 = vrcp.f32 %v7708_v38  ;;  %v1520_v47 = vmul.f32 %v1519_v63, %v7201_v27  ;;  %v1875_v57 = vmul.f32 %v1874_v37, %v7540_v42  ;;  %v7745_v63 = vpop.f32.mrf.mxu3 }
 0x192   : > { %v4638_v25 = vadd.f32 1.0, %v5993_v50  ;;  %v1416_v35 = vsel %vm7704_vm10, %v6140_v14, %v1412_v36  ;;  %v3791_v6 = vmul.f32 %v3790_v49, %v7611_v40  ;;  %v1911_v2 = vmul.f32 %v1910_v23, %v7631_v41  ;;  %v7734_v49 = vpop.f32.mrf.mxu0 }
 0x193   : > { %11431 = vst [vmem:[#allocation14_spill] sm:$0xff] %v7712_v31  ;;  %v1421_v22 = vsel %vm1418_vm11, %v1420_v15, %v1416_v35  ;;  %v3110_v54 = vadd.f32 0.0036580483, %v3109_v16  ;;  %v7724_v24 = vmul.f32 0.70710677, %v7714_v44  ;;  %v7728_v14 = vmul.f32 %v3676_v34, %v7462_v9  ;;  %v11433_v16 = vld [vmem:[#allocation19_spill] sm:$0xff] }
 0x194   : > { %v4734_v55 = vmul.f32 %v4638_v25, %v606_v4  ;;  %v1422_v3 = vmul.f32 %v1421_v22, %v7369_v53  ;;  %v2996_v46 = vadd.f32 1.1283791, %v2995_v10  ;;  %v7731_v18 = vmul.f32 0.5, %v7571_v28 }
 0x195   : > { %11432 = vst [vmem:[#allocation52_spill] sm:$0xff] %v7728_v14  ;;  %v1990_v37 = vadd.f32 0.0036580483, %v1989_v13  ;;  %v3907_v12 = vmul.f32 2.1237322e-06, %v7712_v31  ;;  %v608_v23 = vmul.f32 0.5, %v11433_v16  ;;  %v7738_v4 = vmul.f32 %v1796_v0, %v7477_v43 }
 0x196   : > { %5006 = vmatmul.f32.gmra.mxu0 %v4734_v55  ;;  %v5995_v1 = vclamps-f32 %v1422_v3, 1.0  ;;  %v1521_v39 = vadd.f32 0.014752088, %v1520_v47  ;;  %v7740_v53 = vadd.f32 1.1283791, %v1875_v57  ;;  %v3111_v28 = vmul.f32 %v3110_v54, %v7659_v20 }
 0x197   : > { %v3792_v9 = vadd.f32 0.05243302, %v3791_v6  ;;  %v1912_v34 = vadd.f32 0.05243302, %v1911_v2  ;;  %v6142_v26 = vpop.eup %6141  ;;  %v2025_v15 = vmul.f32 %v7724_v24, %v7724_v24  ;;  %v1991_v10 = vmul.f32 %v1990_v37, %v7666_v60 }
 0x198   : > { %v4640_v50 = vadd.f32 1.0, %v5995_v1  ;;  %v1522_v36 = vmul.f32 %v1521_v39, %v7201_v27  ;;  %v7750_v43 = vmul.f32 0.70710677, %v7745_v63  ;;  %v7753_v0 = vmul.f32 0.70710677, %v7734_v49  ;;  %v7768_v1 = vpop.f32.mrf.mxu2  ;;  %v6381_v39 = vld [vmem:[%s6559_s13 + $0xa0] sm:$0xff] }
 0x199   : > { %v1449_v13 = vmul.f32 %v6142_v26, %v7708_v38  ;;  %v3908_v25 = vadd.f32 0.00028619796, %v3907_v12  ;;  %v1459_v47 = vand.u32 2147483648, %v7708_v38  ;;  %vm1453_vm12 = vweird.f32 %v7708_v38  ;;  %556 = vmatmul.f32.gmra.mxu2 %v6381_v39 }
 0x19a   : > { %v4736_v35 = vmul.f32 %v4640_v50, %v608_v23  ;;  %v1523_v57 = vadd.f32 0.112945676, %v1522_v36  ;;  %vm1454_vm13 = vweird.f32 %v6142_v26  ;;  %v1457_v2 = vand.u32 2147483647, %v7708_v38 }
 0x19b   : > { %v1450_v6 = vsub.f32 1.0, %v1449_v13  ;;  %v3793_v22 = vmul.f32 %v3792_v9, %v7611_v40  ;;  %v1913_v54 = vmul.f32 %v1912_v34, %v7631_v41  ;;  %v7761_v55 = vmin.f32 %v2025_v15, 16.0  ;;  %vm7778_vm14 = vmor %vm1453_vm12, %vm1454_vm13 }
 0x19c   : > { %4896 = vmatmul.f32.gmra.mxu3 %v4736_v35  ;;  %v1524_v3 = vmul.f32 %v1523_v57, %v7201_v27  ;;  %v3112_v37 = vadd.f32 0.05243302, %v3111_v28  ;;  %v3225_v12 = vmul.f32 %v7750_v43, %v7750_v43  ;;  %v2105_v16 = vmul.f32 %v7753_v0, %v7753_v0 }
 0x19d   : > { %v1451_v23 = vmul.f32 %v6142_v26, %v1450_v6  ;;  %v7772_v9 = vmul.f32 0.5, %v7594_v30  ;;  %v2027_v34 = vmul.f32 2.1237322e-06, %v7761_v55  ;;  %v1460_v15 = vor.u32 1.1754944e-38, %v1459_v47 }
 0x19e   : > { %v1525_v50 = vadd.f32 0.4994258, %v1524_v3  ;;  %v7783_v36 = vmul.f32 %v2996_v46, %v7489_v56  ;;  %v3909_v13 = vmul.f32 %v3908_v25, %v7712_v31  ;;  %vm1458_vm15 = vcmp.eq.f32.partialorder %v1457_v2, 8.507059e+37 }
 0x19f   : > { %11434 = vst [vmem:[#allocation19_spill] sm:$0xff] %v7772_v9  ;;  %v1452_v35 = vadd.f32 %v6142_v26, %v1451_v23  ;;  %v3794_v30 = vadd.f32 0.18741608, %v3793_v22  ;;  %v1914_v57 = vadd.f32 0.18741608, %v1913_v54  ;;  %v3113_v38 = vmul.f32 %v3112_v37, %v7659_v20  ;;  %v11439_v23 = vld [vmem:[#allocation20_spill] sm:$0xff] }
 0x1a0   : > { %11437 = vst [vmem:[#allocation53_spill] sm:$0xff] %v7783_v36  ;;  %v1992_v6 = vadd.f32 0.05243302, %v1991_v10  ;;  %v1526_v39 = vmul.f32 %v1525_v50, %v7201_v27  ;;  %v7788_v9 = vmin.f32 %v3225_v12, 16.0  ;;  %v7790_v14 = vmin.f32 %v2105_v16, 16.0 }
 0x1a1   : > { %v1456_v47 = vsel %vm7778_vm14, %v6142_v26, %v1452_v35  ;;  %v2028_v56 = vadd.f32 0.00028619796, %v2027_v34  ;;  %v1558_v25 = vmul.f32 3.8918573e-05, %v7258_v48  ;;  %v3910_v2 = vadd.f32 0.0036580483, %v3909_v13 }
 0x1a2   : > { %11438 = vst [vmem:[#allocation54_spill] sm:$0xff] %v7788_v9  ;;  %v1461_v46 = vsel %vm1458_vm15, %v1460_v15, %v1456_v47  ;;  %v7794_v3 = vadd.f32 1.0, %v1526_v39  ;;  %v3227_v10 = vmul.f32 2.1237322e-06, %v7788_v9  ;;  %v2107_v27 = vmul.f32 2.1237322e-06, %v7790_v14 }
 0x1a3   : > { %v1462_v22 = vmul.f32 %v1461_v46, %v7422_v5  ;;  %v3795_v54 = vmul.f32 %v3794_v30, %v7611_v40  ;;  %v1993_v37 = vmul.f32 %v1992_v6, %v7666_v60  ;;  %v1638_v26 = vmul.f32 3.8918573e-05, %v7316_v19 }
 0x1a4   : > { %6143 = vrcp.f32 %v7794_v3  ;;  %v1915_v12 = vmul.f32 %v1914_v57, %v7631_v41  ;;  %v3114_v16 = vadd.f32 0.18741608, %v3113_v38  ;;  %v609_v34 = vmul.f32 0.5, %v11439_v23 }
 0x1a5   : > { %v5996_v28 = vclamps-f32 %v1462_v22, 1.0  ;;  %v7808_v15 = vmul.f32 %v7740_v53, %v7508_v51  ;;  %v7811_v5 = vmul.f32 0.5, %v7605_v8  ;;  %v2029_v50 = vmul.f32 %v2028_v56, %v7761_v55 }
 0x1a6   : > { %v1559_v13 = vadd.f32 0.001143296, %v1558_v25  ;;  %v3911_v35 = vmul.f32 %v3910_v2, %v7712_v31  ;;  %v3228_v30 = vadd.f32 0.00028619796, %v3227_v10  ;;  %v2108_v6 = vadd.f32 0.00028619796, %v2107_v27 }
 0x1a7   : > { %11440 = vst [vmem:[#allocation20_spill] sm:$0xff] %v7811_v5  ;;  %v4641_v39 = vadd.f32 1.0, %v5996_v28  ;;  %v3796_v57 = vadd.f32 1.1283791, %v3795_v54  ;;  %v1994_v38 = vadd.f32 0.18741608, %v1993_v37  ;;  %v3115_v51 = vmul.f32 %v3114_v16, %v7659_v20  ;;  %v7832_v28 = vpop.f32.mrf.mxu1 }
 0x1a8   : > { %v1560_v47 = vmul.f32 %v1559_v13, %v7258_v48  ;;  %v1639_v46 = vadd.f32 0.001143296, %v1638_v26  ;;  %v7816_v22 = vadd.f32 1.1283791, %v1915_v12  ;;  %v7820_v8 = vmul.f32 0.5, %v7501_v21 }
 0x1a9   : > { %v4737_v53 = vmul.f32 %v4641_v39, %v609_v34  ;;  %v2030_v25 = vadd.f32 0.0036580483, %v2029_v50  ;;  %v7823_v2 = vmul.f32 0.70710677, %v7613_v52  ;;  %v3912_v54 = vadd.f32 0.05243302, %v3911_v35 }
 0x1aa   : > { %11441 = vst [vmem:[#allocation55_spill] sm:$0xff] %v7820_v8  ;;  %v6144_v56 = vpop.eup %6143  ;;  %v1561_v10 = vadd.f32 0.014752088, %v1560_v47  ;;  %v1640_v27 = vmul.f32 %v1639_v46, %v7316_v19  ;;  %v3229_v37 = vmul.f32 %v3228_v30, %v7788_v9  ;;  %v2109_v26 = vmul.f32 %v2108_v6, %v7790_v14 }
 0x1ab   : > { %5009 = vmatmul.f32.gmra.mxu0 %v4737_v53  ;;  %v1529_v12 = vmul.f32 %v6144_v56, %v7794_v3  ;;  %v1539_v21 = vand.u32 2147483648, %v7794_v3  ;;  %v1678_v34 = vmul.f32 3.8918573e-05, %v7385_v7  ;;  %vm1533_vm0 = vweird.f32 %v7794_v3 }
 0x1ac   : > { %v1562_v16 = vmul.f32 %v1561_v10, %v7258_v48  ;;  %v1641_v23 = vadd.f32 0.014752088, %v1640_v27  ;;  %vm1534_vm1 = vweird.f32 %v6144_v56  ;;  %v1537_v13 = vand.u32 2147483647, %v7794_v3 }
 0x1ad   : > { %v1530_v50 = vsub.f32 1.0, %v1529_v12  ;;  %v2031_v35 = vmul.f32 %v2030_v25, %v7761_v55  ;;  %v4025_v30 = vmul.f32 %v7823_v2, %v7823_v2  ;;  %v1995_v47 = vmul.f32 %v1994_v38, %v7666_v60  ;;  %vm7844_vm2 = vmor %vm1533_vm0, %vm1534_vm1  ;;  %v4858_v38 = vld [vmem:[%s11268_s2 + $0x148] sm:$0xff] }
 0x1ae   : > { %v1563_v6 = vadd.f32 0.112945676, %v1562_v16  ;;  %v1642_v39 = vmul.f32 %v1641_v23, %v7316_v19  ;;  %v3230_v46 = vadd.f32 0.0036580483, %v3229_v37  ;;  %v2110_v53 = vadd.f32 0.0036580483, %v2109_v26  ;;  %5097 = vmatpush.msrb.mxu1 %v4858_v38 }
 0x1af   : > { %v1531_v10 = vmul.f32 %v6144_v56, %v1530_v50  ;;  %v7842_v27 = vmul.f32 0.70710677, %v7832_v28  ;;  %v1540_v3 = vor.u32 1.1754944e-38, %v1539_v21  ;;  %v3913_v16 = vmul.f32 %v3912_v54, %v7712_v31 }
 0x1b0   : > { %v1564_v25 = vmul.f32 %v1563_v6, %v7258_v48  ;;  %v1643_v8 = vadd.f32 0.112945676, %v1642_v39  ;;  %vm1538_vm3 = vcmp.eq.f32.partialorder %v1537_v13, 8.507059e+37  ;;  %v1679_v37 = vadd.f32 0.001143296, %v1678_v34  ;;  %v7860_v13 = vpop.f32.mrf.mxu3 }
 0x1b1   : > { %v1532_v20 = vadd.f32 %v6144_v56, %v1531_v10  ;;  %v2032_v26 = vadd.f32 0.05243302, %v2031_v35  ;;  %v7853_v23 = vmin.f32 %v4025_v30, 16.0  ;;  %v7857_v21 = vmul.f32 %v3796_v57, %v7576_v17  ;;  %v7871_v57 = vpop.f32.mrf.mxu0  ;;  %v7874_v10 = vpop.f32.mrf.mxu2 }
 0x1b2   : > { %v1565_v50 = vadd.f32 0.4994258, %v1564_v25  ;;  %v1644_v36 = vmul.f32 %v1643_v8, %v7316_v19  ;;  %v3116_v6 = vadd.f32 1.1283791, %v3115_v51  ;;  %v3231_v54 = vmul.f32 %v3230_v46, %v7788_v9 }
 0x1b3   : > { %11444 = vst [vmem:[#allocation56_spill] sm:$0xff] %v7853_v23  ;;  %v1536_v39 = vsel %vm7844_vm2, %v6144_v56, %v1532_v20  ;;  %v2145_v34 = vmul.f32 %v7842_v27, %v7842_v27  ;;  %v7867_v35 = vmul.f32 0.70710677, %v7860_v13  ;;  %v2111_v17 = vmul.f32 %v2110_v53, %v7790_v14  ;;  %v6382_v56 = vld [vmem:[%s6559_s13 + $0xa8] sm:$0xff] }
 0x1b4   : > { %11445 = vst [vmem:[#allocation57_spill] sm:$0xff] %v7857_v21  ;;  %v1541_v30 = vsel %vm1538_vm3, %v1540_v3, %v1536_v39  ;;  %v1566_v8 = vmul.f32 %v1565_v50, %v7258_v48  ;;  %v1645_v46 = vadd.f32 0.4994258, %v1644_v36  ;;  %v1680_v20 = vmul.f32 %v1679_v37, %v7385_v7  ;;  %559 = vmatmul.f32.gmra.mxu2 %v6382_v56  ;;  %v11446_v50 = vld [vmem:[#allocation23_spill] sm:$0xff] }
 0x1b5   : > { %v1542_v51 = vmul.f32 %v1541_v30, %v7459_v59  ;;  %v3914_v12 = vadd.f32 0.18741608, %v3913_v16  ;;  %v2033_v25 = vmul.f32 %v2032_v26, %v7761_v55  ;;  %v4027_v3 = vmul.f32 2.1237322e-06, %v7853_v23 }
 0x1b6   : > { %v1567_v38 = vadd.f32 1.0, %v1566_v8  ;;  %v3232_v48 = vadd.f32 0.05243302, %v3231_v54  ;;  %v611_v53 = vmul.f32 0.5, %v11446_v50  ;;  %v1646_v21 = vmul.f32 %v1645_v46, %v7316_v19 }
 0x1b7   : > { %v5998_v39 = vclamps-f32 %v1542_v51, 1.0  ;;  %v7882_v59 = vmin.f32 %v2145_v34, 16.0  ;;  %v3345_v36 = vmul.f32 %v7867_v35, %v7867_v35  ;;  %v7887_v37 = vmul.f32 0.70710677, %v7871_v57 }
 0x1b8   : > { %6145 = vrcp.f32 %v1567_v38  ;;  %v1996_v16 = vadd.f32 1.1283791, %v1995_v47  ;;  %v7890_v26 = vmul.f32 0.5, %v7714_v44  ;;  %v1681_v54 = vadd.f32 0.014752088, %v1680_v20 }
 0x1b9   : > { %v4643_v30 = vadd.f32 1.0, %v5998_v39  ;;  %v7894_v8 = vmul.f32 %v7816_v22, %v7584_v32  ;;  %v4028_v19 = vadd.f32 0.00028619796, %v4027_v3  ;;  %v2147_v34 = vmul.f32 2.1237322e-06, %v7882_v59 }
 0x1ba   : > { %11447 = vst [vmem:[#allocation23_spill] sm:$0xff] %v7890_v26  ;;  %v1647_v51 = vadd.f32 1.0, %v1646_v21  ;;  %v3915_v46 = vmul.f32 %v3914_v12, %v7712_v31  ;;  %v2034_v56 = vadd.f32 0.18741608, %v2033_v25  ;;  %v2112_v50 = vadd.f32 0.05243302, %v2111_v17 }
 0x1bb   : > { %v4739_v40 = vmul.f32 %v4643_v30, %v611_v53  ;;  %v3233_v47 = vmul.f32 %v3232_v48, %v7788_v9  ;;  %v7899_v61 = vmin.f32 %v3345_v36, 16.0  ;;  %v2225_v44 = vmul.f32 %v7887_v37, %v7887_v37 }
 0x1bc   : > { %6147 = vrcp.f32 %v1647_v51  ;;  %v7904_v32 = vmul.f32 %v3116_v6, %v7603_v45  ;;  %v7907_v22 = vmul.f32 %v1996_v16, %v7621_v33  ;;  %v7910_v21 = vmul.f32 0.5, %v7745_v63 }
 0x1bd   : > { %11448 = vst [vmem:[#allocation58_spill] sm:$0xff] %v7899_v61  ;;  %4899 = vmatmul.f32.gmra.mxu3 %v4739_v40  ;;  %v1682_v17 = vmul.f32 %v1681_v54, %v7385_v7  ;;  %v7914_v12 = vmul.f32 0.5, %v7734_v49  ;;  %v4029_v25 = vmul.f32 %v4028_v19, %v7853_v23  ;;  %v2148_v3 = vadd.f32 0.00028619796, %v2147_v34 }
 0x1be   : > { %11449 = vst [vmem:[#allocation59_spill] sm:$0xff] %v7904_v32  ;;  %v6146_v20 = vpop.eup %6145  ;;  %v3347_v48 = vmul.f32 2.1237322e-06, %v7899_v61  ;;  %v2113_v45 = vmul.f32 %v2112_v50, %v7790_v14  ;;  %v1577_v33 = vand.u32 2147483647, %v1567_v38  ;;  %v1579_v53 = vand.u32 2147483648, %v1567_v38 }
 0x1bf   : > { %11450 = vst [vmem:[#allocation60_spill] sm:$0xff] %v7910_v21  ;;  %v1569_v6 = vmul.f32 %v6146_v20, %v1567_v38  ;;  %v3916_v39 = vadd.f32 1.1283791, %v3915_v46  ;;  %v7920_v63 = vmul.f32 %v2034_v56, %v7761_v55  ;;  %v3234_v40 = vadd.f32 0.18741608, %v3233_v47 }
 0x1c0   : > { %11451 = vst [vmem:[#allocation61_spill] sm:$0xff] %v7914_v12  ;;  %v7922_v36 = vmin.f32 %v2225_v44, 16.0  ;;  %vm1573_vm4 = vweird.f32 %v1567_v38  ;;  %vm1574_vm5 = vweird.f32 %v6146_v20  ;;  %v1683_v49 = vadd.f32 0.112945676, %v1682_v17 }
 0x1c1   : > { %v1570_v16 = vsub.f32 1.0, %v1569_v6  ;;  %v4030_v54 = vadd.f32 0.0036580483, %v4029_v25  ;;  %v2149_v19 = vmul.f32 %v2148_v3, %v7882_v59  ;;  %v3348_v34 = vadd.f32 0.00028619796, %v3347_v48  ;;  %vm7930_vm7 = vmor %vm1573_vm4, %vm1574_vm5 }
 0x1c2   : > { %v6148_v30 = vpop.eup %6147  ;;  %v1758_v50 = vmul.f32 3.8918573e-05, %v7433_v11  ;;  %vm7926_vm6 = vcmp.eq.f32.partialorder %v1577_v33, 8.507059e+37  ;;  %v1580_v56 = vor.u32 1.1754944e-38, %v1579_v53  ;;  %vm1653_vm8 = vweird.f32 %v1647_v51 }
 0x1c3   : > { %v1571_v31 = vmul.f32 %v6146_v20, %v1570_v16  ;;  %v1649_v47 = vmul.f32 %v6148_v30, %v1647_v51  ;;  %v1657_v38 = vand.u32 2147483647, %v1647_v51  ;;  %v1659_v17 = vand.u32 2147483648, %v1647_v51 }
 0x1c4   : > { %v1684_v25 = vmul.f32 %v1683_v49, %v7385_v7  ;;  %vm1654_vm9 = vweird.f32 %v6148_v30  ;;  %v1759_v6 = vadd.f32 0.001143296, %v1758_v50  ;;  %v4031_v33 = vmul.f32 %v4030_v54, %v7853_v23 }
 0x1c5   : > { %v1572_v3 = vadd.f32 %v6146_v20, %v1571_v31  ;;  %v1650_v48 = vsub.f32 1.0, %v1649_v47  ;;  %v2150_v16 = vadd.f32 0.0036580483, %v2149_v19  ;;  %v2227_v21 = vmul.f32 2.1237322e-06, %v7922_v36  ;;  %v4857_v31 = vld [vmem:[%s11268_s2 + $0x140] sm:$0xff]  ;;  %vm7947_vm10 = vmor %vm1653_vm8, %vm1654_vm9 }
 0x1c6   : > { %v1685_v53 = vadd.f32 0.4994258, %v1684_v25  ;;  %v3235_v32 = vmul.f32 %v3234_v40, %v7788_v9  ;;  %v2114_v12 = vadd.f32 0.18741608, %v2113_v45  ;;  %v3349_v49 = vmul.f32 %v3348_v34, %v7899_v61  ;;  %5098 = vmatpush.msrb.mxu1 %v4857_v31  ;;  %v7955_v40 = vpop.f32.mrf.mxu1  ;;  %v11462_v45 = vld [vmem:[#allocation29_spill] sm:$0xff] }
 0x1c7   : > { %v1576_v26 = vsel %vm7930_vm7, %v6146_v20, %v1572_v3  ;;  %v1651_v5 = vmul.f32 %v6148_v30, %v1650_v48  ;;  %vm7951_vm11 = vcmp.eq.f32.partialorder %v1657_v38, 8.507059e+37  ;;  %v1660_v20 = vor.u32 1.1754944e-38, %v1659_v17  ;;  %v11460_v38 = vld [vmem:[#allocation27_spill] sm:$0xff] }
 0x1c8   : > { %v1581_v54 = vsel %vm7926_vm6, %v1580_v56, %v1576_v26  ;;  %v1686_v34 = vmul.f32 %v1685_v53, %v7385_v7  ;;  %v1760_v26 = vmul.f32 %v1759_v6, %v7433_v11  ;;  %v4032_v51 = vadd.f32 0.05243302, %v4031_v33 }
 0x1c9   : > { %v1582_v50 = vmul.f32 %v1581_v54, %v7468_v62  ;;  %v1652_v47 = vadd.f32 %v6148_v30, %v1651_v5  ;;  %v2151_v46 = vmul.f32 %v2150_v16, %v7882_v59  ;;  %v2228_v56 = vadd.f32 0.00028619796, %v2227_v21  ;;  %v7984_v54 = vpop.f32.mrf.mxu3 }
 0x1ca   : > { %v7962_v44 = vmul.f32 0.70710677, %v7768_v1  ;;  %v612_v25 = vmul.f32 0.5, %v11460_v38  ;;  %v7967_v48 = vadd.f32 1.0, %v1686_v34  ;;  %v2115_v62 = vmul.f32 %v2114_v12, %v7790_v14 }
 0x1cb   : > { %v5999_v17 = vclamps-f32 %v1582_v50, 1.0  ;;  %v1656_v3 = vsel %vm7947_vm10, %v6148_v30, %v1652_v47  ;;  %v3350_v7 = vadd.f32 0.0036580483, %v3349_v49  ;;  %v7971_v5 = vmul.f32 0.70710677, %v7955_v40 }
 0x1cc   : > { %v1661_v21 = vsel %vm7951_vm11, %v1660_v20, %v1656_v3  ;;  %6149 = vrcp.f32 %v7967_v48  ;;  %v1761_v16 = vadd.f32 0.014752088, %v1760_v26  ;;  %v7978_v53 = vmul.f32 %v3916_v39, %v7679_v29 }
 0x1cd   : > { %v4644_v6 = vadd.f32 1.0, %v5999_v17  ;;  %v1662_v33 = vmul.f32 %v1661_v21, %v7544_v58  ;;  %v4033_v30 = vmul.f32 %v4032_v51, %v7853_v23  ;;  %v2152_v31 = vadd.f32 0.05243302, %v2151_v46 }
 0x1ce   : > { %11461 = vst [vmem:[#allocation27_spill] sm:$0xff] %v7978_v53  ;;  %v2229_v12 = vmul.f32 %v2228_v56, %v7922_v36  ;;  %v4145_v49 = vmul.f32 %v7962_v44, %v7962_v44  ;;  %v614_v20 = vmul.f32 0.5, %v11462_v45  ;;  %v2036_v50 = vadd.f32 1.1283791, %v7920_v63 }
 0x1cf   : > { %v4740_v19 = vmul.f32 %v4644_v6, %v612_v25  ;;  %v6001_v58 = vclamps-f32 %v1662_v33, 1.0  ;;  %v3236_v47 = vadd.f32 1.1283791, %v3235_v32  ;;  %v3351_v29 = vmul.f32 %v3350_v7, %v7899_v61  ;;  %v8001_v25 = vpop.f32.mrf.mxu0 }
 0x1d0   : > { %v7990_v39 = vmul.f32 0.70710677, %v7984_v54  ;;  %v2116_v34 = vadd.f32 1.1283791, %v2115_v62  ;;  %v2265_v26 = vmul.f32 %v7971_v5, %v7971_v5  ;;  %v1762_v46 = vmul.f32 %v1761_v16, %v7433_v11  ;;  %v11465_v16 = vld [vmem:[#allocation38_spill] sm:$0xff] }
 0x1d1   : > { %5012 = vmatmul.f32.gmra.mxu0 %v4740_v19  ;;  %v4646_v51 = vadd.f32 1.0, %v6001_v58  ;;  %v7996_v56 = vmul.f32 0.5, %v7613_v52  ;;  %v4034_v38 = vadd.f32 0.18741608, %v4033_v30  ;;  %v7999_v63 = vmul.f32 0.5, %v7832_v28  ;;  %v6383_v58 = vld [vmem:[%s6559_s13 + $0xb0] sm:$0xff] }
 0x1d2   : > { %v2230_v32 = vadd.f32 0.0036580483, %v2229_v12  ;;  %v6150_v17 = vpop.eup %6149  ;;  %v2153_v3 = vmul.f32 %v2152_v31, %v7882_v59  ;;  %v8004_v62 = vmin.f32 %v4145_v49, 16.0  ;;  %v1763_v21 = vadd.f32 0.112945676, %v1762_v46 }
 0x1d3   : > { %11463 = vst [vmem:[#allocation29_spill] sm:$0xff] %v7996_v56  ;;  %v4742_v7 = vmul.f32 %v4646_v51, %v614_v20  ;;  %v3352_v6 = vadd.f32 0.05243302, %v3351_v29  ;;  %v3465_v52 = vmul.f32 %v7990_v39, %v7990_v39  ;;  %v1689_v33 = vmul.f32 %v6150_v17, %v7967_v48  ;;  %v8019_v20 = vpop.f32.mrf.mxu2  ;;  %562 = vmatmul.f32.gmra.mxu2 %v6383_v58 }
 0x1d4   : > { %11464 = vst [vmem:[#allocation62_spill] sm:$0xff] %v8004_v62  ;;  %v1798_v28 = vmul.f32 3.8918573e-05, %v11465_v16  ;;  %v8010_v30 = vmin.f32 %v2265_v26, 16.0  ;;  %v8013_v12 = vmul.f32 0.70710677, %v8001_v25  ;;  %v1764_v49 = vmul.f32 %v1763_v21, %v7433_v11 }
 0x1d5   : > { %4902 = vmatmul.f32.gmra.mxu3 %v4742_v7  ;;  %v1699_v31 = vand.u32 2147483648, %v7967_v48  ;;  %v1690_v19 = vsub.f32 1.0, %v1689_v33  ;;  %vm1693_vm12 = vweird.f32 %v7967_v48  ;;  %vm1694_vm13 = vweird.f32 %v6150_v17 }
 0x1d6   : > { %v1697_v45 = vand.u32 2147483647, %v7967_v48  ;;  %v8023_v29 = vmul.f32 %v2036_v50, %v7724_v24  ;;  %v4147_v26 = vmul.f32 2.1237322e-06, %v8004_v62  ;;  %v2267_v51 = vmul.f32 2.1237322e-06, %v8010_v30  ;;  %vm8035_vm14 = vmor %vm1693_vm12, %vm1694_vm13 }
 0x1d7   : > { %v1765_v46 = vadd.f32 0.4994258, %v1764_v49  ;;  %v8028_v7 = vmul.f32 %v3236_v47, %v7750_v43  ;;  %v2231_v21 = vmul.f32 %v2230_v32, %v7922_v36  ;;  %v1691_v33 = vmul.f32 %v6150_v17, %v1690_v19 }
 0x1d8   : > { %v1799_v56 = vadd.f32 0.001143296, %v1798_v28  ;;  %v4035_v53 = vmul.f32 %v4034_v38, %v7853_v23  ;;  %v2154_v9 = vadd.f32 0.18741608, %v2153_v3  ;;  %v1700_v50 = vor.u32 1.1754944e-38, %v1699_v31 }
 0x1d9   : > { %11466 = vst [vmem:[#allocation38_spill] sm:$0xff] %v8028_v7  ;;  %v1766_v49 = vmul.f32 %v1765_v46, %v7433_v11  ;;  %v8040_v58 = vmin.f32 %v3465_v52, 16.0  ;;  %v2345_v43 = vmul.f32 %v8013_v12, %v8013_v12  ;;  %v1692_v47 = vadd.f32 %v6150_v17, %v1691_v33 }
 0x1da   : > { %vm1698_vm15 = vcmp.eq.f32.partialorder %v1697_v45, 8.507059e+37  ;;  %v3353_v38 = vmul.f32 %v3352_v6, %v7899_v61  ;;  %v4148_v32 = vadd.f32 0.00028619796, %v4147_v26  ;;  %v2268_v3 = vadd.f32 0.00028619796, %v2267_v51 }
 0x1db   : > { %11469 = vst [vmem:[#allocation63_spill] sm:$0xff] %v8040_v58  ;;  %v8045_v28 = vadd.f32 1.0, %v1766_v49  ;;  %v8048_v48 = vmul.f32 0.5, %v7860_v13  ;;  %v3467_v31 = vmul.f32 2.1237322e-06, %v8040_v58  ;;  %v1696_v11 = vsel %vm8035_vm14, %v6150_v17, %v1692_v47  ;;  %v11471_v13 = vld [vmem:[#allocation43_spill] sm:$0xff] }
 0x1dc   : > { %v1800_v52 = vmul.f32 %v1799_v56, %v11465_v16  ;;  %v2155_v19 = vmul.f32 %v2154_v9, %v7882_v59  ;;  %v2232_v46 = vadd.f32 0.05243302, %v2231_v21  ;;  %v1701_v45 = vsel %vm1698_vm15, %v1700_v50, %v1696_v11  ;;  %v11472_v21 = vld [vmem:[#allocation34_spill] sm:$0xff] }
 0x1dd   : > { %11470 = vst [vmem:[#allocation64_spill] sm:$0xff] %v8048_v48  ;;  %6151 = vrcp.f32 %v8045_v28  ;;  %v8057_v6 = vmul.f32 %v2116_v34, %v7753_v0  ;;  %v4036_v26 = vadd.f32 1.1283791, %v4035_v53  ;;  %v8059_v51 = vmin.f32 %v2345_v43, 16.0 }
 0x1de   : > { %v1702_v33 = vmul.f32 %v1701_v45, %v11471_v13  ;;  %v3354_v49 = vadd.f32 0.18741608, %v3353_v38  ;;  %v4149_v24 = vmul.f32 %v4148_v32, %v8004_v62  ;;  %v2269_v17 = vmul.f32 %v2268_v3, %v8010_v30 }
 0x1df   : > { %v1801_v56 = vadd.f32 0.014752088, %v1800_v52  ;;  %v3468_v47 = vadd.f32 0.00028619796, %v3467_v31  ;;  %v2347_v9 = vmul.f32 2.1237322e-06, %v8059_v51  ;;  %v2233_v53 = vmul.f32 %v2232_v46, %v7922_v36 }
 0x1e0   : > { %v615_v50 = vmul.f32 0.5, %v11472_v21  ;;  %v6002_v11 = vclamps-f32 %v1702_v33, 1.0  ;;  %v2156_v23 = vadd.f32 1.1283791, %v2155_v19  ;;  %v8067_v0 = vmul.f32 0.5, %v7871_v57 }
 0x1e1   : > { %v1802_v34 = vmul.f32 %v1801_v56, %v11465_v16  ;;  %v8072_v43 = vmul.f32 %v4036_v26, %v7823_v2  ;;  %v1878_v32 = vmul.f32 3.8918573e-05, %v7540_v42  ;;  %v1918_v3 = vmul.f32 3.8918573e-05, %v7631_v41 }
 0x1e2   : > { %v4647_v38 = vadd.f32 1.0, %v6002_v11  ;;  %v3355_v52 = vmul.f32 %v3354_v49, %v7899_v61  ;;  %v4150_v45 = vadd.f32 0.0036580483, %v4149_v24  ;;  %v2270_v19 = vadd.f32 0.0036580483, %v2269_v17 }
 0x1e3   : > { %11473 = vst [vmem:[#allocation43_spill] sm:$0xff] %v8072_v43  ;;  %v6152_v31 = vpop.eup %6151  ;;  %v1803_v13 = vadd.f32 0.112945676, %v1802_v34  ;;  %v3469_v57 = vmul.f32 %v3468_v47, %v8040_v58  ;;  %v2348_v33 = vadd.f32 0.00028619796, %v2347_v9  ;;  %vm1773_vm0 = vweird.f32 %v8045_v28 }
 0x1e4   : > { %v4743_v46 = vmul.f32 %v4647_v38, %v615_v50  ;;  %v1769_v56 = vmul.f32 %v6152_v31, %v8045_v28  ;;  %v1777_v2 = vand.u32 2147483647, %v8045_v28  ;;  %v1779_v26 = vand.u32 2147483648, %v8045_v28 }
 0x1e5   : > { %v1804_v21 = vmul.f32 %v1803_v13, %v11465_v16  ;;  %vm1774_vm1 = vweird.f32 %v6152_v31  ;;  %v1879_v49 = vadd.f32 0.001143296, %v1878_v32  ;;  %v1919_v24 = vadd.f32 0.001143296, %v1918_v3  ;;  %v4856_v13 = vld [vmem:[%s11268_s2 + $0x138] sm:$0xff] }
 0x1e6   : > { %5015 = vmatmul.f32.gmra.mxu0 %v4743_v46  ;;  %v1770_v11 = vsub.f32 1.0, %v1769_v56  ;;  %v8084_v17 = vmul.f32 %v2156_v23, %v7842_v27  ;;  %v2234_v47 = vadd.f32 0.18741608, %v2233_v53  ;;  %v4151_v9 = vmul.f32 %v4150_v45, %v8004_v62  ;;  %vm8098_vm2 = vmor %vm1773_vm0, %vm1774_vm1  ;;  %5099 = vmatpush.msrb.mxu1 %v4856_v13  ;;  %v8121_v13 = vpop.f32.mrf.mxu3 }
 0x1e7   : > { %v1805_v50 = vadd.f32 0.4994258, %v1804_v21  ;;  %v8088_v34 = vmul.f32 0.70710677, %v7874_v10  ;;  %v1880_v46 = vmul.f32 %v1879_v49, %v7540_v42  ;;  %v1920_v32 = vmul.f32 %v1919_v24, %v7631_v41 }
 0x1e8   : > { %v1771_v38 = vmul.f32 %v6152_v31, %v1770_v11  ;;  %v2271_v3 = vmul.f32 %v2270_v19, %v8010_v30  ;;  %v3470_v27 = vadd.f32 0.0036580483, %v3469_v57  ;;  %v1780_v53 = vor.u32 1.1754944e-38, %v1779_v26  ;;  %v8105_v57 = vpop.f32.mrf.mxu1 }
 0x1e9   : > { %v1806_v45 = vmul.f32 %v1805_v50, %v11465_v16  ;;  %v2349_v56 = vmul.f32 %v2348_v33, %v8059_v51  ;;  %vm1778_vm3 = vcmp.eq.f32.partialorder %v1777_v2, 8.507059e+37  ;;  %v1881_v11 = vadd.f32 0.014752088, %v1880_v46  ;;  %v11477_v46 = vld [vmem:[#allocation45_spill] sm:$0xff] }
 0x1ea   : > { %v1772_v21 = vadd.f32 %v6152_v31, %v1771_v38  ;;  %v3356_v49 = vadd.f32 1.1283791, %v3355_v52  ;;  %v2235_v24 = vmul.f32 %v2234_v47, %v7922_v36  ;;  %v4152_v19 = vadd.f32 0.05243302, %v4151_v9 }
 0x1eb   : > { %v8107_v28 = vadd.f32 1.0, %v1806_v45  ;;  %v4265_v43 = vmul.f32 %v8088_v34, %v8088_v34  ;;  %v1882_v26 = vmul.f32 %v1881_v11, %v7540_v42  ;;  %v1921_v33 = vadd.f32 0.014752088, %v1920_v32 }
 0x1ec   : > { %v1776_v16 = vsel %vm8098_vm2, %v6152_v31, %v1772_v21  ;;  %v8115_v2 = vmul.f32 0.5, %v7768_v1  ;;  %v2272_v52 = vadd.f32 0.05243302, %v2271_v3  ;;  %v3471_v47 = vmul.f32 %v3470_v27, %v8040_v58 }
 0x1ed   : > { %v1781_v9 = vsel %vm1778_vm3, %v1780_v53, %v1776_v16  ;;  %v2350_v50 = vadd.f32 0.0036580483, %v2349_v56  ;;  %v8119_v38 = vmul.f32 0.70710677, %v8105_v57  ;;  %6153 = vrcp.f32 %v8107_v28  ;;  %v8145_v16 = vpop.f32.mrf.mxu0 }
 0x1ee   : > { %11476 = vst [vmem:[#allocation34_spill] sm:$0xff] %v8115_v2  ;;  %v1782_v45 = vmul.f32 %v1781_v9, %v11477_v46  ;;  %v2236_v31 = vadd.f32 1.1283791, %v2235_v24  ;;  %v4153_v32 = vmul.f32 %v4152_v19, %v8004_v62  ;;  %v8127_v1 = vmul.f32 0.5, %v7955_v40 }
 0x1ef   : > { %v8130_v3 = vmul.f32 0.70710677, %v8121_v13  ;;  %v8132_v27 = vmin.f32 %v4265_v43, 16.0  ;;  %v1883_v53 = vadd.f32 0.112945676, %v1882_v26  ;;  %v1922_v56 = vmul.f32 %v1921_v33, %v7631_v41 }
 0x1f0   : > { %11478 = vst [vmem:[#allocation45_spill] sm:$0xff] %v8127_v1  ;;  %v6004_v23 = vclamps-f32 %v1782_v45, 1.0  ;;  %v8136_v21 = vmul.f32 %v3356_v49, %v7867_v35  ;;  %v2273_v11 = vmul.f32 %v2272_v52, %v8010_v30  ;;  %v8140_v24 = vmul.f32 0.5, %v7984_v54  ;;  %v8156_v52 = vpop.f32.mrf.mxu2  ;;  %v11484_v45 = vld [vmem:[#allocation41_spill] sm:$0xff] }
 0x1f1   : > { %11479 = vst [vmem:[#allocation65_spill] sm:$0xff] %v8132_v27  ;;  %v3472_v40 = vadd.f32 0.05243302, %v3471_v47  ;;  %v2351_v19 = vmul.f32 %v2350_v50, %v8059_v51  ;;  %v2385_v43 = vmul.f32 %v8119_v38, %v8119_v38  ;;  %v1884_v9 = vmul.f32 %v1883_v53, %v7540_v42  ;;  %v6384_v47 = vld [vmem:[%s6559_s13 + $0xb8] sm:$0xff] }
 0x1f2   : > { %11480 = vst [vmem:[#allocation66_spill] sm:$0xff] %v8136_v21  ;;  %v4649_v26 = vadd.f32 1.0, %v6004_v23  ;;  %v8149_v33 = vmul.f32 %v2236_v31, %v7887_v37  ;;  %v4154_v35 = vadd.f32 0.18741608, %v4153_v32  ;;  %v8152_v49 = vmul.f32 0.5, %v8001_v25  ;;  %565 = vmatmul.f32.gmra.mxu2 %v6384_v47 }
 0x1f3   : > { %11481 = vst [vmem:[#allocation67_spill] sm:$0xff] %v8140_v24  ;;  %v3585_v54 = vmul.f32 %v8130_v3, %v8130_v3  ;;  %v6154_v50 = vpop.eup %6153  ;;  %v4267_v46 = vmul.f32 2.1237322e-06, %v8132_v27  ;;  %v1885_v53 = vadd.f32 0.4994258, %v1884_v9  ;;  %v3473_v31 = vmul.f32 %v3472_v40, %v8040_v58 }
 0x1f4   : > { %11482 = vst [vmem:[#allocation68_spill] sm:$0xff] %v8152_v49  ;;  %v4745_v23 = vmul.f32 %v4649_v26, %v11484_v45  ;;  %v1923_v2 = vadd.f32 0.112945676, %v1922_v56  ;;  %v2274_v37 = vadd.f32 0.18741608, %v2273_v11  ;;  %v1809_v32 = vmul.f32 %v6154_v50, %v8107_v28 }
 0x1f5   : > { %11483 = vst [vmem:[#allocation69_spill] sm:$0xff] %v8156_v52  ;;  %v8163_v25 = vmul.f32 0.70710677, %v8145_v16  ;;  %v2352_v24 = vadd.f32 0.05243302, %v2351_v19  ;;  %v8166_v48 = vmin.f32 %v2385_v43, 16.0  ;;  %v1886_v21 = vmul.f32 %v1885_v53, %v7540_v42 }
 0x1f6   : > { %4905 = vmatmul.f32.gmra.mxu3 %v4745_v23  ;;  %v1819_v47 = vand.u32 2147483648, %v8107_v28  ;;  %v1810_v7 = vsub.f32 1.0, %v1809_v32  ;;  %vm1813_vm4 = vweird.f32 %v8107_v28  ;;  %vm1814_vm5 = vweird.f32 %v6154_v50 }
 0x1f7   : > { %11485 = vst [vmem:[#allocation41_spill] sm:$0xff] %v8163_v25  ;;  %v1817_v56 = vand.u32 2147483647, %v8107_v28  ;;  %v4268_v11 = vadd.f32 0.00028619796, %v4267_v46  ;;  %v8172_v40 = vmin.f32 %v3585_v54, 16.0  ;;  %v1924_v19 = vmul.f32 %v1923_v2, %v7631_v41  ;;  %vm8183_vm6 = vmor %vm1813_vm4, %vm1814_vm5 }
 0x1f8   : > { %v8174_v26 = vadd.f32 1.0, %v1886_v21  ;;  %v2387_v43 = vmul.f32 2.1237322e-06, %v8166_v48  ;;  %v2465_v9 = vmul.f32 %v8163_v25, %v8163_v25  ;;  %v1811_v45 = vmul.f32 %v6154_v50, %v1810_v7  ;;  %v4855_v7 = vld [vmem:[%s11268_s2 + $0x130] sm:$0xff] }
 0x1f9   : > { %v1998_v42 = vmul.f32 3.8918573e-05, %v7666_v60  ;;  %v4155_v23 = vmul.f32 %v4154_v35, %v8004_v62  ;;  %v3587_v53 = vmul.f32 2.1237322e-06, %v8172_v40  ;;  %v1820_v21 = vor.u32 1.1754944e-38, %v1819_v47  ;;  %5100 = vmatpush.msrb.mxu1 %v4855_v7 }
 0x1fa   : > { %6155 = vrcp.f32 %v8174_v26  ;;  %v2275_v2 = vmul.f32 %v2274_v37, %v8010_v30  ;;  %v3474_v54 = vadd.f32 0.18741608, %v3473_v31  ;;  %v1812_v46 = vadd.f32 %v6154_v50, %v1811_v45 }
 0x1fb   : > { %vm1818_vm7 = vcmp.eq.f32.partialorder %v1817_v56, 8.507059e+37  ;;  %v2353_v35 = vmul.f32 %v2352_v24, %v8059_v51  ;;  %v4269_v32 = vmul.f32 %v4268_v11, %v8132_v27  ;;  %v1925_v62 = vadd.f32 0.4994258, %v1924_v19 }
 0x1fc   : > { %v1999_v61 = vadd.f32 0.001143296, %v1998_v42  ;;  %v8195_v47 = vmul.f32 0.5, %v7874_v10  ;;  %v2388_v49 = vadd.f32 0.00028619796, %v2387_v43  ;;  %v8197_v1 = vmin.f32 %v2465_v9, 16.0 }
 0x1fd   : > { %v1816_v37 = vsel %vm8183_vm6, %v6154_v50, %v1812_v46  ;;  %v3588_v31 = vadd.f32 0.00028619796, %v3587_v53  ;;  %v1926_v45 = vmul.f32 %v1925_v62, %v7631_v41  ;;  %v4156_v25 = vadd.f32 1.1283791, %v4155_v23 }
 0x1fe   : > { %11488 = vst [vmem:[#allocation70_spill] sm:$0xff] %v8195_v47  ;;  %v1821_v56 = vsel %vm1818_vm7, %v1820_v21, %v1816_v37  ;;  %v2000_v24 = vmul.f32 %v1999_v61, %v7666_v60  ;;  %v2276_v11 = vadd.f32 1.1283791, %v2275_v2  ;;  %v2467_v19 = vmul.f32 2.1237322e-06, %v8197_v1 }
 0x1ff   : > { %v1822_v42 = vmul.f32 %v1821_v56, %v7738_v4  ;;  %v3475_v43 = vmul.f32 %v3474_v54, %v8040_v58  ;;  %v4270_v9 = vadd.f32 0.0036580483, %v4269_v32  ;;  %v8206_v7 = vadd.f32 1.0, %v1926_v45 }
 0x200   : > { %v6156_v10 = vpop.eup %6155  ;;  %v2001_v28 = vadd.f32 0.014752088, %v2000_v24  ;;  %v2354_v50 = vadd.f32 0.18741608, %v2353_v35  ;;  %v2389_v53 = vmul.f32 %v2388_v49, %v8166_v48  ;;  %v3589_v61 = vmul.f32 %v3588_v31, %v8172_v40  ;;  %v11490_v31 = vld [vmem:[#allocation47_spill] sm:$0xff] }
 0x201   : > { %v6005_v21 = vclamps-f32 %v1822_v42, 1.0  ;;  %v1889_v41 = vmul.f32 %v6156_v10, %v8174_v26  ;;  %vm1893_vm8 = vweird.f32 %v8174_v26  ;;  %v1899_v62 = vand.u32 2147483648, %v8174_v26 }
 0x202   : > { %6157 = vrcp.f32 %v8206_v7  ;;  %vm1894_vm9 = vweird.f32 %v6156_v10  ;;  %v1897_v2 = vand.u32 2147483647, %v8174_v26  ;;  %v4271_v54 = vmul.f32 %v4270_v9, %v8132_v27 }
 0x203   : > { %v4650_v4 = vadd.f32 1.0, %v6005_v21  ;;  %v1890_v23 = vsub.f32 1.0, %v1889_v41  ;;  %v2468_v46 = vadd.f32 0.00028619796, %v2467_v19  ;;  %v2002_v49 = vmul.f32 %v2001_v28, %v7666_v60  ;;  %vm8227_vm10 = vmor %vm1893_vm8, %vm1894_vm9 }
 0x204   : > { %v2038_v35 = vmul.f32 3.8918573e-05, %v7761_v55  ;;  %v8219_v32 = vmul.f32 %v4156_v25, %v7962_v44  ;;  %v2390_v37 = vadd.f32 0.0036580483, %v2389_v53  ;;  %v8223_v24 = vmul.f32 %v2276_v11, %v7971_v5 }
 0x205   : > { %v4746_v56 = vmul.f32 %v4650_v4, %v11490_v31  ;;  %v1891_v45 = vmul.f32 %v6156_v10, %v1890_v23  ;;  %v3476_v42 = vadd.f32 1.1283791, %v3475_v43  ;;  %v1900_v19 = vor.u32 1.1754944e-38, %v1899_v62  ;;  %v6385_v23 = vld [vmem:[%s6559_s13 + $0xc0] sm:$0xff] }
 0x206   : > { %11489 = vst [vmem:[#allocation71_spill] sm:$0xff] %v8219_v32  ;;  %v2003_v28 = vadd.f32 0.112945676, %v2002_v49  ;;  %v2355_v44 = vmul.f32 %v2354_v50, %v8059_v51  ;;  %v3590_v25 = vadd.f32 0.0036580483, %v3589_v61  ;;  %vm1898_vm11 = vcmp.eq.f32.partialorder %v1897_v2, 8.507059e+37  ;;  %v8241_v61 = vpop.f32.mrf.mxu2  ;;  %568 = vmatmul.f32.gmra.mxu2 %v6385_v23 }
 0x207   : > { %5018 = vmatmul.f32.gmra.mxu0 %v4746_v56  ;;  %v1892_v53 = vadd.f32 %v6156_v10, %v1891_v45  ;;  %v4272_v41 = vadd.f32 0.05243302, %v4271_v54  ;;  %v2469_v5 = vmul.f32 %v2468_v46, %v8197_v1  ;;  %v2039_v26 = vadd.f32 0.001143296, %v2038_v35 }
 0x208   : > { %v6158_v21 = vpop.eup %6157  ;;  %v2004_v11 = vmul.f32 %v2003_v28, %v7666_v60  ;;  %v2391_v43 = vmul.f32 %v2390_v37, %v8166_v48  ;;  %v8236_v4 = vmul.f32 0.70710677, %v8019_v20  ;;  %vm1933_vm12 = vweird.f32 %v8206_v7 }
 0x209   : > { %v1896_v62 = vsel %vm8227_vm10, %v6156_v10, %v1892_v53  ;;  %v1929_v50 = vmul.f32 %v6158_v21, %v8206_v7  ;;  %v1939_v54 = vand.u32 2147483648, %v8206_v7  ;;  %vm1934_vm13 = vweird.f32 %v6158_v21 }
 0x20a   : > { %v1901_v2 = vsel %vm1898_vm11, %v1900_v19, %v1896_v62  ;;  %v2005_v46 = vadd.f32 0.4994258, %v2004_v11  ;;  %v1937_v37 = vand.u32 2147483647, %v8206_v7  ;;  %v2470_v31 = vadd.f32 0.0036580483, %v2469_v5  ;;  %v8258_v62 = vpop.f32.mrf.mxu1  ;;  %vm8262_vm14 = vmor %vm1933_vm12, %vm1934_vm13  ;;  %v8273_v7 = vpop.f32.mrf.mxu3 }
 0x20b   : > { %v1902_v49 = vmul.f32 %v1901_v2, %v7808_v15  ;;  %v1930_v35 = vsub.f32 1.0, %v1929_v50  ;;  %v2040_v56 = vmul.f32 %v2039_v26, %v7761_v55  ;;  %v2118_v45 = vmul.f32 3.8918573e-05, %v7790_v14 }
 0x20c   : > { %v2006_v10 = vmul.f32 %v2005_v46, %v7666_v60  ;;  %v8252_v9 = vmul.f32 0.5, %v8105_v57  ;;  %v3591_v19 = vmul.f32 %v3590_v25, %v8172_v40  ;;  %v4273_v15 = vmul.f32 %v4272_v41, %v8132_v27 }
 0x20d   : > { %v6007_v28 = vclamps-f32 %v1902_v49, 1.0  ;;  %v1931_v53 = vmul.f32 %v6158_v21, %v1930_v35  ;;  %v4385_v11 = vmul.f32 %v8236_v4, %v8236_v4  ;;  %v1940_v5 = vor.u32 1.1754944e-38, %v1939_v54  ;;  %v11495_v49 = vld [vmem:[#allocation49_spill] sm:$0xff] }
 0x20e   : > { %v8266_v57 = vadd.f32 1.0, %v2006_v10  ;;  %v2392_v26 = vadd.f32 0.05243302, %v2391_v43  ;;  %vm1938_vm15 = vcmp.eq.f32.partialorder %v1937_v37, 8.507059e+37  ;;  %v2471_v41 = vmul.f32 %v2470_v31, %v8197_v1 }
 0x20f   : > { %v4652_v25 = vadd.f32 1.0, %v6007_v28  ;;  %v1932_v50 = vadd.f32 %v6158_v21, %v1931_v53  ;;  %v2041_v23 = vadd.f32 0.014752088, %v2040_v56  ;;  %v2119_v2 = vadd.f32 0.001143296, %v2118_v45 }
 0x210   : > { %6159 = vrcp.f32 %v8266_v57  ;;  %v8271_v46 = vmul.f32 0.70710677, %v8258_v62  ;;  %v2158_v43 = vmul.f32 3.8918573e-05, %v7882_v59  ;;  %v8280_v37 = vmul.f32 %v3476_v42, %v7990_v39 }
 0x211   : > { %v4748_v35 = vmul.f32 %v4652_v25, %v11495_v49  ;;  %v1936_v54 = vsel %vm8262_vm14, %v6158_v21, %v1932_v50  ;;  %v8282_v31 = vmin.f32 %v4385_v11, 16.0  ;;  %v8285_v10 = vmul.f32 0.70710677, %v8273_v7 }
 0x212   : > { %11496 = vst [vmem:[#allocation47_spill] sm:$0xff] %v8280_v37  ;;  %v1941_v56 = vsel %vm1938_vm15, %v1940_v5, %v1936_v54  ;;  %v2356_v45 = vadd.f32 1.1283791, %v2355_v44  ;;  %v4274_v28 = vadd.f32 0.18741608, %v4273_v15  ;;  %v2393_v60 = vmul.f32 %v2392_v26, %v8166_v48 }
 0x213   : > { %11497 = vst [vmem:[#allocation49_spill] sm:$0xff] %v8282_v31  ;;  %v3592_v53 = vadd.f32 0.05243302, %v3591_v19  ;;  %4908 = vmatmul.f32.gmra.mxu3 %v4748_v35  ;;  %v1942_v25 = vmul.f32 %v1941_v56, %v7894_v8  ;;  %v8289_v21 = vadd.f32 0.05243302, %v2471_v41  ;;  %v2042_v50 = vmul.f32 %v2041_v23, %v7761_v55  ;;  %v8299_v41 = vpop.f32.mrf.mxu0 }
 0x214   : > { %v2120_v39 = vmul.f32 %v2119_v2, %v7790_v14  ;;  %v2505_v42 = vmul.f32 %v8271_v46, %v8271_v46  ;;  %v2159_v49 = vadd.f32 0.001143296, %v2158_v43  ;;  %v2238_v44 = vmul.f32 3.8918573e-05, %v7922_v36 }
 0x215   : > { %v6008_v11 = vclamps-f32 %v1942_v25, 1.0  ;;  %v4387_v19 = vmul.f32 2.1237322e-06, %v8282_v31  ;;  %v3705_v8 = vmul.f32 %v8285_v10, %v8285_v10  ;;  %v2043_v5 = vadd.f32 0.112945676, %v2042_v50 }
 0x216   : > { %v6160_v15 = vpop.eup %6159  ;;  %v2121_v26 = vadd.f32 0.014752088, %v2120_v39  ;;  %vm2013_vm0 = vweird.f32 %v8266_v57  ;;  %v2017_v35 = vand.u32 2147483647, %v8266_v57  ;;  %v2019_v54 = vand.u32 2147483648, %v8266_v57 }
 0x217   : > { %v4653_v23 = vadd.f32 1.0, %v6008_v11  ;;  %v2009_v2 = vmul.f32 %v6160_v15, %v8266_v57  ;;  %v2044_v43 = vmul.f32 %v2043_v5, %v7761_v55  ;;  %v2160_v25 = vmul.f32 %v2159_v49, %v7882_v59  ;;  %v4854_v11 = vld [vmem:[%s11268_s2 + $0x128] sm:$0xff] }
 0x218   : > { %v2122_v56 = vmul.f32 %v2121_v26, %v7790_v14  ;;  %vm2014_vm1 = vweird.f32 %v6160_v15  ;;  %v2239_v47 = vadd.f32 0.001143296, %v2238_v44  ;;  %v3593_v32 = vmul.f32 %v3592_v53, %v8172_v40  ;;  %5101 = vmatpush.msrb.mxu1 %v4854_v11  ;;  %v6386_v11 = vld [vmem:[%s6559_s13 + $0xc8] sm:$0xff] }
 0x219   : > { %v4749_v50 = vmul.f32 %v4653_v23, %v7731_v18  ;;  %v2010_v39 = vsub.f32 1.0, %v2009_v2  ;;  %v8314_v37 = vmul.f32 0.70710677, %v8299_v41  ;;  %v2045_v58 = vadd.f32 0.4994258, %v2044_v43  ;;  %vm8321_vm2 = vmor %vm2013_vm0, %vm2014_vm1 }
 0x21a   : > { %v2123_v5 = vadd.f32 0.112945676, %v2122_v56  ;;  %v8316_v26 = vmin.f32 %v2505_v42, 16.0  ;;  %v2161_v18 = vadd.f32 0.014752088, %v2160_v25  ;;  %v2240_v23 = vmul.f32 %v2239_v47, %v7922_v36 }
 0x21b   : > { %5021 = vmatmul.f32.gmra.mxu0 %v4749_v50  ;;  %v2011_v49 = vmul.f32 %v6160_v15, %v2010_v39  ;;  %v4388_v2 = vadd.f32 0.00028619796, %v4387_v19  ;;  %v2020_v53 = vor.u32 1.1754944e-38, %v2019_v54  ;;  %v2046_v43 = vmul.f32 %v2045_v58, %v7761_v55 }
 0x21c   : > { %v2124_v56 = vmul.f32 %v2123_v5, %v7790_v14  ;;  %v8327_v42 = vmin.f32 %v3705_v8, 16.0  ;;  %vm2018_vm3 = vcmp.eq.f32.partialorder %v2017_v35, 8.507059e+37  ;;  %v2162_v25 = vmul.f32 %v2161_v18, %v7882_v59  ;;  %v8341_v35 = vpop.f32.mrf.mxu2  ;;  %571 = vmatmul.f32.gmra.mxu2 %v6386_v11 }
 0x21d   : > { %v2012_v50 = vadd.f32 %v6160_v15, %v2011_v49  ;;  %v2585_v47 = vmul.f32 %v8314_v37, %v8314_v37  ;;  %v8332_v57 = vadd.f32 1.0, %v2046_v43  ;;  %v2241_v39 = vadd.f32 0.014752088, %v2240_v23 }
 0x21e   : > { %11500 = vst [vmem:[#allocation72_spill] sm:$0xff] %v8327_v42  ;;  %v2125_v19 = vadd.f32 0.4994258, %v2124_v56  ;;  %v8335_v54 = vmul.f32 %v2356_v45, %v8013_v12  ;;  %v2507_v55 = vmul.f32 2.1237322e-06, %v8316_v26  ;;  %v4275_v5 = vmul.f32 %v4274_v28, %v8132_v27 }
 0x21f   : > { %v3707_v58 = vmul.f32 2.1237322e-06, %v8327_v42  ;;  %v2016_v8 = vsel %vm8321_vm2, %v6160_v15, %v2012_v50  ;;  %v4389_v49 = vmul.f32 %v4388_v2, %v8282_v31  ;;  %6161 = vrcp.f32 %v8332_v57 }
 0x220   : > { %v2021_v18 = vsel %vm2018_vm3, %v2020_v53, %v2016_v8  ;;  %v2394_v12 = vadd.f32 0.18741608, %v2393_v60  ;;  %v3594_v45 = vadd.f32 0.18741608, %v3593_v32  ;;  %v2163_v43 = vadd.f32 0.112945676, %v2162_v25 }
 0x221   : > { %v2022_v23 = vmul.f32 %v2021_v18, %v7907_v22  ;;  %v2473_v44 = vmul.f32 %v8289_v21, %v8197_v1  ;;  %v8350_v15 = vmin.f32 %v2585_v47, 16.0  ;;  %v2126_v56 = vmul.f32 %v2125_v19, %v7790_v14 }
 0x222   : > { %v2242_v50 = vmul.f32 %v2241_v39, %v7922_v36  ;;  %v8355_v28 = vmul.f32 0.5, %v8121_v13  ;;  %v2508_v2 = vadd.f32 0.00028619796, %v2507_v55  ;;  %v3708_v53 = vadd.f32 0.00028619796, %v3707_v58 }
 0x223   : > { %v6010_v8 = vclamps-f32 %v2022_v23, 1.0  ;;  %v8358_v32 = vmul.f32 0.5, %v8145_v16  ;;  %v4390_v22 = vadd.f32 0.0036580483, %v4389_v49  ;;  %v2587_v60 = vmul.f32 2.1237322e-06, %v8350_v15 }
 0x224   : > { %11501 = vst [vmem:[#allocation73_spill] sm:$0xff] %v8355_v28  ;;  %v8361_v25 = vadd.f32 1.0, %v2126_v56  ;;  %v4276_v21 = vadd.f32 1.1283791, %v4275_v5  ;;  %v2395_v47 = vmul.f32 %v2394_v12, %v8166_v48  ;;  %v2164_v19 = vmul.f32 %v2163_v43, %v7882_v59  ;;  %v11502_v49 = vld [vmem:[#allocation20_spill] sm:$0xff] }
 0x225   : > { %v4655_v14 = vadd.f32 1.0, %v6010_v8  ;;  %v6162_v39 = vpop.eup %6161  ;;  %v3595_v13 = vmul.f32 %v3594_v45, %v8172_v40  ;;  %v2474_v55 = vadd.f32 0.18741608, %v2473_v44  ;;  %v2243_v58 = vadd.f32 0.112945676, %v2242_v50  ;;  %v4853_v50 = vld [vmem:[%s11268_s2 + $0x120] sm:$0xff] }
 0x226   : > { %6163 = vrcp.f32 %v8361_v25  ;;  %v2509_v16 = vmul.f32 %v2508_v2, %v8316_v26  ;;  %v3709_v11 = vmul.f32 %v3708_v53, %v8327_v42  ;;  %v2049_v5 = vmul.f32 %v6162_v39, %v8332_v57  ;;  %5102 = vmatpush.msrb.mxu1 %v4853_v50 }
 0x227   : > { %v4751_v18 = vmul.f32 %v4655_v14, %v11502_v49  ;;  %v4391_v12 = vmul.f32 %v4390_v22, %v8282_v31  ;;  %v2588_v23 = vadd.f32 0.00028619796, %v2587_v60  ;;  %vm2053_vm4 = vweird.f32 %v8332_v57 }
 0x228   : > { %v2059_v43 = vand.u32 2147483648, %v8332_v57  ;;  %v2050_v45 = vsub.f32 1.0, %v2049_v5  ;;  %vm2054_vm5 = vweird.f32 %v6162_v39  ;;  %v2057_v44 = vand.u32 2147483647, %v8332_v57 }
 0x229   : > { %4911 = vmatmul.f32.gmra.mxu3 %v4751_v18  ;;  %v2165_v56 = vadd.f32 0.4994258, %v2164_v19  ;;  %v8379_v2 = vmul.f32 %v4276_v21, %v8088_v34  ;;  %v2396_v53 = vadd.f32 1.1283791, %v2395_v47  ;;  %v3596_v8 = vadd.f32 1.1283791, %v3595_v13  ;;  %vm8387_vm6 = vmor %vm2053_vm4, %vm2054_vm5 }
 0x22a   : > { %v2244_v22 = vmul.f32 %v2243_v58, %v7922_v36  ;;  %v2510_v60 = vadd.f32 0.0036580483, %v2509_v16  ;;  %v3710_v14 = vadd.f32 0.0036580483, %v3709_v11  ;;  %v2051_v49 = vmul.f32 %v6162_v39, %v2050_v45  ;;  %v8396_v16 = vpop.f32.mrf.mxu2 }
 0x22b   : > { %11503 = vst [vmem:[#allocation20_spill] sm:$0xff] %v8379_v2  ;;  %v2166_v18 = vmul.f32 %v2165_v56, %v7882_v59  ;;  %v4392_v19 = vadd.f32 0.05243302, %v4391_v12  ;;  %v2589_v27 = vmul.f32 %v2588_v23, %v8350_v15  ;;  %v2060_v21 = vor.u32 1.1754944e-38, %v2059_v43  ;;  %v6387_v12 = vld [vmem:[%s6559_s13 + $0xd0] sm:$0xff] }
 0x22c   : > { %v6164_v5 = vpop.eup %6163  ;;  %v2245_v47 = vadd.f32 0.4994258, %v2244_v22  ;;  %v2052_v13 = vadd.f32 %v6162_v39, %v2051_v49  ;;  %vm8391_vm7 = vcmp.eq.f32.partialorder %v2057_v44, 8.507059e+37  ;;  %v2278_v11 = vmul.f32 3.8918573e-05, %v8010_v30  ;;  %574 = vmatmul.f32.gmra.mxu2 %v6387_v12 }
 0x22d   : > { %v2129_v59 = vmul.f32 %v6164_v5, %v8361_v25  ;;  %vm2133_vm8 = vweird.f32 %v8361_v25  ;;  %v2139_v57 = vand.u32 2147483648, %v8361_v25  ;;  %v2167_v23 = vadd.f32 1.0, %v2166_v18 }
 0x22e   : > { %v2246_v43 = vmul.f32 %v2245_v47, %v7922_v36  ;;  %v2056_v45 = vsel %vm8387_vm6, %v6162_v39, %v2052_v13  ;;  %vm2134_vm9 = vweird.f32 %v6164_v5  ;;  %v2137_v56 = vand.u32 2147483647, %v8361_v25 }
 0x22f   : > { %v2130_v44 = vsub.f32 1.0, %v2129_v59  ;;  %v2511_v50 = vmul.f32 %v2510_v60, %v8316_v26  ;;  %v2590_v22 = vadd.f32 0.0036580483, %v2589_v27  ;;  %v2061_v49 = vsel %vm8391_vm7, %v2060_v21, %v2056_v45  ;;  %vm8417_vm10 = vmor %vm2133_vm8, %vm2134_vm9 }
 0x230   : > { %6165 = vrcp.f32 %v2167_v23  ;;  %v8410_v12 = vmul.f32 %v2474_v55, %v8197_v1  ;;  %v3711_v18 = vmul.f32 %v3710_v14, %v8327_v42  ;;  %v2062_v36 = vmul.f32 %v2061_v49, %v8023_v29 }
 0x231   : > { %v2131_v34 = vmul.f32 %v6164_v5, %v2130_v44  ;;  %v4393_v39 = vmul.f32 %v4392_v19, %v8282_v31  ;;  %v2140_v27 = vor.u32 1.1754944e-38, %v2139_v57  ;;  %v8421_v60 = vadd.f32 1.0, %v2246_v43 }
 0x232   : > { %v2279_v21 = vadd.f32 0.001143296, %v2278_v11  ;;  %v8424_v55 = vmul.f32 0.5, %v8019_v20  ;;  %v6011_v13 = vclamps-f32 %v2062_v36, 1.0  ;;  %vm2138_vm11 = vcmp.eq.f32.partialorder %v2137_v56, 8.507059e+37  ;;  %v11512_v56 = vld [vmem:[#allocation23_spill] sm:$0xff] }
 0x233   : > { %v2132_v14 = vadd.f32 %v6164_v5, %v2131_v34  ;;  %v8427_v29 = vmul.f32 %v2396_v53, %v8119_v38  ;;  %v2512_v19 = vadd.f32 0.05243302, %v2511_v50  ;;  %v2591_v25 = vmul.f32 %v2590_v22, %v8350_v15  ;;  %v8437_v53 = vpop.f32.mrf.mxu1 }
 0x234   : > { %11510 = vst [vmem:[#allocation74_spill] sm:$0xff] %v8424_v55  ;;  %6167 = vrcp.f32 %v8421_v60  ;;  %v8432_v58 = vmul.f32 %v3596_v8, %v8130_v3  ;;  %v3712_v59 = vadd.f32 0.05243302, %v3711_v18  ;;  %v4656_v57 = vadd.f32 1.0, %v6011_v13 }
 0x235   : > { %v2136_v20 = vsel %vm8417_vm10, %v6164_v5, %v2132_v14  ;;  %v4394_v43 = vadd.f32 0.18741608, %v4393_v39  ;;  %v2177_v44 = vand.u32 2147483647, %v2167_v23  ;;  %v2280_v38 = vmul.f32 %v2279_v21, %v8010_v30 }
 0x236   : > { %11511 = vst [vmem:[#allocation75_spill] sm:$0xff] %v8432_v58  ;;  %v6166_v11 = vpop.eup %6165  ;;  %v2141_v45 = vsel %vm2138_vm11, %v2140_v27, %v2136_v20  ;;  %v4752_v50 = vmul.f32 %v4656_v57, %v11512_v56  ;;  %v2358_v3 = vmul.f32 3.8918573e-05, %v8059_v51  ;;  %v2513_v8 = vmul.f32 %v2512_v19, %v8316_v26  ;;  %v11518_v56 = vld [vmem:[#allocation61_spill] sm:$0xff] }
 0x237   : > { %v2142_v22 = vmul.f32 %v2141_v45, %v8057_v6  ;;  %v2169_v49 = vmul.f32 %v6166_v11, %v2167_v23  ;;  %v2592_v18 = vadd.f32 0.05243302, %v2591_v25  ;;  %v8444_v5 = vmul.f32 0.70710677, %v8156_v52 }
 0x238   : > { %v2179_v36 = vand.u32 2147483648, %v2167_v23  ;;  %5024 = vmatmul.f32.gmra.mxu0 %v4752_v50  ;;  %vm2173_vm12 = vweird.f32 %v2167_v23  ;;  %vm2174_vm13 = vweird.f32 %v6166_v11  ;;  %v3713_v27 = vmul.f32 %v3712_v59, %v8327_v42 }
 0x239   : > { %11513 = vst [vmem:[#allocation23_spill] sm:$0xff] %v8444_v5  ;;  %v6013_v34 = vclamps-f32 %v2142_v22, 1.0  ;;  %v2170_v39 = vsub.f32 1.0, %v2169_v49  ;;  %v8448_v6 = vmul.f32 0.70710677, %v8437_v53  ;;  %vm8450_vm14 = vcmp.eq.f32.partialorder %v2177_v44, 8.507059e+37  ;;  %vm8455_vm15 = vmor %vm2173_vm12, %vm2174_vm13  ;;  %v8462_v44 = vpop.f32.mrf.mxu3 }
 0x23a   : > { %v6168_v47 = vpop.eup %6167  ;;  %v2281_v13 = vadd.f32 0.014752088, %v2280_v38  ;;  %v2359_v57 = vadd.f32 0.001143296, %v2358_v3  ;;  %v2180_v23 = vor.u32 1.1754944e-38, %v2179_v36  ;;  %vm2253_vm0 = vweird.f32 %v8421_v60 }
 0x23b   : > { %v4658_v14 = vadd.f32 1.0, %v6013_v34  ;;  %v2171_v19 = vmul.f32 %v6166_v11, %v2170_v39  ;;  %v2249_v25 = vmul.f32 %v6168_v47, %v8421_v60  ;;  %v2257_v59 = vand.u32 2147483647, %v8421_v60 }
 0x23c   : > { %v2259_v45 = vand.u32 2147483648, %v8421_v60  ;;  %vm2254_vm1 = vweird.f32 %v6168_v47  ;;  %v4395_v49 = vmul.f32 %v4394_v43, %v8282_v31  ;;  %v2625_v3 = vmul.f32 %v8448_v6, %v8448_v6 }
 0x23d   : > { %v4754_v38 = vmul.f32 %v4658_v14, %v11518_v56  ;;  %v2172_v50 = vadd.f32 %v6166_v11, %v2171_v19  ;;  %v2250_v22 = vsub.f32 1.0, %v2249_v25  ;;  %v8469_v36 = vmul.f32 0.70710677, %v8462_v44  ;;  %vm8481_vm2 = vmor %vm2253_vm0, %vm2254_vm1 }
 0x23e   : > { %v2282_v34 = vmul.f32 %v2281_v13, %v8010_v30  ;;  %v2514_v39 = vadd.f32 0.18741608, %v2513_v8  ;;  %v2360_v14 = vmul.f32 %v2359_v57, %v8059_v51  ;;  %v4505_v19 = vmul.f32 %v8444_v5, %v8444_v5 }
 0x23f   : > { %4914 = vmatmul.f32.gmra.mxu3 %v4754_v38  ;;  %v2176_v52 = vsel %vm8455_vm15, %v6166_v11, %v2172_v50  ;;  %v2251_v55 = vmul.f32 %v6168_v47, %v2250_v22  ;;  %v2260_v8 = vor.u32 1.1754944e-38, %v2259_v45  ;;  %vm2258_vm3 = vcmp.eq.f32.partialorder %v2257_v59, 8.507059e+37 }
 0x240   : > { %v2181_v43 = vsel %vm8450_vm14, %v2180_v23, %v2176_v52  ;;  %v2283_v13 = vadd.f32 0.112945676, %v2282_v34  ;;  %v2361_v56 = vadd.f32 0.014752088, %v2360_v14  ;;  %v8486_v57 = vmin.f32 %v2625_v3, 16.0 }
 0x241   : > { %v2182_v20 = vmul.f32 %v2181_v43, %v8084_v17  ;;  %v2252_v11 = vadd.f32 %v6168_v47, %v2251_v55  ;;  %v3825_v38 = vmul.f32 %v8469_v36, %v8469_v36  ;;  %v2398_v60 = vmul.f32 3.8918573e-05, %v8166_v48  ;;  %v4852_v17 = vld [vmem:[%s11268_s2 + $0x118] sm:$0xff] }
 0x242   : > { %v2284_v52 = vmul.f32 %v2283_v13, %v8010_v30  ;;  %v3714_v21 = vadd.f32 0.18741608, %v3713_v27  ;;  %v2362_v55 = vmul.f32 %v2361_v56, %v8059_v51  ;;  %v2593_v59 = vmul.f32 %v2592_v18, %v8350_v15  ;;  %5103 = vmatpush.msrb.mxu1 %v4852_v17 }
 0x243   : > { %v6014_v23 = vclamps-f32 %v2182_v20, 1.0  ;;  %v2256_v45 = vsel %vm8481_vm2, %v6168_v47, %v2252_v11  ;;  %v2627_v50 = vmul.f32 2.1237322e-06, %v8486_v57  ;;  %v2399_v43 = vadd.f32 0.001143296, %v2398_v60 }
 0x244   : > { %v2261_v22 = vsel %vm2258_vm3, %v2260_v8, %v2256_v45  ;;  %v2285_v3 = vadd.f32 0.4994258, %v2284_v52  ;;  %v2363_v14 = vadd.f32 0.112945676, %v2362_v55  ;;  %v2515_v47 = vmul.f32 %v2514_v39, %v8316_v26  ;;  %v8514_v39 = vpop.f32.mrf.mxu2 }
 0x245   : > { %v4659_v34 = vadd.f32 1.0, %v6014_v23  ;;  %v2262_v27 = vmul.f32 %v2261_v22, %v8149_v33  ;;  %v8502_v25 = vmin.f32 %v4505_v19, 16.0  ;;  %v8504_v13 = vmin.f32 %v3825_v38, 16.0  ;;  %v6388_v19 = vld [vmem:[%s6559_s13 + $0xd8] sm:$0xff] }
 0x246   : > { %v2286_v20 = vmul.f32 %v2285_v3, %v8010_v30  ;;  %v2364_v8 = vmul.f32 %v2363_v14, %v8059_v51  ;;  %v2478_v56 = vmul.f32 3.8918573e-05, %v8197_v1  ;;  %v3715_v33 = vmul.f32 %v3714_v21, %v8327_v42  ;;  %577 = vmatmul.f32.gmra.mxu2 %v6388_v19 }
 0x247   : > { %11521 = vst [vmem:[#allocation61_spill] sm:$0xff] %v8502_v25  ;;  %v4755_v18 = vmul.f32 %v4659_v34, %v7999_v63  ;;  %v6016_v11 = vclamps-f32 %v2262_v27, 1.0  ;;  %v2628_v52 = vadd.f32 0.00028619796, %v2627_v50  ;;  %v3827_v60 = vmul.f32 2.1237322e-06, %v8504_v13 }
 0x248   : > { %11522 = vst [vmem:[#allocation76_spill] sm:$0xff] %v8504_v13  ;;  %v8512_v23 = vadd.f32 1.0, %v2286_v20  ;;  %v8518_v30 = vmul.f32 0.70710677, %v8241_v61  ;;  %v2365_v38 = vadd.f32 0.4994258, %v2364_v8  ;;  %v2400_v45 = vmul.f32 %v2399_v43, %v8166_v48 }
 0x249   : > { %5027 = vmatmul.f32.gmra.mxu0 %v4755_v18  ;;  %v4661_v63 = vadd.f32 1.0, %v6016_v11  ;;  %v2476_v17 = vadd.f32 1.1283791, %v8410_v12  ;;  %v4396_v21 = vadd.f32 1.1283791, %v4395_v49  ;;  %v8527_v27 = vmul.f32 0.5, %v8258_v62 }
 0x24a   : > { %v2594_v55 = vadd.f32 0.18741608, %v2593_v59  ;;  %6169 = vrcp.f32 %v8512_v23  ;;  %v4507_v50 = vmul.f32 2.1237322e-06, %v8502_v25  ;;  %v2366_v3 = vmul.f32 %v2365_v38, %v8059_v51  ;;  %v11523_v11 = vld [vmem:[#allocation41_spill] sm:$0xff] }
 0x24b   : > { %v4757_v22 = vmul.f32 %v4661_v63, %v8067_v0  ;;  %v2479_v34 = vadd.f32 0.001143296, %v2478_v56  ;;  %v2516_v14 = vadd.f32 1.1283791, %v2515_v47  ;;  %v2629_v20 = vmul.f32 %v2628_v52, %v8486_v57 }
 0x24c   : > { %v3828_v43 = vadd.f32 0.00028619796, %v3827_v60  ;;  %v3716_v18 = vadd.f32 1.1283791, %v3715_v33  ;;  %v865_v12 = vmul.f32 %v8518_v30, %v8518_v30  ;;  %v8532_v49 = vadd.f32 1.0, %v2366_v3  ;;  %v8547_v33 = vpop.f32.mrf.mxu3 }
 0x24d   : > { %4917 = vmatmul.f32.gmra.mxu3 %v4757_v22  ;;  %v2401_v59 = vadd.f32 0.014752088, %v2400_v45  ;;  %v8535_v0 = vmul.f32 %v2476_v17, %v11523_v11  ;;  %v8538_v51 = vmul.f32 0.5, %v8273_v7  ;;  %v8541_v62 = vmul.f32 0.5, %v8299_v41  ;;  %11526 = vst [vmem:[#allocation78_spill] sm:$0xff] %v8547_v33 }
 0x24e   : > { %v2595_v47 = vmul.f32 %v2594_v55, %v8350_v15  ;;  %v8545_v8 = vmul.f32 %v4396_v21, %v8236_v4  ;;  %v4508_v56 = vadd.f32 0.00028619796, %v4507_v50  ;;  %6171 = vrcp.f32 %v8532_v49 }
 0x24f   : > { %11524 = vst [vmem:[#allocation41_spill] sm:$0xff] %v8538_v51  ;;  %v2480_v52 = vmul.f32 %v2479_v34, %v8197_v1  ;;  %v2630_v19 = vadd.f32 0.0036580483, %v2629_v20  ;;  %v3829_v7 = vmul.f32 %v3828_v43, %v8504_v13  ;;  %v8553_v63 = vmul.f32 0.70710677, %v8547_v33 }
 0x250   : > { %11525 = vst [vmem:[#allocation77_spill] sm:$0xff] %v8545_v8  ;;  %v6170_v60 = vpop.eup %6169  ;;  %v2402_v41 = vmul.f32 %v2401_v59, %v8166_v48  ;;  %v8557_v38 = vmul.f32 %v2516_v14, %v8271_v46  ;;  %v8560_v4 = vmul.f32 %v3716_v18, %v8285_v10  ;;  %v8562_v45 = vmin.f32 %v865_v12, 16.0 }
 0x251   : > { %11527 = vst [vmem:[#allocation79_spill] sm:$0xff] %v8553_v63  ;;  %v2289_v17 = vmul.f32 %v6170_v60, %v8512_v23  ;;  %v8565_v21 = vadd.f32 1.1283791, %v2595_v47  ;;  %vm2293_vm4 = vweird.f32 %v8512_v23  ;;  %v2297_v55 = vand.u32 2147483647, %v8512_v23 }
 0x252   : > { %11528 = vst [vmem:[#allocation80_spill] sm:$0xff] %v8560_v4  ;;  %v2299_v50 = vand.u32 2147483648, %v8512_v23  ;;  %vm2294_vm5 = vweird.f32 %v6170_v60  ;;  %v2403_v3 = vadd.f32 0.112945676, %v2402_v41  ;;  %v2481_v46 = vadd.f32 0.014752088, %v2480_v52 }
 0x253   : > { %v2290_v22 = vsub.f32 1.0, %v2289_v17  ;;  %v4509_v34 = vmul.f32 %v4508_v56, %v8502_v25  ;;  %v2631_v10 = vmul.f32 %v2630_v19, %v8486_v57  ;;  %v3830_v14 = vadd.f32 0.0036580483, %v3829_v7  ;;  %vm8579_vm6 = vmor %vm2293_vm4, %vm2294_vm5  ;;  %v4851_v41 = vld [vmem:[%s11268_s2 + $0x110] sm:$0xff]  ;;  %v11572_v4 = vld [vmem:[#allocation11_spill] sm:$0xff] }
 0x254   : > { %v3945_v20 = vmul.f32 %v8553_v63, %v8553_v63  ;;  %v6172_v43 = vpop.eup %6171  ;;  %v867_v18 = vmul.f32 2.1237322e-06, %v8562_v45  ;;  %v2404_v59 = vmul.f32 %v2403_v3, %v8166_v48  ;;  %v2482_v11 = vmul.f32 %v2481_v46, %v8197_v1  ;;  %5104 = vmatpush.msrb.mxu1 %v4851_v41 }
 0x255   : > { %v2291_v12 = vmul.f32 %v6170_v60, %v2290_v22  ;;  %vm8583_vm7 = vcmp.eq.f32.partialorder %v2297_v55, 8.507059e+37  ;;  %v2300_v52 = vor.u32 1.1754944e-38, %v2299_v50  ;;  %v2369_v19 = vmul.f32 %v6172_v43, %v8532_v49 }
 0x256   : > { %v2379_v7 = vand.u32 2147483648, %v8532_v49  ;;  %v2405_v22 = vadd.f32 0.4994258, %v2404_v59  ;;  %v2483_v23 = vadd.f32 0.112945676, %v2482_v11  ;;  %vm2373_vm8 = vweird.f32 %v8532_v49 }
 0x257   : > { %v2292_v17 = vadd.f32 %v6170_v60, %v2291_v12  ;;  %v2518_v3 = vmul.f32 3.8918573e-05, %v8316_v26  ;;  %v2370_v46 = vsub.f32 1.0, %v2369_v19  ;;  %vm2374_vm9 = vweird.f32 %v6172_v43 }
 0x258   : > { %v2377_v55 = vand.u32 2147483647, %v8532_v49  ;;  %v8595_v50 = vmin.f32 %v3945_v20, 16.0  ;;  %v2406_v33 = vmul.f32 %v2405_v22, %v8166_v48  ;;  %v2484_v12 = vmul.f32 %v2483_v23, %v8197_v1  ;;  %vm8605_vm10 = vmor %vm2373_vm8, %vm2374_vm9 }
 0x259   : > { %v2296_v5 = vsel %vm8579_vm6, %v6170_v60, %v2292_v17  ;;  %v2371_v11 = vmul.f32 %v6172_v43, %v2370_v46  ;;  %v2380_v19 = vor.u32 1.1754944e-38, %v2379_v7  ;;  %v2598_v41 = vmul.f32 3.8918573e-05, %v8350_v15 }
 0x25a   : > { %11533 = vst [vmem:[#allocation81_spill] sm:$0xff] %v8595_v50  ;;  %v2301_v59 = vsel %vm8583_vm7, %v2300_v52, %v2296_v5  ;;  %v8609_v20 = vadd.f32 1.0, %v2406_v33  ;;  %v2485_v60 = vadd.f32 0.4994258, %v2484_v12  ;;  %v2519_v48 = vadd.f32 0.001143296, %v2518_v3  ;;  %v8614_v5 = vpop.f32.mrf.mxu2 }
 0x25b   : > { %v2302_v63 = vmul.f32 %v2301_v59, %v8223_v24  ;;  %v868_v47 = vadd.f32 0.00028619796, %v867_v18  ;;  %v8612_v17 = vmul.f32 0.70710677, %v8341_v35  ;;  %v2372_v56 = vadd.f32 %v6172_v43, %v2371_v11  ;;  %v6389_v52 = vld [vmem:[%s6559_s13 + $0xe0] sm:$0xff] }
 0x25c   : > { %vm2378_vm11 = vcmp.eq.f32.partialorder %v2377_v55, 8.507059e+37  ;;  %580 = vmatmul.f32.gmra.mxu2 %v6389_v52  ;;  %v4510_v7 = vadd.f32 0.0036580483, %v4509_v34  ;;  %v2632_v24 = vadd.f32 0.05243302, %v2631_v10  ;;  %6173 = vrcp.f32 %v8609_v20 }
 0x25d   : > { %v6017_v22 = vclamps-f32 %v2302_v63, 1.0  ;;  %v3831_v33 = vmul.f32 %v3830_v14, %v8504_v13  ;;  %v3947_v23 = vmul.f32 2.1237322e-06, %v8595_v50  ;;  %v2376_v18 = vsel %vm8605_vm10, %v6172_v43, %v2372_v56 }
 0x25e   : > { %v2599_v3 = vadd.f32 0.001143296, %v2598_v41  ;;  %v2381_v12 = vsel %vm2378_vm11, %v2380_v19, %v2376_v18  ;;  %v2486_v55 = vmul.f32 %v2485_v60, %v8197_v1  ;;  %v2520_v59 = vmul.f32 %v2519_v48, %v8316_v26  ;;  %v11536_v19 = vld [vmem:[#allocation45_spill] sm:$0xff] }
 0x25f   : > { %v4662_v46 = vadd.f32 1.0, %v6017_v22  ;;  %v8625_v34 = vmul.f32 0.5, %v8437_v53  ;;  %v869_v63 = vmul.f32 %v868_v47, %v8562_v45  ;;  %v985_v10 = vmul.f32 %v8612_v17, %v8612_v17 }
 0x260   : > { %v2382_v14 = vmul.f32 %v2381_v12, %v8335_v54  ;;  %v2633_v11 = vmul.f32 %v2632_v24, %v8486_v57  ;;  %v8633_v43 = vmul.f32 0.70710677, %v8396_v16  ;;  %v8636_v1 = vadd.f32 1.0, %v2486_v55 }
 0x261   : > { %v4758_v41 = vmul.f32 %v4662_v46, %v11536_v19  ;;  %v8640_v53 = vmul.f32 %v8565_v21, %v8314_v37  ;;  %v8643_v49 = vmul.f32 %v4510_v7, %v8502_v25  ;;  %v3832_v60 = vadd.f32 0.05243302, %v3831_v33 }
 0x262   : > { %v6019_v48 = vclamps-f32 %v2382_v14, 1.0  ;;  %v6174_v47 = vpop.eup %6173  ;;  %v3948_v54 = vadd.f32 0.00028619796, %v3947_v23  ;;  %6175 = vrcp.f32 %v8636_v1  ;;  %v2521_v56 = vadd.f32 0.014752088, %v2520_v59  ;;  %v11537_v23 = vld [vmem:[#allocation68_spill] sm:$0xff] }
 0x263   : > { %5030 = vmatmul.f32.gmra.mxu0 %v4758_v41  ;;  %v2600_v52 = vmul.f32 %v2599_v3, %v8350_v15  ;;  %v870_v24 = vadd.f32 0.0036580483, %v869_v63  ;;  %v8647_v22 = vmin.f32 %v985_v10, 16.0  ;;  %v2409_v37 = vmul.f32 %v6174_v47, %v8609_v20 }
 0x264   : > { %v4664_v18 = vadd.f32 1.0, %v6019_v48  ;;  %v2634_v21 = vadd.f32 0.18741608, %v2633_v11  ;;  %v1105_v7 = vmul.f32 %v8633_v43, %v8633_v43  ;;  %vm2413_vm12 = vweird.f32 %v8609_v20 }
 0x265   : > { %v2419_v33 = vand.u32 2147483648, %v8609_v20  ;;  %v2410_v12 = vsub.f32 1.0, %v2409_v37  ;;  %vm2414_vm13 = vweird.f32 %v6174_v47  ;;  %v2417_v3 = vand.u32 2147483647, %v8609_v20 }
 0x266   : > { %v4760_v46 = vmul.f32 %v4664_v18, %v11537_v23  ;;  %v3833_v55 = vmul.f32 %v3832_v60, %v8504_v13  ;;  %v2522_v59 = vmul.f32 %v2521_v56, %v8316_v26  ;;  %v2601_v63 = vadd.f32 0.014752088, %v2600_v52  ;;  %vm8664_vm14 = vmor %vm2413_vm12, %vm2414_vm13 }
 0x267   : > { %v2638_v10 = vmul.f32 3.8918573e-05, %v8486_v57  ;;  %v871_v14 = vmul.f32 %v870_v24, %v8562_v45  ;;  %v3949_v11 = vmul.f32 %v3948_v54, %v8595_v50  ;;  %v987_v19 = vmul.f32 2.1237322e-06, %v8647_v22 }
 0x268   : > { %4920 = vmatmul.f32.gmra.mxu3 %v4760_v46  ;;  %v2411_v41 = vmul.f32 %v6174_v47, %v2410_v12  ;;  %v6176_v48 = vpop.eup %6175  ;;  %v2420_v60 = vor.u32 1.1754944e-38, %v2419_v33  ;;  %v2523_v56 = vadd.f32 0.112945676, %v2522_v59  ;;  %v2602_v52 = vmul.f32 %v2601_v63, %v8350_v15 }
 0x269   : > { %v2639_v37 = vadd.f32 0.001143296, %v2638_v10  ;;  %v8669_v23 = vmin.f32 %v1105_v7, 16.0  ;;  %vm2418_vm15 = vcmp.eq.f32.partialorder %v2417_v3, 8.507059e+37  ;;  %v2489_v54 = vmul.f32 %v6176_v48, %v8636_v1  ;;  %v4850_v7 = vld [vmem:[%s11268_s2 + $0x108] sm:$0xff] }
 0x26a   : > { %v2412_v24 = vadd.f32 %v6174_v47, %v2411_v41  ;;  %vm2493_vm0 = vweird.f32 %v8636_v1  ;;  %v2499_v46 = vand.u32 2147483648, %v8636_v1  ;;  %v2524_v20 = vmul.f32 %v2523_v56, %v8316_v26  ;;  %5105 = vmatpush.msrb.mxu1 %v4850_v7 }
 0x26b   : > { %v2603_v12 = vadd.f32 0.112945676, %v2602_v52  ;;  %v2490_v59 = vsub.f32 1.0, %v2489_v54  ;;  %vm2494_vm1 = vweird.f32 %v6176_v48  ;;  %v2497_v63 = vand.u32 2147483647, %v8636_v1 }
 0x26c   : > { %v2416_v33 = vsel %vm8664_vm14, %v6174_v47, %v2412_v24  ;;  %v2525_v10 = vadd.f32 0.4994258, %v2524_v20  ;;  %v2640_v56 = vmul.f32 %v2639_v37, %v8486_v57  ;;  %v872_v52 = vadd.f32 0.05243302, %v871_v14  ;;  %vm8686_vm2 = vmor %vm2493_vm0, %vm2494_vm1  ;;  %v8692_v14 = vpop.f32.mrf.mxu2 }
 0x26d   : > { %v2421_v3 = vsel %vm2418_vm15, %v2420_v60, %v2416_v33  ;;  %v2604_v41 = vmul.f32 %v2603_v12, %v8350_v15  ;;  %v3950_v8 = vadd.f32 0.0036580483, %v3949_v11  ;;  %v2491_v18 = vmul.f32 %v6176_v48, %v2490_v59  ;;  %v11542_v59 = vld [vmem:[#allocation2_spill] sm:$0xff] }
 0x26e   : > { %v2422_v47 = vmul.f32 %v2421_v3, %v8427_v29  ;;  %v988_v24 = vadd.f32 0.00028619796, %v987_v19  ;;  %v2500_v60 = vor.u32 1.1754944e-38, %v2499_v46  ;;  %v2526_v20 = vmul.f32 %v2525_v10, %v8316_v26  ;;  %v6390_v29 = vld [vmem:[%s6559_s13 + $0xe8] sm:$0xff] }
 0x26f   : > { %v2605_v33 = vadd.f32 0.4994258, %v2604_v41  ;;  %v1107_v12 = vmul.f32 2.1237322e-06, %v8669_v23  ;;  %v2492_v37 = vadd.f32 %v6176_v48, %v2491_v18  ;;  %vm2498_vm3 = vcmp.eq.f32.partialorder %v2497_v63, 8.507059e+37  ;;  %583 = vmatmul.f32.gmra.mxu2 %v6390_v29 }
 0x270   : > { %v6020_v7 = vclamps-f32 %v2422_v47, 1.0  ;;  %v2527_v11 = vadd.f32 1.0, %v2526_v20  ;;  %v2641_v19 = vadd.f32 0.014752088, %v2640_v56  ;;  %v2718_v3 = vmul.f32 3.8918573e-05, %v11542_v59 }
 0x271   : > { %v2606_v1 = vmul.f32 %v2605_v33, %v8350_v15  ;;  %v2635_v46 = vmul.f32 %v2634_v21, %v8486_v57  ;;  %v3951_v26 = vmul.f32 %v3950_v8, %v8595_v50  ;;  %v2496_v41 = vsel %vm8686_vm2, %v6176_v48, %v2492_v37 }
 0x272   : > { %v4665_v10 = vadd.f32 1.0, %v6020_v7  ;;  %v873_v63 = vmul.f32 %v872_v52, %v8562_v45  ;;  %v989_v47 = vmul.f32 %v988_v24, %v8647_v22  ;;  %v2501_v18 = vsel %vm2498_vm3, %v2500_v60, %v2496_v41 }
 0x273   : > { %6177 = vrcp.f32 %v2527_v11  ;;  %v3834_v20 = vadd.f32 0.18741608, %v3833_v55  ;;  %v1108_v29 = vadd.f32 0.00028619796, %v1107_v12  ;;  %v2502_v56 = vmul.f32 %v2501_v18, %v8535_v0 }
 0x274   : > { %v4761_v15 = vmul.f32 %v4665_v10, %v8252_v9  ;;  %v8706_v21 = vmul.f32 0.70710677, %v8514_v39  ;;  %v8708_v8 = vadd.f32 1.0, %v2606_v1  ;;  %v2642_v54 = vmul.f32 %v2641_v19, %v8486_v57 }
 0x275   : > { %v2719_v48 = vadd.f32 0.001143296, %v2718_v3  ;;  %v8712_v52 = vadd.f32 0.05243302, %v8643_v49  ;;  %v2636_v24 = vadd.f32 1.1283791, %v2635_v46  ;;  %v3835_v12 = vmul.f32 %v3834_v20, %v8504_v13 }
 0x276   : > { %v8715_v60 = vmul.f32 0.5, %v8462_v44  ;;  %5033 = vmatmul.f32.gmra.mxu0 %v4761_v15  ;;  %v6022_v55 = vclamps-f32 %v2502_v56, 1.0  ;;  %v874_v9 = vadd.f32 0.18741608, %v873_v63  ;;  %v3952_v33 = vadd.f32 0.05243302, %v3951_v26 }
 0x277   : > { %11543 = vst [vmem:[#allocation45_spill] sm:$0xff] %v8712_v52  ;;  %v990_v0 = vadd.f32 0.0036580483, %v989_v47  ;;  %6179 = vrcp.f32 %v8708_v8  ;;  %v8720_v7 = vmul.f32 0.5, %v8241_v61  ;;  %v1109_v37 = vmul.f32 %v1108_v29, %v8669_v23  ;;  %v11545_v20 = vld [vmem:[#allocation4_spill] sm:$0xff] }
 0x278   : > { %11544 = vst [vmem:[#allocation68_spill] sm:$0xff] %v8715_v60  ;;  %v4667_v49 = vadd.f32 1.0, %v6022_v55  ;;  %v1225_v44 = vmul.f32 %v8706_v21, %v8706_v21  ;;  %v2537_v19 = vand.u32 2147483647, %v2527_v11  ;;  %v2643_v3 = vadd.f32 0.112945676, %v2642_v54 }
 0x279   : > { %v6178_v1 = vpop.eup %6177  ;;  %v2720_v46 = vmul.f32 %v2719_v48, %v11542_v59  ;;  %v8727_v26 = vmul.f32 %v2636_v24, %v8448_v6  ;;  %v2539_v63 = vand.u32 2147483648, %v2527_v11  ;;  %v875_v61 = vmul.f32 %v874_v9, %v8562_v45 }
 0x27a   : > { %v4763_v10 = vmul.f32 %v4667_v49, %v8358_v32  ;;  %v2529_v41 = vmul.f32 %v6178_v1, %v2527_v11  ;;  %v3953_v47 = vmul.f32 %v3952_v33, %v8595_v50  ;;  %v991_v18 = vmul.f32 %v990_v0, %v8647_v22 }
 0x27b   : > { %v2838_v29 = vmul.f32 3.8918573e-05, %v11545_v20  ;;  %vm2533_vm4 = vweird.f32 %v2527_v11  ;;  %vm2534_vm5 = vweird.f32 %v6178_v1  ;;  %v2644_v56 = vmul.f32 %v2643_v3, %v8486_v57  ;;  %v4849_v11 = vld [vmem:[%s11268_s2 + $0x100] sm:$0xff] }
 0x27c   : > { %4923 = vmatmul.f32.gmra.mxu3 %v4763_v10  ;;  %v2530_v15 = vsub.f32 1.0, %v2529_v41  ;;  %v1110_v54 = vadd.f32 0.0036580483, %v1109_v37  ;;  %v8735_v48 = vmin.f32 %v1225_v44, 16.0  ;;  %vm8737_vm6 = vcmp.eq.f32.partialorder %v2537_v19, 8.507059e+37  ;;  %vm8746_vm8 = vmor %vm2533_vm4, %vm2534_vm5  ;;  %5106 = vmatpush.msrb.mxu1 %v4849_v11 }
 0x27d   : > { %v6180_v6 = vpop.eup %6179  ;;  %v2721_v24 = vadd.f32 0.014752088, %v2720_v46  ;;  %v2540_v9 = vor.u32 1.1754944e-38, %v2539_v63  ;;  %vm2613_vm7 = vweird.f32 %v8708_v8  ;;  %v2617_v37 = vand.u32 2147483647, %v8708_v8 }
 0x27e   : > { %v2531_v55 = vmul.f32 %v6178_v1, %v2530_v15  ;;  %v2609_v33 = vmul.f32 %v6180_v6, %v8708_v8  ;;  %v2619_v49 = vand.u32 2147483648, %v8708_v8  ;;  %v2645_v44 = vadd.f32 0.4994258, %v2644_v56 }
 0x27f   : > { %v2722_v19 = vmul.f32 %v2721_v24, %v11542_v59  ;;  %vm2614_vm9 = vweird.f32 %v6180_v6  ;;  %v2839_v10 = vadd.f32 0.001143296, %v2838_v29  ;;  %v992_v41 = vadd.f32 0.05243302, %v991_v18  ;;  %v11557_v18 = vld [vmem:[#allocation10_spill] sm:$0xff] }
 0x280   : > { %v2532_v3 = vadd.f32 %v6178_v1, %v2531_v55  ;;  %v2610_v46 = vsub.f32 1.0, %v2609_v33  ;;  %v1111_v63 = vmul.f32 %v1110_v54, %v8669_v23  ;;  %v2646_v15 = vmul.f32 %v2645_v44, %v8486_v57  ;;  %vm8765_vm10 = vmor %vm2613_vm7, %vm2614_vm9  ;;  %v8775_v55 = vpop.f32.mrf.mxu3 }
 0x281   : > { %v2723_v2 = vadd.f32 0.112945676, %v2722_v19  ;;  %v1227_v60 = vmul.f32 2.1237322e-06, %v8735_v48  ;;  %v8757_v52 = vmul.f32 0.70710677, %v8614_v5  ;;  %v2840_v8 = vmul.f32 %v2839_v10, %v11545_v20 }
 0x282   : > { %v2536_v56 = vsel %vm8746_vm8, %v6178_v1, %v2532_v3  ;;  %v2611_v11 = vmul.f32 %v6180_v6, %v2610_v46  ;;  %vm8769_vm11 = vcmp.eq.f32.partialorder %v2617_v37, 8.507059e+37  ;;  %v2620_v29 = vor.u32 1.1754944e-38, %v2619_v49  ;;  %11554 = vst [vmem:[#allocation2_spill] sm:$0xff] %v8775_v55  ;;  %v8791_v3 = vpop.f32.mrf.mxu2 }
 0x283   : > { %v2541_v24 = vsel %vm8737_vm6, %v2540_v9, %v2536_v56  ;;  %v8773_v54 = vadd.f32 1.0, %v2646_v15  ;;  %v2724_v9 = vmul.f32 %v2723_v2, %v11542_v59  ;;  %v8780_v33 = vadd.f32 1.1283791, %v3835_v12  ;;  %v6391_v2 = vld [vmem:[%s6559_s13 + $0xf0] sm:$0xff] }
 0x284   : > { %v2542_v1 = vmul.f32 %v2541_v24, %v8557_v38  ;;  %v2612_v32 = vadd.f32 %v6180_v6, %v2611_v11  ;;  %v993_v0 = vmul.f32 %v992_v41, %v8647_v22  ;;  %v8784_v37 = vmul.f32 0.70710677, %v8775_v55  ;;  %586 = vmatmul.f32.gmra.mxu2 %v6391_v2 }
 0x285   : > { %6181 = vrcp.f32 %v8773_v54  ;;  %v8787_v49 = vadd.f32 0.18741608, %v3953_v47  ;;  %v1112_v44 = vadd.f32 0.05243302, %v1111_v63  ;;  %v1228_v12 = vadd.f32 0.00028619796, %v1227_v60 }
 0x286   : > { %11555 = vst [vmem:[#allocation4_spill] sm:$0xff] %v8784_v37  ;;  %v6023_v19 = vclamps-f32 %v2542_v1, 1.0  ;;  %v2616_v38 = vsel %vm8765_vm10, %v6180_v6, %v2612_v32  ;;  %v1345_v46 = vmul.f32 %v8757_v52, %v8757_v52  ;;  %v2725_v41 = vadd.f32 0.4994258, %v2724_v9 }
 0x287   : > { %11556 = vst [vmem:[#allocation82_spill] sm:$0xff] %v8787_v49  ;;  %v2621_v10 = vsel %vm8769_vm11, %v2620_v29, %v2616_v38  ;;  %v876_v15 = vadd.f32 1.1283791, %v875_v61  ;;  %v2841_v56 = vadd.f32 0.014752088, %v2840_v8  ;;  %v4065_v6 = vmul.f32 %v8784_v37, %v8784_v37  ;;  %v11558_v29 = vld [vmem:[#allocation30_spill] sm:$0xff] }
 0x288   : > { %v4668_v47 = vadd.f32 1.0, %v6023_v19  ;;  %v2622_v63 = vmul.f32 %v2621_v10, %v8640_v53  ;;  %v994_v11 = vadd.f32 0.18741608, %v993_v0  ;;  %v2726_v24 = vmul.f32 %v2725_v41, %v11542_v59  ;;  %v11563_v37 = vld [vmem:[#allocation15_spill] sm:$0xff] }
 0x289   : > { %v2958_v60 = vmul.f32 3.8918573e-05, %v11557_v18  ;;  %v1113_v1 = vmul.f32 %v1112_v44, %v8669_v23  ;;  %v2758_v9 = vmul.f32 3.8918573e-05, %v11558_v29  ;;  %v1229_v19 = vmul.f32 %v1228_v12, %v8735_v48 }
 0x28a   : > { %v4764_v32 = vmul.f32 %v4668_v47, %v8527_v27  ;;  %v6025_v57 = vclamps-f32 %v2622_v63, 1.0  ;;  %v8807_v53 = vmin.f32 %v1345_v46, 16.0  ;;  %v8810_v8 = vmul.f32 0.70710677, %v8692_v14 }
 0x28b   : > { %v6182_v61 = vpop.eup %6181  ;;  %v8812_v0 = vadd.f32 1.0, %v2726_v24  ;;  %v2759_v44 = vadd.f32 0.001143296, %v2758_v9  ;;  %v2842_v27 = vmul.f32 %v2841_v56, %v11545_v20  ;;  %vm2653_vm12 = vweird.f32 %v8773_v54 }
 0x28c   : > { %5036 = vmatmul.f32.gmra.mxu0 %v4764_v32  ;;  %v4670_v59 = vadd.f32 1.0, %v6025_v57  ;;  %v2649_v38 = vmul.f32 %v6182_v61, %v8773_v54  ;;  %v2659_v2 = vand.u32 2147483648, %v8773_v54  ;;  %v2959_v12 = vadd.f32 0.001143296, %v2958_v60 }
 0x28d   : > { %6183 = vrcp.f32 %v8812_v0  ;;  %vm2654_vm13 = vweird.f32 %v6182_v61  ;;  %v2657_v41 = vand.u32 2147483647, %v8773_v54  ;;  %v8822_v47 = vmul.f32 %v876_v15, %v8518_v30 }
 0x28e   : > { %v4766_v46 = vmul.f32 %v4670_v59, %v8541_v62  ;;  %v2650_v10 = vsub.f32 1.0, %v2649_v38  ;;  %v1230_v63 = vadd.f32 0.0036580483, %v1229_v19  ;;  %v1347_v24 = vmul.f32 2.1237322e-06, %v8807_v53  ;;  %vm8835_vm14 = vmor %vm2653_vm12, %vm2654_vm13 }
 0x28f   : > { %v2760_v56 = vmul.f32 %v2759_v44, %v11558_v29  ;;  %v8826_v32 = vmin.f32 %v4065_v6, 16.0  ;;  %v1465_v60 = vmul.f32 %v8810_v8, %v8810_v8  ;;  %v2843_v62 = vadd.f32 0.112945676, %v2842_v27 }
 0x290   : > { %4926 = vmatmul.f32.gmra.mxu3 %v4766_v46  ;;  %v2651_v57 = vmul.f32 %v6182_v61, %v2650_v10  ;;  %v8831_v9 = vmul.f32 %v994_v11, %v8647_v22  ;;  %v2660_v15 = vor.u32 1.1754944e-38, %v2659_v2  ;;  %v2960_v6 = vmul.f32 %v2959_v12, %v11557_v18 }
 0x291   : > { %11559 = vst [vmem:[#allocation10_spill] sm:$0xff] %v8826_v32  ;;  %v2761_v19 = vadd.f32 0.014752088, %v2760_v56  ;;  %v8840_v59 = vadd.f32 0.18741608, %v1113_v1  ;;  %vm2658_vm15 = vcmp.eq.f32.partialorder %v2657_v41, 8.507059e+37  ;;  %v2844_v44 = vmul.f32 %v2843_v62, %v11545_v20 }
 0x292   : > { %v2652_v38 = vadd.f32 %v6182_v61, %v2651_v57  ;;  %v1231_v11 = vmul.f32 %v1230_v63, %v8735_v48  ;;  %v1348_v46 = vadd.f32 0.00028619796, %v1347_v24  ;;  %v2961_v10 = vadd.f32 0.014752088, %v2960_v6 }
 0x293   : > { %v6184_v27 = vpop.eup %6183  ;;  %v2762_v54 = vmul.f32 %v2761_v19, %v11558_v29  ;;  %v8845_v55 = vmin.f32 %v1465_v60, 16.0  ;;  %v2845_v1 = vadd.f32 0.4994258, %v2844_v44  ;;  %v8851_v41 = vmul.f32 0.70710677, %v8791_v3 }
 0x294   : > { %v2656_v2 = vsel %vm8835_vm14, %v6182_v61, %v2652_v38  ;;  %v2729_v12 = vmul.f32 %v6184_v27, %v8812_v0  ;;  %v2962_v62 = vmul.f32 %v2961_v10, %v11557_v18  ;;  %v2737_v19 = vand.u32 2147483647, %v8812_v0 }
 0x295   : > { %v2661_v56 = vsel %vm2658_vm15, %v2660_v15, %v2656_v2  ;;  %v2763_v57 = vadd.f32 0.112945676, %v2762_v54  ;;  %v2846_v60 = vmul.f32 %v2845_v1, %v11545_v20  ;;  %vm2734_vm0 = vweird.f32 %v6184_v27 }
 0x296   : > { %v2662_v63 = vmul.f32 %v2661_v56, %v8727_v26  ;;  %v2730_v24 = vsub.f32 1.0, %v2729_v12  ;;  %v2739_v61 = vand.u32 2147483648, %v8812_v0  ;;  %v2963_v6 = vadd.f32 0.112945676, %v2962_v62 }
 0x297   : > { %v2764_v30 = vmul.f32 %v2763_v57, %v11558_v29  ;;  %v878_v44 = vmul.f32 3.8918573e-05, %v8562_v45  ;;  %v8860_v54 = vadd.f32 1.0, %v2846_v60  ;;  %v1467_v10 = vmul.f32 2.1237322e-06, %v8845_v55 }
 0x298   : > { %v6026_v15 = vclamps-f32 %v2662_v63, 1.0  ;;  %v2731_v38 = vmul.f32 %v6184_v27, %v2730_v24  ;;  %vm2733_vm1 = vweird.f32 %v8812_v0  ;;  %v2964_v2 = vmul.f32 %v2963_v6, %v11557_v18  ;;  %v11562_v63 = vld [vmem:[#allocation13_spill] sm:$0xff] }
 0x299   : > { %v2765_v26 = vadd.f32 0.4994258, %v2764_v30  ;;  %v879_v1 = vadd.f32 0.001143296, %v878_v44  ;;  %6185 = vrcp.f32 %v8860_v54  ;;  %vm2735_vm2 = vmor %vm2733_vm1, %vm2734_vm0  ;;  %v2740_v56 = vor.u32 1.1754944e-38, %v2739_v61 }
 0x29a   : > { %v4671_v20 = vadd.f32 1.0, %v6026_v15  ;;  %v2732_v12 = vadd.f32 %v6184_v27, %v2731_v38  ;;  %v1585_v57 = vmul.f32 %v8851_v41, %v8851_v41  ;;  %v3078_v24 = vmul.f32 3.8918573e-05, %v11562_v63 }
 0x29b   : > { %v2766_v62 = vmul.f32 %v2765_v26, %v11558_v29  ;;  %vm2738_vm3 = vcmp.eq.f32.partialorder %v2737_v19, 8.507059e+37  ;;  %v880_v30 = vmul.f32 %v879_v1, %v8562_v45  ;;  %v1232_v6 = vadd.f32 0.05243302, %v1231_v11 }
 0x29c   : > { %v4767_v0 = vmul.f32 %v4671_v20, %v8625_v34  ;;  %v2736_v60 = vsel %vm2735_vm2, %v6184_v27, %v2732_v12  ;;  %v1349_v15 = vmul.f32 %v1348_v46, %v8807_v53  ;;  %v8877_v61 = vmul.f32 2.1237322e-06, %v8826_v32 }
 0x29d   : > { %v2741_v38 = vsel %vm2738_vm3, %v2740_v56, %v2736_v60  ;;  %v8874_v44 = vadd.f32 1.0, %v2766_v62  ;;  %v881_v26 = vadd.f32 0.014752088, %v880_v30  ;;  %v2965_v49 = vadd.f32 0.4994258, %v2964_v2 }
 0x29e   : > { %5039 = vmatmul.f32.gmra.mxu0 %v4767_v0  ;;  %v2742_v29 = vmul.f32 %v2741_v38, %v11563_v37  ;;  %v1468_v25 = vadd.f32 0.00028619796, %v1467_v10  ;;  %v8880_v34 = vmin.f32 %v1585_v57, 16.0  ;;  %v3079_v27 = vadd.f32 0.001143296, %v3078_v24  ;;  %v11564_v0 = vld [vmem:[#allocation9_spill] sm:$0xff] }
 0x29f   : > { %6187 = vrcp.f32 %v8874_v44  ;;  %v6186_v11 = vpop.eup %6185  ;;  %v8884_v46 = vadd.f32 1.1283791, %v8831_v9  ;;  %v882_v20 = vmul.f32 %v881_v26, %v8562_v45  ;;  %v2966_v12 = vmul.f32 %v2965_v49, %v11557_v18 }
 0x2a0   : > { %v6028_v19 = vclamps-f32 %v2742_v29, 1.0  ;;  %v8890_v37 = vmul.f32 %v8840_v59, %v8669_v23  ;;  %v8893_v10 = vmul.f32 %v1232_v6, %v8735_v48  ;;  %v8895_v2 = vadd.f32 0.0036580483, %v1349_v15  ;;  %v11566_v29 = vld [vmem:[#allocation3_spill] sm:$0xff] }
 0x2a1   : > { %v2849_v1 = vmul.f32 %v6186_v11, %v8860_v54  ;;  %v883_v57 = vadd.f32 0.112945676, %v882_v20  ;;  %v2859_v9 = vand.u32 2147483648, %v8860_v54  ;;  %v8899_v62 = vadd.f32 1.0, %v2966_v12 }
 0x2a2   : > { %v4673_v56 = vadd.f32 1.0, %v6028_v19  ;;  %v8902_v49 = vmul.f32 %v1468_v25, %v8845_v55  ;;  %v1587_v18 = vmul.f32 2.1237322e-06, %v8880_v34  ;;  %v3080_v24 = vmul.f32 %v3079_v27, %v11562_v63  ;;  %v8911_v25 = vpop.f32.mrf.mxu2  ;;  %v6392_v19 = vld [vmem:[%s6559_s13 + $0xf8] sm:$0xff] }
 0x2a3   : > { %v2850_v59 = vsub.f32 1.0, %v2849_v1  ;;  %v884_v30 = vmul.f32 %v883_v57, %v8562_v45  ;;  %vm2853_vm4 = vweird.f32 %v8860_v54  ;;  %6189 = vrcp.f32 %v8899_v62  ;;  %11565 = vst [vmem:[#allocation30_spill] sm:$0xff] %v8911_v25  ;;  %589 = vmatmul.f32.gmra.mxu2 %v6392_v19 }
 0x2a4   : > { %v4769_v60 = vmul.f32 %v4673_v56, %v11564_v0  ;;  %vm2854_vm5 = vweird.f32 %v6186_v11  ;;  %v2857_v38 = vand.u32 2147483647, %v8860_v54  ;;  %v2878_v26 = vmul.f32 3.8918573e-05, %v11566_v29 }
 0x2a5   : > { %v6188_v6 = vpop.eup %6187  ;;  %v2851_v15 = vmul.f32 %v6186_v11, %v2850_v59  ;;  %vm2773_vm6 = vweird.f32 %v8874_v44  ;;  %v885_v20 = vadd.f32 0.4994258, %v884_v30  ;;  %v2860_v12 = vor.u32 1.1754944e-38, %v2859_v9  ;;  %vm2855_vm8 = vmor %vm2853_vm4, %vm2854_vm5 }
 0x2a6   : > { %4929 = vmatmul.f32.gmra.mxu3 %v4769_v60  ;;  %v2769_v27 = vmul.f32 %v6188_v6, %v8874_v44  ;;  %v2777_v1 = vand.u32 2147483647, %v8874_v44  ;;  %v2779_v56 = vand.u32 2147483648, %v8874_v44  ;;  %v2879_v59 = vadd.f32 0.001143296, %v2878_v26  ;;  %v11567_v26 = vld [vmem:[#allocation17_spill] sm:$0xff] }
 0x2a7   : > { %v2852_v57 = vadd.f32 %v6186_v11, %v2851_v15  ;;  %vm2774_vm7 = vweird.f32 %v6188_v6  ;;  %v886_v32 = vmul.f32 %v885_v20, %v8562_v45  ;;  %v3081_v60 = vadd.f32 0.014752088, %v3080_v24 }
 0x2a8   : > { %v2770_v0 = vsub.f32 1.0, %v2769_v27  ;;  %v8923_v19 = vadd.f32 0.00028619796, %v1587_v18  ;;  %vm2858_vm9 = vcmp.eq.f32.partialorder %v2857_v38, 8.507059e+37  ;;  %v2880_v9 = vmul.f32 %v2879_v59, %v11566_v29  ;;  %vm8931_vm10 = vmor %vm2773_vm6, %vm2774_vm7  ;;  %v11570_v18 = vld [vmem:[#allocation18_spill] sm:$0xff] }
 0x2a9   : > { %v2856_v50 = vsel %vm2855_vm8, %v6186_v11, %v2852_v57  ;;  %v6190_v30 = vpop.eup %6189  ;;  %v8926_v13 = vadd.f32 1.0, %v886_v32  ;;  %v3198_v27 = vmul.f32 3.8918573e-05, %v11567_v26  ;;  %v2780_v54 = vor.u32 1.1754944e-38, %v2779_v56 }
 0x2aa   : > { %v2771_v31 = vmul.f32 %v6188_v6, %v2770_v0  ;;  %v2861_v15 = vsel %vm2858_vm9, %v2860_v12, %v2856_v50  ;;  %v2881_v11 = vadd.f32 0.014752088, %v2880_v9  ;;  %v2969_v38 = vmul.f32 %v6190_v30, %v8899_v62  ;;  %v11571_v9 = vld [vmem:[#allocation39_spill] sm:$0xff] }
 0x2ab   : > { %v2862_v24 = vmul.f32 %v2861_v15, %v11570_v18  ;;  %vm2778_vm11 = vcmp.eq.f32.partialorder %v2777_v1, 8.507059e+37  ;;  %6191 = vrcp.f32 %v8926_v13  ;;  %v3082_v50 = vmul.f32 %v3081_v60, %v11562_v63 }
 0x2ac   : > { %v2772_v20 = vadd.f32 %v6188_v6, %v2771_v31  ;;  %v8940_v12 = vmul.f32 0.70710677, %v8911_v25  ;;  %v2882_v44 = vmul.f32 %v2881_v11, %v11566_v29  ;;  %v2977_v57 = vand.u32 2147483647, %v8899_v62 }
 0x2ad   : > { %v6031_v32 = vclamps-f32 %v2862_v24, 1.0  ;;  %v2970_v59 = vsub.f32 1.0, %v2969_v38  ;;  %vm2973_vm12 = vweird.f32 %v8899_v62  ;;  %v2979_v31 = vand.u32 2147483648, %v8899_v62 }
 0x2ae   : > { %v2776_v56 = vsel %vm8931_vm10, %v6188_v6, %v2772_v20  ;;  %vm2974_vm13 = vweird.f32 %v6190_v30  ;;  %v3199_v60 = vadd.f32 0.001143296, %v3198_v27  ;;  %v2883_v18 = vadd.f32 0.112945676, %v2882_v44 }
 0x2af   : > { %v2781_v1 = vsel %vm2778_vm11, %v2780_v54, %v2776_v56  ;;  %v4676_v0 = vadd.f32 1.0, %v6031_v32  ;;  %v2971_v24 = vmul.f32 %v6190_v30, %v2970_v59  ;;  %v3083_v51 = vadd.f32 0.112945676, %v3082_v50  ;;  %vm2975_vm15 = vmor %vm2973_vm12, %vm2974_vm13 }
 0x2b0   : > { %v2782_v15 = vmul.f32 %v2781_v1, %v11571_v9  ;;  %v897_v11 = vand.u32 2147483647, %v8926_v13  ;;  %v1705_v6 = vmul.f32 %v8940_v12, %v8940_v12  ;;  %vm8953_vm14 = vcmp.eq.f32.partialorder %v2977_v57, 8.507059e+37 }
 0x2b1   : > { %v4772_v28 = vmul.f32 %v4676_v0, %v11572_v4  ;;  %v6192_v54 = vpop.eup %6191  ;;  %v2884_v27 = vmul.f32 %v2883_v18, %v11566_v29  ;;  %v2972_v20 = vadd.f32 %v6190_v30, %v2971_v24  ;;  %v3084_v32 = vmul.f32 %v3083_v51, %v11562_v63  ;;  %v11575_v18 = vld [vmem:[#allocation21_spill] sm:$0xff] }
 0x2b2   : > { %v6029_v38 = vclamps-f32 %v2782_v15, 1.0  ;;  %v889_v50 = vmul.f32 %v6192_v54, %v8926_v13  ;;  %v899_v44 = vand.u32 2147483648, %v8926_v13  ;;  %v2980_v4 = vor.u32 1.1754944e-38, %v2979_v31  ;;  %v11577_v31 = vld [vmem:[#allocation25_spill] sm:$0xff] }
 0x2b3   : > { %4932 = vmatmul.f32.gmra.mxu3 %v4772_v28  ;;  %v3200_v57 = vmul.f32 %v3199_v60, %v11567_v26  ;;  %v2885_v59 = vadd.f32 0.4994258, %v2884_v27  ;;  %v998_v1 = vmul.f32 3.8918573e-05, %v8647_v22  ;;  %v2976_v0 = vsel %vm2975_vm15, %v6190_v30, %v2972_v20  ;;  %v11576_v28 = vld [vmem:[#allocation33_spill] sm:$0xff] }
 0x2b4   : > { %v4674_v56 = vadd.f32 1.0, %v6029_v38  ;;  %v890_v9 = vsub.f32 1.0, %v889_v50  ;;  %v2981_v51 = vsel %vm8953_vm14, %v2980_v4, %v2976_v0  ;;  %v3085_v15 = vadd.f32 0.4994258, %v3084_v32 }
 0x2b5   : > { %v3318_v24 = vmul.f32 3.8918573e-05, %v11575_v18  ;;  %v2886_v62 = vmul.f32 %v2885_v59, %v11566_v29  ;;  %v999_v42 = vadd.f32 0.001143296, %v998_v1  ;;  %v2982_v25 = vmul.f32 %v2981_v51, %v11577_v31 }
 0x2b6   : > { %v4770_v58 = vmul.f32 %v4674_v56, %v11576_v28  ;;  %v891_v60 = vmul.f32 %v6192_v54, %v890_v9  ;;  %vm894_vm0 = vweird.f32 %v6192_v54  ;;  %v3086_v38 = vmul.f32 %v3085_v15, %v11562_v63 }
 0x2b7   : > { %v3201_v27 = vadd.f32 0.014752088, %v3200_v57  ;;  %v8973_v30 = vmin.f32 %v1705_v6, 16.0  ;;  %v8975_v45 = vadd.f32 1.0, %v2886_v62  ;;  %v1000_v20 = vmul.f32 %v999_v42, %v8647_v22 }
 0x2b8   : > { %5042 = vmatmul.f32.gmra.mxu0 %v4770_v58  ;;  %v6034_v32 = vclamps-f32 %v2982_v25, 1.0  ;;  %v1589_v50 = vmul.f32 %v8923_v19, %v8880_v34  ;;  %v892_v29 = vadd.f32 %v6192_v54, %v891_v60  ;;  %vm893_vm1 = vweird.f32 %v8926_v13 }
 0x2b9   : > { %v8981_v4 = vadd.f32 1.0, %v3086_v38  ;;  %vm895_vm2 = vmor %vm893_vm1, %vm894_vm0  ;;  %vm898_vm3 = vcmp.eq.f32.partialorder %v897_v11, 8.507059e+37  ;;  %v900_v63 = vor.u32 1.1754944e-38, %v899_v44  ;;  %6193 = vrcp.f32 %v8975_v45 }
 0x2ba   : > { %v3202_v58 = vmul.f32 %v3201_v27, %v11567_v26  ;;  %v896_v6 = vsel %vm895_vm2, %v6192_v54, %v892_v29  ;;  %v1001_v57 = vadd.f32 0.014752088, %v1000_v20  ;;  %v4679_v56 = vadd.f32 1.0, %v6034_v32  ;;  %v11578_v54 = vld [vmem:[#allocation12_spill] sm:$0xff] }
 0x2bb   : > { %v3319_v42 = vadd.f32 0.001143296, %v3318_v24  ;;  %v8987_v25 = vmul.f32 %v8884_v46, %v8612_v17  ;;  %v901_v19 = vsel %vm898_vm3, %v900_v63, %v896_v6  ;;  %v1707_v13 = vmul.f32 2.1237322e-06, %v8973_v30  ;;  %v9012_v6 = vpop.f32.mrf.mxu2 }
 0x2bc   : > { %6195 = vrcp.f32 %v8981_v4  ;;  %v8992_v11 = vadd.f32 1.1283791, %v8890_v37  ;;  %v902_v44 = vmul.f32 %v901_v19, %v8822_v47  ;;  %v1002_v59 = vmul.f32 %v1001_v57, %v8647_v22 }
 0x2bd   : > { %v4775_v1 = vmul.f32 %v4679_v56, %v11578_v54  ;;  %v8998_v0 = vadd.f32 0.18741608, %v8893_v10  ;;  %v1351_v17 = vmul.f32 %v8895_v2, %v8807_v53  ;;  %v1470_v46 = vadd.f32 0.0036580483, %v8902_v49  ;;  %v11579_v10 = vld [vmem:[#allocation28_spill] sm:$0xff] }
 0x2be   : > { %v3203_v9 = vadd.f32 0.112945676, %v3202_v58  ;;  %v1590_v51 = vadd.f32 0.0036580483, %v1589_v50  ;;  %v5982_v15 = vclamps-f32 %v902_v44, 1.0  ;;  %v3320_v37 = vmul.f32 %v3319_v42, %v11575_v18 }
 0x2bf   : > { %v1003_v24 = vadd.f32 0.112945676, %v1002_v59  ;;  %4935 = vmatmul.f32.gmra.mxu3 %v4775_v1  ;;  %v6194_v47 = vpop.eup %6193  ;;  %v1708_v28 = vadd.f32 0.00028619796, %v1707_v13  ;;  %vm2893_vm4 = vweird.f32 %v8975_v45  ;;  %v3438_v31 = vmul.f32 3.8918573e-05, %v11579_v10 }
 0x2c0   : > { %v3204_v62 = vmul.f32 %v3203_v9, %v11567_v26  ;;  %v4627_v60 = vadd.f32 1.0, %v5982_v15  ;;  %v2889_v2 = vmul.f32 %v6194_v47, %v8975_v45  ;;  %v2897_v49 = vand.u32 2147483647, %v8975_v45 }
 0x2c1   : > { %v2899_v38 = vand.u32 2147483648, %v8975_v45  ;;  %v1004_v20 = vmul.f32 %v1003_v24, %v8647_v22  ;;  %v3321_v50 = vadd.f32 0.014752088, %v3320_v37  ;;  %v3439_v29 = vadd.f32 0.001143296, %v3438_v31 }
 0x2c2   : > { %v6196_v27 = vpop.eup %6195  ;;  %v3205_v32 = vadd.f32 0.4994258, %v3204_v62  ;;  %v4723_v63 = vmul.f32 %v4627_v60, %v8720_v7  ;;  %v2890_v58 = vsub.f32 1.0, %v2889_v2  ;;  %vm2894_vm5 = vweird.f32 %v6194_v47 }
 0x2c3   : > { %v3089_v57 = vmul.f32 %v6196_v27, %v8981_v4  ;;  %v1709_v56 = vmul.f32 %v1708_v28, %v8973_v30  ;;  %v1005_v42 = vadd.f32 0.4994258, %v1004_v20  ;;  %v9017_v19 = vmul.f32 0.70710677, %v9012_v6  ;;  %vm9023_vm6 = vmor %vm2893_vm4, %vm2894_vm5 }
 0x2c4   : > { %v3206_v13 = vmul.f32 %v3205_v32, %v11567_v26  ;;  %5107 = vmatmul.f32.vlgmr.msrb.gmra.mxu1 %v4723_v63  ;;  %v2891_v44 = vmul.f32 %v6194_v47, %v2890_v58  ;;  %v2900_v59 = vor.u32 1.1754944e-38, %v2899_v38  ;;  %v3322_v7 = vmul.f32 %v3321_v50, %v11575_v18 }
 0x2c5   : > { %v3090_v54 = vsub.f32 1.0, %v3089_v57  ;;  %v1006_v9 = vmul.f32 %v1005_v42, %v8647_v22  ;;  %v1825_v15 = vmul.f32 %v9017_v19, %v9017_v19  ;;  %v3440_v26 = vmul.f32 %v3439_v29, %v11579_v10  ;;  %v11582_v29 = vld [vmem:[#allocation44_spill] sm:$0xff] }
 0x2c6   : > { %v9030_v24 = vadd.f32 1.0, %v3206_v13  ;;  %v2892_v37 = vadd.f32 %v6194_v47, %v2891_v44  ;;  %vm2898_vm7 = vcmp.eq.f32.partialorder %v2897_v49, 8.507059e+37  ;;  %v3099_v62 = vand.u32 2147483648, %v8981_v4 }
 0x2c7   : > { %v3091_v28 = vmul.f32 %v6196_v27, %v3090_v54  ;;  %v9034_v31 = vadd.f32 1.0, %v1006_v9  ;;  %v9036_v45 = vmin.f32 %v1825_v15, 16.0  ;;  %vm3094_vm8 = vweird.f32 %v6196_v27 }
 0x2c8   : > { %6197 = vrcp.f32 %v9030_v24  ;;  %v2896_v22 = vsel %vm9023_vm6, %v6194_v47, %v2892_v37  ;;  %vm3093_vm9 = vweird.f32 %v8981_v4  ;;  %v3097_v2 = vand.u32 2147483647, %v8981_v4 }
 0x2c9   : > { %v3092_v60 = vadd.f32 %v6196_v27, %v3091_v28  ;;  %v2901_v38 = vsel %vm2898_vm7, %v2900_v59, %v2896_v22  ;;  %6199 = vrcp.f32 %v9034_v31  ;;  %v3323_v49 = vadd.f32 0.112945676, %v3322_v7  ;;  %vm3095_vm10 = vmor %vm3093_vm9, %vm3094_vm8  ;;  %v11585_v22 = vld [vmem:[#allocation7_spill] sm:$0xff] }
 0x2ca   : > { %v3441_v20 = vadd.f32 0.014752088, %v3440_v26  ;;  %v9044_v32 = vadd.f32 0.05243302, %v1351_v17  ;;  %v9047_v50 = vmul.f32 %v1470_v46, %v8845_v55  ;;  %v2902_v63 = vmul.f32 %v2901_v38, %v11582_v29  ;;  %v11583_v17 = vld [vmem:[#allocation35_spill] sm:$0xff] }
 0x2cb   : > { %v1838_v58 = vmul.f32 3.8918573e-05, %v9036_v45  ;;  %v9052_v47 = vmul.f32 %v1590_v51, %v8880_v34  ;;  %v9054_v57 = vadd.f32 0.0036580483, %v1709_v56  ;;  %v3096_v4 = vsel %vm3095_vm10, %v6196_v27, %v3092_v60  ;;  %v11584_v56 = vld [vmem:[#allocation26_spill] sm:$0xff] }
 0x2cc   : > { %v3100_v42 = vor.u32 1.1754944e-38, %v3099_v62  ;;  %v6032_v13 = vclamps-f32 %v2902_v63, 1.0  ;;  %vm3098_vm11 = vcmp.eq.f32.partialorder %v3097_v2, 8.507059e+37  ;;  %v3558_v59 = vmul.f32 3.8918573e-05, %v11583_v17 }
 0x2cd   : > { %v1839_v44 = vadd.f32 0.001143296, %v1838_v58  ;;  %vm3213_vm12 = vweird.f32 %v9030_v24  ;;  %v3324_v7 = vmul.f32 %v3323_v49, %v11575_v18  ;;  %v3442_v1 = vmul.f32 %v3441_v20, %v11579_v10 }
 0x2ce   : > { %v6198_v54 = vpop.eup %6197  ;;  %v3101_v46 = vsel %vm3098_vm11, %v3100_v42, %v3096_v4  ;;  %v4677_v9 = vadd.f32 1.0, %v6032_v13  ;;  %v3217_v27 = vand.u32 2147483647, %v9030_v24  ;;  %vm1013_vm13 = vweird.f32 %v9034_v31 }
 0x2cf   : > { %v1840_v51 = vmul.f32 %v1839_v44, %v9036_v45  ;;  %v3102_v15 = vmul.f32 %v3101_v46, %v11584_v56  ;;  %v6200_v26 = vpop.eup %6199  ;;  %v3209_v37 = vmul.f32 %v6198_v54, %v9030_v24  ;;  %v3219_v28 = vand.u32 2147483648, %v9030_v24  ;;  %v11586_v56 = vld [vmem:[#allocation16_spill] sm:$0xff] }
 0x2d0   : > { %v3325_v62 = vadd.f32 0.4994258, %v3324_v7  ;;  %v4773_v60 = vmul.f32 %v4677_v9, %v11585_v22  ;;  %v1009_v2 = vmul.f32 %v6200_v26, %v9034_v31  ;;  %v3443_v38 = vadd.f32 0.112945676, %v3442_v1 }
 0x2d1   : > { %v3559_v49 = vadd.f32 0.001143296, %v3558_v59  ;;  %v1841_v20 = vadd.f32 0.014752088, %v1840_v51  ;;  %v6037_v29 = vclamps-f32 %v3102_v15, 1.0  ;;  %v3210_v63 = vsub.f32 1.0, %v3209_v37 }
 0x2d2   : > { %v3326_v58 = vmul.f32 %v3325_v62, %v11575_v18  ;;  %5045 = vmatmul.f32.gmra.mxu0 %v4773_v60  ;;  %v1010_v4 = vsub.f32 1.0, %v1009_v2  ;;  %v1017_v42 = vand.u32 2147483647, %v9034_v31  ;;  %v1019_v13 = vand.u32 2147483648, %v9034_v31  ;;  %v11587_v60 = vld [vmem:[#allocation40_spill] sm:$0xff] }
 0x2d3   : > { %vm3214_vm14 = vweird.f32 %v6198_v54  ;;  %v1842_v44 = vmul.f32 %v1841_v20, %v9036_v45  ;;  %v4682_v46 = vadd.f32 1.0, %v6037_v29  ;;  %v3211_v7 = vmul.f32 %v6198_v54, %v3210_v63 }
 0x2d4   : > { %v9072_v9 = vadd.f32 1.0, %v3326_v58  ;;  %v1011_v1 = vmul.f32 %v6200_v26, %v1010_v4  ;;  %vm1014_vm15 = vweird.f32 %v6200_v26  ;;  %v3444_v59 = vmul.f32 %v3443_v38, %v11579_v10  ;;  %vm3215_vm0 = vmor %vm3213_vm12, %vm3214_vm14 }
 0x2d5   : > { %v3560_v51 = vmul.f32 %v3559_v49, %v11583_v17  ;;  %v1843_v18 = vadd.f32 0.112945676, %v1842_v44  ;;  %v4778_v15 = vmul.f32 %v4682_v46, %v11586_v56  ;;  %v3212_v37 = vadd.f32 %v6198_v54, %v3211_v7  ;;  %vm1015_vm1 = vmor %vm1013_vm13, %vm1014_vm15  ;;  %v11588_v46 = vld [vmem:[#allocation32_spill] sm:$0xff] }
 0x2d6   : > { %6201 = vrcp.f32 %v9072_v9  ;;  %v1012_v62 = vadd.f32 %v6200_v26, %v1011_v1  ;;  %v1827_v22 = vmul.f32 2.1237322e-06, %v9036_v45  ;;  %v2998_v2 = vmul.f32 3.8918573e-05, %v11587_v60 }
 0x2d7   : > { %v3220_v20 = vor.u32 1.1754944e-38, %v3219_v28  ;;  %v1020_v38 = vor.u32 1.1754944e-38, %v1019_v13  ;;  %v1844_v49 = vmul.f32 %v1843_v18, %v9036_v45  ;;  %4938 = vmatmul.f32.gmra.mxu3 %v4778_v15  ;;  %v3216_v29 = vsel %vm3215_vm0, %v6198_v54, %v3212_v37 }
 0x2d8   : > { %vm3218_vm2 = vcmp.eq.f32.partialorder %v3217_v27, 8.507059e+37  ;;  %v1016_v63 = vsel %vm1015_vm1, %v6200_v26, %v1012_v62  ;;  %vm1018_vm3 = vcmp.eq.f32.partialorder %v1017_v42, 8.507059e+37  ;;  %v2999_v58 = vadd.f32 0.001143296, %v2998_v2 }
 0x2d9   : > { %v3221_v4 = vsel %vm3218_vm2, %v3220_v20, %v3216_v29  ;;  %v1021_v44 = vsel %vm1018_vm3, %v1020_v38, %v1016_v63  ;;  %v3445_v1 = vadd.f32 0.4994258, %v3444_v59  ;;  %v3561_v24 = vadd.f32 0.014752088, %v3560_v51  ;;  %v11589_v29 = vld [vmem:[#allocation22_spill] sm:$0xff] }
 0x2da   : > { %v3222_v7 = vmul.f32 %v3221_v4, %v11588_v46  ;;  %v1472_v28 = vadd.f32 0.05243302, %v9047_v50  ;;  %v1022_v31 = vmul.f32 %v1021_v44, %v8987_v25  ;;  %v1828_v56 = vadd.f32 0.00028619796, %v1827_v22 }
 0x2db   : > { %v3000_v13 = vmul.f32 %v2999_v58, %v11587_v60  ;;  %v9092_v54 = vmul.f32 %v8780_v33, %v8469_v36  ;;  %v1592_v27 = vadd.f32 0.05243302, %v9052_v47  ;;  %v1845_v26 = vadd.f32 0.4994258, %v1844_v49 }
 0x2dc   : > { %v6202_v18 = vpop.eup %6201  ;;  %v6040_v42 = vclamps-f32 %v3222_v7, 1.0  ;;  %v598_v15 = vmul.f32 0.5, %v8341_v35  ;;  %v5985_v59 = vclamps-f32 %v1022_v31, 1.0  ;;  %v1711_v25 = vmul.f32 %v9054_v57, %v8973_v30  ;;  %v9111_v7 = vpop.f32.mrf.mxu3 }
 0x2dd   : > { %v3001_v51 = vadd.f32 0.014752088, %v3000_v13  ;;  %v3329_v50 = vmul.f32 %v6202_v18, %v9072_v9  ;;  %v3446_v62 = vmul.f32 %v3445_v1, %v11579_v10  ;;  %v3562_v22 = vmul.f32 %v3561_v24, %v11583_v17  ;;  %11590 = vst [vmem:[#allocation13_spill] sm:$0xff] %v9111_v7 }
 0x2de   : > { %v4685_v37 = vadd.f32 1.0, %v6040_v42  ;;  %v4630_v36 = vadd.f32 1.0, %v5985_v59  ;;  %v1829_v33 = vmul.f32 %v1828_v56, %v9036_v45  ;;  %v1846_v35 = vmul.f32 %v1845_v26, %v9036_v45 }
 0x2df   : > { %v3002_v47 = vmul.f32 %v3001_v51, %v11587_v60  ;;  %v3330_v2 = vsub.f32 1.0, %v3329_v50  ;;  %vm3334_vm4 = vweird.f32 %v6202_v18  ;;  %v3337_v20 = vand.u32 2147483647, %v9072_v9 }
 0x2e0   : > { %v3339_v38 = vand.u32 2147483648, %v9072_v9  ;;  %v4726_v49 = vmul.f32 %v4630_v36, %v598_v15  ;;  %v4781_v63 = vmul.f32 %v4685_v37, %v11589_v29  ;;  %v1353_v58 = vmul.f32 %v9044_v32, %v8807_v53  ;;  %v11591_v15 = vld [vmem:[#allocation6_spill] sm:$0xff]  ;;  %v11592_v36 = vld [vmem:[#allocation36_spill] sm:$0xff] }
 0x2e1   : > { %v3003_v57 = vadd.f32 0.112945676, %v3002_v47  ;;  %v3331_v10 = vmul.f32 %v6202_v18, %v3330_v2  ;;  %v1712_v4 = vadd.f32 0.05243302, %v1711_v25  ;;  %v9109_v44 = vadd.f32 1.0, %v3446_v62 }
 0x2e2   : > { %v3563_v46 = vadd.f32 0.112945676, %v3562_v22  ;;  %5110 = vmatmul.f32.gmra.mxu1 %v4726_v49  ;;  %v1830_v1 = vadd.f32 0.0036580483, %v1829_v33  ;;  %4941 = vmatmul.f32.gmra.mxu3 %v4781_v63  ;;  %vm3333_vm5 = vweird.f32 %v9072_v9  ;;  %v1118_v56 = vmul.f32 3.8918573e-05, %v8669_v23 }
 0x2e3   : > { %v3004_v24 = vmul.f32 %v3003_v57, %v11587_v60  ;;  %v3332_v31 = vadd.f32 %v6202_v18, %v3331_v10  ;;  %vm3335_vm6 = vmor %vm3333_vm5, %vm3334_vm4  ;;  %vm3338_vm7 = vcmp.eq.f32.partialorder %v3337_v20, 8.507059e+37  ;;  %v3340_v32 = vor.u32 1.1754944e-38, %v3339_v38 }
 0x2e4   : > { %6203 = vrcp.f32 %v9109_v44  ;;  %v9118_v13 = vadd.f32 1.0, %v1846_v35  ;;  %v3678_v59 = vmul.f32 3.8918573e-05, %v11591_v15  ;;  %v1473_v51 = vmul.f32 %v1472_v28, %v8845_v55 }
 0x2e5   : > { %v3005_v26 = vadd.f32 0.4994258, %v3004_v24  ;;  %v3336_v42 = vsel %vm3335_vm6, %v6202_v18, %v3332_v31  ;;  %v1119_v50 = vadd.f32 0.001143296, %v1118_v56  ;;  %v3564_v9 = vmul.f32 %v3563_v46, %v11583_v17 }
 0x2e6   : > { %v3341_v25 = vsel %vm3338_vm7, %v3340_v32, %v3336_v42  ;;  %v1593_v37 = vmul.f32 %v1592_v27, %v8880_v34  ;;  %v1713_v62 = vmul.f32 %v1712_v4, %v8973_v30  ;;  %v1235_v47 = vmul.f32 %v8998_v0, %v8735_v48  ;;  %v11593_v32 = vld [vmem:[#allocation24_spill] sm:$0xff] }
 0x2e7   : > { %v3006_v22 = vmul.f32 %v3005_v26, %v11587_v60  ;;  %v3342_v33 = vmul.f32 %v3341_v25, %v11592_v36  ;;  %v1831_v18 = vmul.f32 %v1830_v1, %v9036_v45  ;;  %v1120_v2 = vmul.f32 %v1119_v50, %v8669_v23  ;;  %v9164_v25 = vpop.f32.mrf.mxu3 }
 0x2e8   : > { %v3565_v28 = vadd.f32 0.4994258, %v3564_v9  ;;  %6205 = vrcp.f32 %v9118_v13  ;;  %v3679_v27 = vadd.f32 0.001143296, %v3678_v59  ;;  %v9135_v49 = vadd.f32 0.00028619796, %v8877_v61 }
 0x2e9   : > { %v9132_v35 = vadd.f32 1.0, %v3006_v22  ;;  %v6043_v20 = vclamps-f32 %v3342_v33, 1.0  ;;  %v1354_v60 = vadd.f32 0.18741608, %v1353_v58  ;;  %v1121_v57 = vadd.f32 0.014752088, %v1120_v2  ;;  %v9173_v33 = vpop.f32.mrf.mxu2 }
 0x2ea   : > { %v6204_v38 = vpop.eup %6203  ;;  %v3566_v29 = vmul.f32 %v3565_v28, %v11583_v17  ;;  %v1474_v0 = vadd.f32 0.18741608, %v1473_v51  ;;  %v1594_v63 = vadd.f32 0.18741608, %v1593_v37  ;;  %v1714_v10 = vadd.f32 0.18741608, %v1713_v62 }
 0x2eb   : > { %6207 = vrcp.f32 %v9132_v35  ;;  %v1832_v4 = vadd.f32 0.05243302, %v1831_v18  ;;  %v1122_v46 = vmul.f32 %v1121_v57, %v8669_v23  ;;  %v4688_v1 = vadd.f32 1.0, %v6043_v20  ;;  %11594 = vst [vmem:[#allocation15_spill] sm:$0xff] %v9164_v25 }
 0x2ec   : > { %v3449_v24 = vmul.f32 %v6204_v38, %v9109_v44  ;;  %v9143_v31 = vmul.f32 %v8992_v11, %v8633_v43  ;;  %v9145_v61 = vadd.f32 1.1283791, %v1235_v47  ;;  %v9147_v58 = vadd.f32 1.0, %v3566_v29 }
 0x2ed   : > { %v3680_v17 = vmul.f32 %v3679_v27, %v11591_v15  ;;  %v1123_v56 = vadd.f32 0.112945676, %v1122_v46  ;;  %v4784_v26 = vmul.f32 %v4688_v1, %v11593_v32  ;;  %v3459_v59 = vand.u32 2147483648, %v9109_v44 }
 0x2ee   : > { %v3450_v42 = vsub.f32 1.0, %v3449_v24  ;;  %v9152_v51 = vpop.eup %6205  ;;  %v9155_v50 = vmul.f32 %v1354_v60, %v8807_v53  ;;  %v9158_v43 = vmul.f32 %v1474_v0, %v8845_v55  ;;  %v9161_v11 = vmul.f32 %v1594_v63, %v8880_v34 }
 0x2ef   : > { %6209 = vrcp.f32 %v9147_v58  ;;  %v9167_v9 = vmul.f32 %v1714_v10, %v8973_v30  ;;  %v9170_v37 = vmul.f32 %v1832_v4, %v9036_v45  ;;  %v1124_v62 = vmul.f32 %v1123_v56, %v8669_v23  ;;  %4944 = vmatmul.f32.gmra.mxu3 %v4784_v26 }
 0x2f0   : > { %v3451_v22 = vmul.f32 %v6204_v38, %v3450_v42  ;;  %vm3453_vm8 = vweird.f32 %v9109_v44  ;;  %vm3454_vm9 = vweird.f32 %v6204_v38  ;;  %v3457_v47 = vand.u32 2147483647, %v9109_v44 }
 0x2f1   : > { %v6208_v36 = vpop.eup %6207  ;;  %v3681_v18 = vadd.f32 0.014752088, %v3680_v17  ;;  %v9179_v2 = vmul.f32 %v9152_v51, %v9118_v13  ;;  %v1125_v20 = vadd.f32 0.4994258, %v1124_v62  ;;  %v3460_v27 = vor.u32 1.1754944e-38, %v3459_v59  ;;  %vm3455_vm12 = vmor %vm3453_vm8, %vm3454_vm9  ;;  %v11597_v59 = vld [vmem:[#allocation5_spill] sm:$0xff] }
 0x2f2   : > { %v3009_v28 = vmul.f32 %v6208_v36, %v9132_v35  ;;  %vm3013_vm10 = vweird.f32 %v9132_v35  ;;  %v3019_v60 = vand.u32 2147483648, %v9132_v35  ;;  %v9185_v57 = vmul.f32 0.70710677, %v9173_v33  ;;  %v11598_v62 = vld [vmem:[#allocation8_spill] sm:$0xff] }
 0x2f3   : > { %v3452_v29 = vadd.f32 %v6204_v38, %v3451_v22  ;;  %vm3014_vm11 = vweird.f32 %v6208_v36  ;;  %v3017_v63 = vand.u32 2147483647, %v9132_v35  ;;  %v1126_v10 = vmul.f32 %v1125_v20, %v8669_v23 }
 0x2f4   : > { %v3010_v0 = vsub.f32 1.0, %v3009_v28  ;;  %v1945_v46 = vmul.f32 %v9185_v57, %v9185_v57  ;;  %vm3458_vm13 = vcmp.eq.f32.partialorder %v3457_v47, 8.507059e+37  ;;  %v3682_v24 = vmul.f32 %v3681_v18, %v11591_v15  ;;  %vm9200_vm14 = vmor %vm3013_vm10, %vm3014_vm11 }
 0x2f5   : > { %v6210_v4 = vpop.eup %6209  ;;  %v3456_v1 = vsel %vm3455_vm12, %v6204_v38, %v3452_v29  ;;  %v9195_v56 = vadd.f32 1.0, %v1126_v10  ;;  %v3020_v44 = vor.u32 1.1754944e-38, %v3019_v60  ;;  %v3798_v22 = vmul.f32 3.8918573e-05, %v11598_v62 }
 0x2f6   : > { %v3011_v17 = vmul.f32 %v6208_v36, %v3010_v0  ;;  %v3461_v32 = vsel %vm3458_vm13, %v3460_v27, %v3456_v1  ;;  %v3569_v26 = vmul.f32 %v6210_v4, %v9147_v58  ;;  %v9204_v42 = vmin.f32 %v1945_v46, 16.0 }
 0x2f7   : > { %v3462_v38 = vmul.f32 %v3461_v32, %v11597_v59  ;;  %vm3018_vm15 = vcmp.eq.f32.partialorder %v3017_v63, 8.507059e+37  ;;  %6211 = vrcp.f32 %v9195_v56  ;;  %v3577_v18 = vand.u32 2147483647, %v9147_v58 }
 0x2f8   : > { %v3012_v47 = vadd.f32 %v6208_v36, %v3011_v17  ;;  %v1850_v28 = vsub.f32 1.0, %v9179_v2  ;;  %v1947_v35 = vmul.f32 2.1237322e-06, %v9204_v42  ;;  %v1958_v20 = vmul.f32 3.8918573e-05, %v9204_v42  ;;  %v11599_v17 = vld [vmem:[#allocation53_spill] sm:$0xff] }
 0x2f9   : > { %v6046_v27 = vclamps-f32 %v3462_v38, 1.0  ;;  %v3570_v29 = vsub.f32 1.0, %v3569_v26  ;;  %v3579_v0 = vand.u32 2147483648, %v9147_v58  ;;  %v3683_v10 = vadd.f32 0.112945676, %v3682_v24  ;;  %v11600_v24 = vld [vmem:[#allocation31_spill] sm:$0xff] }
 0x2fa   : > { %v3016_v60 = vsel %vm9200_vm14, %v6208_v36, %v3012_v47  ;;  %v1948_v63 = vadd.f32 0.00028619796, %v1947_v35  ;;  %v1959_v1 = vadd.f32 0.001143296, %v1958_v20  ;;  %vm3574_vm0 = vweird.f32 %v6210_v4 }
 0x2fb   : > { %v3021_v46 = vsel %vm3018_vm15, %v3020_v44, %v3016_v60  ;;  %v4691_v59 = vadd.f32 1.0, %v6046_v27  ;;  %v3571_v2 = vmul.f32 %v6210_v4, %v3570_v29  ;;  %v3684_v25 = vmul.f32 %v3683_v10, %v11591_v15  ;;  %v9224_v29 = vpop.f32.mrf.mxu3 }
 0x2fc   : > { %v3022_v32 = vmul.f32 %v3021_v46, %v11599_v17  ;;  %v1949_v7 = vmul.f32 %v1948_v63, %v9204_v42  ;;  %v1960_v38 = vmul.f32 %v1959_v1, %v9204_v42  ;;  %vm3573_vm1 = vweird.f32 %v9147_v58 }
 0x2fd   : > { %v3799_v36 = vadd.f32 0.001143296, %v3798_v22  ;;  %v6212_v26 = vpop.eup %6211  ;;  %v4787_v44 = vmul.f32 %v4691_v59, %v11600_v24  ;;  %v3572_v47 = vadd.f32 %v6210_v4, %v3571_v2  ;;  %v3685_v35 = vadd.f32 0.4994258, %v3684_v25  ;;  %vm3575_vm2 = vmor %vm3573_vm1, %vm3574_vm0  ;;  %v11603_v24 = vld [vmem:[#allocation50_spill] sm:$0xff] }
 0x2fe   : > { %v6035_v23 = vclamps-f32 %v3022_v32, 1.0  ;;  %v1129_v20 = vmul.f32 %v6212_v26, %v9195_v56  ;;  %v1961_v60 = vadd.f32 0.014752088, %v1960_v38  ;;  %vm3578_vm3 = vcmp.eq.f32.partialorder %v3577_v18, 8.507059e+37  ;;  %v11601_v32 = vld [vmem:[#allocation48_spill] sm:$0xff]  ;;  %v11602_v18 = vld [vmem:[#allocation42_spill] sm:$0xff] }
 0x2ff   : > { %v3580_v27 = vor.u32 1.1754944e-38, %v3579_v0  ;;  %v1950_v46 = vadd.f32 0.0036580483, %v1949_v7  ;;  %4947 = vmatmul.f32.gmra.mxu3 %v4787_v44  ;;  %v3576_v58 = vsel %vm3575_vm2, %v6210_v4, %v3572_v47  ;;  %v3686_v22 = vmul.f32 %v3685_v35, %v11591_v15 }
 0x300   : > { %v4680_v10 = vadd.f32 1.0, %v6035_v23  ;;  %v1130_v63 = vsub.f32 1.0, %v1129_v20  ;;  %v1962_v1 = vmul.f32 %v1961_v60, %v9204_v42  ;;  %v3800_v25 = vmul.f32 %v3799_v36, %v11598_v62 }
 0x301   : > { %v3581_v17 = vsel %vm3578_vm3, %v3580_v27, %v3576_v58  ;;  %v1139_v2 = vand.u32 2147483648, %v9195_v56  ;;  %v9232_v38 = vadd.f32 1.0, %v3686_v22  ;;  %vm1134_vm4 = vweird.f32 %v6212_v26 }
 0x302   : > { %v4776_v59 = vmul.f32 %v4680_v10, %v11601_v32  ;;  %v3582_v0 = vmul.f32 %v3581_v17, %v11602_v18  ;;  %v1131_v23 = vmul.f32 %v6212_v26, %v1130_v63  ;;  %v1137_v7 = vand.u32 2147483647, %v9195_v56 }
 0x303   : > { %v1963_v4 = vadd.f32 0.112945676, %v1962_v1  ;;  %v1951_v15 = vmul.f32 %v1950_v46, %v9204_v42  ;;  %v3118_v44 = vmul.f32 3.8918573e-05, %v11603_v24  ;;  %6213 = vrcp.f32 %v9232_v38 }
 0x304   : > { %5048 = vmatmul.f32.gmra.mxu0 %v4776_v59  ;;  %v6049_v47 = vclamps-f32 %v3582_v0, 1.0  ;;  %v1834_v36 = vadd.f32 0.18741608, %v9170_v37  ;;  %v1132_v35 = vadd.f32 %v6212_v26, %v1131_v23  ;;  %vm1133_vm5 = vweird.f32 %v9195_v56  ;;  %v11604_v37 = vld [vmem:[#allocation37_spill] sm:$0xff]  ;;  %v9254_v0 = vpop.f32.mrf.mxu3 }
 0x305   : > { %v1964_v20 = vmul.f32 %v1963_v4, %v9204_v42  ;;  %v1851_v60 = vmul.f32 %v9152_v51, %v1850_v28  ;;  %vm1135_vm6 = vmor %vm1133_vm5, %vm1134_vm4  ;;  %v1140_v27 = vor.u32 1.1754944e-38, %v1139_v2  ;;  %v3119_v10 = vadd.f32 0.001143296, %v3118_v44 }
 0x306   : > { %v4694_v58 = vadd.f32 1.0, %v6049_v47  ;;  %v1136_v22 = vsel %vm1135_vm6, %v6212_v26, %v1132_v35  ;;  %vm1138_vm7 = vcmp.eq.f32.partialorder %v1137_v7, 8.507059e+37  ;;  %v3801_v63 = vadd.f32 0.014752088, %v3800_v25 }
 0x307   : > { %v1965_v46 = vadd.f32 0.4994258, %v1964_v20  ;;  %v1141_v1 = vsel %vm1138_vm7, %v1140_v27, %v1136_v22  ;;  %v1952_v17 = vadd.f32 0.05243302, %v1951_v15  ;;  %v3120_v32 = vmul.f32 %v3119_v10, %v11603_v24 }
 0x308   : > { %v4790_v59 = vmul.f32 %v4694_v58, %v11604_v37  ;;  %v9245_v56 = vadd.f32 1.1283791, %v9155_v50  ;;  %v9248_v18 = vadd.f32 1.1283791, %v9158_v43  ;;  %v1142_v28 = vmul.f32 %v1141_v1, %v9143_v31 }
 0x309   : > { %v1966_v2 = vmul.f32 %v1965_v46, %v9204_v42  ;;  %v9252_v26 = vpop.eup %6213  ;;  %v1596_v25 = vadd.f32 1.1283791, %v9161_v11  ;;  %v9258_v23 = vadd.f32 1.1283791, %v9167_v9  ;;  %v1835_v7 = vmul.f32 %v1834_v36, %v9036_v45 }
 0x30a   : > { %v3121_v50 = vadd.f32 0.014752088, %v3120_v32  ;;  %4950 = vmatmul.f32.gmra.mxu3 %v4790_v59  ;;  %v1852_v43 = vadd.f32 %v9152_v51, %v1851_v60  ;;  %vm1854_vm8 = vweird.f32 %v9152_v51  ;;  %v5988_v31 = vclamps-f32 %v1142_v28, 1.0 }
 0x30b   : > { %v1238_v4 = vmul.f32 3.8918573e-05, %v8735_v48  ;;  %v1953_v15 = vmul.f32 %v1952_v17, %v9204_v42  ;;  %v3689_v11 = vmul.f32 %v9252_v26, %v9232_v38  ;;  %v3802_v9 = vmul.f32 %v3801_v63, %v11598_v62 }
 0x30c   : > { %v3122_v44 = vmul.f32 %v3121_v50, %v11603_v24  ;;  %vm1853_vm9 = vweird.f32 %v9118_v13  ;;  %v601_v45 = vmul.f32 0.5, %v8396_v16  ;;  %v4633_v47 = vadd.f32 1.0, %v5988_v31 }
 0x30d   : > { %v9271_v36 = vadd.f32 1.0, %v1966_v2  ;;  %v1836_v35 = vadd.f32 1.1283791, %v1835_v7  ;;  %vm9273_vm10 = vmor %vm1853_vm9, %vm1854_vm8  ;;  %v1859_v60 = vand.u32 2147483648, %v9118_v13  ;;  %v3690_v10 = vsub.f32 1.0, %v3689_v11 }
 0x30e   : > { %v3123_v27 = vadd.f32 0.112945676, %v3122_v44  ;;  %v1856_v58 = vsel %vm9273_vm10, %v9152_v51, %v1852_v43  ;;  %v1857_v22 = vand.u32 2147483647, %v9118_v13  ;;  %v4729_v46 = vmul.f32 %v4633_v47, %v601_v45  ;;  %v11607_v45 = vld [vmem:[#allocation54_spill] sm:$0xff] }
 0x30f   : > { %v1239_v16 = vadd.f32 0.001143296, %v1238_v4  ;;  %v1954_v63 = vadd.f32 0.18741608, %v1953_v15  ;;  %v3699_v17 = vand.u32 2147483648, %v9232_v38  ;;  %6215 = vrcp.f32 %v9271_v36 }
 0x310   : > { %v3124_v1 = vmul.f32 %v3123_v27, %v11603_v24  ;;  %v3803_v32 = vadd.f32 0.112945676, %v3802_v9  ;;  %5113 = vmatmul.f32.gmra.mxu1 %v4729_v46  ;;  %v3691_v59 = vmul.f32 %v9252_v26, %v3690_v10  ;;  %vm3694_vm11 = vweird.f32 %v9252_v26 }
 0x311   : > { %v1240_v37 = vmul.f32 %v1239_v16, %v8735_v48  ;;  %v9290_v13 = vmul.f32 %v9145_v61, %v8706_v21  ;;  %v1860_v51 = vor.u32 1.1754944e-38, %v1859_v60  ;;  %v3697_v2 = vand.u32 2147483647, %v9232_v38 }
 0x312   : > { %v3125_v28 = vadd.f32 0.4994258, %v3124_v1  ;;  %vm1858_vm12 = vcmp.eq.f32.partialorder %v1857_v22, 8.507059e+37  ;;  %v3692_v50 = vadd.f32 %v9252_v26, %v3691_v59  ;;  %vm3693_vm13 = vweird.f32 %v9232_v38 }
 0x313   : > { %v1241_v7 = vadd.f32 0.014752088, %v1240_v37  ;;  %v1837_v43 = vmul.f32 %v1836_v35, %v9017_v19  ;;  %v1861_v31 = vsel %vm1858_vm12, %v1860_v51, %v1856_v58  ;;  %vm3695_vm14 = vmor %vm3693_vm13, %vm3694_vm11  ;;  %v3804_v15 = vmul.f32 %v3803_v32, %v11598_v62 }
 0x314   : > { %v3126_v4 = vmul.f32 %v3125_v28, %v11603_v24  ;;  %v1955_v21 = vmul.f32 %v1954_v63, %v9204_v42  ;;  %v3696_v44 = vsel %vm3695_vm14, %v9252_v26, %v3692_v50  ;;  %v3700_v11 = vor.u32 1.1754944e-38, %v3699_v17 }
 0x315   : > { %v1242_v61 = vmul.f32 %v1241_v7, %v8735_v48  ;;  %v3238_v47 = vmul.f32 3.8918573e-05, %v11607_v45  ;;  %v1358_v38 = vmul.f32 3.8918573e-05, %v8807_v53  ;;  %vm3698_vm15 = vcmp.eq.f32.partialorder %v3697_v2, 8.507059e+37  ;;  %v9305_v19 = vpop.eup %6215 }
 0x316   : > { %v9301_v9 = vadd.f32 1.0, %v3126_v4  ;;  %v9309_v24 = vmul.f32 %v9245_v56, %v8757_v52  ;;  %v9311_v35 = vmul.f32 %v1861_v31, %v1837_v43  ;;  %v3701_v20 = vsel %vm3698_vm15, %v3700_v11, %v3696_v44 }
 0x317   : > { %v1243_v42 = vadd.f32 0.112945676, %v1242_v61  ;;  %v9315_v26 = vmul.f32 %v9248_v18, %v8810_v8  ;;  %v9318_v60 = vmul.f32 %v1596_v25, %v8851_v41  ;;  %v3805_v27 = vadd.f32 0.4994258, %v3804_v15  ;;  %v9331_v41 = vpop.f32.mrf.mxu2  ;;  %v11608_v18 = vld [vmem:[#allocation52_spill] sm:$0xff] }
 0x318   : > { %6217 = vrcp.f32 %v9301_v9  ;;  %v1956_v10 = vadd.f32 1.1283791, %v1955_v21  ;;  %v3239_v22 = vadd.f32 0.001143296, %v3238_v47  ;;  %v1359_v52 = vadd.f32 0.001143296, %v1358_v38  ;;  %v9364_v47 = vpop.f32.mrf.mxu3 }
 0x319   : > { %v1244_v58 = vmul.f32 %v1243_v42, %v8735_v48  ;;  %v9324_v56 = vmul.f32 %v9258_v23, %v8940_v12  ;;  %v9327_v46 = vmul.f32 0.5, %v9012_v6  ;;  %v1969_v8 = vmul.f32 %v9305_v19, %v9271_v36  ;;  %v11609_v21 = vld [vmem:[#allocation46_spill] sm:$0xff] }
 0x31a   : > { %v3702_v25 = vmul.f32 %v3701_v20, %v11608_v18  ;;  %v6006_v16 = vclamps-f32 %v9311_v35, 1.0  ;;  %v9336_v63 = vmul.f32 0.5, %v9173_v33  ;;  %v9339_v17 = vmul.f32 0.70710677, %v9331_v41 }
 0x31b   : > { %v1245_v1 = vadd.f32 0.4994258, %v1244_v58  ;;  %v3240_v12 = vmul.f32 %v3239_v22, %v11607_v45  ;;  %v1360_v6 = vmul.f32 %v1359_v52, %v8807_v53  ;;  %v3806_v32 = vmul.f32 %v3805_v27, %v11598_v62 }
 0x31c   : > { %v6052_v23 = vclamps-f32 %v3702_v25, 1.0  ;;  %v9345_v37 = vmul.f32 %v1956_v10, %v9185_v57  ;;  %v1977_v59 = vand.u32 2147483647, %v9271_v36  ;;  %v2065_v33 = vmul.f32 %v9339_v17, %v9339_v17 }
 0x31d   : > { %v1246_v51 = vmul.f32 %v1245_v1, %v8735_v48  ;;  %v1970_v2 = vsub.f32 1.0, %v1969_v8  ;;  %v3241_v7 = vadd.f32 0.014752088, %v3240_v12  ;;  %v1361_v50 = vadd.f32 0.014752088, %v1360_v6 }
 0x31e   : > { %v6218_v28 = vpop.eup %6217  ;;  %v4697_v43 = vadd.f32 1.0, %v6052_v23  ;;  %vm3133_vm0 = vweird.f32 %v9301_v9  ;;  %v9355_v57 = vmin.f32 %v2065_v33, 16.0  ;;  %vm1973_vm1 = vweird.f32 %v9271_v36 }
 0x31f   : > { %v3129_v31 = vmul.f32 %v6218_v28, %v9301_v9  ;;  %v9353_v62 = vadd.f32 1.0, %v1246_v51  ;;  %v3139_v48 = vand.u32 2147483648, %v9301_v9  ;;  %v3242_v4 = vmul.f32 %v3241_v7, %v11607_v45 }
 0x320   : > { %v1362_v15 = vmul.f32 %v1361_v50, %v8807_v53  ;;  %v4793_v61 = vmul.f32 %v4697_v43, %v11609_v21  ;;  %vm3134_vm2 = vweird.f32 %v6218_v28  ;;  %v3137_v11 = vand.u32 2147483647, %v9301_v9  ;;  %v11616_v21 = vld [vmem:[#allocation59_spill] sm:$0xff] }
 0x321   : > { %v3130_v44 = vsub.f32 1.0, %v3129_v31  ;;  %6219 = vrcp.f32 %v9353_v62  ;;  %v1971_v38 = vmul.f32 %v9305_v19, %v1970_v2  ;;  %v1979_v42 = vand.u32 2147483648, %v9271_v36  ;;  %vm9378_vm4 = vmor %vm3133_vm0, %vm3134_vm2 }
 0x322   : > { %v2067_v20 = vmul.f32 2.1237322e-06, %v9355_v57  ;;  %v2078_v27 = vmul.f32 3.8918573e-05, %v9355_v57  ;;  %4953 = vmatmul.f32.gmra.mxu3 %v4793_v61  ;;  %v3243_v58 = vadd.f32 0.112945676, %v3242_v4  ;;  %vm1974_vm6 = vweird.f32 %v9305_v19 }
 0x323   : > { %v3131_v10 = vmul.f32 %v6218_v28, %v3130_v44  ;;  %v1363_v22 = vadd.f32 0.112945676, %v1362_v15  ;;  %v9370_v52 = vadd.f32 1.0, %v3806_v32  ;;  %vm9372_vm3 = vcmp.eq.f32.partialorder %v1977_v59, 8.507059e+37  ;;  %vm9394_vm7 = vmor %vm1973_vm1, %vm1974_vm6 }
 0x324   : > { %v3140_v25 = vor.u32 1.1754944e-38, %v3139_v48  ;;  %v2068_v1 = vadd.f32 0.00028619796, %v2067_v20  ;;  %v2079_v12 = vadd.f32 0.001143296, %v2078_v27  ;;  %vm3138_vm5 = vcmp.eq.f32.partialorder %v3137_v11, 8.507059e+37 }
 0x325   : > { %v3132_v6 = vadd.f32 %v6218_v28, %v3131_v10  ;;  %v3244_v23 = vmul.f32 %v3243_v58, %v11607_v45  ;;  %v1364_v32 = vmul.f32 %v1363_v22, %v8807_v53  ;;  %v1972_v59 = vadd.f32 %v9305_v19, %v1971_v38  ;;  %v11617_v22 = vld [vmem:[#allocation58_spill] sm:$0xff] }
 0x326   : > { %v2069_v51 = vmul.f32 %v2068_v1, %v9355_v57  ;;  %v2080_v9 = vmul.f32 %v2079_v12, %v9355_v57  ;;  %v1980_v2 = vor.u32 1.1754944e-38, %v1979_v42  ;;  %6221 = vrcp.f32 %v9370_v52 }
 0x327   : > { %v6220_v33 = vpop.eup %6219  ;;  %v3136_v7 = vsel %vm9378_vm4, %v6218_v28, %v3132_v6  ;;  %v3245_v50 = vadd.f32 0.4994258, %v3244_v23  ;;  %v1365_v43 = vadd.f32 0.4994258, %v1364_v32  ;;  %v1976_v38 = vsel %vm9394_vm7, %v9305_v19, %v1972_v59 }
 0x328   : > { %v3141_v31 = vsel %vm3138_vm5, %v3140_v25, %v3136_v7  ;;  %v1249_v48 = vmul.f32 %v6220_v33, %v9353_v62  ;;  %v2070_v4 = vadd.f32 0.0036580483, %v2069_v51  ;;  %v2081_v44 = vadd.f32 0.014752088, %v2080_v9  ;;  %v11618_v51 = vld [vmem:[#allocation19_spill] sm:$0xff] }
 0x329   : > { %v3142_v61 = vmul.f32 %v3141_v31, %v11616_v21  ;;  %v3246_v11 = vmul.f32 %v3245_v50, %v11607_v45  ;;  %v1366_v28 = vmul.f32 %v1365_v43, %v8807_v53  ;;  %v1259_v20 = vand.u32 2147483648, %v9353_v62  ;;  %v9423_v31 = vpop.f32.mrf.mxu2 }
 0x32a   : > { %v1250_v42 = vsub.f32 1.0, %v1249_v48  ;;  %v2071_v36 = vmul.f32 %v2070_v4, %v9355_v57  ;;  %v2082_v10 = vmul.f32 %v2081_v44, %v9355_v57  ;;  %v3358_v18 = vmul.f32 3.8918573e-05, %v11617_v22 }
 0x32b   : > { %v6038_v27 = vclamps-f32 %v3142_v61, 1.0  ;;  %v3247_v58 = vadd.f32 1.0, %v3246_v11  ;;  %vm1254_vm8 = vweird.f32 %v6220_v33  ;;  %v1257_v45 = vand.u32 2147483647, %v9353_v62 }
 0x32c   : > { %v1251_v25 = vmul.f32 %v6220_v33, %v1250_v42  ;;  %v9409_v53 = vadd.f32 1.0, %v1366_v28  ;;  %v1981_v19 = vsel %vm9372_vm3, %v1980_v2, %v1976_v38  ;;  %v2083_v12 = vadd.f32 0.112945676, %v2082_v10  ;;  %v9413_v6 = vpop.eup %6221 }
 0x32d   : > { %v4683_v1 = vadd.f32 1.0, %v6038_v27  ;;  %6223 = vrcp.f32 %v3247_v58  ;;  %vm1253_vm9 = vweird.f32 %v9353_v62  ;;  %v2072_v32 = vadd.f32 0.05243302, %v2071_v36 }
 0x32e   : > { %v1252_v23 = vadd.f32 %v6220_v33, %v1251_v25  ;;  %v1478_v59 = vmul.f32 3.8918573e-05, %v8845_v55  ;;  %vm1255_vm10 = vmor %vm1253_vm9, %vm1254_vm8  ;;  %v1260_v7 = vor.u32 1.1754944e-38, %v1259_v20  ;;  %v2084_v50 = vmul.f32 %v2083_v12, %v9355_v57 }
 0x32f   : > { %v4779_v9 = vmul.f32 %v4683_v1, %v11618_v51  ;;  %v3359_v43 = vadd.f32 0.001143296, %v3358_v18  ;;  %v9420_v8 = vmul.f32 %v1981_v19, %v9345_v37  ;;  %vm1258_vm11 = vcmp.eq.f32.partialorder %v1257_v45, 8.507059e+37 }
 0x330   : > { %v1256_v2 = vsel %vm1255_vm10, %v6220_v33, %v1252_v23  ;;  %6225 = vrcp.f32 %v9409_v53  ;;  %v9427_v62 = vadd.f32 1.0, %v6006_v16  ;;  %v604_v48 = vmul.f32 0.5, %v8514_v39 }
 0x331   : > { %5051 = vmatmul.f32.gmra.mxu0 %v4779_v9  ;;  %v1261_v4 = vsel %vm1258_vm11, %v1260_v7, %v1256_v2  ;;  %v2085_v15 = vadd.f32 0.4994258, %v2084_v50  ;;  %v2073_v37 = vmul.f32 %v2072_v32, %v9355_v57  ;;  %v1479_v61 = vadd.f32 0.001143296, %v1478_v59 }
 0x332   : > { %v1262_v21 = vmul.f32 %v1261_v4, %v9290_v13  ;;  %v9434_v33 = vmul.f32 %v9413_v6, %v9370_v52  ;;  %v3257_v35 = vand.u32 2147483647, %v3247_v58  ;;  %v9438_v16 = vmul.f32 0.70710677, %v9423_v31 }
 0x333   : > { %v6224_v44 = vpop.eup %6223  ;;  %v2086_v11 = vmul.f32 %v2085_v15, %v9355_v57  ;;  %v3360_v39 = vmul.f32 %v3359_v43, %v11617_v22  ;;  %v6009_v28 = vclamps-f32 %v9420_v8, 1.0  ;;  %v3259_v42 = vand.u32 2147483648, %v3247_v58  ;;  %v11623_v15 = vld [vmem:[#allocation63_spill] sm:$0xff] }
 0x334   : > { %v5991_v38 = vclamps-f32 %v1262_v21, 1.0  ;;  %v3249_v13 = vmul.f32 %v6224_v44, %v3247_v58  ;;  %vm3253_vm12 = vweird.f32 %v3247_v58  ;;  %v2185_v36 = vmul.f32 %v9438_v16, %v9438_v16 }
 0x335   : > { %v9442_v20 = vadd.f32 1.0, %v2086_v11  ;;  %v3361_v27 = vadd.f32 0.014752088, %v3360_v39  ;;  %vm3254_vm13 = vweird.f32 %v6224_v44  ;;  %v1480_v45 = vmul.f32 %v1479_v61, %v8845_v55 }
 0x336   : > { %v6226_v10 = vpop.eup %6225  ;;  %v4636_v18 = vadd.f32 1.0, %v5991_v38  ;;  %v3250_v25 = vsub.f32 1.0, %v3249_v13  ;;  %v9447_v19 = vadd.f32 0.18741608, %v2073_v37  ;;  %vm9450_vm14 = vcmp.eq.f32.partialorder %v3257_v35, 8.507059e+37  ;;  %vm9457_vm0 = vmor %vm3253_vm12, %vm3254_vm13 }
 0x337   : > { %6227 = vrcp.f32 %v9442_v20  ;;  %vm1373_vm15 = vweird.f32 %v9409_v53  ;;  %v3260_v32 = vor.u32 1.1754944e-38, %v3259_v42  ;;  %v1369_v59 = vmul.f32 %v6226_v10, %v9409_v53 }
 0x338   : > { %v4732_v12 = vmul.f32 %v4636_v18, %v604_v48  ;;  %v3251_v23 = vmul.f32 %v6224_v44, %v3250_v25  ;;  %v1377_v9 = vand.u32 2147483647, %v9409_v53  ;;  %v1379_v7 = vand.u32 2147483648, %v9409_v53 }
 0x339   : > { %v9463_v50 = vmin.f32 %v2185_v36, 16.0  ;;  %v3362_v43 = vmul.f32 %v3361_v27, %v11617_v22  ;;  %v1370_v48 = vsub.f32 1.0, %v1369_v59  ;;  %v1481_v4 = vadd.f32 0.014752088, %v1480_v45  ;;  %v11624_v45 = vld [vmem:[#allocation38_spill] sm:$0xff] }
 0x33a   : > { %5116 = vmatmul.f32.gmra.mxu1 %v4732_v12  ;;  %v3252_v2 = vadd.f32 %v6224_v44, %v3251_v23  ;;  %v3478_v21 = vmul.f32 3.8918573e-05, %v11623_v15  ;;  %vm1374_vm1 = vweird.f32 %v6226_v10  ;;  %vm1378_vm3 = vcmp.eq.f32.partialorder %v1377_v9, 8.507059e+37 }
 0x33b   : > { %v2187_v58 = vmul.f32 2.1237322e-06, %v9463_v50  ;;  %v2198_v37 = vmul.f32 3.8918573e-05, %v9463_v50  ;;  %v3363_v61 = vadd.f32 0.112945676, %v3362_v43  ;;  %v1371_v35 = vmul.f32 %v6226_v10, %v1370_v48  ;;  %vm1375_vm2 = vmor %vm1373_vm15, %vm1374_vm1 }
 0x33c   : > { %v3256_v11 = vsel %vm9457_vm0, %v6224_v44, %v3252_v2  ;;  %v1482_v39 = vmul.f32 %v1481_v4, %v8845_v55  ;;  %v3479_v38 = vadd.f32 0.001143296, %v3478_v21  ;;  %v1380_v44 = vor.u32 1.1754944e-38, %v1379_v7 }
 0x33d   : > { %v9472_v13 = vpop.eup %6227  ;;  %v3261_v42 = vsel %vm9450_vm14, %v3260_v32, %v3256_v11  ;;  %v2188_v36 = vadd.f32 0.00028619796, %v2187_v58  ;;  %v2199_v27 = vadd.f32 0.001143296, %v2198_v37  ;;  %v3364_v18 = vmul.f32 %v3363_v61, %v11617_v22 }
 0x33e   : > { %v2089_v25 = vmul.f32 %v9472_v13, %v9442_v20  ;;  %v3262_v12 = vmul.f32 %v3261_v42, %v11624_v45  ;;  %v1372_v23 = vadd.f32 %v6226_v10, %v1371_v35  ;;  %v1483_v51 = vadd.f32 0.112945676, %v1482_v39 }
 0x33f   : > { %v2189_v59 = vmul.f32 %v2188_v36, %v9463_v50  ;;  %v2200_v1 = vmul.f32 %v2199_v27, %v9463_v50  ;;  %v3365_v32 = vadd.f32 0.4994258, %v3364_v18  ;;  %v3480_v7 = vmul.f32 %v3479_v38, %v11623_v15  ;;  %v11625_v38 = vld [vmem:[#allocation60_spill] sm:$0xff] }
 0x340   : > { %v2090_v43 = vsub.f32 1.0, %v2089_v25  ;;  %v6041_v2 = vclamps-f32 %v3262_v12, 1.0  ;;  %v1376_v48 = vsel %vm1375_vm2, %v6226_v10, %v1372_v23  ;;  %v1484_v11 = vmul.f32 %v1483_v51, %v8845_v55 }
 0x341   : > { %v1381_v4 = vsel %vm1378_vm3, %v1380_v44, %v1376_v48  ;;  %v2201_v21 = vadd.f32 0.014752088, %v2200_v1  ;;  %v3366_v58 = vmul.f32 %v3365_v32, %v11617_v22  ;;  %v2190_v61 = vadd.f32 0.0036580483, %v2189_v59  ;;  %v533_v44 = vpop.f32.mrf.mxu2 }
 0x342   : > { %v4686_v37 = vadd.f32 1.0, %v6041_v2  ;;  %v1382_v53 = vmul.f32 %v1381_v4, %v9309_v24  ;;  %v9491_v35 = vmul.f32 %v9427_v62, %v9327_v46  ;;  %v4654_v10 = vadd.f32 1.0, %v6009_v28 }
 0x343   : > { %v2202_v9 = vmul.f32 %v2201_v21, %v9463_v50  ;;  %v9496_v39 = vadd.f32 1.0, %v3366_v58  ;;  %v2091_v22 = vmul.f32 %v9472_v13, %v2090_v43  ;;  %v3810_v24 = vsub.f32 1.0, %v9434_v33 }
 0x344   : > { %v4782_v42 = vmul.f32 %v4686_v37, %v11625_v38  ;;  %v5994_v36 = vclamps-f32 %v1382_v53, 1.0  ;;  %v1485_v18 = vadd.f32 0.4994258, %v1484_v11  ;;  %v3481_v46 = vadd.f32 0.014752088, %v3480_v7 }
 0x345   : > { %v2203_v27 = vadd.f32 0.112945676, %v2202_v9  ;;  %6229 = vrcp.f32 %v9496_v39  ;;  %v2075_v8 = vmul.f32 %v9447_v19, %v9355_v57  ;;  %v607_v62 = vmul.f32 0.5, %v8614_v5 }
 0x346   : > { %5054 = vmatmul.f32.gmra.mxu0 %v4782_v42  ;;  %v4639_v28 = vadd.f32 1.0, %v5994_v36  ;;  %v2191_v25 = vmul.f32 %v2190_v61, %v9463_v50  ;;  %v9507_v45 = vmul.f32 %v4654_v10, %v9336_v63  ;;  %v9510_v12 = vmul.f32 0.5, %v9331_v41 }
 0x347   : > { %v2099_v33 = vand.u32 2147483648, %v9442_v20  ;;  %v2204_v23 = vmul.f32 %v2203_v27, %v9463_v50  ;;  %v2092_v59 = vadd.f32 %v9472_v13, %v2091_v22  ;;  %vm2094_vm4 = vweird.f32 %v9472_v13 }
 0x348   : > { %v4735_v57 = vmul.f32 %v4639_v28, %v607_v62  ;;  %v9517_v5 = vmul.f32 0.5, %v8692_v14  ;;  %v1486_v63 = vmul.f32 %v1485_v18, %v8845_v55  ;;  %v3482_v1 = vmul.f32 %v3481_v46, %v11623_v15 }
 0x349   : > { %v2205_v19 = vadd.f32 0.4994258, %v2204_v23  ;;  %v3811_v41 = vmul.f32 %v9413_v6, %v3810_v24  ;;  %v2076_v32 = vadd.f32 1.1283791, %v2075_v8  ;;  %vm2093_vm5 = vweird.f32 %v9442_v20 }
 0x34a   : > { %5119 = vmatmul.f32.gmra.mxu1 %v4735_v57  ;;  %v2192_v51 = vadd.f32 0.05243302, %v2191_v25  ;;  %v9523_v43 = vmul.f32 0.70710677, %v533_v44  ;;  %vm9525_vm6 = vmor %vm2093_vm5, %vm2094_vm4  ;;  %v2097_v14 = vand.u32 2147483647, %v9442_v20  ;;  %vm3373_vm7 = vweird.f32 %v9496_v39 }
 0x34b   : > { %v6230_v2 = vpop.eup %6229  ;;  %v2100_v4 = vor.u32 1.1754944e-38, %v2099_v33  ;;  %v2206_v55 = vmul.f32 %v2205_v19, %v9463_v50  ;;  %v9531_v21 = vadd.f32 1.0, %v1486_v63  ;;  %v2096_v58 = vsel %vm9525_vm6, %v9472_v13, %v2092_v59 }
 0x34c   : > { %v3369_v7 = vmul.f32 %v6230_v2, %v9496_v39  ;;  %v3379_v37 = vand.u32 2147483648, %v9496_v39  ;;  %v2305_v20 = vmul.f32 %v9523_v43, %v9523_v43  ;;  %v3483_v61 = vadd.f32 0.112945676, %v3482_v1 }
 0x34d   : > { %v9539_v53 = vadd.f32 1.0, %v2206_v55  ;;  %6231 = vrcp.f32 %v9531_v21  ;;  %v2193_v11 = vmul.f32 %v2192_v51, %v9463_v50  ;;  %vm3374_vm8 = vweird.f32 %v6230_v2 }
 0x34e   : > { %v3370_v10 = vsub.f32 1.0, %v3369_v7  ;;  %v3377_v13 = vand.u32 2147483647, %v9496_v39  ;;  %vm2098_vm9 = vcmp.eq.f32.partialorder %v2097_v14, 8.507059e+37  ;;  %v9547_v9 = vmul.f32 0.5, %v9423_v31  ;;  %vm9557_vm10 = vmor %vm3373_vm7, %vm3374_vm8 }
 0x34f   : > { %6233 = vrcp.f32 %v9539_v53  ;;  %v3817_v22 = vand.u32 2147483647, %v9370_v52  ;;  %v2077_v38 = vmul.f32 %v2076_v32, %v9339_v17  ;;  %v2101_v42 = vsel %vm2098_vm9, %v2100_v4, %v2096_v58  ;;  %v11630_v4 = vld [vmem:[#allocation66_spill] sm:$0xff] }
 0x350   : > { %v3371_v36 = vmul.f32 %v6230_v2, %v3370_v10  ;;  %v9553_v24 = vadd.f32 %v9413_v6, %v3811_v41  ;;  %v3380_v18 = vor.u32 1.1754944e-38, %v3379_v37  ;;  %v9561_v31 = vmin.f32 %v2305_v20, 16.0 }
 0x351   : > { %v3484_v46 = vmul.f32 %v3483_v61, %v11623_v15  ;;  %v1598_v8 = vmul.f32 3.8918573e-05, %v8880_v34  ;;  %v2194_v62 = vadd.f32 0.18741608, %v2193_v11  ;;  %vm3378_vm11 = vcmp.eq.f32.partialorder %v3377_v13, 8.507059e+37 }
 0x352   : > { %v3372_v17 = vadd.f32 %v6230_v2, %v3371_v36  ;;  %v9565_v28 = vmul.f32 0.5, %v533_v44  ;;  %v2102_v33 = vmul.f32 %v2101_v42, %v2077_v38  ;;  %v2307_v39 = vmul.f32 2.1237322e-06, %v9561_v31 }
 0x353   : > { %v6232_v25 = vpop.eup %6231  ;;  %v2318_v23 = vmul.f32 3.8918573e-05, %v9561_v31  ;;  %v3485_v59 = vadd.f32 0.4994258, %v3484_v46  ;;  %v1499_v63 = vand.u32 2147483648, %v9531_v21  ;;  %vm1493_vm13 = vweird.f32 %v9531_v21 }
 0x354   : > { %v3376_v57 = vsel %vm9557_vm10, %v6230_v2, %v3372_v17  ;;  %v1489_v19 = vmul.f32 %v6232_v25, %v9531_v21  ;;  %v1599_v1 = vadd.f32 0.001143296, %v1598_v8  ;;  %v2308_v44 = vadd.f32 0.00028619796, %v2307_v39 }
 0x355   : > { %v9573_v41 = vpop.eup %6233  ;;  %v3381_v32 = vsel %vm3378_vm11, %v3380_v18, %v3376_v57  ;;  %v2319_v51 = vadd.f32 0.001143296, %v2318_v23  ;;  %v3486_v48 = vmul.f32 %v3485_v59, %v11623_v15  ;;  %v3598_v2 = vmul.f32 3.8918573e-05, %v8172_v40  ;;  %v11631_v23 = vld [vmem:[#allocation64_spill] sm:$0xff] }
 0x356   : > { %v2209_v14 = vmul.f32 %v9573_v41, %v9539_v53  ;;  %v3382_v55 = vmul.f32 %v3381_v32, %v11630_v4  ;;  %v1490_v58 = vsub.f32 1.0, %v1489_v19  ;;  %v2309_v7 = vmul.f32 %v2308_v44, %v9561_v31 }
 0x357   : > { %v2320_v37 = vmul.f32 %v2319_v51, %v9561_v31  ;;  %v9582_v20 = vadd.f32 1.0, %v3486_v48  ;;  %v1600_v61 = vmul.f32 %v1599_v1, %v8880_v34  ;;  %vm1494_vm12 = vweird.f32 %v6232_v25 }
 0x358   : > { %v6044_v11 = vclamps-f32 %v3382_v55, 1.0  ;;  %v1491_v10 = vmul.f32 %v6232_v25, %v1490_v58  ;;  %v1497_v15 = vand.u32 2147483647, %v9531_v21  ;;  %v6012_v13 = vclamps-f32 %v2102_v33, 1.0  ;;  %vm1495_vm14 = vmor %vm1493_vm13, %vm1494_vm12 }
 0x359   : > { %v2310_v38 = vadd.f32 0.0036580483, %v2309_v7  ;;  %v2321_v42 = vadd.f32 0.014752088, %v2320_v37  ;;  %6235 = vrcp.f32 %v9582_v20  ;;  %v1500_v18 = vor.u32 1.1754944e-38, %v1499_v63 }
 0x35a   : > { %v4689_v36 = vadd.f32 1.0, %v6044_v11  ;;  %v1492_v27 = vadd.f32 %v6232_v25, %v1491_v10  ;;  %v2210_v46 = vsub.f32 1.0, %v2209_v14  ;;  %v1601_v17 = vadd.f32 0.014752088, %v1600_v61 }
 0x35b   : > { %v2322_v8 = vmul.f32 %v2321_v42, %v9561_v31  ;;  %v3599_v39 = vadd.f32 0.001143296, %v3598_v2  ;;  %vm1498_vm15 = vcmp.eq.f32.partialorder %v1497_v15, 8.507059e+37  ;;  %v2311_v33 = vmul.f32 %v2310_v38, %v9561_v31 }
 0x35c   : > { %v4785_v59 = vmul.f32 %v4689_v36, %v11631_v23  ;;  %v1496_v57 = vsel %vm1495_vm14, %v6232_v25, %v1492_v27  ;;  %v2195_v19 = vmul.f32 %v2194_v62, %v9463_v50  ;;  %v9593_v44 = vmul.f32 0.5, %v8791_v3 }
 0x35d   : > { %v1501_v1 = vsel %vm1498_vm15, %v1500_v18, %v1496_v57  ;;  %v2323_v32 = vadd.f32 0.112945676, %v2322_v8  ;;  %v4657_v21 = vadd.f32 1.0, %v6012_v13  ;;  %vm2213_vm0 = vweird.f32 %v9539_v53 }
 0x35e   : > { %5057 = vmatmul.f32.gmra.mxu0 %v4785_v59  ;;  %v1502_v63 = vmul.f32 %v1501_v1, %v9315_v26  ;;  %v1602_v51 = vmul.f32 %v1601_v17, %v8880_v34  ;;  %v2211_v25 = vmul.f32 %v9573_v41, %v2210_v46  ;;  %v2219_v14 = vand.u32 2147483648, %v9539_v53  ;;  %v9622_v17 = vpop.f32.mrf.mxu2 }
 0x35f   : > { %v6236_v48 = vpop.eup %6235  ;;  %v2324_v50 = vmul.f32 %v2323_v32, %v9561_v31  ;;  %v3600_v62 = vmul.f32 %v3599_v39, %v8172_v40  ;;  %v2312_v3 = vadd.f32 0.05243302, %v2311_v33  ;;  %v3499_v58 = vand.u32 2147483648, %v9582_v20 }
 0x360   : > { %v5997_v4 = vclamps-f32 %v1502_v63, 1.0  ;;  %v3489_v55 = vmul.f32 %v6236_v48, %v9582_v20  ;;  %vm3493_vm1 = vweird.f32 %v9582_v20  ;;  %v3497_v26 = vand.u32 2147483647, %v9582_v20 }
 0x361   : > { %v2325_v2 = vadd.f32 0.4994258, %v2324_v50  ;;  %v1603_v7 = vadd.f32 0.112945676, %v1602_v51  ;;  %vm3814_vm2 = vweird.f32 %v9413_v6  ;;  %vm3494_vm3 = vweird.f32 %v6236_v48 }
 0x362   : > { %v4642_v37 = vadd.f32 1.0, %v5997_v4  ;;  %v3490_v61 = vsub.f32 1.0, %v3489_v55  ;;  %v3601_v11 = vadd.f32 0.014752088, %v3600_v62  ;;  %v2212_v10 = vadd.f32 %v9573_v41, %v2211_v25  ;;  %vm9618_vm6 = vmor %vm3493_vm1, %vm3494_vm3 }
 0x363   : > { %vm2214_vm4 = vweird.f32 %v9573_v41  ;;  %v2326_v15 = vmul.f32 %v2325_v2, %v9561_v31  ;;  %v1604_v13 = vmul.f32 %v1603_v7, %v8880_v34  ;;  %vm3813_vm5 = vweird.f32 %v9370_v52 }
 0x364   : > { %v4738_v38 = vmul.f32 %v4642_v37, %v9517_v5  ;;  %v2313_v42 = vmul.f32 %v2312_v3, %v9561_v31  ;;  %v3491_v36 = vmul.f32 %v6236_v48, %v3490_v61  ;;  %v3500_v27 = vor.u32 1.1754944e-38, %v3499_v58  ;;  %vm9637_vm8 = vmor %vm2213_vm0, %vm2214_vm4 }
 0x365   : > { %v9614_v18 = vadd.f32 1.0, %v2326_v15  ;;  %v1605_v8 = vadd.f32 0.4994258, %v1604_v13  ;;  %v3602_v39 = vmul.f32 %v3601_v11, %v8172_v40  ;;  %v1718_v23 = vmul.f32 3.8918573e-05, %v8973_v30  ;;  %vm9667_vm10 = vmor %vm3813_vm5, %vm3814_vm2 }
 0x366   : > { %v2217_v5 = vand.u32 2147483647, %v9539_v53  ;;  %5122 = vmatmul.f32.gmra.mxu1 %v4738_v38  ;;  %v3492_v59 = vadd.f32 %v6236_v48, %v3491_v36  ;;  %vm3498_vm7 = vcmp.eq.f32.partialorder %v3497_v26, 8.507059e+37  ;;  %v9628_v57 = vmul.f32 0.70710677, %v9622_v17  ;;  %v11640_v36 = vld [vmem:[#allocation72_spill] sm:$0xff] }
 0x367   : > { %v9631_v20 = vmul.f32 %v4657_v21, %v9510_v12  ;;  %v2196_v33 = vadd.f32 1.1283791, %v2195_v19  ;;  %v2220_v32 = vor.u32 1.1754944e-38, %v2219_v14  ;;  %6237 = vrcp.f32 %v9614_v18  ;;  %v11636_v14 = vld [vmem:[#allocation47_spill] sm:$0xff] }
 0x368   : > { %v2216_v63 = vsel %vm9637_vm8, %v9573_v41, %v2212_v10  ;;  %v3496_v12 = vsel %vm9618_vm6, %v6236_v48, %v3492_v59  ;;  %v1606_v19 = vmul.f32 %v1605_v8, %v8880_v34  ;;  %v2425_v21 = vmul.f32 %v9628_v57, %v9628_v57  ;;  %v11637_v48 = vld [vmem:[#allocation30_spill] sm:$0xff] }
 0x369   : > { %v2314_v53 = vadd.f32 0.18741608, %v2313_v42  ;;  %v3501_v51 = vsel %vm3498_vm7, %v3500_v27, %v3496_v12  ;;  %v3603_v25 = vadd.f32 0.112945676, %v3602_v39  ;;  %v1719_v50 = vadd.f32 0.001143296, %v1718_v23 }
 0x36a   : > { %vm2218_vm9 = vcmp.eq.f32.partialorder %v2217_v5, 8.507059e+37  ;;  %v3502_v62 = vmul.f32 %v3501_v51, %v11636_v14  ;;  %v9651_v4 = vadd.f32 1.0, %v1606_v19  ;;  %v9653_v3 = vmin.f32 %v2425_v21, 16.0  ;;  %v11641_v23 = vld [vmem:[#allocation67_spill] sm:$0xff] }
 0x36b   : > { %v2197_v41 = vmul.f32 %v2196_v33, %v9438_v16  ;;  %v2221_v55 = vsel %vm2218_vm9, %v2220_v32, %v2216_v63  ;;  %v9657_v58 = vmul.f32 0.5, %v11637_v48  ;;  %v3819_v34 = vand.u32 2147483648, %v9370_v52 }
 0x36c   : > { %v6047_v2 = vclamps-f32 %v3502_v62, 1.0  ;;  %6239 = vrcp.f32 %v9651_v4  ;;  %v3604_v26 = vmul.f32 %v3603_v25, %v8172_v40  ;;  %v1720_v7 = vmul.f32 %v1719_v50, %v8973_v30  ;;  %v11642_v62 = vld [vmem:[#allocation57_spill] sm:$0xff] }
 0x36d   : > { %v9671_v16 = vpop.eup %6237  ;;  %v2315_v61 = vmul.f32 %v2314_v53, %v9561_v31  ;;  %v2427_v11 = vmul.f32 2.1237322e-06, %v9653_v3  ;;  %v2438_v10 = vmul.f32 3.8918573e-05, %v9653_v3  ;;  %v3816_v15 = vsel %vm9667_vm10, %v9413_v6, %v9553_v24 }
 0x36e   : > { %v9680_v13 = vmul.f32 %v2221_v55, %v2197_v41  ;;  %v2329_v38 = vmul.f32 %v9671_v16, %v9614_v18  ;;  %v4692_v42 = vadd.f32 1.0, %v6047_v2  ;;  %v3718_v27 = vmul.f32 3.8918573e-05, %v11640_v36 }
 0x36f   : > { %v2428_v46 = vadd.f32 0.00028619796, %v2427_v11  ;;  %v2439_v8 = vadd.f32 0.001143296, %v2438_v10  ;;  %vm3818_vm11 = vcmp.eq.f32.partialorder %v3817_v22, 8.507059e+37  ;;  %v3820_v31 = vor.u32 1.1754944e-38, %v3819_v34 }
 0x370   : > { %v2330_v39 = vsub.f32 1.0, %v2329_v38  ;;  %v4788_v5 = vmul.f32 %v4692_v42, %v11641_v23  ;;  %v3605_v59 = vadd.f32 0.4994258, %v3604_v26  ;;  %v1721_v33 = vadd.f32 0.014752088, %v1720_v7 }
 0x371   : > { %v9688_v6 = vadd.f32 1.1283791, %v2315_v61  ;;  %v2429_v24 = vmul.f32 %v2428_v46, %v9653_v3  ;;  %v2440_v1 = vmul.f32 %v2439_v8, %v9653_v3  ;;  %v3821_v32 = vsel %vm3818_vm11, %v3820_v31, %v3816_v15 }
 0x372   : > { %v6240_v63 = vpop.eup %6239  ;;  %v2331_v12 = vmul.f32 %v9671_v16, %v2330_v39  ;;  %vm2333_vm12 = vweird.f32 %v9614_v18  ;;  %5060 = vmatmul.f32.gmra.mxu0 %v4788_v5  ;;  %v3606_v52 = vmul.f32 %v3605_v59, %v8172_v40  ;;  %v1722_v22 = vmul.f32 %v1721_v33, %v8973_v30  ;;  %v9723_v33 = vpop.f32.mrf.mxu2 }
 0x373   : > { %v2339_v19 = vand.u32 2147483648, %v9614_v18  ;;  %v1609_v21 = vmul.f32 %v6240_v63, %v9651_v4  ;;  %v2430_v53 = vadd.f32 0.0036580483, %v2429_v24  ;;  %v2441_v51 = vadd.f32 0.014752088, %v2440_v1 }
 0x374   : > { %v1617_v25 = vand.u32 2147483647, %v9651_v4  ;;  %v9699_v50 = vadd.f32 1.0, %v3606_v52  ;;  %v3719_v14 = vadd.f32 0.001143296, %v3718_v27  ;;  %v3822_v41 = vmul.f32 %v3821_v32, %v11642_v62 }
 0x375   : > { %v1610_v55 = vsub.f32 1.0, %v1609_v21  ;;  %v2431_v48 = vmul.f32 %v2430_v53, %v9653_v3  ;;  %v2442_v40 = vmul.f32 %v2441_v51, %v9653_v3  ;;  %v1723_v34 = vadd.f32 0.112945676, %v1722_v22 }
 0x376   : > { %v2332_v2 = vadd.f32 %v9671_v16, %v2331_v12  ;;  %vm2334_vm13 = vweird.f32 %v9671_v16  ;;  %v1619_v26 = vand.u32 2147483648, %v9651_v4  ;;  %6241 = vrcp.f32 %v9699_v50 }
 0x377   : > { %v1611_v7 = vmul.f32 %v6240_v63, %v1610_v55  ;;  %vm1614_vm14 = vweird.f32 %v6240_v63  ;;  %v2432_v37 = vadd.f32 0.05243302, %v2431_v48  ;;  %v2443_v61 = vadd.f32 0.112945676, %v2442_v40  ;;  %vm9713_vm0 = vmor %vm2333_vm12, %vm2334_vm13  ;;  %v11645_v48 = vld [vmem:[#allocation51_spill] sm:$0xff] }
 0x378   : > { %v2337_v11 = vand.u32 2147483647, %v9614_v18  ;;  %vm1613_vm15 = vweird.f32 %v9651_v4  ;;  %v3720_v10 = vmul.f32 %v3719_v14, %v11640_v36  ;;  %v6055_v15 = vclamps-f32 %v3822_v41, 1.0 }
 0x379   : > { %v1612_v42 = vadd.f32 %v6240_v63, %v1611_v7  ;;  %v2433_v27 = vmul.f32 %v2432_v37, %v9653_v3  ;;  %v2444_v46 = vmul.f32 %v2443_v61, %v9653_v3  ;;  %v1724_v8 = vmul.f32 %v1723_v34, %v8973_v30  ;;  %vm1615_vm1 = vmor %vm1613_vm15, %vm1614_vm14  ;;  %v11646_v7 = vld [vmem:[#allocation14_spill] sm:$0xff] }
 0x37a   : > { %v2336_v4 = vsel %vm9713_vm0, %v9671_v16, %v2332_v2  ;;  %v2340_v31 = vor.u32 1.1754944e-38, %v2339_v19  ;;  %vm1618_vm2 = vcmp.eq.f32.partialorder %v1617_v25, 8.507059e+37  ;;  %v1620_v39 = vor.u32 1.1754944e-38, %v1619_v26  ;;  %v9747_v2 = vpop.f32.mrf.mxu3 }
 0x37b   : > { %v1616_v18 = vsel %vm1615_vm1, %v6240_v63, %v1612_v42  ;;  %v2434_v23 = vadd.f32 0.18741608, %v2433_v27  ;;  %v2445_v5 = vadd.f32 0.4994258, %v2444_v46  ;;  %v1725_v59 = vadd.f32 0.4994258, %v1724_v8 }
 0x37c   : > { %v6242_v24 = vpop.eup %6241  ;;  %v1621_v1 = vsel %vm1618_vm2, %v1620_v39, %v1616_v18  ;;  %vm3613_vm3 = vweird.f32 %v9699_v50  ;;  %v9727_v32 = vmul.f32 0.70710677, %v9723_v33  ;;  %v4700_v12 = vadd.f32 1.0, %v6055_v15 }
 0x37d   : > { %v1622_v16 = vmul.f32 %v1621_v1, %v9318_v60  ;;  %v2446_v52 = vmul.f32 %v2445_v5, %v9653_v3  ;;  %v3609_v22 = vmul.f32 %v6242_v24, %v9699_v50  ;;  %v3721_v63 = vadd.f32 0.014752088, %v3720_v10 }
 0x37e   : > { %v3617_v19 = vand.u32 2147483647, %v9699_v50  ;;  %v3619_v21 = vand.u32 2147483648, %v9699_v50  ;;  %v1726_v53 = vmul.f32 %v1725_v59, %v8973_v30  ;;  %v2545_v51 = vmul.f32 %v9727_v32, %v9727_v32 }
 0x37f   : > { %v6000_v25 = vclamps-f32 %v1622_v16, 1.0  ;;  %v2435_v14 = vmul.f32 %v2434_v23, %v9653_v3  ;;  %v9738_v62 = vadd.f32 1.0, %v2446_v52  ;;  %v3610_v60 = vsub.f32 1.0, %v3609_v22  ;;  %v11649_v52 = vld [vmem:[#allocation75_spill] sm:$0xff] }
 0x380   : > { %vm3614_vm4 = vweird.f32 %v6242_v24  ;;  %v9740_v41 = vadd.f32 1.0, %v1726_v53  ;;  %v9742_v55 = vmin.f32 %v2545_v51, 16.0  ;;  %v4796_v40 = vmul.f32 %v4700_v12, %v11645_v48 }
 0x381   : > { %vm2338_vm5 = vcmp.eq.f32.partialorder %v2337_v11, 8.507059e+37  ;;  %v4645_v34 = vadd.f32 1.0, %v6000_v25  ;;  %6243 = vrcp.f32 %v9738_v62  ;;  %v3722_v30 = vmul.f32 %v3721_v63, %v11640_v36  ;;  %vm9758_vm6 = vmor %vm3613_vm3, %vm3614_vm4 }
 0x382   : > { %v2341_v26 = vsel %vm2338_vm5, %v2340_v31, %v2336_v4  ;;  %v3611_v3 = vmul.f32 %v6242_v24, %v3610_v60  ;;  %6245 = vrcp.f32 %v9740_v41  ;;  %4956 = vmatmul.f32.gmra.mxu3 %v4796_v40  ;;  %v3918_v37 = vmul.f32 3.8918573e-05, %v11646_v7 }
 0x383   : > { %v6015_v61 = vclamps-f32 %v9680_v13, 1.0  ;;  %v2317_v10 = vmul.f32 %v9688_v6, %v9523_v43  ;;  %v4741_v11 = vmul.f32 %v4645_v34, %v9593_v44  ;;  %v3620_v38 = vor.u32 1.1754944e-38, %v3619_v21 }
 0x384   : > { %v9762_v42 = vadd.f32 1.1283791, %v2435_v14  ;;  %v3612_v27 = vadd.f32 %v6242_v24, %v3611_v3  ;;  %vm3618_vm7 = vcmp.eq.f32.partialorder %v3617_v19, 8.507059e+37  ;;  %v2547_v46 = vmul.f32 2.1237322e-06, %v9742_v55  ;;  %v11650_v19 = vld [vmem:[#allocation56_spill] sm:$0xff] }
 0x385   : > { %v9765_v8 = vmul.f32 %v2341_v26, %v2317_v10  ;;  %5125 = vmatmul.f32.gmra.mxu1 %v4741_v11  ;;  %v2459_v43 = vand.u32 2147483648, %v9738_v62  ;;  %v2558_v44 = vmul.f32 3.8918573e-05, %v9742_v55  ;;  %v3723_v6 = vadd.f32 0.112945676, %v3722_v30 }
 0x386   : > { %vm2453_vm8 = vweird.f32 %v9738_v62  ;;  %v3616_v50 = vsel %vm9758_vm6, %v6242_v24, %v3612_v27  ;;  %v1737_v4 = vand.u32 2147483647, %v9740_v41  ;;  %v2548_v31 = vadd.f32 0.00028619796, %v2547_v46 }
 0x387   : > { %v3919_v39 = vadd.f32 0.001143296, %v3918_v37  ;;  %v6244_v18 = vpop.eup %6243  ;;  %v3621_v23 = vsel %vm3618_vm7, %v3620_v38, %v3616_v50  ;;  %v1739_v5 = vand.u32 2147483648, %v9740_v41  ;;  %v2559_v59 = vadd.f32 0.001143296, %v2558_v44 }
 0x388   : > { %v3724_v1 = vmul.f32 %v3723_v6, %v11640_v36  ;;  %v6246_v12 = vpop.eup %6245  ;;  %v2449_v16 = vmul.f32 %v6244_v18, %v9738_v62  ;;  %v3622_v22 = vmul.f32 %v3621_v23, %v11649_v52  ;;  %v2549_v63 = vmul.f32 %v2548_v31, %v9742_v55  ;;  %v11651_v6 = vld [vmem:[#allocation73_spill] sm:$0xff] }
 0x389   : > { %v4038_v24 = vmul.f32 3.8918573e-05, %v11650_v19  ;;  %vm2454_vm9 = vweird.f32 %v6244_v18  ;;  %v1729_v21 = vmul.f32 %v6246_v12, %v9740_v41  ;;  %v2560_v53 = vmul.f32 %v2559_v59, %v9742_v55 }
 0x38a   : > { %v3725_v51 = vadd.f32 0.4994258, %v3724_v1  ;;  %v2450_v25 = vsub.f32 1.0, %v2449_v16  ;;  %v6050_v14 = vclamps-f32 %v3622_v22, 1.0  ;;  %v2550_v60 = vadd.f32 0.0036580483, %v2549_v63  ;;  %vm9793_vm12 = vmor %vm2453_vm8, %vm2454_vm9  ;;  %v9803_v22 = vpop.f32.mrf.mxu2 }
 0x38b   : > { %v3920_v48 = vmul.f32 %v3919_v39, %v11646_v7  ;;  %v1730_v40 = vsub.f32 1.0, %v1729_v21  ;;  %vm1734_vm10 = vweird.f32 %v6246_v12  ;;  %v2561_v34 = vadd.f32 0.014752088, %v2560_v53 }
 0x38c   : > { %v3726_v30 = vmul.f32 %v3725_v51, %v11640_v36  ;;  %v2451_v26 = vmul.f32 %v6244_v18, %v2450_v25  ;;  %v4695_v3 = vadd.f32 1.0, %v6050_v14  ;;  %v4039_v10 = vadd.f32 0.001143296, %v4038_v24  ;;  %v11654_v24 = vld [vmem:[#allocation62_spill] sm:$0xff] }
 0x38d   : > { %v3921_v37 = vadd.f32 0.014752088, %v3920_v48  ;;  %v1731_v11 = vmul.f32 %v6246_v12, %v1730_v40  ;;  %v2551_v15 = vmul.f32 %v2550_v60, %v9742_v55  ;;  %v2562_v38 = vmul.f32 %v2561_v34, %v9742_v55 }
 0x38e   : > { %v9785_v27 = vadd.f32 1.0, %v3726_v30  ;;  %v2452_v46 = vadd.f32 %v6244_v18, %v2451_v26  ;;  %v2457_v44 = vand.u32 2147483647, %v9738_v62  ;;  %v4791_v50 = vmul.f32 %v4695_v3, %v11651_v6 }
 0x38f   : > { %vm1733_vm11 = vweird.f32 %v9740_v41  ;;  %v2460_v31 = vor.u32 1.1754944e-38, %v2459_v43  ;;  %v1732_v39 = vadd.f32 %v6246_v12, %v1731_v11  ;;  %v2563_v23 = vadd.f32 0.112945676, %v2562_v38 }
 0x390   : > { %6247 = vrcp.f32 %v9785_v27  ;;  %v2456_v59 = vsel %vm9793_vm12, %v6244_v18, %v2452_v46  ;;  %5063 = vmatmul.f32.gmra.mxu0 %v4791_v50  ;;  %vm1735_vm13 = vmor %vm1733_vm11, %vm1734_vm10  ;;  %vm1738_vm14 = vcmp.eq.f32.partialorder %v1737_v4, 8.507059e+37  ;;  %v1740_v41 = vor.u32 1.1754944e-38, %v1739_v5 }
 0x391   : > { %v3922_v1 = vmul.f32 %v3921_v37, %v11646_v7  ;;  %v1736_v62 = vsel %vm1735_vm13, %v6246_v12, %v1732_v39  ;;  %v2552_v16 = vadd.f32 0.05243302, %v2551_v15  ;;  %v2564_v52 = vmul.f32 %v2563_v23, %v9742_v55 }
 0x392   : > { %v4040_v43 = vmul.f32 %v4039_v10, %v11650_v19  ;;  %v4660_v63 = vadd.f32 1.0, %v6015_v61  ;;  %vm2458_vm15 = vcmp.eq.f32.partialorder %v2457_v44, 8.507059e+37  ;;  %v1741_v18 = vsel %vm1738_vm14, %v1740_v41, %v1736_v62 }
 0x393   : > { %v4158_v21 = vmul.f32 3.8918573e-05, %v11654_v24  ;;  %v6018_v4 = vclamps-f32 %v9765_v8, 1.0  ;;  %v2461_v5 = vsel %vm2458_vm15, %v2460_v31, %v2456_v59  ;;  %v1742_v53 = vmul.f32 %v1741_v18, %v9324_v56 }
 0x394   : > { %v2565_v12 = vadd.f32 0.4994258, %v2564_v52  ;;  %v2437_v51 = vmul.f32 %v9762_v42, %v9628_v57  ;;  %vm3733_vm0 = vweird.f32 %v9785_v27  ;;  %v9815_v25 = vmul.f32 0.70710677, %v9803_v22 }
 0x395   : > { %v3923_v13 = vadd.f32 0.112945676, %v3922_v1  ;;  %v6003_v14 = vclamps-f32 %v1742_v53, 1.0  ;;  %v2553_v60 = vmul.f32 %v2552_v16, %v9742_v55  ;;  %v4041_v8 = vadd.f32 0.014752088, %v4040_v43 }
 0x396   : > { %v6248_v61 = vpop.eup %6247  ;;  %v2566_v48 = vmul.f32 %v2565_v12, %v9742_v55  ;;  %v2462_v40 = vmul.f32 %v2461_v5, %v2437_v51  ;;  %v3739_v34 = vand.u32 2147483648, %v9785_v27  ;;  %v4159_v30 = vadd.f32 0.001143296, %v4158_v21 }
 0x397   : > { %v3729_v56 = vmul.f32 %v6248_v61, %v9785_v27  ;;  %v4648_v57 = vadd.f32 1.0, %v6003_v14  ;;  %v2665_v26 = vmul.f32 %v9815_v25, %v9815_v25  ;;  %v3924_v3 = vmul.f32 %v3923_v13, %v11646_v7  ;;  %v11657_v13 = vld [vmem:[#allocation80_spill] sm:$0xff] }
 0x398   : > { %v9821_v42 = vadd.f32 1.0, %v2566_v48  ;;  %vm3734_vm1 = vweird.f32 %v6248_v61  ;;  %v3737_v10 = vand.u32 2147483647, %v9785_v27  ;;  %v4042_v11 = vmul.f32 %v4041_v8, %v11650_v19 }
 0x399   : > { %v3730_v37 = vsub.f32 1.0, %v3729_v56  ;;  %v9829_v15 = vmul.f32 %v4660_v63, %v9547_v9  ;;  %v4744_v38 = vmul.f32 %v4648_v57, %v9657_v58  ;;  %v2554_v46 = vadd.f32 0.18741608, %v2553_v60  ;;  %vm9837_vm2 = vmor %vm3733_vm0, %vm3734_vm1 }
 0x39a   : > { %6249 = vrcp.f32 %v9821_v42  ;;  %v6021_v44 = vclamps-f32 %v2462_v40, 1.0  ;;  %v9833_v50 = vmin.f32 %v2665_v26, 16.0  ;;  %v3925_v36 = vadd.f32 0.4994258, %v3924_v3 }
 0x39b   : > { %v3731_v6 = vmul.f32 %v6248_v61, %v3730_v37  ;;  %v4663_v31 = vadd.f32 1.0, %v6018_v4  ;;  %5128 = vmatmul.f32.gmra.mxu1 %v4744_v38  ;;  %v3740_v9 = vor.u32 1.1754944e-38, %v3739_v34  ;;  %v4043_v23 = vadd.f32 0.112945676, %v4042_v11  ;;  %v11658_v11 = vld [vmem:[#allocation65_spill] sm:$0xff] }
 0x39c   : > { %v4160_v58 = vmul.f32 %v4159_v30, %v11654_v24  ;;  %vm3738_vm3 = vcmp.eq.f32.partialorder %v3737_v10, 8.507059e+37  ;;  %v2667_v41 = vmul.f32 2.1237322e-06, %v9833_v50  ;;  %v2678_v1 = vmul.f32 3.8918573e-05, %v9833_v50 }
 0x39d   : > { %v3732_v59 = vadd.f32 %v6248_v61, %v3731_v6  ;;  %v2555_v62 = vmul.f32 %v2554_v46, %v9742_v55  ;;  %v3926_v16 = vmul.f32 %v3925_v36, %v11646_v7  ;;  %v4044_v27 = vmul.f32 %v4043_v23, %v11650_v19 }
 0x39e   : > { %v4161_v52 = vadd.f32 0.014752088, %v4160_v58  ;;  %v4666_v43 = vadd.f32 1.0, %v6021_v44  ;;  %v2668_v18 = vadd.f32 0.00028619796, %v2667_v41  ;;  %v634_v55 = vmul.f32 0.5, %v9622_v17  ;;  %v9885_v58 = vpop.f32.mrf.mxu0 }
 0x39f   : > { %v3736_v63 = vsel %vm9837_vm2, %v6248_v61, %v3732_v59  ;;  %v2679_v21 = vadd.f32 0.001143296, %v2678_v1  ;;  %v9851_v53 = vadd.f32 1.0, %v3926_v16  ;;  %v4045_v12 = vadd.f32 0.4994258, %v4044_v27  ;;  %v11660_v59 = vld [vmem:[#allocation76_spill] sm:$0xff]  ;;  %v9941_v16 = vpop.f32.mrf.mxu2 }
 0x3a0   : > { %v9849_v4 = vpop.eup %6249  ;;  %v3741_v5 = vsel %vm3738_vm3, %v3740_v9, %v3736_v63  ;;  %v4162_v51 = vmul.f32 %v4161_v52, %v11654_v24  ;;  %v2669_v60 = vmul.f32 %v2668_v18, %v9833_v50  ;;  %v9860_v61 = vmul.f32 0.5, %v9723_v33  ;;  %v11665_v63 = vld [vmem:[#allocation49_spill] sm:$0xff] }
 0x3a1   : > { %v2569_v7 = vmul.f32 %v9849_v4, %v9821_v42  ;;  %v3742_v14 = vmul.f32 %v3741_v5, %v11657_v13  ;;  %v2556_v48 = vadd.f32 1.1283791, %v2555_v62  ;;  %v2680_v8 = vmul.f32 %v2679_v21, %v9833_v50 }
 0x3a2   : > { %6251 = vrcp.f32 %v9851_v53  ;;  %v9865_v40 = vmul.f32 %v4663_v31, %v9565_v28  ;;  %v2670_v34 = vadd.f32 0.0036580483, %v2669_v60  ;;  %v9867_v30 = vmul.f32 %v4666_v43, %v634_v55 }
 0x3a3   : > { %v2570_v56 = vsub.f32 1.0, %v2569_v7  ;;  %v6053_v17 = vclamps-f32 %v3742_v14, 1.0  ;;  %5131 = vmatmul.f32.gmra.mxu1 %v9491_v35  ;;  %v2681_v57 = vadd.f32 0.014752088, %v2680_v8  ;;  %v4046_v26 = vmul.f32 %v4045_v12, %v11650_v19  ;;  %v11659_v19 = vld [vmem:[#allocation41_spill] sm:$0xff] }
 0x3a4   : > { %v4163_v33 = vadd.f32 0.112945676, %v4162_v51  ;;  %v2671_v10 = vmul.f32 %v2670_v34, %v9833_v50  ;;  %v4278_v38 = vmul.f32 3.8918573e-05, %v11658_v11  ;;  %v2557_v28 = vmul.f32 %v2556_v48, %v9727_v32 }
 0x3a5   : > { %v2571_v3 = vmul.f32 %v9849_v4, %v2570_v56  ;;  %v4698_v37 = vadd.f32 1.0, %v6053_v17  ;;  %v2577_v46 = vand.u32 2147483647, %v9821_v42  ;;  %v2682_v44 = vmul.f32 %v2681_v57, %v9833_v50 }
 0x3a6   : > { %v9877_v6 = vadd.f32 1.0, %v4046_v26  ;;  %vm2574_vm4 = vweird.f32 %v9849_v4  ;;  %v2672_v31 = vadd.f32 0.05243302, %v2671_v10  ;;  %v2579_v9 = vand.u32 2147483648, %v9821_v42 }
 0x3a7   : > { %v2572_v35 = vadd.f32 %v9849_v4, %v2571_v3  ;;  %v4794_v36 = vmul.f32 %v4698_v37, %v11659_v19  ;;  %v2683_v23 = vadd.f32 0.112945676, %v2682_v44  ;;  %v4164_v32 = vmul.f32 %v4163_v33, %v11654_v24 }
 0x3a8   : > { %v6252_v39 = vpop.eup %6251  ;;  %6253 = vrcp.f32 %v9877_v6  ;;  %vm2573_vm5 = vweird.f32 %v9821_v42  ;;  %v3838_v41 = vmul.f32 3.8918573e-05, %v11660_v59  ;;  %v4279_v62 = vadd.f32 0.001143296, %v4278_v38 }
 0x3a9   : > { %5066 = vmatmul.f32.gmra.mxu0 %v4794_v36  ;;  %v3929_v1 = vmul.f32 %v6252_v39, %v9851_v53  ;;  %vm9890_vm6 = vmor %vm2573_vm5, %vm2574_vm4  ;;  %vm9894_vm7 = vcmp.eq.f32.partialorder %v2577_v46, 8.507059e+37  ;;  %v2673_v52 = vmul.f32 %v2672_v31, %v9833_v50  ;;  %v2684_v43 = vmul.f32 %v2683_v23, %v9833_v50 }
 0x3aa   : > { %v4398_v42 = vmul.f32 3.8918573e-05, %v11665_v63  ;;  %v2576_v18 = vsel %vm9890_vm6, %v9849_v4, %v2572_v35  ;;  %v3839_v21 = vadd.f32 0.001143296, %v3838_v41  ;;  %v3937_v12 = vand.u32 2147483647, %v9851_v53 }
 0x3ab   : > { %v3930_v5 = vsub.f32 1.0, %v3929_v1  ;;  %v2580_v51 = vor.u32 1.1754944e-38, %v2579_v9  ;;  %v2685_v55 = vadd.f32 0.4994258, %v2684_v43  ;;  %5134 = vmatmul.f32.gmra.mxu1 %v9507_v45  ;;  %v3939_v7 = vand.u32 2147483648, %v9851_v53  ;;  %v11666_v9 = vld [vmem:[#allocation27_spill] sm:$0xff] }
 0x3ac   : > { %v4165_v13 = vadd.f32 0.4994258, %v4164_v32  ;;  %v3840_v14 = vmul.f32 %v3839_v21, %v11660_v59  ;;  %vm3934_vm8 = vweird.f32 %v6252_v39  ;;  %v4280_v48 = vmul.f32 %v4279_v62, %v11658_v11 }
 0x3ad   : > { %v3931_v60 = vmul.f32 %v6252_v39, %v3930_v5  ;;  %v2581_v4 = vsel %vm9894_vm7, %v2580_v51, %v2576_v18  ;;  %v2674_v56 = vadd.f32 0.18741608, %v2673_v52  ;;  %v2686_v17 = vmul.f32 %v2685_v55, %v9833_v50 }
 0x3ae   : > { %v9909_v8 = vpop.eup %6253  ;;  %v4166_v34 = vmul.f32 %v4165_v13, %v11654_v24  ;;  %v3841_v45 = vadd.f32 0.014752088, %v3840_v14  ;;  %vm3933_vm9 = vweird.f32 %v9851_v53  ;;  %vm3938_vm10 = vcmp.eq.f32.partialorder %v3937_v12, 8.507059e+37 }
 0x3af   : > { %v3932_v57 = vadd.f32 %v6252_v39, %v3931_v60  ;;  %v9916_v26 = vadd.f32 1.0, %v2686_v17  ;;  %vm3935_vm11 = vmor %vm3933_vm9, %vm3934_vm8  ;;  %v3940_v33 = vor.u32 1.1754944e-38, %v3939_v7  ;;  %v4049_v3 = vmul.f32 %v9909_v8, %v9877_v6 }
 0x3b0   : > { %v9920_v37 = vadd.f32 1.0, %v4166_v34  ;;  %v9922_v10 = vmul.f32 %v2581_v4, %v2557_v28  ;;  %v3842_v38 = vmul.f32 %v3841_v45, %v11660_v59  ;;  %v4057_v24 = vand.u32 2147483647, %v9877_v6  ;;  %v9968_v4 = vpop.f32.mrf.mxu3 }
 0x3b1   : > { %v3936_v46 = vsel %vm3935_vm11, %v6252_v39, %v3932_v57  ;;  %v2675_v44 = vmul.f32 %v2674_v56, %v9833_v50  ;;  %6255 = vrcp.f32 %v9916_v26  ;;  %v4059_v53 = vand.u32 2147483648, %v9877_v6  ;;  %v11669_v56 = vld [vmem:[#allocation55_spill] sm:$0xff] }
 0x3b2   : > { %v4281_v35 = vadd.f32 0.014752088, %v4280_v48  ;;  %v3843_v19 = vadd.f32 0.112945676, %v3842_v38  ;;  %v3941_v36 = vsel %vm3938_vm10, %v3940_v33, %v3936_v46  ;;  %v4050_v31 = vsub.f32 1.0, %v4049_v3  ;;  %v11670_v38 = vld [vmem:[#allocation43_spill] sm:$0xff] }
 0x3b3   : > { %6257 = vrcp.f32 %v9920_v37  ;;  %v2699_v28 = vand.u32 2147483648, %v9916_v26  ;;  %v3942_v23 = vmul.f32 %v3941_v36, %v11666_v9  ;;  %5137 = vmatmul.f32.gmra.mxu1 %v9631_v20  ;;  %vm4053_vm12 = vweird.f32 %v9877_v6 }
 0x3b4   : > { %v4399_v39 = vadd.f32 0.001143296, %v4398_v42  ;;  %v6024_v50 = vclamps-f32 %v9922_v10, 1.0  ;;  %v3844_v32 = vmul.f32 %v3843_v19, %v11660_v59  ;;  %v4051_v41 = vmul.f32 %v9909_v8, %v4050_v31 }
 0x3b5   : > { %vm9937_vm13 = vcmp.eq.f32.partialorder %v4057_v24, 8.507059e+37  ;;  %v6058_v62 = vclamps-f32 %v3942_v23, 1.0  ;;  %vm4054_vm14 = vweird.f32 %v9909_v8  ;;  %v4060_v27 = vor.u32 1.1754944e-38, %v4059_v53 }
 0x3b6   : > { %v4282_v20 = vmul.f32 %v4281_v35, %v11658_v11  ;;  %v9945_v52 = vadd.f32 1.1283791, %v2675_v44  ;;  %v3845_v43 = vadd.f32 0.4994258, %v3844_v32  ;;  %v9948_v42 = vmul.f32 0.70710677, %v9941_v16  ;;  %vm4055_vm15 = vmor %vm4053_vm12, %vm4054_vm14 }
 0x3b7   : > { %v4052_v18 = vadd.f32 %v9909_v8, %v4051_v41  ;;  %v9951_v21 = vpop.eup %6255  ;;  %v2697_v5 = vand.u32 2147483647, %v9916_v26  ;;  %v9954_v12 = vor.u32 1.1754944e-38, %v2699_v28  ;;  %v4703_v51 = vadd.f32 1.0, %v6058_v62 }
 0x3b8   : > { %v4283_v55 = vadd.f32 0.112945676, %v4282_v20  ;;  %v2689_v13 = vmul.f32 %v9951_v21, %v9916_v26  ;;  %v3846_v14 = vmul.f32 %v3845_v43, %v11660_v59  ;;  %v2785_v60 = vmul.f32 %v9948_v42, %v9948_v42 }
 0x3b9   : > { %v9956_v7 = vpop.eup %6257  ;;  %v4400_v48 = vmul.f32 %v4399_v39, %v11665_v63  ;;  %vm2693_vm0 = vweird.f32 %v9916_v26  ;;  %v4799_v17 = vmul.f32 %v4703_v51, %v11669_v56  ;;  %v4056_v34 = vsel %vm4055_vm15, %v9909_v8, %v4052_v18  ;;  %v11675_v51 = vld [vmem:[#allocation29_spill] sm:$0xff] }
 0x3ba   : > { %v4169_v59 = vmul.f32 %v9956_v7, %v9920_v37  ;;  %v4177_v45 = vand.u32 2147483647, %v9920_v37  ;;  %v2690_v57 = vsub.f32 1.0, %v2689_v13  ;;  %v9976_v33 = vadd.f32 1.0, %v3846_v14 }
 0x3bb   : > { %v9978_v6 = vmin.f32 %v2785_v60, 16.0  ;;  %v4061_v3 = vsel %vm9937_vm13, %v4060_v27, %v4056_v34  ;;  %4959 = vmatmul.f32.gmra.mxu3 %v4799_v17  ;;  %5140 = vmatmul.f32.gmra.mxu1 %v9829_v15  ;;  %vm4173_vm1 = vweird.f32 %v9920_v37  ;;  %v4284_v8 = vmul.f32 %v4283_v55, %v11658_v11  ;;  %v10030_v17 = vpop.f32.mrf.mxu3 }
 0x3bc   : > { %v4062_v46 = vmul.f32 %v4061_v3, %v11670_v38  ;;  %v4170_v24 = vsub.f32 1.0, %v4169_v59  ;;  %v2691_v44 = vmul.f32 %v9951_v21, %v2690_v57  ;;  %6259 = vrcp.f32 %v9976_v33 }
 0x3bd   : > { %v4179_v53 = vand.u32 2147483648, %v9920_v37  ;;  %v4401_v35 = vadd.f32 0.014752088, %v4400_v48  ;;  %vm9989_vm2 = vcmp.eq.f32.partialorder %v2697_v5, 8.507059e+37  ;;  %v2787_v36 = vmul.f32 2.1237322e-06, %v9978_v6 }
 0x3be   : > { %v2798_v15 = vmul.f32 3.8918573e-05, %v9978_v6  ;;  %v6061_v31 = vclamps-f32 %v4062_v46, 1.0  ;;  %vm9995_vm3 = vcmp.eq.f32.partialorder %v4177_v45, 8.507059e+37  ;;  %vm2694_vm4 = vweird.f32 %v9951_v21  ;;  %v11680_v46 = vld [vmem:[#allocation71_spill] sm:$0xff] }
 0x3bf   : > { %v4171_v9 = vmul.f32 %v9956_v7, %v4170_v24  ;;  %vm4174_vm5 = vweird.f32 %v9956_v7  ;;  %v4285_v23 = vadd.f32 0.4994258, %v4284_v8  ;;  %v2692_v39 = vadd.f32 %v9951_v21, %v2691_v44  ;;  %vm10020_vm8 = vmor %vm2693_vm0, %vm2694_vm4 }
 0x3c0   : > { %v2788_v32 = vadd.f32 0.00028619796, %v2787_v36  ;;  %v2799_v41 = vadd.f32 0.001143296, %v2798_v15  ;;  %v4706_v1 = vadd.f32 1.0, %v6061_v31  ;;  %v4180_v27 = vor.u32 1.1754944e-38, %v4179_v53  ;;  %vm10012_vm7 = vmor %vm4173_vm1, %vm4174_vm5 }
 0x3c1   : > { %v4172_v62 = vadd.f32 %v9956_v7, %v4171_v9  ;;  %v4286_v20 = vmul.f32 %v4285_v23, %v11658_v11  ;;  %v4402_v43 = vmul.f32 %v4401_v35, %v11665_v63  ;;  %vm3853_vm6 = vweird.f32 %v9976_v33 }
 0x3c2   : > { %v2789_v18 = vmul.f32 %v2788_v32, %v9978_v6  ;;  %v2800_v5 = vmul.f32 %v2799_v41, %v9978_v6  ;;  %v4802_v55 = vmul.f32 %v4706_v1, %v11675_v51  ;;  %v6260_v14 = vpop.eup %6259  ;;  %v3857_v60 = vand.u32 2147483647, %v9976_v33  ;;  %v11687_v41 = vld [vmem:[#allocation45_spill] sm:$0xff] }
 0x3c3   : > { %v4176_v48 = vsel %vm10012_vm7, %v9956_v7, %v4172_v62  ;;  %v10028_v37 = vadd.f32 1.0, %v4286_v20  ;;  %v4403_v56 = vadd.f32 0.112945676, %v4402_v43  ;;  %v2696_v34 = vsel %vm10020_vm8, %v9951_v21, %v2692_v39  ;;  %5143 = vmatmul.f32.gmra.mxu1 %v9865_v40 }
 0x3c4   : > { %v3849_v26 = vmul.f32 %v6260_v14, %v9976_v33  ;;  %v2790_v59 = vadd.f32 0.0036580483, %v2789_v18  ;;  %v2801_v45 = vadd.f32 0.014752088, %v2800_v5  ;;  %4962 = vmatmul.f32.gmra.mxu3 %v4802_v55  ;;  %vm3854_vm9 = vweird.f32 %v6260_v14 }
 0x3c5   : > { %v3859_v57 = vand.u32 2147483648, %v9976_v33  ;;  %v4181_v7 = vsel %vm9995_vm3, %v4180_v27, %v4176_v48  ;;  %6261 = vrcp.f32 %v10028_v37  ;;  %v4669_v8 = vadd.f32 1.0, %v6024_v50  ;;  %vm10055_vm10 = vmor %vm3853_vm6, %vm3854_vm9  ;;  %v11685_v50 = vld [vmem:[#allocation81_spill] sm:$0xff] }
 0x3c6   : > { %v3850_v3 = vsub.f32 1.0, %v3849_v26  ;;  %v2791_v38 = vmul.f32 %v2790_v59, %v9978_v6  ;;  %v2802_v21 = vmul.f32 %v2801_v45, %v9978_v6  ;;  %v4182_v24 = vmul.f32 %v4181_v7, %v11680_v46 }
 0x3c7   : > { %v2677_v40 = vmul.f32 %v9945_v52, %v9815_v25  ;;  %v2701_v44 = vsel %vm9989_vm2, %v9954_v12, %v2696_v34  ;;  %v4404_v53 = vmul.f32 %v4403_v56, %v11665_v63  ;;  %vm10059_vm11 = vcmp.eq.f32.partialorder %v3857_v60, 8.507059e+37  ;;  %v11686_v12 = vld [vmem:[#allocation61_spill] sm:$0xff]  ;;  %v11688_v60 = vld [vmem:[#allocation34_spill] sm:$0xff] }
 0x3c8   : > { %v3851_v35 = vmul.f32 %v6260_v14, %v3850_v3  ;;  %v2792_v36 = vadd.f32 0.05243302, %v2791_v38  ;;  %v2803_v15 = vadd.f32 0.112945676, %v2802_v21  ;;  %v6064_v31 = vclamps-f32 %v4182_v24, 1.0 }
 0x3c9   : > { %v3860_v25 = vor.u32 1.1754944e-38, %v3859_v57  ;;  %v3958_v52 = vmul.f32 3.8918573e-05, %v11685_v50  ;;  %v4518_v19 = vmul.f32 3.8918573e-05, %v11686_v12  ;;  %v2702_v9 = vmul.f32 %v2701_v44, %v2677_v40 }
 0x3ca   : > { %v3852_v23 = vadd.f32 %v6260_v14, %v3851_v35  ;;  %v2793_v39 = vmul.f32 %v2792_v36, %v9978_v6  ;;  %v2804_v32 = vmul.f32 %v2803_v15, %v9978_v6  ;;  %v4513_v1 = vmul.f32 %v11687_v41, %v11686_v12 }
 0x3cb   : > { %v6262_v33 = vpop.eup %6261  ;;  %v3959_v62 = vadd.f32 0.001143296, %v3958_v52  ;;  %v4709_v27 = vadd.f32 1.0, %v6064_v31  ;;  %v4405_v20 = vadd.f32 0.4994258, %v4404_v53  ;;  %v4765_v43 = vmul.f32 %v4669_v8, %v9860_v61  ;;  %5146 = vmatmul.f32.gmra.mxu1 %v9867_v30  ;;  %v11689_v8 = vld [vmem:[#allocation82_spill] sm:$0xff] }
 0x3cc   : > { %v3856_v18 = vsel %vm10055_vm10, %v6260_v14, %v3852_v23  ;;  %v2805_v5 = vadd.f32 0.4994258, %v2804_v32  ;;  %v4289_v51 = vmul.f32 %v6262_v33, %v10028_v37  ;;  %v2794_v13 = vadd.f32 0.18741608, %v2793_v39  ;;  %v10080_v14 = vpop.f32.mrf.mxu3  ;;  %v11690_v53 = vld [vmem:[#allocation10_spill] sm:$0xff]  ;;  %v11691_v31 = vld [vmem:[#allocation68_spill] sm:$0xff] }
 0x3cd   : > { %v3861_v55 = vsel %vm10059_vm11, %v3860_v25, %v3856_v18  ;;  %v3960_v11 = vmul.f32 %v3959_v62, %v11685_v50  ;;  %v4805_v48 = vmul.f32 %v4709_v27, %v11688_v60  ;;  %v6027_v56 = vclamps-f32 %v2702_v9, 1.0  ;;  %v11693_v18 = vld [vmem:[#allocation13_spill] sm:$0xff] }
 0x3ce   : > { %v3862_v34 = vmul.f32 %v3861_v55, %v9092_v54  ;;  %v2806_v61 = vmul.f32 %v2805_v5, %v9978_v6  ;;  %v4290_v26 = vsub.f32 1.0, %v4289_v51  ;;  %v4297_v30 = vand.u32 2147483647, %v10028_v37 }
 0x3cf   : > { %v3961_v59 = vadd.f32 0.014752088, %v3960_v11  ;;  %4965 = vmatmul.f32.gmra.mxu3 %v4805_v48  ;;  %v4406_v45 = vmul.f32 %v4405_v20, %v11665_v63  ;;  %v4519_v57 = vadd.f32 0.001143296, %v4518_v19  ;;  %v4299_v21 = vand.u32 2147483648, %v10028_v37  ;;  %v11692_v20 = vld [vmem:[#allocation20_spill] sm:$0xff] }
 0x3d0   : > { %v6056_v7 = vclamps-f32 %v3862_v34, 1.0  ;;  %v10084_v3 = vadd.f32 1.0, %v2806_v61  ;;  %v4291_v38 = vmul.f32 %v6262_v33, %v4290_v26  ;;  %v2795_v54 = vmul.f32 %v2794_v13, %v9978_v6 }
 0x3d1   : > { %v3962_v46 = vmul.f32 %v3961_v59, %v11685_v50  ;;  %vm4294_vm12 = vweird.f32 %v6262_v33  ;;  %v10089_v24 = vadd.f32 1.0, %v4406_v45  ;;  %v3955_v40 = vmul.f32 %v11689_v8, %v11685_v50 }
 0x3d2   : > { %v4701_v44 = vadd.f32 1.0, %v6056_v7  ;;  %6263 = vrcp.f32 %v10084_v3  ;;  %v4520_v63 = vmul.f32 %v4519_v57, %v11686_v12  ;;  %v4069_v35 = vmul.f32 %v9135_v49, %v11690_v53  ;;  %v10103_v49 = vpop.f32.mrf.mxu0 }
 0x3d3   : > { %v3963_v36 = vadd.f32 0.112945676, %v3962_v46  ;;  %v4292_v15 = vadd.f32 %v6262_v33, %v4291_v38  ;;  %vm4293_vm13 = vweird.f32 %v10028_v37  ;;  %v4672_v6 = vadd.f32 1.0, %v6027_v56  ;;  %5149 = vmatmul.f32.gmra.mxu1 %v4765_v43  ;;  %v10106_v37 = vpop.f32.mrf.mxu2  ;;  %v11694_v46 = vld [vmem:[#allocation70_spill] sm:$0xff] }
 0x3d4   : > { %v4797_v28 = vmul.f32 %v4701_v44, %v11691_v31  ;;  %vm4295_vm14 = vmor %vm4293_vm13, %vm4294_vm12  ;;  %v4300_v10 = vor.u32 1.1754944e-38, %v4299_v21  ;;  %6265 = vrcp.f32 %v10089_v24  ;;  %v2796_v25 = vadd.f32 1.1283791, %v2795_v54 }
 0x3d5   : > { %v3964_v52 = vmul.f32 %v3963_v36, %v11685_v50  ;;  %v4296_v19 = vsel %vm4295_vm14, %v6262_v33, %v4292_v15  ;;  %vm4298_vm15 = vcmp.eq.f32.partialorder %v4297_v30, 8.507059e+37  ;;  %v10101_v9 = vadd.f32 0.18741608, %v4513_v1  ;;  %v10141_v36 = vpop.f32.mrf.mxu3 }
 0x3d6   : > { %v640_v23 = vmul.f32 0.5, %v9803_v22  ;;  %5069 = vmatmul.f32.gmra.mxu0 %v4797_v28  ;;  %v4301_v39 = vsel %vm4298_vm15, %v4300_v10, %v4296_v19  ;;  %v4521_v32 = vadd.f32 0.014752088, %v4520_v63  ;;  %v10108_v41 = vadd.f32 1.1283791, %v3955_v40 }
 0x3d7   : > { %v3965_v62 = vadd.f32 0.4994258, %v3964_v52  ;;  %v10111_v27 = vmul.f32 0.70710677, %v10106_v37  ;;  %v4302_v33 = vmul.f32 %v4301_v39, %v11692_v20  ;;  %v10114_v1 = vadd.f32 0.0036580483, %v4069_v35 }
 0x3d8   : > { %v6264_v43 = vpop.eup %6263  ;;  %v10117_v5 = vmul.f32 0.70710677, %v11693_v18  ;;  %v4768_v22 = vmul.f32 %v4672_v6, %v640_v23  ;;  %v4522_v51 = vmul.f32 %v4521_v32, %v11686_v12  ;;  %v2797_v55 = vmul.f32 %v2796_v25, %v9948_v42 }
 0x3d9   : > { %v2809_v13 = vmul.f32 %v6264_v43, %v10084_v3  ;;  %v3966_v11 = vmul.f32 %v3965_v62, %v11685_v50  ;;  %v2905_v60 = vmul.f32 %v10111_v27, %v10111_v27  ;;  %vm2813_vm0 = vweird.f32 %v10084_v3 }
 0x3da   : > { %v6266_v48 = vpop.eup %6265  ;;  %v2817_v56 = vand.u32 2147483647, %v10084_v3  ;;  %v6067_v34 = vclamps-f32 %v4302_v33, 1.0  ;;  %v4523_v61 = vadd.f32 0.112945676, %v4522_v51  ;;  %v2819_v45 = vand.u32 2147483648, %v10084_v3 }
 0x3db   : > { %v2810_v26 = vsub.f32 1.0, %v2809_v13  ;;  %v10127_v59 = vadd.f32 1.0, %v3966_v11  ;;  %v10129_v30 = vmin.f32 %v2905_v60, 16.0  ;;  %v4409_v42 = vmul.f32 %v6266_v48, %v10089_v24  ;;  %5152 = vmatmul.f32.gmra.mxu1 %v4768_v22 }
 0x3dc   : > { %v4712_v50 = vadd.f32 1.0, %v6067_v34  ;;  %v4417_v57 = vand.u32 2147483647, %v10089_v24  ;;  %v4524_v7 = vmul.f32 %v4523_v61, %v11686_v12  ;;  %vm2814_vm1 = vweird.f32 %v6264_v43 }
 0x3dd   : > { %v2811_v38 = vmul.f32 %v6264_v43, %v2810_v26  ;;  %6267 = vrcp.f32 %v10127_v59  ;;  %vm4413_vm2 = vweird.f32 %v10089_v24  ;;  %v2907_v21 = vmul.f32 2.1237322e-06, %v10129_v30  ;;  %vm2815_vm4 = vmor %vm2813_vm0, %vm2814_vm1 }
 0x3de   : > { %v2918_v54 = vmul.f32 3.8918573e-05, %v10129_v30  ;;  %v4808_v8 = vmul.f32 %v4712_v50, %v11694_v46  ;;  %v4419_v40 = vand.u32 2147483648, %v10089_v24  ;;  %vm2818_vm3 = vcmp.eq.f32.partialorder %v2817_v56, 8.507059e+37 }
 0x3df   : > { %v2812_v44 = vadd.f32 %v6264_v43, %v2811_v38  ;;  %v4410_v63 = vsub.f32 1.0, %v4409_v42  ;;  %v4525_v35 = vadd.f32 0.4994258, %v4524_v7  ;;  %v2820_v15 = vor.u32 1.1754944e-38, %v2819_v45  ;;  %v11697_v45 = vld [vmem:[#allocation77_spill] sm:$0xff] }
 0x3e0   : > { %v2908_v6 = vadd.f32 0.00028619796, %v2907_v21  ;;  %v2919_v31 = vadd.f32 0.001143296, %v2918_v54  ;;  %4968 = vmatmul.f32.gmra.mxu3 %v4808_v8  ;;  %vm10145_vm5 = vcmp.eq.f32.partialorder %v4417_v57, 8.507059e+37  ;;  %vm4414_vm6 = vweird.f32 %v6266_v48 }
 0x3e1   : > { %v2816_v10 = vsel %vm2815_vm4, %v6264_v43, %v2812_v44  ;;  %v4411_v25 = vmul.f32 %v6266_v48, %v4410_v63  ;;  %v4526_v52 = vmul.f32 %v4525_v35, %v11686_v12  ;;  %v4420_v3 = vor.u32 1.1754944e-38, %v4419_v40  ;;  %vm4415_vm8 = vmor %vm4413_vm2, %vm4414_vm6  ;;  %v11700_v40 = vld [vmem:[#allocation79_spill] sm:$0xff] }
 0x3e2   : > { %v2821_v19 = vsel %vm2818_vm3, %v2820_v15, %v2816_v10  ;;  %v2909_v23 = vmul.f32 %v2908_v6, %v10129_v30  ;;  %v2920_v39 = vmul.f32 %v2919_v31, %v10129_v30  ;;  %vm3973_vm7 = vweird.f32 %v10127_v59 }
 0x3e3   : > { %v6268_v32 = vpop.eup %6267  ;;  %v2822_v62 = vmul.f32 %v2821_v19, %v2797_v55  ;;  %v4412_v20 = vadd.f32 %v6266_v48, %v4411_v25  ;;  %v10153_v33 = vadd.f32 1.0, %v4526_v52  ;;  %v3977_v43 = vand.u32 2147483647, %v10127_v59  ;;  %v11701_v25 = vld [vmem:[#allocation15_spill] sm:$0xff] }
 0x3e4   : > { %v3969_v22 = vmul.f32 %v6268_v32, %v10127_v59  ;;  %v2910_v51 = vadd.f32 0.0036580483, %v2909_v23  ;;  %v2921_v13 = vadd.f32 0.014752088, %v2920_v39  ;;  %v3979_v60 = vand.u32 2147483648, %v10127_v59  ;;  %v11702_v39 = vld [vmem:[#allocation74_spill] sm:$0xff] }
 0x3e5   : > { %v6030_v11 = vclamps-f32 %v2822_v62, 1.0  ;;  %v4416_v56 = vsel %vm4415_vm8, %v6266_v48, %v4412_v20  ;;  %6269 = vrcp.f32 %v10153_v33  ;;  %vm3974_vm9 = vweird.f32 %v6268_v32 }
 0x3e6   : > { %v3970_v55 = vsub.f32 1.0, %v3969_v22  ;;  %v2922_v34 = vmul.f32 %v2921_v13, %v10129_v30  ;;  %v4421_v61 = vsel %vm10145_vm5, %v4420_v3, %v4416_v56  ;;  %v4185_v26 = vmul.f32 %v10117_v5, %v10117_v5  ;;  %vm10174_vm10 = vmor %vm3973_vm7, %vm3974_vm9  ;;  %v10197_v13 = vpop.f32.mrf.mxu3 }
 0x3e7   : > { %v643_v42 = vmul.f32 0.5, %v9941_v16  ;;  %v4675_v24 = vadd.f32 1.0, %v6030_v11  ;;  %v4422_v50 = vmul.f32 %v4421_v61, %v11697_v45  ;;  %v4515_v48 = vmul.f32 %v10101_v9, %v11686_v12 }
 0x3e8   : > { %v3971_v57 = vmul.f32 %v6268_v32, %v3970_v55  ;;  %v2911_v7 = vmul.f32 %v2910_v51, %v10129_v30  ;;  %v2923_v38 = vadd.f32 0.112945676, %v2922_v34  ;;  %v3980_v46 = vor.u32 1.1754944e-38, %v3979_v60 }
 0x3e9   : > { %v4771_v21 = vmul.f32 %v4675_v24, %v643_v42  ;;  %v4078_v16 = vmul.f32 3.8918573e-05, %v11690_v53  ;;  %v6070_v8 = vclamps-f32 %v4422_v50, 1.0  ;;  %v3957_v44 = vmul.f32 %v10108_v41, %v11700_v40 }
 0x3ea   : > { %v3972_v63 = vadd.f32 %v6268_v32, %v3971_v57  ;;  %vm3978_vm11 = vcmp.eq.f32.partialorder %v3977_v43, 8.507059e+37  ;;  %v2924_v12 = vmul.f32 %v2923_v38, %v10129_v30  ;;  %v4071_v35 = vmul.f32 %v10114_v1, %v11690_v53  ;;  %v11704_v38 = vld [vmem:[#allocation23_spill] sm:$0xff] }
 0x3eb   : > { %v6270_v9 = vpop.eup %6269  ;;  %v10184_v59 = vmin.f32 %v4185_v26, 16.0  ;;  %v4079_v15 = vadd.f32 0.001143296, %v4078_v16  ;;  %v4715_v6 = vadd.f32 1.0, %v6070_v8  ;;  %5155 = vmatmul.f32.gmra.mxu1 %v4771_v21  ;;  %v2912_v28 = vadd.f32 0.05243302, %v2911_v7 }
 0x3ec   : > { %v3976_v31 = vsel %vm10174_vm10, %v6268_v32, %v3972_v63  ;;  %v2925_v10 = vadd.f32 0.4994258, %v2924_v12  ;;  %v4529_v41 = vmul.f32 %v6270_v9, %v10153_v33  ;;  %v10190_v52 = vmul.f32 0.70710677, %v11701_v25  ;;  %v11703_v32 = vld [vmem:[#allocation78_spill] sm:$0xff] }
 0x3ed   : > { %v3981_v19 = vsel %vm3978_vm11, %v3980_v46, %v3976_v31  ;;  %v4080_v23 = vmul.f32 %v4079_v15, %v11690_v53  ;;  %v4811_v1 = vmul.f32 %v4715_v6, %v11702_v39  ;;  %v4187_v3 = vmul.f32 2.1237322e-06, %v10184_v59 }
 0x3ee   : > { %v3982_v62 = vmul.f32 %v3981_v19, %v3957_v44  ;;  %v2926_v20 = vmul.f32 %v2925_v10, %v10129_v30  ;;  %v4530_v22 = vsub.f32 1.0, %v4529_v41  ;;  %v4516_v43 = vadd.f32 1.1283791, %v4515_v48 }
 0x3ef   : > { %v672_v51 = vmul.f32 0.5, %v11703_v32  ;;  %v4081_v11 = vadd.f32 0.014752088, %v4080_v23  ;;  %4971 = vmatmul.f32.gmra.mxu3 %v4811_v1  ;;  %v4539_v60 = vand.u32 2147483648, %v10153_v33  ;;  %v2913_v55 = vmul.f32 %v2912_v28, %v10129_v30 }
 0x3f0   : > { %v6059_v56 = vclamps-f32 %v3982_v62, 1.0  ;;  %v10201_v34 = vadd.f32 1.0, %v2926_v20  ;;  %v4531_v61 = vmul.f32 %v6270_v9, %v4530_v22  ;;  %v4305_v26 = vmul.f32 %v10190_v52, %v10190_v52 }
 0x3f1   : > { %v4082_v42 = vmul.f32 %v4081_v11, %v11690_v53  ;;  %vm4534_vm12 = vweird.f32 %v6270_v9  ;;  %v4537_v24 = vand.u32 2147483647, %v10153_v33  ;;  %v4072_v45 = vadd.f32 0.05243302, %v4071_v35  ;;  %v10215_v35 = vpop.f32.mrf.mxu0 }
 0x3f2   : > { %v4188_v50 = vadd.f32 0.00028619796, %v4187_v3  ;;  %v4704_v48 = vadd.f32 1.0, %v6059_v56  ;;  %6271 = vrcp.f32 %v10201_v34  ;;  %v4532_v7 = vadd.f32 %v6270_v9, %v4531_v61  ;;  %v11705_v3 = vld [vmem:[#allocation69_spill] sm:$0xff] }
 0x3f3   : > { %v4083_v57 = vadd.f32 0.112945676, %v4082_v42  ;;  %vm4533_vm13 = vweird.f32 %v10153_v33  ;;  %v4517_v21 = vmul.f32 %v4516_v43, %v11704_v38  ;;  %v2914_v46 = vadd.f32 0.18741608, %v2913_v55  ;;  %v10217_v33 = vpop.f32.mrf.mxu2 }
 0x3f4   : > { %v4800_v54 = vmul.f32 %v4704_v48, %v672_v51  ;;  %vm4535_vm14 = vmor %vm4533_vm13, %vm4534_vm12  ;;  %v4540_v16 = vor.u32 1.1754944e-38, %v4539_v60  ;;  %v10210_v8 = vmin.f32 %v4305_v26, 16.0  ;;  %vm4538_vm15 = vcmp.eq.f32.partialorder %v4537_v24, 8.507059e+37 }
 0x3f5   : > { %v4084_v40 = vmul.f32 %v4083_v57, %v11690_v53  ;;  %v4536_v44 = vsel %vm4535_vm14, %v6270_v9, %v4532_v7  ;;  %v4073_v63 = vmul.f32 %v4072_v45, %v11690_v53  ;;  %v4189_v12 = vmul.f32 %v4188_v50, %v10184_v59 }
 0x3f6   : > { %5072 = vmatmul.f32.gmra.mxu0 %v4800_v54  ;;  %v4541_v15 = vsel %vm4538_vm15, %v4540_v16, %v4536_v44  ;;  %v4307_v6 = vmul.f32 2.1237322e-06, %v10210_v8  ;;  %v10221_v28 = vmul.f32 0.70710677, %v10217_v33  ;;  %v10224_v9 = vmul.f32 0.70710677, %v9224_v29 }
 0x3f7   : > { %v4085_v31 = vadd.f32 0.4994258, %v4084_v40  ;;  %v4542_v10 = vmul.f32 %v4541_v15, %v4517_v21  ;;  %v2915_v19 = vmul.f32 %v2914_v46, %v10129_v30  ;;  %v686_v62 = vmul.f32 0.5, %v11705_v3  ;;  %v10247_v21 = vpop.f32.mrf.mxu3 }
 0x3f8   : > { %v6272_v41 = vpop.eup %6271  ;;  %v3025_v1 = vmul.f32 %v10221_v28, %v10221_v28  ;;  %v4074_v20 = vadd.f32 0.18741608, %v4073_v63  ;;  %v4190_v22 = vadd.f32 0.0036580483, %v4189_v12  ;;  %v4308_v32 = vadd.f32 0.00028619796, %v4307_v6 }
 0x3f9   : > { %v2929_v23 = vmul.f32 %v6272_v41, %v10201_v34  ;;  %v4086_v39 = vmul.f32 %v4085_v31, %v11690_v53  ;;  %v6073_v43 = vclamps-f32 %v4542_v10, 1.0  ;;  %v4425_v30 = vmul.f32 %v10224_v9, %v10224_v9 }
 0x3fa   : > { %v10234_v60 = vmin.f32 %v3025_v1, 16.0  ;;  %v2916_v56 = vadd.f32 1.1283791, %v2915_v19  ;;  %v2939_v55 = vand.u32 2147483648, %v10201_v34  ;;  %vm2934_vm0 = vweird.f32 %v6272_v41 }
 0x3fb   : > { %v2930_v51 = vsub.f32 1.0, %v2929_v23  ;;  %v10232_v11 = vadd.f32 1.0, %v4086_v39  ;;  %v4718_v61 = vadd.f32 1.0, %v6073_v43  ;;  %v2937_v42 = vand.u32 2147483647, %v10201_v34 }
 0x3fc   : > { %v4075_v24 = vmul.f32 %v4074_v20, %v11690_v53  ;;  %v3027_v45 = vmul.f32 2.1237322e-06, %v10234_v60  ;;  %v3038_v50 = vmul.f32 3.8918573e-05, %v10234_v60  ;;  %v4191_v57 = vmul.f32 %v4190_v22, %v10184_v59 }
 0x3fd   : > { %v2931_v26 = vmul.f32 %v6272_v41, %v2930_v51  ;;  %6273 = vrcp.f32 %v10232_v11  ;;  %v4814_v48 = vmul.f32 %v4718_v61, %v686_v62  ;;  %v4309_v7 = vmul.f32 %v4308_v32, %v10210_v8  ;;  %v11706_v61 = vld [vmem:[#allocation4_spill] sm:$0xff] }
 0x3fe   : > { %vm2933_vm1 = vweird.f32 %v10201_v34  ;;  %v2940_v54 = vor.u32 1.1754944e-38, %v2939_v55  ;;  %v3028_v46 = vadd.f32 0.00028619796, %v3027_v45  ;;  %v3039_v16 = vadd.f32 0.001143296, %v3038_v50 }
 0x3ff   : > { %v2932_v38 = vadd.f32 %v6272_v41, %v2931_v26  ;;  %vm2935_vm2 = vmor %vm2933_vm1, %vm2934_vm0  ;;  %4974 = vmatmul.f32.gmra.mxu3 %v4814_v48  ;;  %v10249_v53 = vmin.f32 %v4425_v30, 16.0  ;;  %v2917_v40 = vmul.f32 %v2916_v56, %v10111_v27  ;;  %vm2938_vm3 = vcmp.eq.f32.partialorder %v2937_v42, 8.507059e+37 }
 0x400   : > { %v3029_v12 = vmul.f32 %v3028_v46, %v10234_v60  ;;  %v3040_v15 = vmul.f32 %v3039_v16, %v10234_v60  ;;  %v4198_v34 = vmul.f32 3.8918573e-05, %v10184_v59  ;;  %v4076_v31 = vadd.f32 1.1283791, %v4075_v24 }
 0x401   : > { %v2936_v44 = vsel %vm2935_vm2, %v6272_v41, %v2932_v38  ;;  %v4192_v10 = vadd.f32 0.05243302, %v4191_v57  ;;  %v4310_v19 = vadd.f32 0.0036580483, %v4309_v7  ;;  %v4427_v39 = vmul.f32 2.1237322e-06, %v10249_v53 }
 0x402   : > { %v2941_v63 = vsel %vm2938_vm3, %v2940_v54, %v2936_v44  ;;  %v3030_v3 = vadd.f32 0.0036580483, %v3029_v12  ;;  %v3041_v27 = vadd.f32 0.014752088, %v3040_v15  ;;  %vm4093_vm4 = vweird.f32 %v10232_v11 }
 0x403   : > { %v6274_v6 = vpop.eup %6273  ;;  %v2942_v23 = vmul.f32 %v2941_v63, %v2917_v40  ;;  %v4099_v62 = vand.u32 2147483648, %v10232_v11  ;;  %v4199_v20 = vadd.f32 0.001143296, %v4198_v34  ;;  %v4097_v43 = vand.u32 2147483647, %v10232_v11 }
 0x404   : > { %v4089_v1 = vmul.f32 %v6274_v6, %v10232_v11  ;;  %vm4094_vm5 = vweird.f32 %v6274_v6  ;;  %v3042_v32 = vmul.f32 %v3041_v27, %v10234_v60  ;;  %v646_v51 = vmul.f32 0.5, %v10106_v37 }
 0x405   : > { %v6033_v41 = vclamps-f32 %v2942_v23, 1.0  ;;  %v3031_v56 = vmul.f32 %v3030_v3, %v10234_v60  ;;  %v4200_v55 = vmul.f32 %v4199_v20, %v10184_v59  ;;  %v4077_v26 = vmul.f32 %v4076_v31, %v11706_v61  ;;  %vm4095_vm6 = vmor %vm4093_vm4, %vm4094_vm5 }
 0x406   : > { %v4090_v22 = vsub.f32 1.0, %v4089_v1  ;;  %v3043_v24 = vadd.f32 0.112945676, %v3042_v32  ;;  %v4428_v45 = vadd.f32 0.00028619796, %v4427_v39  ;;  %v4100_v48 = vor.u32 1.1754944e-38, %v4099_v62 }
 0x407   : > { %v4678_v30 = vadd.f32 1.0, %v6033_v41  ;;  %v4201_v57 = vadd.f32 0.014752088, %v4200_v55  ;;  %v4193_v7 = vmul.f32 %v4192_v10, %v10184_v59  ;;  %vm4098_vm7 = vcmp.eq.f32.partialorder %v4097_v43, 8.507059e+37 }
 0x408   : > { %v4091_v42 = vmul.f32 %v6274_v6, %v4090_v22  ;;  %v3044_v37 = vmul.f32 %v3043_v24, %v10234_v60  ;;  %v4311_v54 = vmul.f32 %v4310_v19, %v10210_v8  ;;  %v3032_v46 = vadd.f32 0.05243302, %v3031_v56  ;;  %v11707_v19 = vld [vmem:[#allocation2_spill] sm:$0xff] }
 0x409   : > { %v4774_v50 = vmul.f32 %v4678_v30, %v646_v51  ;;  %v4202_v16 = vmul.f32 %v4201_v57, %v10184_v59  ;;  %v4429_v63 = vmul.f32 %v4428_v45, %v10249_v53  ;;  %v4194_v15 = vadd.f32 0.18741608, %v4193_v7 }
 0x40a   : > { %v4092_v38 = vadd.f32 %v6274_v6, %v4091_v42  ;;  %v3045_v44 = vadd.f32 0.4994258, %v3044_v37  ;;  %v4312_v10 = vadd.f32 0.05243302, %v4311_v54  ;;  %v3033_v23 = vmul.f32 %v3032_v46, %v10234_v60 }
 0x40b   : > { %5158 = vmatmul.f32.gmra.mxu1 %v4774_v50  ;;  %v4203_v12 = vadd.f32 0.112945676, %v4202_v16  ;;  %v675_v1 = vmul.f32 0.5, %v11707_v19  ;;  %v4430_v41 = vadd.f32 0.0036580483, %v4429_v63  ;;  %v4195_v22 = vmul.f32 %v4194_v15, %v10184_v59  ;;  %v10293_v50 = vpop.f32.mrf.mxu0 }
 0x40c   : > { %v4096_v40 = vsel %vm4095_vm6, %v6274_v6, %v4092_v38  ;;  %v3046_v31 = vmul.f32 %v3045_v44, %v10234_v60  ;;  %v10278_v6 = vpop.f32.mrf.mxu2  ;;  %v4313_v32 = vmul.f32 %v4312_v10, %v10210_v8  ;;  %v3034_v51 = vadd.f32 0.18741608, %v3033_v23 }
 0x40d   : > { %v4101_v11 = vsel %vm4098_vm7, %v4100_v48, %v4096_v40  ;;  %v4204_v39 = vmul.f32 %v4203_v12, %v10184_v59  ;;  %v10281_v20 = vmul.f32 0.70710677, %v10278_v6  ;;  %v4318_v61 = vmul.f32 3.8918573e-05, %v10210_v8 }
 0x40e   : > { %v4102_v34 = vmul.f32 %v4101_v11, %v4077_v26  ;;  %v10276_v27 = vadd.f32 1.0, %v3046_v31  ;;  %v4431_v26 = vmul.f32 %v4430_v41, %v10249_v53  ;;  %v4196_v45 = vadd.f32 1.1283791, %v4195_v22 }
 0x40f   : > { %v4205_v62 = vadd.f32 0.4994258, %v4204_v39  ;;  %v3145_v56 = vmul.f32 %v10281_v20, %v10281_v20  ;;  %v4319_v48 = vadd.f32 0.001143296, %v4318_v61  ;;  %v4314_v57 = vadd.f32 0.18741608, %v4313_v32 }
 0x410   : > { %v6062_v3 = vclamps-f32 %v4102_v34, 1.0  ;;  %6275 = vrcp.f32 %v10276_v27  ;;  %v3035_v7 = vmul.f32 %v3034_v51, %v10234_v60  ;;  %v10299_v46 = vadd.f32 0.05243302, %v4431_v26 }
 0x411   : > { %v4206_v30 = vmul.f32 %v4205_v62, %v10184_v59  ;;  %v10291_v24 = vmin.f32 %v3145_v56, 16.0  ;;  %v4320_v54 = vmul.f32 %v4319_v48, %v10210_v8  ;;  %v3059_v40 = vand.u32 2147483648, %v10276_v27 }
 0x412   : > { %v4707_v43 = vadd.f32 1.0, %v6062_v3  ;;  %v4197_v44 = vmul.f32 %v4196_v45, %v10117_v5  ;;  %v10305_v60 = vmul.f32 %v4314_v57, %v10210_v8  ;;  %v10308_v15 = vmul.f32 0.70710677, %v9254_v0 }
 0x413   : > { %v4207_v42 = vadd.f32 1.0, %v4206_v30  ;;  %v3147_v38 = vmul.f32 2.1237322e-06, %v10291_v24  ;;  %v3158_v37 = vmul.f32 3.8918573e-05, %v10291_v24  ;;  %vm3053_vm8 = vweird.f32 %v10276_v27 }
 0x414   : > { %v4803_v55 = vmul.f32 %v4707_v43, %v675_v1  ;;  %v4321_v12 = vadd.f32 0.014752088, %v4320_v54  ;;  %v3036_v34 = vadd.f32 1.1283791, %v3035_v7  ;;  %v3057_v1 = vand.u32 2147483647, %v10276_v27 }
 0x415   : > { %6277 = vrcp.f32 %v4207_v42  ;;  %v3148_v63 = vadd.f32 0.00028619796, %v3147_v38  ;;  %v3159_v11 = vadd.f32 0.001143296, %v3158_v37  ;;  %v3060_v3 = vor.u32 1.1754944e-38, %v3059_v40 }
 0x416   : > { %5075 = vmatmul.f32.gmra.mxu0 %v4803_v55  ;;  %v6276_v59 = vpop.eup %6275  ;;  %v4322_v39 = vmul.f32 %v4321_v12, %v10210_v8  ;;  %vm4213_vm10 = vweird.f32 %v4207_v42  ;;  %v4217_v32 = vand.u32 2147483647, %v4207_v42  ;;  %v4219_v51 = vand.u32 2147483648, %v4207_v42  ;;  %v10330_v12 = vpop.f32.mrf.mxu2 }
 0x417   : > { %v3049_v16 = vmul.f32 %v6276_v59, %v10276_v27  ;;  %v3149_v10 = vmul.f32 %v3148_v63, %v10291_v24  ;;  %v3160_v23 = vmul.f32 %v3159_v11, %v10291_v24  ;;  %vm3054_vm9 = vweird.f32 %v6276_v59 }
 0x418   : > { %v4323_v30 = vadd.f32 0.112945676, %v4322_v39  ;;  %vm3055_vm11 = vmor %vm3053_vm8, %vm3054_vm9  ;;  %v3037_v26 = vmul.f32 %v3036_v34, %v10221_v28  ;;  %vm3058_vm13 = vcmp.eq.f32.partialorder %v3057_v1, 8.507059e+37  ;;  %v4438_v63 = vmul.f32 3.8918573e-05, %v10249_v53 }
 0x419   : > { %v3050_v31 = vsub.f32 1.0, %v3049_v16  ;;  %v3150_v62 = vadd.f32 0.0036580483, %v3149_v10  ;;  %v3161_v22 = vadd.f32 0.014752088, %v3160_v23  ;;  %v4220_v16 = vor.u32 1.1754944e-38, %v4219_v51 }
 0x41a   : > { %v4324_v48 = vmul.f32 %v4323_v30, %v10210_v8  ;;  %v4545_v28 = vmul.f32 %v10308_v15, %v10308_v15  ;;  %vm4218_vm15 = vcmp.eq.f32.partialorder %v4217_v32, 8.507059e+37  ;;  %v649_v34 = vmul.f32 0.5, %v10217_v33 }
 0x41b   : > { %v6278_v5 = vpop.eup %6277  ;;  %v3051_v19 = vmul.f32 %v6276_v59, %v3050_v31  ;;  %v3151_v55 = vmul.f32 %v3150_v62, %v10291_v24  ;;  %v3162_v61 = vmul.f32 %v3161_v22, %v10291_v24  ;;  %v10335_v10 = vmul.f32 0.70710677, %v10330_v12 }
 0x41c   : > { %v4209_v41 = vmul.f32 %v6278_v5, %v4207_v42  ;;  %vm4214_vm12 = vweird.f32 %v6278_v5  ;;  %v4325_v40 = vadd.f32 0.4994258, %v4324_v48  ;;  %v4439_v1 = vadd.f32 0.001143296, %v4438_v63 }
 0x41d   : > { %v3052_v43 = vadd.f32 %v6276_v59, %v3051_v19  ;;  %v3152_v38 = vadd.f32 0.05243302, %v3151_v55  ;;  %v3163_v37 = vadd.f32 0.112945676, %v3162_v61  ;;  %vm10322_vm14 = vmor %vm4213_vm10, %vm4214_vm12  ;;  %v3265_v22 = vmul.f32 %v10335_v10, %v10335_v10 }
 0x41e   : > { %v4210_v56 = vsub.f32 1.0, %v4209_v41  ;;  %v4326_v31 = vmul.f32 %v4325_v40, %v10210_v8  ;;  %v10342_v33 = vmin.f32 %v4545_v28, 16.0  ;;  %v4440_v32 = vmul.f32 %v4439_v1, %v10249_v53  ;;  %v10364_v28 = vpop.f32.mrf.mxu0 }
 0x41f   : > { %v3056_v45 = vsel %vm3055_vm11, %v6276_v59, %v3052_v43  ;;  %v3164_v11 = vmul.f32 %v3163_v37, %v10291_v24  ;;  %v3153_v39 = vmul.f32 %v3152_v38, %v10291_v24  ;;  %v4433_v61 = vmul.f32 %v10299_v46, %v10249_v53 }
 0x420   : > { %v3061_v57 = vsel %vm3058_vm13, %v3060_v3, %v3056_v45  ;;  %v4211_v7 = vmul.f32 %v6278_v5, %v4210_v56  ;;  %v4327_v62 = vadd.f32 1.0, %v4326_v31  ;;  %v4547_v30 = vmul.f32 2.1237322e-06, %v10342_v33 }
 0x421   : > { %v3062_v54 = vmul.f32 %v3061_v57, %v3037_v26  ;;  %v3165_v19 = vadd.f32 0.4994258, %v3164_v11  ;;  %v3154_v26 = vadd.f32 0.18741608, %v3153_v39  ;;  %v10352_v45 = vmin.f32 %v3265_v22, 16.0 }
 0x422   : > { %v4212_v59 = vadd.f32 %v6278_v5, %v4211_v7  ;;  %6279 = vrcp.f32 %v4327_v62  ;;  %v4316_v48 = vadd.f32 1.1283791, %v10305_v60  ;;  %v10358_v7 = vmul.f32 0.5, %v11701_v25 }
 0x423   : > { %v6036_v42 = vclamps-f32 %v3062_v54, 1.0  ;;  %v3166_v8 = vmul.f32 %v3165_v19, %v10291_v24  ;;  %v3278_v37 = vmul.f32 3.8918573e-05, %v10352_v45  ;;  %v4434_v27 = vadd.f32 0.18741608, %v4433_v61 }
 0x424   : > { %v4216_v23 = vsel %vm10322_vm14, %v6278_v5, %v4212_v59  ;;  %v678_v5 = vmul.f32 0.5, %v11693_v18  ;;  %v3267_v18 = vmul.f32 2.1237322e-06, %v10352_v45  ;;  %v3155_v40 = vmul.f32 %v3154_v26, %v10291_v24 }
 0x425   : > { %v4681_v3 = vadd.f32 1.0, %v6036_v42  ;;  %v4221_v41 = vsel %vm4218_vm15, %v4220_v16, %v4216_v23  ;;  %v10348_v55 = vadd.f32 1.0, %v3166_v8  ;;  %v4548_v16 = vadd.f32 0.00028619796, %v4547_v30 }
 0x426   : > { %v4222_v43 = vmul.f32 %v4221_v41, %v4197_v44  ;;  %v4441_v44 = vadd.f32 0.014752088, %v4440_v32  ;;  %v3268_v63 = vadd.f32 0.00028619796, %v3267_v18  ;;  %v4317_v60 = vmul.f32 %v4316_v48, %v10190_v52 }
 0x427   : > { %v4777_v51 = vmul.f32 %v4681_v3, %v649_v34  ;;  %6281 = vrcp.f32 %v10348_v55  ;;  %v3279_v11 = vadd.f32 0.001143296, %v3278_v37  ;;  %vm4333_vm0 = vweird.f32 %v4327_v62 }
 0x428   : > { %v6065_v56 = vclamps-f32 %v4222_v43, 1.0  ;;  %v4442_v46 = vmul.f32 %v4441_v44, %v10249_v53  ;;  %v6280_v54 = vpop.eup %6279  ;;  %v4337_v34 = vand.u32 2147483647, %v4327_v62  ;;  %v4339_v42 = vand.u32 2147483648, %v4327_v62 }
 0x429   : > { %5161 = vmatmul.f32.gmra.mxu1 %v4777_v51  ;;  %v4329_v59 = vmul.f32 %v6280_v54, %v4327_v62  ;;  %v3269_v31 = vmul.f32 %v3268_v63, %v10352_v45  ;;  %vm4334_vm1 = vweird.f32 %v6280_v54  ;;  %v3280_v19 = vmul.f32 %v3279_v11, %v10352_v45 }
 0x42a   : > { %v4710_v57 = vadd.f32 1.0, %v6065_v56  ;;  %v4443_v25 = vadd.f32 0.112945676, %v4442_v46  ;;  %v4435_v52 = vmul.f32 %v4434_v27, %v10249_v53  ;;  %v4549_v1 = vmul.f32 %v4548_v16, %v10342_v33  ;;  %vm10373_vm2 = vmor %vm4333_vm0, %vm4334_vm1 }
 0x42b   : > { %v4330_v39 = vsub.f32 1.0, %v4329_v59  ;;  %v3156_v3 = vadd.f32 1.1283791, %v3155_v40  ;;  %v3270_v43 = vadd.f32 0.0036580483, %v3269_v31  ;;  %vm10377_vm3 = vcmp.eq.f32.partialorder %v4337_v34, 8.507059e+37 }
 0x42c   : > { %v4806_v38 = vmul.f32 %v4710_v57, %v678_v5  ;;  %v4444_v24 = vmul.f32 %v4443_v25, %v10249_v53  ;;  %v3281_v8 = vadd.f32 0.014752088, %v3280_v19  ;;  %v4340_v56 = vor.u32 1.1754944e-38, %v4339_v42  ;;  %v10394_v42 = vpop.f32.mrf.mxu2 }
 0x42d   : > { %v6282_v23 = vpop.eup %6281  ;;  %v4331_v22 = vmul.f32 %v6280_v54, %v4330_v39  ;;  %v4558_v61 = vmul.f32 3.8918573e-05, %v10342_v33  ;;  %v3179_v26 = vand.u32 2147483648, %v10348_v55  ;;  %v3177_v62 = vand.u32 2147483647, %v10348_v55 }
 0x42e   : > { %5078 = vmatmul.f32.gmra.mxu0 %v4806_v38  ;;  %v3169_v41 = vmul.f32 %v6282_v23, %v10348_v55  ;;  %v4445_v32 = vadd.f32 0.4994258, %v4444_v24  ;;  %v3282_v48 = vmul.f32 %v3281_v8, %v10352_v45  ;;  %vm3174_vm4 = vweird.f32 %v6282_v23 }
 0x42f   : > { %v4332_v44 = vadd.f32 %v6280_v54, %v4331_v22  ;;  %v4559_v38 = vadd.f32 0.001143296, %v4558_v61  ;;  %v3271_v46 = vmul.f32 %v3270_v43, %v10352_v45  ;;  %v4550_v40 = vadd.f32 0.0036580483, %v4549_v1 }
 0x430   : > { %v3170_v51 = vsub.f32 1.0, %v3169_v41  ;;  %v4446_v57 = vmul.f32 %v4445_v32, %v10249_v53  ;;  %v3283_v27 = vadd.f32 0.112945676, %v3282_v48  ;;  %vm3173_vm5 = vweird.f32 %v10348_v55 }
 0x431   : > { %v4336_v37 = vsel %vm10373_vm2, %v6280_v54, %v4332_v44  ;;  %vm3175_vm6 = vmor %vm3173_vm5, %vm3174_vm4  ;;  %v3180_v53 = vor.u32 1.1754944e-38, %v3179_v26  ;;  %v3157_v34 = vmul.f32 %v3156_v3, %v10281_v20  ;;  %vm3178_vm7 = vcmp.eq.f32.partialorder %v3177_v62, 8.507059e+37 }
 0x432   : > { %v3171_v18 = vmul.f32 %v6282_v23, %v3170_v51  ;;  %v4447_v16 = vadd.f32 1.0, %v4446_v57  ;;  %v4341_v59 = vsel %vm10377_vm3, %v4340_v56, %v4336_v37  ;;  %v3284_v25 = vmul.f32 %v3283_v27, %v10352_v45 }
 0x433   : > { %v4342_v11 = vmul.f32 %v4341_v59, %v4317_v60  ;;  %v4560_v31 = vmul.f32 %v4559_v38, %v10342_v33  ;;  %v3272_v55 = vadd.f32 0.05243302, %v3271_v46  ;;  %v10399_v60 = vmul.f32 0.70710677, %v10394_v42 }
 0x434   : > { %v3172_v63 = vadd.f32 %v6282_v23, %v3171_v18  ;;  %6283 = vrcp.f32 %v4447_v16  ;;  %v3285_v24 = vadd.f32 0.4994258, %v3284_v25  ;;  %v4436_v43 = vadd.f32 1.1283791, %v4435_v52  ;;  %v10409_v52 = vpop.f32.mrf.mxu0 }
 0x435   : > { %v6068_v19 = vclamps-f32 %v4342_v11, 1.0  ;;  %v4551_v20 = vmul.f32 %v4550_v40, %v10342_v33  ;;  %v4561_v3 = vadd.f32 0.014752088, %v4560_v31  ;;  %v3273_v51 = vmul.f32 %v3272_v55, %v10352_v45 }
 0x436   : > { %v3176_v54 = vsel %vm3175_vm6, %v6282_v23, %v3172_v63  ;;  %v3286_v22 = vmul.f32 %v3285_v24, %v10352_v45  ;;  %v3385_v30 = vmul.f32 %v10399_v60, %v10399_v60  ;;  %v652_v56 = vmul.f32 0.5, %v10278_v6 }
 0x437   : > { %v3181_v39 = vsel %vm3178_vm7, %v3180_v53, %v3176_v54  ;;  %v4713_v41 = vadd.f32 1.0, %v6068_v19  ;;  %vm4453_vm8 = vweird.f32 %v4447_v16  ;;  %v4457_v44 = vand.u32 2147483647, %v4447_v16 }
 0x438   : > { %v3182_v1 = vmul.f32 %v3181_v39, %v3157_v34  ;;  %v10404_v5 = vadd.f32 1.0, %v3286_v22  ;;  %v10412_v18 = vmin.f32 %v3385_v30, 16.0  ;;  %v4562_v62 = vmul.f32 %v4561_v3, %v10342_v33 }
 0x439   : > { %v4809_v32 = vmul.f32 %v4713_v41, %v10358_v7  ;;  %v4459_v7 = vand.u32 2147483648, %v4447_v16  ;;  %v3274_v38 = vadd.f32 0.18741608, %v3273_v51  ;;  %v4437_v40 = vmul.f32 %v4436_v43, %v10224_v9 }
 0x43a   : > { %v6039_v23 = vclamps-f32 %v3182_v1, 1.0  ;;  %v6284_v8 = vpop.eup %6283  ;;  %6285 = vrcp.f32 %v10404_v5  ;;  %v3387_v6 = vmul.f32 2.1237322e-06, %v10412_v18  ;;  %v3398_v46 = vmul.f32 3.8918573e-05, %v10412_v18 }
 0x43b   : > { %v4449_v26 = vmul.f32 %v6284_v8, %v4447_v16  ;;  %5081 = vmatmul.f32.gmra.mxu0 %v4809_v32  ;;  %vm4454_vm9 = vweird.f32 %v6284_v8  ;;  %v4563_v27 = vadd.f32 0.112945676, %v4562_v62  ;;  %v4552_v63 = vadd.f32 0.05243302, %v4551_v20 }
 0x43c   : > { %v4684_v61 = vadd.f32 1.0, %v6039_v23  ;;  %vm4455_vm10 = vmor %vm4453_vm8, %vm4454_vm9  ;;  %vm4458_vm11 = vcmp.eq.f32.partialorder %v4457_v44, 8.507059e+37  ;;  %v4460_v59 = vor.u32 1.1754944e-38, %v4459_v7  ;;  %v3388_v11 = vadd.f32 0.00028619796, %v3387_v6 }
 0x43d   : > { %v4450_v57 = vsub.f32 1.0, %v4449_v26  ;;  %v3399_v25 = vadd.f32 0.001143296, %v3398_v46  ;;  %v4564_v34 = vmul.f32 %v4563_v27, %v10342_v33  ;;  %v3275_v31 = vmul.f32 %v3274_v38, %v10352_v45 }
 0x43e   : > { %v4780_v48 = vmul.f32 %v4684_v61, %v652_v56  ;;  %v3389_v55 = vmul.f32 %v3388_v11, %v10412_v18  ;;  %v4553_v9 = vmul.f32 %v4552_v63, %v10342_v33  ;;  %v684_v41 = vmul.f32 0.5, %v9224_v29 }
 0x43f   : > { %v4451_v37 = vmul.f32 %v6284_v8, %v4450_v57  ;;  %v3400_v16 = vmul.f32 %v3399_v25, %v10412_v18  ;;  %v4565_v1 = vadd.f32 0.4994258, %v4564_v34  ;;  %v3276_v23 = vadd.f32 1.1283791, %v3275_v31 }
 0x440   : > { %5164 = vmatmul.f32.gmra.mxu1 %v4780_v48  ;;  %v6286_v54 = vpop.eup %6285  ;;  %v3390_v20 = vadd.f32 0.0036580483, %v3389_v55  ;;  %v3299_v3 = vand.u32 2147483648, %v10404_v5  ;;  %v3297_v51 = vand.u32 2147483647, %v10404_v5  ;;  %vm3293_vm13 = vweird.f32 %v10404_v5 }
 0x441   : > { %v4452_v53 = vadd.f32 %v6284_v8, %v4451_v37  ;;  %v3289_v39 = vmul.f32 %v6286_v54, %v10404_v5  ;;  %v3401_v45 = vadd.f32 0.014752088, %v3400_v16  ;;  %v4566_v32 = vmul.f32 %v4565_v1, %v10342_v33  ;;  %v10438_v5 = vpop.f32.mrf.mxu0 }
 0x442   : > { %vm3294_vm12 = vweird.f32 %v6286_v54  ;;  %v4554_v56 = vadd.f32 0.18741608, %v4553_v9  ;;  %v3391_v7 = vmul.f32 %v3390_v20, %v10412_v18  ;;  %v3300_v48 = vor.u32 1.1754944e-38, %v3299_v3 }
 0x443   : > { %v4456_v19 = vsel %vm4455_vm10, %v6284_v8, %v4452_v53  ;;  %v3290_v22 = vsub.f32 1.0, %v3289_v39  ;;  %v3402_v61 = vmul.f32 %v3401_v45, %v10412_v18  ;;  %v4567_v26 = vadd.f32 1.0, %v4566_v32  ;;  %vm3295_vm14 = vmor %vm3293_vm13, %vm3294_vm12 }
 0x444   : > { %v4461_v24 = vsel %vm4458_vm11, %v4460_v59, %v4456_v19  ;;  %v3277_v62 = vmul.f32 %v3276_v23, %v10335_v10  ;;  %vm3298_vm15 = vcmp.eq.f32.partialorder %v3297_v51, 8.507059e+37  ;;  %v4555_v6 = vmul.f32 %v4554_v56, %v10342_v33 }
 0x445   : > { %v4462_v43 = vmul.f32 %v4461_v24, %v4437_v40  ;;  %v3291_v8 = vmul.f32 %v6286_v54, %v3290_v22  ;;  %v3403_v57 = vadd.f32 0.112945676, %v3402_v61  ;;  %6287 = vrcp.f32 %v4567_v26  ;;  %v10436_v40 = vpop.f32.mrf.mxu2 }
 0x446   : > { %v3392_v59 = vadd.f32 0.05243302, %v3391_v7  ;;  %v10441_v11 = vmul.f32 0.70710677, %v10436_v40  ;;  %v4556_v34 = vadd.f32 1.1283791, %v4555_v6  ;;  %vm4573_vm0 = vweird.f32 %v4567_v26 }
 0x447   : > { %v6071_v30 = vclamps-f32 %v4462_v43, 1.0  ;;  %v3292_v44 = vadd.f32 %v6286_v54, %v3291_v8  ;;  %v3404_v27 = vmul.f32 %v3403_v57, %v10412_v18  ;;  %v655_v31 = vmul.f32 0.5, %v10330_v12 }
 0x448   : > { %v3505_v33 = vmul.f32 %v10441_v11, %v10441_v11  ;;  %v3393_v19 = vmul.f32 %v3392_v59, %v10412_v18  ;;  %v4579_v24 = vand.u32 2147483648, %v4567_v26  ;;  %v4577_v22 = vand.u32 2147483647, %v4567_v26 }
 0x449   : > { %v4716_v29 = vadd.f32 1.0, %v6071_v30  ;;  %v3296_v38 = vsel %vm3295_vm14, %v6286_v54, %v3292_v44  ;;  %v3405_v53 = vadd.f32 0.4994258, %v3404_v27  ;;  %v4557_v12 = vmul.f32 %v4556_v34, %v10308_v15 }
 0x44a   : > { %v3301_v46 = vsel %vm3298_vm15, %v3300_v48, %v3296_v38  ;;  %v10448_v16 = vmin.f32 %v3505_v33, 16.0  ;;  %v3394_v3 = vadd.f32 0.18741608, %v3393_v19  ;;  %v4580_v45 = vor.u32 1.1754944e-38, %v4579_v24 }
 0x44b   : > { %v4812_v37 = vmul.f32 %v4716_v29, %v684_v41  ;;  %v3302_v63 = vmul.f32 %v3301_v46, %v3277_v62  ;;  %v6288_v25 = vpop.eup %6287  ;;  %v3406_v54 = vmul.f32 %v3405_v53, %v10412_v18  ;;  %vm4578_vm3 = vcmp.eq.f32.partialorder %v4577_v22, 8.507059e+37 }
 0x44c   : > { %v4569_v55 = vmul.f32 %v6288_v25, %v4567_v26  ;;  %vm4574_vm1 = vweird.f32 %v6288_v25  ;;  %v3507_v20 = vmul.f32 2.1237322e-06, %v10448_v16  ;;  %v3518_v23 = vmul.f32 3.8918573e-05, %v10448_v16 }
 0x44d   : > { %5084 = vmatmul.f32.gmra.mxu0 %v4812_v37  ;;  %v6042_v10 = vclamps-f32 %v3302_v63, 1.0  ;;  %v3407_v9 = vadd.f32 1.0, %v3406_v54  ;;  %vm4575_vm2 = vmor %vm4573_vm0, %vm4574_vm1  ;;  %v3395_v44 = vmul.f32 %v3394_v3, %v10412_v18  ;;  %v687_v62 = vmul.f32 0.5, %v9254_v0  ;;  %v10462_v19 = vpop.f32.mrf.mxu2 }
 0x44e   : > { %v4570_v41 = vsub.f32 1.0, %v4569_v55  ;;  %v3508_v8 = vadd.f32 0.00028619796, %v3507_v20  ;;  %v3519_v51 = vadd.f32 0.001143296, %v3518_v23  ;;  %v10464_v55 = vpop.f32.mrf.mxu0 }
 0x44f   : > { %v4687_v39 = vadd.f32 1.0, %v6042_v10  ;;  %6289 = vrcp.f32 %v3407_v9  ;;  %v3396_v6 = vadd.f32 1.1283791, %v3395_v44  ;;  %v3419_v46 = vand.u32 2147483648, %v3407_v9 }
 0x450   : > { %v4571_v43 = vmul.f32 %v6288_v25, %v4570_v41  ;;  %v3509_v56 = vmul.f32 %v3508_v8, %v10448_v16  ;;  %v3520_v61 = vmul.f32 %v3519_v51, %v10448_v16  ;;  %v3417_v53 = vand.u32 2147483647, %v3407_v9 }
 0x451   : > { %v4783_v1 = vmul.f32 %v4687_v39, %v655_v31  ;;  %vm3413_vm5 = vweird.f32 %v3407_v9  ;;  %v3420_v0 = vor.u32 1.1754944e-38, %v3419_v46  ;;  %v5108_v39 = vpop.f32.mrf.mxu1  ;;  %v3397_v24 = vmul.f32 %v3396_v6, %v10399_v60 }
 0x452   : > { %v4572_v32 = vadd.f32 %v6288_v25, %v4571_v43  ;;  %v3510_v57 = vadd.f32 0.0036580483, %v3509_v56  ;;  %v3521_v15 = vadd.f32 0.014752088, %v3520_v61  ;;  %vm3418_vm7 = vcmp.eq.f32.partialorder %v3417_v53, 8.507059e+37  ;;  %v6393_v43 = vld [vmem:[%s6559_s13] sm:$0xff] }
 0x453   : > { %5167 = vmatmul.f32.gmra.mxu1 %v4783_v1  ;;  %v10468_v41 = vmul.f32 0.70710677, %v10462_v19  ;;  %v658_v8 = vmul.f32 0.5, %v10394_v42  ;;  %v5002_v6 = vadd.f32 %v10215_v35, %v9968_v4 }
 0x454   : > { %v4576_v30 = vsel %vm4575_vm2, %v6288_v25, %v4572_v32  ;;  %v3511_v27 = vmul.f32 %v3510_v57, %v10448_v16  ;;  %v3522_v63 = vmul.f32 %v3521_v15, %v10448_v16  ;;  %v4996_v25 = vadd.f32 %v9885_v58, %v9364_v47 }
 0x455   : > { %v6290_v26 = vpop.eup %6289  ;;  %v4581_v29 = vsel %vm4578_vm3, %v4580_v45, %v4576_v30  ;;  %v3625_v60 = vmul.f32 %v10468_v41, %v10468_v41  ;;  %v4999_v30 = vadd.f32 %v10103_v49, %v9747_v2 }
 0x456   : > { %v3409_v7 = vmul.f32 %v6290_v26, %v3407_v9  ;;  %v4582_v48 = vmul.f32 %v4581_v29, %v4557_v12  ;;  %vm3414_vm4 = vweird.f32 %v6290_v26  ;;  %v3523_v18 = vadd.f32 0.112945676, %v3522_v63 }
 0x457   : > { %vm3415_vm6 = vmor %vm3413_vm5, %vm3414_vm4  ;;  %v3512_v33 = vadd.f32 0.05243302, %v3511_v27  ;;  %v5109_v47 = vadd.f32 %v5108_v39, %v4996_v25  ;;  %v10478_v32 = vmin.f32 %v3625_v60, 16.0  ;;  %v6395_v39 = vld [vmem:[%s6559_s13 + $0x10] sm:$0xff] }
 0x458   : > { %v3410_v38 = vsub.f32 1.0, %v3409_v7  ;;  %v6074_v37 = vclamps-f32 %v4582_v48, 1.0  ;;  %v3524_v31 = vmul.f32 %v3523_v18, %v10448_v16 }
 0x459   : > { %v10471_v20 = vadd.f32 %v6393_v43, %v5109_v47  ;;  %v3513_v23 = vmul.f32 %v3512_v33, %v10448_v16  ;;  %v5111_v61 = vpop.f32.mrf.mxu1  ;;  %v3627_v44 = vmul.f32 2.1237322e-06, %v10478_v32  ;;  %v3638_v29 = vmul.f32 3.8918573e-05, %v10478_v32 }
 0x45a   : > { %v3411_v59 = vmul.f32 %v6290_v26, %v3410_v38  ;;  %v4719_v10 = vadd.f32 1.0, %v6074_v37  ;;  %v3525_v9 = vadd.f32 0.4994258, %v3524_v31  ;;  %v5112_v7 = vadd.f32 %v5111_v61, %v4999_v30  ;;  %v10492_v37 = vpop.f32.mrf.mxu2 }
 0x45b   : > { %5236 = vadd.xlane.f32.xlu0 %v10471_v20  ;;  %v3514_v56 = vadd.f32 0.18741608, %v3513_v23  ;;  %v3628_v48 = vadd.f32 0.00028619796, %v3627_v44  ;;  %v3639_v57 = vadd.f32 0.001143296, %v3638_v29  ;;  %v5005_v47 = vadd.f32 %v10293_v50, %v10030_v17 }
 0x45c   : > { %v3412_v34 = vadd.f32 %v6290_v26, %v3411_v59  ;;  %v4815_v54 = vmul.f32 %v4719_v10, %v687_v62  ;;  %v3526_v12 = vmul.f32 %v3525_v9, %v10448_v16  ;;  %v6394_v62 = vld [vmem:[%s6559_s13 + $0x8] sm:$0xff]  ;;  %v10497_v59 = vmul.f32 0.70710677, %v10492_v37 }
 0x45d   : > { %v3515_v15 = vmul.f32 %v3514_v56, %v10448_v16  ;;  %v10487_v42 = vadd.f32 %v6394_v62, %v5112_v7  ;;  %v3629_v38 = vmul.f32 %v3628_v48, %v10478_v32  ;;  %v3640_v2 = vmul.f32 %v3639_v57, %v10478_v32  ;;  %v10529_v62 = vpop.f32.mrf.mxu3 }
 0x45e   : > { %v3416_v1 = vsel %vm3415_vm6, %v6290_v26, %v3412_v34  ;;  %5087 = vmatmul.f32.gmra.mxu0 %v4815_v54  ;;  %v3527_v45 = vadd.f32 1.0, %v3526_v12  ;;  %v3745_v4 = vmul.f32 %v10497_v59, %v10497_v59 }
 0x45f   : > { %v3421_v58 = vsel %vm3418_vm7, %v3420_v0, %v3416_v1  ;;  %v3630_v27 = vadd.f32 0.0036580483, %v3629_v38  ;;  %v3641_v63 = vadd.f32 0.014752088, %v3640_v2  ;;  %v3516_v16 = vadd.f32 1.1283791, %v3515_v15 }
 0x460   : > { %v3422_v22 = vmul.f32 %v3421_v58, %v3397_v24  ;;  %6291 = vrcp.f32 %v3527_v45  ;;  %v3537_v54 = vand.u32 2147483647, %v3527_v45  ;;  %v3539_v0 = vand.u32 2147483648, %v3527_v45 }
 0x461   : > { %v5114_v53 = vpop.f32.mrf.mxu1  ;;  %v3631_v18 = vmul.f32 %v3630_v27, %v10478_v32  ;;  %v3642_v25 = vmul.f32 %v3641_v63, %v10478_v32  ;;  %v10506_v1 = vmin.f32 %v3745_v4, 16.0  ;;  %vm3533_vm9 = vweird.f32 %v3527_v45  ;;  %v10536_v27 = vpop.f32.mrf.mxu0 }
 0x462   : > { %v6045_v3 = vclamps-f32 %v3422_v22, 1.0  ;;  %v5115_v34 = vadd.f32 %v5114_v53, %v5002_v6  ;;  %v3517_v22 = vmul.f32 %v3516_v16, %v10441_v11  ;;  %v3540_v43 = vor.u32 1.1754944e-38, %v3539_v0  ;;  %v10516_v60 = vpop.f32.mrf.mxu2  ;;  %v6396_v6 = vld [vmem:[%s6559_s13 + $0x18] sm:$0xff] }
 0x463   : > { %5238 = vadd.xlane.f32.xlu0 %v10487_v42  ;;  %v3632_v33 = vadd.f32 0.05243302, %v3631_v18  ;;  %v3643_v31 = vadd.f32 0.112945676, %v3642_v25  ;;  %v3747_v23 = vmul.f32 2.1237322e-06, %v10506_v1  ;;  %v5008_v0 = vadd.f32 %v10364_v28, %v10080_v14 }
 0x464   : > { %v4690_v51 = vadd.f32 1.0, %v6045_v3  ;;  %v10504_v24 = vadd.f32 %v6395_v39, %v5115_v34  ;;  %v3758_v12 = vmul.f32 3.8918573e-05, %v10506_v1  ;;  %vm3538_vm11 = vcmp.eq.f32.partialorder %v3537_v54, 8.507059e+37 }
 0x465   : > { %v3644_v9 = vmul.f32 %v3643_v31, %v10478_v32  ;;  %v3633_v17 = vmul.f32 %v3632_v33, %v10478_v32  ;;  %v10520_v11 = vmul.f32 0.70710677, %v10516_v60  ;;  %v661_v63 = vmul.f32 0.5, %v10436_v40 }
 0x466   : > { %v4786_v26 = vmul.f32 %v4690_v51, %v658_v8  ;;  %v6292_v49 = vpop.eup %6291  ;;  %5240 = vadd.xlane.f32.xlu1 %v10504_v24  ;;  %v3748_v8 = vadd.f32 0.00028619796, %v3747_v23  ;;  %v3759_v51 = vadd.f32 0.001143296, %v3758_v12 }
 0x467   : > { %v3529_v46 = vmul.f32 %v6292_v49, %v3527_v45  ;;  %vm3534_vm8 = vweird.f32 %v6292_v49  ;;  %v3645_v50 = vadd.f32 0.4994258, %v3644_v9  ;;  %v3865_v29 = vmul.f32 %v10520_v11, %v10520_v11 }
 0x468   : > { %5170 = vmatmul.f32.gmra.mxu1 %v4786_v26  ;;  %vm3535_vm10 = vmor %vm3533_vm9, %vm3534_vm8  ;;  %v3749_v26 = vmul.f32 %v3748_v8, %v10506_v1  ;;  %v3760_v44 = vmul.f32 %v3759_v51, %v10506_v1  ;;  %v3634_v57 = vadd.f32 0.18741608, %v3633_v17  ;;  %v6397_v8 = vld [vmem:[%s6559_s13 + $0x20] sm:$0xff] }
 0x469   : > { %v3530_v10 = vsub.f32 1.0, %v3529_v46  ;;  %v5117_v30 = vpop.f32.mrf.mxu1  ;;  %v3646_v61 = vmul.f32 %v3645_v50, %v10478_v32 }
 0x46a   : > { %v5118_v7 = vadd.f32 %v5117_v30, %v5005_v47  ;;  %v3750_v38 = vadd.f32 0.0036580483, %v3749_v26  ;;  %v3761_v2 = vadd.f32 0.014752088, %v3760_v44  ;;  %v10543_v18 = vpop.f32.mrf.mxu2  ;;  %v3635_v40 = vmul.f32 %v3634_v57, %v10478_v32  ;;  %v10565_v30 = vpop.f32.mrf.mxu3 }
 0x46b   : > { %v3531_v35 = vmul.f32 %v6292_v49, %v3530_v10  ;;  %v10527_v15 = vadd.f32 1.0, %v3646_v61  ;;  %v10551_v47 = vmul.f32 0.70710677, %v10543_v18 }
 0x46c   : > { %v10534_v46 = vadd.f32 %v6396_v6, %v5118_v7  ;;  %v3751_v53 = vmul.f32 %v3750_v38, %v10506_v1  ;;  %v3762_v10 = vmul.f32 %v3761_v2, %v10506_v1  ;;  %v3636_v23 = vadd.f32 1.1283791, %v3635_v40 }
 0x46d   : > { %v3532_v58 = vadd.f32 %v6292_v49, %v3531_v35  ;;  %6293 = vrcp.f32 %v10527_v15  ;;  %v3985_v32 = vmul.f32 %v10551_v47, %v10551_v47  ;;  %v3657_v61 = vand.u32 2147483647, %v10527_v15 }
 0x46e   : > { %5242 = vadd.xlane.f32.xlu1 %v10534_v46  ;;  %v3752_v4 = vadd.f32 0.05243302, %v3751_v53  ;;  %v3763_v35 = vadd.f32 0.112945676, %v3762_v10  ;;  %v3659_v26 = vand.u32 2147483648, %v10527_v15  ;;  %vm3653_vm13 = vweird.f32 %v10527_v15 }
 0x46f   : > { %v3536_v3 = vsel %vm3535_vm10, %v6292_v49, %v3532_v58  ;;  %v10531_v49 = vmin.f32 %v3865_v29, 16.0  ;;  %v10570_v29 = vpop.f32.mrf.mxu0  ;;  %vm3658_vm15 = vcmp.eq.f32.partialorder %v3657_v61, 8.507059e+37 }
 0x470   : > { %v3541_v45 = vsel %vm3538_vm11, %v3540_v43, %v3536_v3  ;;  %v3764_v58 = vmul.f32 %v3763_v35, %v10506_v1  ;;  %v3753_v43 = vmul.f32 %v3752_v4, %v10506_v1  ;;  %v3660_v40 = vor.u32 1.1754944e-38, %v3659_v26 }
 0x471   : > { %v3542_v56 = vmul.f32 %v3541_v45, %v3517_v22  ;;  %v3867_v34 = vmul.f32 2.1237322e-06, %v10531_v49  ;;  %v3878_v54 = vmul.f32 3.8918573e-05, %v10531_v49  ;;  %v5120_v33 = vpop.f32.mrf.mxu1  ;;  %v10560_v45 = vmin.f32 %v3985_v32, 16.0 }
 0x472   : > { %v5121_v9 = vadd.f32 %v5120_v33, %v5008_v0  ;;  %v3765_v3 = vadd.f32 0.4994258, %v3764_v58  ;;  %v3754_v7 = vadd.f32 0.18741608, %v3753_v43  ;;  %v664_v32 = vmul.f32 0.5, %v10462_v19 }
 0x473   : > { %v6048_v48 = vclamps-f32 %v3542_v56, 1.0  ;;  %v3868_v31 = vadd.f32 0.00028619796, %v3867_v34  ;;  %v3879_v39 = vadd.f32 0.001143296, %v3878_v54  ;;  %v6294_v22 = vpop.eup %6293  ;;  %v10579_v34 = vpop.f32.mrf.mxu2  ;;  %v3637_v54 = vmul.f32 %v3636_v23, %v10468_v41 }
 0x474   : > { %v3649_v12 = vmul.f32 %v6294_v22, %v10527_v15  ;;  %v10563_v51 = vadd.f32 %v6397_v8, %v5121_v9  ;;  %v3766_v44 = vmul.f32 %v3765_v3, %v10506_v1  ;;  %v3987_v38 = vmul.f32 2.1237322e-06, %v10560_v45 }
 0x475   : > { %v4693_v16 = vadd.f32 1.0, %v6048_v48  ;;  %v3869_v14 = vmul.f32 %v3868_v31, %v10531_v49  ;;  %v3880_v28 = vmul.f32 %v3879_v39, %v10531_v49  ;;  %vm3654_vm12 = vweird.f32 %v6294_v22 }
 0x476   : > { %v3650_v56 = vsub.f32 1.0, %v3649_v12  ;;  %5244 = vadd.xlane.f32.xlu2 %v10563_v51  ;;  %v10576_v6 = vadd.f32 1.0, %v3766_v44  ;;  %vm3655_vm14 = vmor %vm3653_vm13, %vm3654_vm12  ;;  %v3755_v4 = vmul.f32 %v3754_v7, %v10506_v1  ;;  %v10588_v58 = vmul.f32 0.70710677, %v10579_v34 }
 0x477   : > { %v4789_v25 = vmul.f32 %v4693_v16, %v661_v63  ;;  %v3870_v17 = vadd.f32 0.0036580483, %v3869_v14  ;;  %v3881_v50 = vadd.f32 0.014752088, %v3880_v28  ;;  %v3998_v63 = vmul.f32 3.8918573e-05, %v10560_v45  ;;  %v10603_v61 = vpop.f32.mrf.mxu0 }
 0x478   : > { %v3651_v2 = vmul.f32 %v6294_v22, %v3650_v56  ;;  %6295 = vrcp.f32 %v10576_v6  ;;  %v5011_v41 = vadd.f32 %v10409_v52, %v10141_v36  ;;  %v3756_v23 = vadd.f32 1.1283791, %v3755_v4 }
 0x479   : > { %5173 = vmatmul.f32.gmra.mxu1 %v4789_v25  ;;  %v3871_v48 = vmul.f32 %v3870_v17, %v10531_v49  ;;  %v3882_v57 = vmul.f32 %v3881_v50, %v10531_v49  ;;  %v5123_v16 = vpop.f32.mrf.mxu1  ;;  %v3988_v25 = vadd.f32 0.00028619796, %v3987_v38  ;;  %v3999_v39 = vadd.f32 0.001143296, %v3998_v63  ;;  %v10599_v17 = vpop.f32.mrf.mxu3 }
 0x47a   : > { %v3652_v0 = vadd.f32 %v6294_v22, %v3651_v2  ;;  %v4105_v12 = vmul.f32 %v10588_v58, %v10588_v58  ;;  %v3777_v52 = vand.u32 2147483647, %v10576_v6  ;;  %v10613_v38 = vmul.f32 0.5, %v10492_v37 }
 0x47b   : > { %v3872_v53 = vadd.f32 0.05243302, %v3871_v48  ;;  %v3883_v10 = vadd.f32 0.112945676, %v3882_v57  ;;  %v3989_v31 = vmul.f32 %v3988_v25, %v10560_v45  ;;  %v4000_v1 = vmul.f32 %v3999_v39, %v10560_v45  ;;  %v10620_v4 = vpop.f32.mrf.mxu2 }
 0x47c   : > { %v3656_v33 = vsel %vm3655_vm14, %v6294_v22, %v3652_v0  ;;  %v5014_v22 = vadd.f32 %v10438_v5, %v10197_v13  ;;  %v10607_v26 = vmin.f32 %v4105_v12, 16.0  ;;  %v5124_v57 = vadd.f32 %v5123_v16, %v5011_v41 }
 0x47d   : > { %v3884_v35 = vmul.f32 %v3883_v10, %v10531_v49  ;;  %v3661_v15 = vsel %vm3658_vm15, %v3660_v40, %v3656_v33  ;;  %v3873_v9 = vmul.f32 %v3872_v53, %v10531_v49  ;;  %v3990_v28 = vadd.f32 0.0036580483, %v3989_v31  ;;  %v6398_v33 = vld [vmem:[%s6559_s13 + $0x28] sm:$0xff] }
 0x47e   : > { %v3662_v43 = vmul.f32 %v3661_v15, %v3637_v54  ;;  %v6296_v3 = vpop.eup %6295  ;;  %v4001_v8 = vadd.f32 0.014752088, %v4000_v1  ;;  %v4107_v63 = vmul.f32 2.1237322e-06, %v10607_v26  ;;  %v4118_v53 = vmul.f32 3.8918573e-05, %v10607_v26 }
 0x47f   : > { %v3885_v14 = vadd.f32 0.4994258, %v3884_v35  ;;  %v3769_v13 = vmul.f32 %v6296_v3, %v10576_v6  ;;  %v3874_v5 = vadd.f32 0.18741608, %v3873_v9  ;;  %v3991_v19 = vmul.f32 %v3990_v28, %v10560_v45 }
 0x480   : > { %v6051_v36 = vclamps-f32 %v3662_v43, 1.0  ;;  %v4002_v48 = vmul.f32 %v4001_v8, %v10560_v45  ;;  %v3757_v25 = vmul.f32 %v3756_v23, %v10497_v59  ;;  %v3779_v54 = vand.u32 2147483648, %v10576_v6 }
 0x481   : > { %v3886_v50 = vmul.f32 %v3885_v14, %v10531_v49  ;;  %v5126_v56 = vpop.f32.mrf.mxu1  ;;  %v3770_v2 = vsub.f32 1.0, %v3769_v13  ;;  %vm3774_vm0 = vweird.f32 %v6296_v3  ;;  %v3992_v40 = vadd.f32 0.05243302, %v3991_v19 }
 0x482   : > { %v4696_v44 = vadd.f32 1.0, %v6051_v36  ;;  %v4003_v16 = vadd.f32 0.112945676, %v4002_v48  ;;  %vm3773_vm1 = vweird.f32 %v10576_v6  ;;  %v4108_v37 = vadd.f32 0.00028619796, %v4107_v63  ;;  %v10641_v36 = vpop.f32.mrf.mxu3 }
 0x483   : > { %v10609_v7 = vadd.f32 1.0, %v3886_v50  ;;  %v3771_v0 = vmul.f32 %v6296_v3, %v3770_v2  ;;  %v4119_v35 = vadd.f32 0.001143296, %v4118_v53  ;;  %v10624_v31 = vadd.f32 %v6398_v33, %v5124_v57  ;;  %vm3775_vm3 = vmor %vm3773_vm1, %vm3774_vm0 }
 0x484   : > { %v4792_v10 = vmul.f32 %v4696_v44, %v664_v32  ;;  %vm10626_vm2 = vcmp.eq.f32.partialorder %v3777_v52, 8.507059e+37  ;;  %v3875_v41 = vmul.f32 %v3874_v5, %v10531_v49  ;;  %v4004_v15 = vmul.f32 %v4003_v16, %v10560_v45  ;;  %v10647_v5 = vpop.f32.mrf.mxu0 }
 0x485   : > { %6297 = vrcp.f32 %v10609_v7  ;;  %v3772_v39 = vadd.f32 %v6296_v3, %v3771_v0  ;;  %v3780_v9 = vor.u32 1.1754944e-38, %v3779_v54  ;;  %v4109_v43 = vmul.f32 %v4108_v37, %v10607_v26  ;;  %5246 = vadd.xlane.f32.xlu2 %v10624_v31  ;;  %v6399_v54 = vld [vmem:[%s6559_s13 + $0x30] sm:$0xff] }
 0x486   : > { %5176 = vmatmul.f32.gmra.mxu1 %v4792_v10  ;;  %v4120_v6 = vmul.f32 %v4119_v35, %v10607_v26  ;;  %v10636_v14 = vmul.f32 0.70710677, %v10620_v4  ;;  %v3993_v32 = vmul.f32 %v3992_v40, %v10560_v45  ;;  %v4005_v23 = vadd.f32 0.4994258, %v4004_v15  ;;  %v10670_v15 = vpop.f32.mrf.mxu2 }
 0x487   : > { %v3776_v1 = vsel %vm3775_vm3, %v6296_v3, %v3772_v39  ;;  %v5127_v49 = vadd.f32 %v5126_v56, %v5014_v22  ;;  %v4110_v50 = vadd.f32 0.0036580483, %v4109_v43  ;;  %v3876_v3 = vadd.f32 1.1283791, %v3875_v41 }
 0x488   : > { %v3781_v52 = vsel %vm10626_vm2, %v3780_v9, %v3776_v1  ;;  %v4121_v8 = vadd.f32 0.014752088, %v4120_v6  ;;  %v4225_v13 = vmul.f32 %v10636_v14, %v10636_v14  ;;  %v3897_v22 = vand.u32 2147483647, %v10609_v7 }
 0x489   : > { %v10638_v28 = vpop.f32.mrf.mxu1  ;;  %v3782_v19 = vmul.f32 %v3781_v52, %v3757_v25  ;;  %v3899_v56 = vand.u32 2147483648, %v10609_v7  ;;  %v4006_v48 = vmul.f32 %v4005_v23, %v10560_v45  ;;  %v4111_v10 = vmul.f32 %v4110_v50, %v10607_v26 }
 0x48a   : > { %v4122_v57 = vmul.f32 %v4121_v8, %v10607_v26  ;;  %v10654_v2 = vmin.f32 %v4225_v13, 16.0  ;;  %v10658_v0 = vadd.f32 %v6399_v54, %v5127_v49  ;;  %v3994_v25 = vadd.f32 0.18741608, %v3993_v32  ;;  %v10683_v50 = vpop.f32.mrf.mxu3 }
 0x48b   : > { %v6298_v12 = vpop.eup %6297  ;;  %v6054_v63 = vclamps-f32 %v3782_v19, 1.0  ;;  %v10660_v40 = vadd.f32 1.0, %v4006_v48  ;;  %v5017_v59 = vadd.f32 %v10464_v55, %v10247_v21  ;;  %v3877_v41 = vmul.f32 %v3876_v3, %v10520_v11 }
 0x48c   : > { %v3889_v44 = vmul.f32 %v6298_v12, %v10609_v7  ;;  %vm3894_vm4 = vweird.f32 %v6298_v12  ;;  %v4123_v16 = vadd.f32 0.112945676, %v4122_v57  ;;  %v4227_v33 = vmul.f32 2.1237322e-06, %v10654_v2  ;;  %5248 = vadd.xlane.f32.xlu0 %v10658_v0 }
 0x48d   : > { %v4699_v37 = vadd.f32 1.0, %v6054_v63  ;;  %v4238_v39 = vmul.f32 3.8918573e-05, %v10654_v2  ;;  %vm3893_vm5 = vweird.f32 %v10609_v7  ;;  %6299 = vrcp.f32 %v10660_v40 }
 0x48e   : > { %v3890_v53 = vsub.f32 1.0, %v3889_v44  ;;  %v4112_v1 = vadd.f32 0.05243302, %v4111_v10  ;;  %v4124_v32 = vmul.f32 %v4123_v16, %v10607_v26  ;;  %vm3895_vm6 = vmor %vm3893_vm5, %vm3894_vm4  ;;  %v3900_v23 = vor.u32 1.1754944e-38, %v3899_v56 }
 0x48f   : > { %v4795_v43 = vmul.f32 %v4699_v37, %v10613_v38  ;;  %v3995_v21 = vmul.f32 %v3994_v25, %v10560_v45  ;;  %v4228_v55 = vadd.f32 0.00028619796, %v4227_v33  ;;  %v4239_v11 = vadd.f32 0.001143296, %v4238_v39  ;;  %v10687_v45 = vpop.f32.mrf.mxu0 }
 0x490   : > { %v3891_v35 = vmul.f32 %v6298_v12, %v3890_v53  ;;  %vm3898_vm7 = vcmp.eq.f32.partialorder %v3897_v22, 8.507059e+37  ;;  %v4125_v49 = vadd.f32 0.4994258, %v4124_v32  ;;  %v10679_v52 = vmul.f32 0.70710677, %v10670_v15 }
 0x491   : > { %v10672_v9 = vpop.f32.mrf.mxu1  ;;  %5179 = vmatmul.f32.gmra.mxu1 %v4795_v43  ;;  %v5020_v38 = vadd.f32 %v10536_v27, %v10529_v62  ;;  %v4229_v13 = vmul.f32 %v4228_v55, %v10654_v2  ;;  %v4240_v19 = vmul.f32 %v4239_v11, %v10654_v2  ;;  %v3996_v48 = vadd.f32 1.1283791, %v3995_v21 }
 0x492   : > { %v3892_v6 = vadd.f32 %v6298_v12, %v3891_v35  ;;  %v4126_v44 = vmul.f32 %v4125_v49, %v10607_v26  ;;  %v4345_v22 = vmul.f32 %v10679_v52, %v10679_v52  ;;  %v5130_v57 = vadd.f32 %v10638_v28, %v5017_v59  ;;  %v6400_v59 = vld [vmem:[%s6559_s13 + $0x38] sm:$0xff] }
 0x493   : > { %v6300_v56 = vpop.eup %6299  ;;  %v4230_v62 = vadd.f32 0.0036580483, %v4229_v13  ;;  %v4241_v27 = vadd.f32 0.014752088, %v4240_v19  ;;  %v670_v63 = vmul.f32 0.5, %v10516_v60  ;;  %v3997_v43 = vmul.f32 %v3996_v48, %v10551_v47 }
 0x494   : > { %v3896_v7 = vsel %vm3895_vm6, %v6298_v12, %v3892_v6  ;;  %v4113_v12 = vmul.f32 %v4112_v1, %v10607_v26  ;;  %v4009_v10 = vmul.f32 %v6300_v56, %v10660_v40  ;;  %v4017_v54 = vand.u32 2147483647, %v10660_v40  ;;  %v10711_v1 = vpop.f32.mrf.mxu2 }
 0x495   : > { %v3901_v8 = vsel %vm3898_vm7, %v3900_v23, %v3896_v7  ;;  %v10697_v25 = vadd.f32 1.0, %v4126_v44  ;;  %v4231_v16 = vmul.f32 %v4230_v62, %v10654_v2  ;;  %v4242_v37 = vmul.f32 %v4241_v27, %v10654_v2 }
 0x496   : > { %v3902_v3 = vmul.f32 %v3901_v8, %v3877_v41  ;;  %v10701_v35 = vmin.f32 %v4345_v22, 16.0  ;;  %v4010_v41 = vsub.f32 1.0, %v4009_v10  ;;  %v4114_v28 = vadd.f32 0.18741608, %v4113_v12 }
 0x497   : > { %v10706_v60 = vadd.f32 %v6400_v59, %v5130_v57  ;;  %vm4014_vm8 = vweird.f32 %v6300_v56  ;;  %v4019_v6 = vand.u32 2147483648, %v10660_v40  ;;  %6301 = vrcp.f32 %v10697_v25  ;;  %v10730_v48 = vpop.f32.mrf.mxu0 }
 0x498   : > { %v6057_v53 = vclamps-f32 %v3902_v3, 1.0  ;;  %v4011_v23 = vmul.f32 %v6300_v56, %v4010_v41  ;;  %v4232_v21 = vadd.f32 0.05243302, %v4231_v16  ;;  %v4243_v55 = vadd.f32 0.112945676, %v4242_v37  ;;  %v10726_v3 = vpop.f32.mrf.mxu3  ;;  %v6401_v16 = vld [vmem:[%s6559_s13 + $0x40] sm:$0xff] }
 0x499   : > { %v10703_v33 = vpop.f32.mrf.mxu1  ;;  %5250 = vadd.xlane.f32.xlu1 %v10706_v60  ;;  %vm4013_vm9 = vweird.f32 %v10660_v40  ;;  %vm10715_vm10 = vcmp.eq.f32.partialorder %v4017_v54, 8.507059e+37  ;;  %v4347_v47 = vmul.f32 2.1237322e-06, %v10701_v35  ;;  %v4358_v7 = vmul.f32 3.8918573e-05, %v10701_v35 }
 0x49a   : > { %v4702_v39 = vadd.f32 1.0, %v6057_v53  ;;  %v4012_v49 = vadd.f32 %v6300_v56, %v4011_v23  ;;  %v4115_v8 = vmul.f32 %v4114_v28, %v10607_v26  ;;  %v4244_v13 = vmul.f32 %v4243_v55, %v10654_v2  ;;  %vm4015_vm11 = vmor %vm4013_vm9, %vm4014_vm8 }
 0x49b   : > { %v10724_v19 = vmul.f32 0.70710677, %v10711_v1  ;;  %v4020_v40 = vor.u32 1.1754944e-38, %v4019_v6  ;;  %v4348_v12 = vadd.f32 0.00028619796, %v4347_v47  ;;  %v5133_v22 = vadd.f32 %v10672_v9, %v5020_v38 }
 0x49c   : > { %v4798_v32 = vmul.f32 %v4702_v39, %v670_v63  ;;  %v4359_v44 = vadd.f32 0.001143296, %v4358_v7  ;;  %v4016_v62 = vsel %vm4015_vm11, %v6300_v56, %v4012_v49  ;;  %v4233_v26 = vmul.f32 %v4232_v21, %v10654_v2 }
 0x49d   : > { %v4245_v27 = vadd.f32 0.4994258, %v4244_v13  ;;  %v4465_v57 = vmul.f32 %v10724_v19, %v10724_v19  ;;  %v6302_v63 = vpop.eup %6301  ;;  %v4021_v53 = vsel %vm10715_vm10, %v4020_v40, %v4016_v62  ;;  %v4349_v10 = vmul.f32 %v4348_v12, %v10701_v35  ;;  %v10760_v12 = vpop.f32.mrf.mxu2 }
 0x49e   : > { %5182 = vmatmul.f32.gmra.mxu1 %v4798_v32  ;;  %v4360_v54 = vmul.f32 %v4359_v44, %v10701_v35  ;;  %v10740_v37 = vadd.f32 %v6401_v16, %v5133_v22  ;;  %v673_v38 = vmul.f32 0.5, %v10543_v18  ;;  %v4022_v56 = vmul.f32 %v4021_v53, %v3997_v43 }
 0x49f   : > { %v4116_v39 = vadd.f32 1.1283791, %v4115_v8  ;;  %v4129_v41 = vmul.f32 %v6302_v63, %v10697_v25  ;;  %v4137_v28 = vand.u32 2147483647, %v10697_v25  ;;  %v4246_v59 = vmul.f32 %v4245_v27, %v10654_v2 }
 0x4a0   : > { %v4361_v6 = vadd.f32 0.014752088, %v4360_v54  ;;  %v10748_v32 = vmin.f32 %v4465_v57, 16.0  ;;  %5252 = vadd.xlane.f32.xlu2 %v10740_v37  ;;  %v6060_v23 = vclamps-f32 %v4022_v56, 1.0  ;;  %v4139_v55 = vand.u32 2147483648, %v10697_v25  ;;  %v10763_v27 = vpop.f32.mrf.mxu3 }
 0x4a1   : > { %v10742_v9 = vpop.f32.mrf.mxu1  ;;  %v4130_v21 = vsub.f32 1.0, %v4129_v41  ;;  %v4350_v11 = vadd.f32 0.0036580483, %v4349_v10  ;;  %v4234_v47 = vadd.f32 0.18741608, %v4233_v26  ;;  %v10752_v18 = vadd.f32 1.0, %v4246_v59 }
 0x4a2   : > { %v4362_v43 = vmul.f32 %v4361_v6, %v10701_v35  ;;  %v4467_v7 = vmul.f32 2.1237322e-06, %v10748_v32  ;;  %v4705_v49 = vadd.f32 1.0, %v6060_v23  ;;  %vm4134_vm12 = vweird.f32 %v6302_v63 }
 0x4a3   : > { %v4131_v8 = vmul.f32 %v6302_v63, %v4130_v21  ;;  %v4478_v13 = vmul.f32 3.8918573e-05, %v10748_v32  ;;  %v4117_v40 = vmul.f32 %v4116_v39, %v10588_v58  ;;  %vm4133_vm13 = vweird.f32 %v10697_v25  ;;  %v10767_v58 = vpop.f32.mrf.mxu0 }
 0x4a4   : > { %6303 = vrcp.f32 %v10752_v18  ;;  %v4801_v44 = vmul.f32 %v4705_v49, %v673_v38  ;;  %v4351_v62 = vmul.f32 %v4350_v11, %v10701_v35  ;;  %v4363_v26 = vadd.f32 0.112945676, %v4362_v43  ;;  %vm4135_vm14 = vmor %vm4133_vm13, %vm4134_vm12 }
 0x4a5   : > { %v4132_v22 = vadd.f32 %v6302_v63, %v4131_v8  ;;  %vm4138_vm15 = vcmp.eq.f32.partialorder %v4137_v28, 8.507059e+37  ;;  %v4140_v57 = vor.u32 1.1754944e-38, %v4139_v55  ;;  %v4468_v53 = vadd.f32 0.00028619796, %v4467_v7 }
 0x4a6   : > { %v4479_v10 = vadd.f32 0.001143296, %v4478_v13  ;;  %v4235_v16 = vmul.f32 %v4234_v47, %v10654_v2  ;;  %v4364_v38 = vmul.f32 %v4363_v26, %v10701_v35  ;;  %v10772_v56 = vmul.f32 0.70710677, %v10760_v12  ;;  %5185 = vmatmul.f32.gmra.mxu1 %v4801_v44 }
 0x4a7   : > { %v4136_v25 = vsel %vm4135_vm14, %v6302_v63, %v4132_v22  ;;  %v5023_v39 = vadd.f32 %v10570_v29, %v10565_v30  ;;  %v4469_v28 = vmul.f32 %v4468_v53, %v10748_v32  ;;  %v4352_v23 = vadd.f32 0.05243302, %v4351_v62 }
 0x4a8   : > { %v4141_v41 = vsel %vm4138_vm15, %v4140_v57, %v4136_v25  ;;  %v4480_v59 = vmul.f32 %v4479_v10, %v10748_v32  ;;  %v4365_v21 = vadd.f32 0.4994258, %v4364_v38  ;;  %v4585_v2 = vmul.f32 %v10772_v56, %v10772_v56 }
 0x4a9   : > { %v10765_v54 = vpop.f32.mrf.mxu1  ;;  %v4142_v6 = vmul.f32 %v4141_v41, %v4117_v40  ;;  %v5026_v55 = vadd.f32 %v10603_v61, %v10599_v17  ;;  %v676_v11 = vmul.f32 0.5, %v10579_v34  ;;  %v5136_v30 = vadd.f32 %v10703_v33, %v5023_v39  ;;  %v6402_v61 = vld [vmem:[%s6559_s13 + $0x48] sm:$0xff] }
 0x4aa   : > { %v6304_v63 = vpop.eup %6303  ;;  %v4481_v47 = vadd.f32 0.014752088, %v4480_v59  ;;  %v4236_v43 = vadd.f32 1.1283791, %v4235_v16  ;;  %v4257_v49 = vand.u32 2147483647, %v10752_v18  ;;  %v4366_v8 = vmul.f32 %v4365_v21, %v10701_v35 }
 0x4ab   : > { %v6063_v29 = vclamps-f32 %v4142_v6, 1.0  ;;  %v4249_v7 = vmul.f32 %v6304_v63, %v10752_v18  ;;  %v4470_v13 = vadd.f32 0.0036580483, %v4469_v28  ;;  %v10788_v44 = vmin.f32 %v4585_v2, 16.0  ;;  %v10804_v28 = vpop.f32.mrf.mxu3  ;;  %v10808_v59 = vpop.f32.mrf.mxu0 }
 0x4ac   : > { %v4482_v40 = vmul.f32 %v4481_v47, %v10748_v32  ;;  %v4353_v34 = vmul.f32 %v4352_v23, %v10701_v35  ;;  %v10792_v62 = vadd.f32 %v6402_v61, %v5136_v30  ;;  %v4259_v33 = vand.u32 2147483648, %v10752_v18 }
 0x4ad   : > { %v4708_v22 = vadd.f32 1.0, %v6063_v29  ;;  %v4250_v17 = vsub.f32 1.0, %v4249_v7  ;;  %v10795_v26 = vadd.f32 1.0, %v4366_v8  ;;  %v5139_v53 = vadd.f32 %v10742_v9, %v5026_v55 }
 0x4ae   : > { %v4483_v57 = vadd.f32 0.112945676, %v4482_v40  ;;  %vm4254_vm0 = vweird.f32 %v6304_v63  ;;  %v4587_v38 = vmul.f32 2.1237322e-06, %v10788_v44  ;;  %5254 = vadd.xlane.f32.xlu0 %v10792_v62  ;;  %v5029_v39 = vadd.f32 %v10647_v5, %v10641_v36 }
 0x4af   : > { %v4804_v25 = vmul.f32 %v4708_v22, %v676_v11  ;;  %v4251_v16 = vmul.f32 %v6304_v63, %v4250_v17  ;;  %v5032_v41 = vadd.f32 %v10687_v45, %v10683_v50  ;;  %6305 = vrcp.f32 %v10795_v26  ;;  %v6403_v45 = vld [vmem:[%s6559_s13 + $0x50] sm:$0xff] }
 0x4b0   : > { %v4471_v9 = vmul.f32 %v4470_v13, %v10748_v32  ;;  %vm4253_vm1 = vweird.f32 %v10752_v18  ;;  %v4354_v23 = vadd.f32 0.18741608, %v4353_v34  ;;  %v4484_v21 = vmul.f32 %v4483_v57, %v10748_v32 }
 0x4b1   : > { %v5144_v10 = vpop.f32.mrf.mxu1  ;;  %v4252_v6 = vadd.f32 %v6304_v63, %v4251_v16  ;;  %5188 = vmatmul.f32.gmra.mxu1 %v4804_v25  ;;  %vm4255_vm2 = vmor %vm4253_vm1, %vm4254_vm0  ;;  %v4260_v36 = vor.u32 1.1754944e-38, %v4259_v33  ;;  %v4588_v5 = vadd.f32 0.00028619796, %v4587_v38  ;;  %v4598_v50 = vmul.f32 3.8918573e-05, %v10788_v44  ;;  %v6405_v25 = vld [vmem:[%s6559_s13 + $0x60] sm:$0xff] }
 0x4b2   : > { %v10814_v2 = vadd.f32 %v6403_v45, %v5139_v53  ;;  %v4237_v55 = vmul.f32 %v4236_v43, %v10636_v14  ;;  %vm4258_vm3 = vcmp.eq.f32.partialorder %v4257_v49, 8.507059e+37  ;;  %v4485_v47 = vadd.f32 0.4994258, %v4484_v21 }
 0x4b3   : > { %v4256_v11 = vsel %vm4255_vm2, %v6304_v63, %v4252_v6  ;;  %v4472_v18 = vadd.f32 0.05243302, %v4471_v9  ;;  %v4599_v29 = vadd.f32 0.001143296, %v4598_v50  ;;  %v5142_v7 = vadd.f32 %v10765_v54, %v5029_v39  ;;  %v6404_v63 = vld [vmem:[%s6559_s13 + $0x58] sm:$0xff]  ;;  %v10837_v9 = vpop.f32.mrf.mxu3 }
 0x4b4   : > { %v4261_v30 = vsel %vm4258_vm3, %v4260_v36, %v4256_v11  ;;  %5256 = vadd.xlane.f32.xlu1 %v10814_v2  ;;  %v4355_v13 = vmul.f32 %v4354_v23, %v10701_v35  ;;  %v4486_v40 = vmul.f32 %v4485_v47, %v10748_v32  ;;  %v4589_v17 = vmul.f32 %v4588_v5, %v10788_v44  ;;  %v10843_v23 = vpop.f32.mrf.mxu0 }
 0x4b5   : > { %v4262_v8 = vmul.f32 %v4261_v30, %v4237_v55  ;;  %v6306_v22 = vpop.eup %6305  ;;  %v4600_v14 = vmul.f32 %v4599_v29, %v10788_v44  ;;  %v10824_v43 = vadd.f32 %v6404_v63, %v5142_v7  ;;  %v5145_v49 = vadd.f32 %v5144_v10, %v5032_v41  ;;  %v6406_v7 = vld [vmem:[%s6559_s13 + $0x68] sm:$0xff] }
 0x4b6   : > { %v5035_v61 = vadd.f32 %v10730_v48, %v10726_v3  ;;  %v4369_v33 = vmul.f32 %v6306_v22, %v10795_v26  ;;  %v4473_v35 = vmul.f32 %v4472_v18, %v10748_v32  ;;  %v10830_v57 = vadd.f32 1.0, %v4486_v40 }
 0x4b7   : > { %v6066_v54 = vclamps-f32 %v4262_v8, 1.0  ;;  %v4601_v53 = vadd.f32 0.014752088, %v4600_v14  ;;  %5258 = vadd.xlane.f32.xlu2 %v10824_v43  ;;  %v10834_v16 = vadd.f32 %v6405_v25, %v5145_v49  ;;  %v679_v38 = vmul.f32 0.5, %v10620_v4 }
 0x4b8   : > { %v4356_v39 = vadd.f32 1.1283791, %v4355_v13  ;;  %v4370_v41 = vsub.f32 1.0, %v4369_v33  ;;  %v4377_v3 = vand.u32 2147483647, %v10795_v26  ;;  %v4379_v48 = vand.u32 2147483648, %v10795_v26 }
 0x4b9   : > { %v5147_v34 = vpop.f32.mrf.mxu1  ;;  %v4711_v10 = vadd.f32 1.0, %v6066_v54  ;;  %6307 = vrcp.f32 %v10830_v57  ;;  %v4590_v6 = vadd.f32 0.0036580483, %v4589_v17  ;;  %5260 = vadd.xlane.f32.xlu0 %v10834_v16  ;;  %vm4374_vm4 = vweird.f32 %v6306_v22 }
 0x4ba   : > { %v4371_v36 = vmul.f32 %v6306_v22, %v4370_v41  ;;  %v4602_v4 = vmul.f32 %v4601_v53, %v10788_v44  ;;  %v5038_v5 = vadd.f32 %v10767_v58, %v10763_v27  ;;  %v4474_v50 = vadd.f32 0.18741608, %v4473_v35 }
 0x4bb   : > { %v4807_v21 = vmul.f32 %v4711_v10, %v679_v38  ;;  %v5148_v45 = vadd.f32 %v5147_v34, %v5035_v61  ;;  %vm4373_vm5 = vweird.f32 %v10795_v26  ;;  %v6433_v47 = vmov 128.0   ;;  %v6407_v61 = vld [vmem:[%s6559_s13 + $0x70] sm:$0xff]  ;;  %v10864_v38 = vpop.f32.mrf.mxu3 }
 0x4bc   : > { %v4372_v55 = vadd.f32 %v6306_v22, %v4371_v36  ;;  %v4603_v11 = vadd.f32 0.112945676, %v4602_v4  ;;  %6309 = vrcp.f32 %v6433_v47  ;;  %v4357_v30 = vmul.f32 %v4356_v39, %v10679_v52  ;;  %vm4375_vm6 = vmor %vm4373_vm5, %vm4374_vm4 }
 0x4bd   : > { %5191 = vmatmul.f32.gmra.mxu1 %v4807_v21  ;;  %v4380_v18 = vor.u32 1.1754944e-38, %v4379_v48  ;;  %v4591_v29 = vmul.f32 %v4590_v6, %v10788_v44  ;;  %v10852_v8 = vadd.f32 %v6406_v7, %v5148_v45  ;;  %vm4378_vm7 = vcmp.eq.f32.partialorder %v4377_v3, 8.507059e+37  ;;  %v5046_v3 = vpop.f32.mrf.mxu0 }
 0x4be   : > { %v4376_v58 = vsel %vm4375_vm6, %v6306_v22, %v4372_v55  ;;  %v4604_v13 = vmul.f32 %v4603_v11, %v10788_v44  ;;  %v4475_v14 = vmul.f32 %v4474_v50, %v10748_v32  ;;  %v5041_v22 = vadd.f32 %v10808_v59, %v10804_v28 }
 0x4bf   : > { %v6308_v40 = vpop.eup %6307  ;;  %v4381_v17 = vsel %vm4378_vm7, %v4380_v18, %v4376_v58  ;;  %5262 = vadd.xlane.f32.xlu1 %v10852_v8  ;;  %v4592_v49 = vadd.f32 0.05243302, %v4591_v29  ;;  %v682_v35 = vmul.f32 0.5, %v10670_v15  ;;  %v4499_v10 = vand.u32 2147483648, %v10830_v57  ;;  %v6408_v18 = vld [vmem:[%s6559_s13 + $0x78] sm:$0xff] }
 0x4c0   : > { %v4382_v52 = vmul.f32 %v4381_v17, %v4357_v30  ;;  %v4489_v63 = vmul.f32 %v6308_v40, %v10830_v57  ;;  %v4605_v34 = vadd.f32 0.4994258, %v4604_v13  ;;  %v4476_v32 = vadd.f32 1.1283791, %v4475_v14 }
 0x4c1   : > { %v5150_v27 = vpop.f32.mrf.mxu1  ;;  %vm4494_vm8 = vweird.f32 %v6308_v40  ;;  %v4497_v28 = vand.u32 2147483647, %v10830_v57  ;;  %v4593_v15 = vmul.f32 %v4592_v49, %v10788_v44  ;;  %vm4493_vm9 = vweird.f32 %v10830_v57 }
 0x4c2   : > { %v5151_v26 = vadd.f32 %v5150_v27, %v5038_v5  ;;  %v6310_v33 = vpop.eup %6309  ;;  %v6069_v53 = vclamps-f32 %v4382_v52, 1.0  ;;  %v4490_v25 = vsub.f32 1.0, %v4489_v63  ;;  %v4606_v39 = vmul.f32 %v4605_v34, %v10788_v44  ;;  %vm4495_vm10 = vmor %vm4493_vm9, %vm4494_vm8 }
 0x4c3   : > { %v5301_v41 = vmul.f32 128.0, %v6310_v33  ;;  %v4477_v55 = vmul.f32 %v4476_v32, %v10724_v19  ;;  %v4500_v11 = vor.u32 1.1754944e-38, %v4499_v10  ;;  %vm4498_vm11 = vcmp.eq.f32.partialorder %v4497_v28, 8.507059e+37  ;;  %v4936_v17 = vpop.f32.mrf.mxu3  ;;  %v6409_v32 = vld [vmem:[%s6559_s13 + $0x80] sm:$0xff] }
 0x4c4   : > { %v10859_v54 = vadd.f32 %v6407_v61, %v5151_v26  ;;  %v4714_v48 = vadd.f32 1.0, %v6069_v53  ;;  %v4491_v6 = vmul.f32 %v6308_v40, %v4490_v25  ;;  %v10871_v59 = vadd.f32 1.0, %v4606_v39 }
 0x4c5   : > { %v5302_v36 = vsub.f32 1.0, %v5301_v41  ;;  %v4594_v27 = vadd.f32 0.18741608, %v4593_v15  ;;  %vm5305_vm12 = vweird.f32 %v6310_v33  ;;  %v5044_v19 = vadd.f32 %v10843_v23, %v10837_v9  ;;  %v5049_v49 = vpop.f32.mrf.mxu0 }
 0x4c6   : > { %5264 = vadd.xlane.f32.xlu2 %v10859_v54  ;;  %v4810_v5 = vmul.f32 %v4714_v48, %v682_v35  ;;  %v4492_v50 = vadd.f32 %v6308_v40, %v4491_v6  ;;  %6311 = vrcp.f32 %v10871_v59  ;;  %v685_v34 = vmul.f32 0.5, %v10711_v1 }
 0x4c7   : > { %v5303_v30 = vmul.f32 %v6310_v33, %v5302_v36  ;;  %v4595_v14 = vmul.f32 %v4594_v27, %v10788_v44  ;;  %v4619_v39 = vand.u32 2147483648, %v10871_v59  ;;  %v5047_v28 = vadd.f32 %v5046_v3, %v10864_v38 }
 0x4c8   : > { %v4496_v47 = vsel %vm4495_vm10, %v6308_v40, %v4492_v50  ;;  %5194 = vmatmul.f32.gmra.mxu1 %v4810_v5  ;;  %vm4613_vm14 = vweird.f32 %v10871_v59  ;;  %v688_v27 = vmul.f32 0.5, %v10760_v12 }
 0x4c9   : > { %v5153_v21 = vpop.f32.mrf.mxu1  ;;  %v4501_v7 = vsel %vm4498_vm11, %v4500_v11, %v4496_v47  ;;  %v5304_v13 = vadd.f32 %v6310_v33, %v5303_v30  ;;  %v4596_v10 = vadd.f32 1.1283791, %v4595_v14  ;;  %v6411_v14 = vld [vmem:[%s6559_s13 + $0x90] sm:$0xff] }
 0x4ca   : > { %v5154_v45 = vadd.f32 %v5153_v21, %v5041_v22  ;;  %v4502_v58 = vmul.f32 %v4501_v7, %v4477_v55  ;;  %v4620_v21 = vor.u32 1.1754944e-38, %v4619_v39  ;;  %v5050_v7 = vadd.f32 %v5049_v49, %v4936_v17 }
 0x4cb   : > { %v10882_v26 = vsel %vm5305_vm12, %v6310_v33, %v5304_v13  ;;  %v4939_v11 = vpop.f32.mrf.mxu3 }
 0x4cc   : > { %v10877_v29 = vadd.f32 %v6408_v18, %v5154_v45  ;;  %v6072_v57 = vclamps-f32 %v4502_v58, 1.0  ;;  %v6312_v40 = vpop.eup %6311 }
 0x4cd   : > { %v4609_v22 = vmul.f32 %v6312_v40, %v10871_v59  ;;  %vm4614_vm13 = vweird.f32 %v6312_v40  ;;  %v5052_v47 = vpop.f32.mrf.mxu0 }
 0x4ce   : > { %v5237_v4 = vpop.xlane.xlu0 %5236  ;;  %5266 = vadd.xlane.f32.xlu0 %v10877_v29  ;;  %v4717_v61 = vadd.f32 1.0, %v6072_v57  ;;  %vm4615_vm15 = vmor %vm4613_vm14, %vm4614_vm13  ;;  %v5053_v49 = vadd.f32 %v5052_v47, %v4939_v11 }
 0x4cf   : > { %v5307_v52 = vmul.f32 %v10882_v26, %v5237_v4  ;;  %v4610_v25 = vsub.f32 1.0, %v4609_v22 }
 0x4d0   : > { %v4813_v33 = vmul.f32 %v4717_v61, %v685_v34 }
 0x4d1   : > { %v5156_v63 = vpop.f32.mrf.mxu1  ;;  %v10889_v9 = vsub.f32 %v10471_v20, %v5307_v52  ;;  %v4611_v48 = vmul.f32 %v6312_v40, %v4610_v25  ;;  %v4617_v20 = vand.u32 2147483647, %v10871_v59  ;;  %v6410_v59 = vld [vmem:[%s6559_s13 + $0x88] sm:$0xff] }
 0x4d2   : > { %v5157_v35 = vadd.f32 %v5156_v63, %v5044_v19  ;;  %5197 = vmatmul.f32.gmra.mxu1 %v4813_v33 }
 0x4d3   : > { %v5371_v1 = vmul.f32 %v10889_v9, %v10889_v9  ;;  %v4612_v15 = vadd.f32 %v6312_v40, %v4611_v48  ;;  %vm4618_vm0 = vcmp.eq.f32.partialorder %v4617_v20, 8.507059e+37  ;;  %v4942_v34 = vpop.f32.mrf.mxu3  ;;  %v6413_v20 = vld [vmem:[%s6559_s13 + $0xa0] sm:$0xff] }
 0x4d4   : > { %v10893_v44 = vadd.f32 %v6409_v32, %v5157_v35 }
 0x4d5   : > { %5403 = vadd.xlane.f32.xlu2 %v5371_v1  ;;  %v4616_v5 = vsel %vm4615_vm15, %v6312_v40, %v4612_v15  ;;  %v5055_v17 = vpop.f32.mrf.mxu0 }
 0x4d6   : > { %v5239_v53 = vpop.xlane.xlu0 %5238  ;;  %5268 = vadd.xlane.f32.xlu1 %v10893_v44  ;;  %v4621_v55 = vsel %vm4618_vm0, %v4620_v21, %v4616_v5  ;;  %v5056_v25 = vadd.f32 %v5055_v17, %v4942_v34  ;;  %v6416_v34 = vld [vmem:[%s6559_s13 + $0xb8] sm:$0xff] }
 0x4d7   : > { %v5308_v23 = vmul.f32 %v10882_v26, %v5239_v53 }
 0x4d9   : > { %v10899_v41 = vsub.f32 %v10487_v42, %v5308_v23  ;;  %v4597_v42 = vmul.f32 %v4596_v10, %v10772_v56  ;;  %v5159_v36 = vpop.f32.mrf.mxu1  ;;  %v5241_v4 = vpop.xlane.xlu1 %5240  ;;  %v6412_v23 = vld [vmem:[%s6559_s13 + $0x98] sm:$0xff] }
 0x4da   : > { %v5160_v50 = vadd.f32 %v5159_v36, %v5047_v28  ;;  %v5309_v45 = vmul.f32 %v10882_v26, %v5241_v4  ;;  %v6414_v4 = vld [vmem:[%s6559_s13 + $0xa8] sm:$0xff] }
 0x4db   : > { %v5372_v6 = vmul.f32 %v10899_v41, %v10899_v41  ;;  %v4622_v38 = vmul.f32 %v4621_v55, %v4597_v42  ;;  %v4945_v32 = vpop.f32.mrf.mxu3 }
 0x4dc   : > { %v10910_v3 = vsub.f32 %v10504_v24, %v5309_v45  ;;  %v10913_v56 = vadd.f32 %v6410_v59, %v5160_v50 }
 0x4dd   : > { %5405 = vadd.xlane.f32.xlu0 %v5372_v6  ;;  %v6075_v30 = vclamps-f32 %v4622_v38, 1.0  ;;  %v5058_v10 = vpop.f32.mrf.mxu0 }
 0x4de   : > { %v5373_v18 = vmul.f32 %v10910_v3, %v10910_v3  ;;  %5270 = vadd.xlane.f32.xlu2 %v10913_v56  ;;  %v5059_v28 = vadd.f32 %v5058_v10, %v4945_v32 }
 0x4df   : > { %v4720_v58 = vadd.f32 1.0, %v6075_v30 }
 0x4e0   : > { %5407 = vadd.xlane.f32.xlu1 %v5373_v18 }
 0x4e1   : > { %v5162_v13 = vpop.f32.mrf.mxu1  ;;  %v4816_v19 = vmul.f32 %v4720_v58, %v688_v27  ;;  %v5243_v24 = vpop.xlane.xlu1 %5242  ;;  %v6415_v58 = vld [vmem:[%s6559_s13 + $0xb0] sm:$0xff] }
 0x4e2   : > { %v5163_v57 = vadd.f32 %v5162_v13, %v5050_v7  ;;  %v5310_v40 = vmul.f32 %v10882_v26, %v5243_v24 }
 0x4e3   : > { %5200 = vmatmul.f32.gmra.mxu1 %v4816_v19  ;;  %v4948_v15 = vpop.f32.mrf.mxu3 }
 0x4e4   : > { %v10921_v52 = vadd.f32 %v6411_v14, %v5163_v57  ;;  %v10924_v63 = vsub.f32 %v10534_v46, %v5310_v40 }
 0x4e5   : > { %v5061_v42 = vpop.f32.mrf.mxu0 }
 0x4e6   : > { %5272 = vadd.xlane.f32.xlu0 %v10921_v52  ;;  %v5374_v12 = vmul.f32 %v10924_v63, %v10924_v63  ;;  %v5062_v55 = vadd.f32 %v5061_v42, %v4948_v15  ;;  %v6418_v15 = vld [vmem:[%s6559_s13 + $0xc8] sm:$0xff] }
 0x4e8   : > { %5409 = vadd.xlane.f32.xlu2 %v5374_v12 }
 0x4e9   : > { %v5165_v61 = vpop.f32.mrf.mxu1  ;;  %v5245_v35 = vpop.xlane.xlu2 %5244 }
 0x4ea   : > { %v5166_v22 = vadd.f32 %v5165_v61, %v5053_v49  ;;  %v5311_v53 = vmul.f32 %v10882_v26, %v5245_v35 }
 0x4eb   : > { %v4951_v30 = vpop.f32.mrf.mxu3 }
 0x4ec   : > { %v10931_v33 = vadd.f32 %v6412_v23, %v5166_v22  ;;  %v10934_v46 = vsub.f32 %v10563_v51, %v5311_v53 }
 0x4ed   : > { %v5064_v18 = vpop.f32.mrf.mxu0 }
 0x4ee   : > { %5274 = vadd.xlane.f32.xlu1 %v10931_v33  ;;  %v5375_v39 = vmul.f32 %v10934_v46, %v10934_v46 }
 0x4f0   : > { %5411 = vadd.xlane.f32.xlu0 %v5375_v39 }
 0x4f1   : > { %v5168_v1 = vpop.f32.mrf.mxu1 }
 0x4f2   : > { %v5169_v48 = vadd.f32 %v5168_v1, %v5056_v25  ;;  %v6417_v1 = vld [vmem:[%s6559_s13 + $0xc0] sm:$0xff] }
 0x4f3   : > { %v4954_v40 = vpop.f32.mrf.mxu3 }
 0x4f4   : > { %v10940_v6 = vadd.f32 %v6413_v20, %v5169_v48 }
 0x4f5   : > { %v5067_v14 = vpop.f32.mrf.mxu0 }
 0x4f6   : > { %5276 = vadd.xlane.f32.xlu2 %v10940_v6  ;;  %v5068_v22 = vadd.f32 %v5067_v14, %v4954_v40 }
 0x4f8   : > { %v5247_v36 = vpop.xlane.xlu2 %5246 }
 0x4f9   : > { %v5171_v51 = vpop.f32.mrf.mxu1  ;;  %v5312_v50 = vmul.f32 %v10882_v26, %v5247_v36 }
 0x4fa   : > { %v5172_v21 = vadd.f32 %v5171_v51, %v5059_v28 }
 0x4fb   : > { %v10949_v45 = vsub.f32 %v10624_v31, %v5312_v50  ;;  %v5065_v31 = vadd.f32 %v5064_v18, %v4951_v30  ;;  %v4957_v32 = vpop.f32.mrf.mxu3 }
 0x4fc   : > { %v10944_v5 = vadd.f32 %v6414_v4, %v5172_v21 }
 0x4fd   : > { %v5376_v11 = vmul.f32 %v10949_v45, %v10949_v45  ;;  %v5070_v10 = vpop.f32.mrf.mxu0 }
 0x4fe   : > { %5278 = vadd.xlane.f32.xlu0 %v10944_v5  ;;  %v5071_v48 = vadd.f32 %v5070_v10, %v4957_v32 }
 0x4ff   : > { %5413 = vadd.xlane.f32.xlu1 %v5376_v11  ;;  %v5249_v38 = vpop.xlane.xlu0 %5248 }
 0x500   : > { %v5313_v7 = vmul.f32 %v10882_v26, %v5249_v38 }
 0x501   : > { %v5174_v47 = vpop.f32.mrf.mxu1 }
 0x502   : > { %v5175_v59 = vadd.f32 %v5174_v47, %v5062_v55  ;;  %v10955_v27 = vsub.f32 %v10658_v0, %v5313_v7 }
 0x503   : > { %v4960_v21 = vpop.f32.mrf.mxu3 }
 0x504   : > { %v10958_v13 = vadd.f32 %v6415_v58, %v5175_v59  ;;  %v5377_v19 = vmul.f32 %v10955_v27, %v10955_v27 }
 0x505   : > { %v5073_v36 = vpop.f32.mrf.mxu0 }
 0x506   : > { %5415 = vadd.xlane.f32.xlu2 %v5377_v19  ;;  %v5074_v11 = vadd.f32 %v5073_v36, %v4960_v21 }
 0x507   : > { %5280 = vadd.xlane.f32.xlu1 %v10958_v13 }
 0x509   : > { %v5177_v57 = vpop.f32.mrf.mxu1 }
 0x50a   : > { %v5178_v24 = vadd.f32 %v5177_v57, %v5065_v31 }
 0x50b   : > { %v4963_v18 = vpop.f32.mrf.mxu3 }
 0x50c   : > { %v10964_v17 = vadd.f32 %v6416_v34, %v5178_v24  ;;  %v5251_v0 = vpop.xlane.xlu1 %5250  ;;  %v6419_v24 = vld [vmem:[%s6559_s13 + $0xd0] sm:$0xff] }
 0x50d   : > { %v5314_v12 = vmul.f32 %v10882_v26, %v5251_v0  ;;  %v5076_v7 = vpop.f32.mrf.mxu0 }
 0x50e   : > { %5282 = vadd.xlane.f32.xlu2 %v10964_v17  ;;  %v5077_v57 = vadd.f32 %v5076_v7, %v4963_v18  ;;  %v6422_v18 = vld [vmem:[%s6559_s13 + $0xe8] sm:$0xff] }
 0x50f   : > { %v10968_v61 = vsub.f32 %v10706_v60, %v5314_v12 }
 0x511   : > { %v5180_v49 = vpop.f32.mrf.mxu1  ;;  %v5378_v35 = vmul.f32 %v10968_v61, %v10968_v61 }
 0x512   : > { %v5181_v23 = vadd.f32 %v5180_v49, %v5068_v22 }
 0x513   : > { %5417 = vadd.xlane.f32.xlu0 %v5378_v35  ;;  %v5253_v53 = vpop.xlane.xlu2 %5252  ;;  %v6420_v35 = vld [vmem:[%s6559_s13 + $0xd8] sm:$0xff]  ;;  %v4966_v32 = vpop.f32.mrf.mxu3 }
 0x514   : > { %v5315_v25 = vmul.f32 %v10882_v26, %v5253_v53  ;;  %v10978_v60 = vadd.f32 %v6417_v1, %v5181_v23 }
 0x515   : > { %v5079_v10 = vpop.f32.mrf.mxu0 }
 0x516   : > { %v10975_v39 = vsub.f32 %v10740_v37, %v5315_v25 }
 0x518   : > { %v5379_v20 = vmul.f32 %v10975_v39, %v10975_v39 }
 0x51a   : > { %5419 = vadd.xlane.f32.xlu1 %v5379_v20 }
 0x51b   : > { %v5183_v28 = vpop.f32.mrf.mxu1  ;;  %5284 = vadd.xlane.f32.xlu0 %v10978_v60 }
 0x51c   : > { %v5184_v51 = vadd.f32 %v5183_v28, %v5071_v48 }
 0x51e   : > { %v10984_v42 = vadd.f32 %v6418_v15, %v5184_v51  ;;  %v6421_v51 = vld [vmem:[%s6559_s13 + $0xe0] sm:$0xff] }
 0x521   : > { %v5255_v4 = vpop.xlane.xlu0 %5254 }
 0x522   : > { %5286 = vadd.xlane.f32.xlu1 %v10984_v42  ;;  %v5316_v37 = vmul.f32 %v10882_v26, %v5255_v4  ;;  %v4969_v4 = vpop.f32.mrf.mxu3 }
 0x523   : > { %v5186_v50 = vpop.f32.mrf.mxu1 }
 0x524   : > { %v10989_v55 = vsub.f32 %v10792_v62, %v5316_v37  ;;  %v5187_v30 = vadd.f32 %v5186_v50, %v5074_v11 }
 0x526   : > { %v5380_v47 = vmul.f32 %v10989_v55, %v10989_v55  ;;  %v11001_v40 = vadd.f32 %v6419_v24, %v5187_v30 }
 0x527   : > { %v5257_v38 = vpop.xlane.xlu1 %5256 }
 0x528   : > { %v5317_v59 = vmul.f32 %v10882_v26, %v5257_v38  ;;  %5421 = vadd.xlane.f32.xlu2 %v5380_v47 }
 0x52a   : > { %v10995_v58 = vsub.f32 %v10814_v2, %v5317_v59  ;;  %v5259_v31 = vpop.xlane.xlu2 %5258  ;;  %v4972_v24 = vpop.f32.mrf.mxu3 }
 0x52b   : > { %v5318_v19 = vmul.f32 %v10882_v26, %v5259_v31 }
 0x52c   : > { %v5381_v62 = vmul.f32 %v10995_v58, %v10995_v58  ;;  %v5261_v14 = vpop.xlane.xlu0 %5260 }
 0x52d   : > { %v11004_v34 = vsub.f32 %v10824_v43, %v5318_v19  ;;  %v5319_v2 = vmul.f32 %v10882_v26, %v5261_v14 }
 0x52e   : > { %5423 = vadd.xlane.f32.xlu0 %v5381_v62  ;;  %v5189_v0 = vpop.f32.mrf.mxu1 }
 0x52f   : > { %v5190_v12 = vadd.f32 %v5189_v0, %v5077_v57  ;;  %v5382_v49 = vmul.f32 %v11004_v34, %v11004_v34  ;;  %v11011_v22 = vsub.f32 %v10834_v16, %v5319_v2  ;;  %v5080_v16 = vadd.f32 %v5079_v10, %v4966_v32 }
 0x530   : > { %5288 = vadd.xlane.f32.xlu2 %v11001_v40 }
 0x531   : > { %5425 = vadd.xlane.f32.xlu1 %v5382_v49  ;;  %v11014_v53 = vadd.f32 %v6420_v35, %v5190_v12  ;;  %v5383_v25 = vmul.f32 %v11011_v22, %v11011_v22 }
 0x532   : > { %v5263_v23 = vpop.xlane.xlu1 %5262 }
 0x533   : > { %v5320_v43 = vmul.f32 %v10882_v26, %v5263_v23 }
 0x535   : > { %v11021_v1 = vsub.f32 %v10852_v8, %v5320_v43  ;;  %v5082_v8 = vpop.f32.mrf.mxu0 }
 0x536   : > { %5290 = vadd.xlane.f32.xlu0 %v11014_v53  ;;  %v5083_v37 = vadd.f32 %v5082_v8, %v4969_v4 }
 0x537   : > { %v5384_v20 = vmul.f32 %v11021_v1, %v11021_v1 }
 0x538   : > { %5427 = vadd.xlane.f32.xlu2 %v5383_v25 }
 0x539   : > { %v11029_v21 = vpop.xlane.xlu2 %5264 }
 0x53a   : > { %v5192_v48 = vpop.f32.mrf.mxu1 }
 0x53b   : > { %v5193_v28 = vadd.f32 %v5192_v48, %v5080_v16  ;;  %v6423_v16 = vld [vmem:[%s6559_s13 + $0xf0] sm:$0xff] }
 0x53d   : > { %v11026_v15 = vadd.f32 %v6421_v51, %v5193_v28  ;;  %v5085_v14 = vpop.f32.mrf.mxu0 }
 0x53e   : > { %5429 = vadd.xlane.f32.xlu0 %v5384_v20  ;;  %v5086_v2 = vadd.f32 %v5085_v14, %v4972_v24 }
 0x53f   : > { %5292 = vadd.xlane.f32.xlu1 %v11026_v15 }
 0x541   : > { %v5267_v36 = vpop.xlane.xlu0 %5266 }
 0x542   : > { %v5322_v47 = vmul.f32 %v10882_v26, %v5267_v36 }
 0x544   : > { %v11039_v57 = vsub.f32 %v10877_v29, %v5322_v47 }
 0x545   : > { %v5195_v50 = vpop.f32.mrf.mxu1 }
 0x546   : > { %v5196_v11 = vadd.f32 %v5195_v50, %v5083_v37  ;;  %v5386_v12 = vmul.f32 %v11039_v57, %v11039_v57 }
 0x548   : > { %v5404_v38 = vpop.xlane.xlu2 %5403  ;;  %v11034_v7 = vadd.f32 %v6422_v18, %v5196_v11  ;;  %v5088_v18 = vpop.f32.mrf.mxu0 }
 0x549   : > { %v5467_v59 = vmul.f32 %v5404_v38, %v10882_v26  ;;  %v5269_v30 = vpop.xlane.xlu1 %5268 }
 0x54a   : > { %5294 = vadd.xlane.f32.xlu2 %v11034_v7  ;;  %v5323_v35 = vmul.f32 %v10882_v26, %v5269_v30 }
 0x54b   : > { %v5499_v62 = vadd.f32 1e-05, %v5467_v59 }
 0x54c   : > { %v11053_v51 = vsub.f32 %v10893_v44, %v5323_v35 }
 0x54d   : > { %6313 = vrsqrt.f32 %v5499_v62  ;;  %vm5537_vm2 = vweird.f32 %v5499_v62 }
 0x54e   : > { %v5387_v47 = vmul.f32 %v11053_v51, %v11053_v51 }
 0x54f   : > { %v5198_v49 = vpop.f32.mrf.mxu1 }
 0x550   : > { %v5406_v31 = vpop.xlane.xlu0 %5405  ;;  %v5199_v43 = vadd.f32 %v5198_v49, %v5086_v2 }
 0x551   : > { %v5468_v19 = vmul.f32 %v5406_v31, %v10882_v26  ;;  %v11044_v25 = vpop.xlane.xlu2 %5270  ;;  %v4975_v31 = vpop.f32.mrf.mxu3 }
 0x552   : > { %v11048_v48 = vadd.f32 %v6423_v16, %v5199_v43  ;;  %5433 = vadd.xlane.f32.xlu2 %v5386_v12 }
 0x553   : > { %v5500_v0 = vadd.f32 1e-05, %v5468_v19  ;;  %v5408_v23 = vpop.xlane.xlu1 %5407  ;;  %v6314_v32 = vpop.eup %6313 }
 0x554   : > { %v5469_v29 = vmul.f32 %v5408_v23, %v10882_v26  ;;  %v5532_v10 = vmul.f32 %v6314_v32, %v5499_v62  ;;  %5296 = vadd.xlane.f32.xlu0 %v11048_v48  ;;  %vm5538_vm1 = vweird.f32 %v6314_v32  ;;  %v5089_v23 = vadd.f32 %v5088_v18, %v4975_v31 }
 0x555   : > { %6315 = vrsqrt.f32 %v5500_v0  ;;  %vm5539_vm4 = vmor %vm5537_vm2, %vm5538_vm1  ;;  %vm5547_vm5 = vweird.f32 %v5500_v0 }
 0x556   : > { %v11050_v20 = vadd.f32 1e-05, %v5469_v29  ;;  %v5533_v36 = vmul.f32 %v6314_v32, %v5532_v10 }
 0x558   : > { %6317 = vrsqrt.f32 %v11050_v20  ;;  %v5534_v37 = vmul.f32 0.5, %v5533_v36  ;;  %vm5557_vm8 = vweird.f32 %v11050_v20 }
 0x559   : > { %v5273_v8 = vpop.xlane.xlu0 %5272 }
 0x55a   : > { %v5325_v11 = vmul.f32 %v10882_v26, %v5273_v8  ;;  %v5535_v38 = vsub.f32 1.5, %v5534_v37 }
 0x55b   : > { %v6316_v28 = vpop.eup %6315  ;;  %v5410_v30 = vpop.xlane.xlu2 %5409 }
 0x55c   : > { %v5542_v4 = vmul.f32 %v6316_v28, %v5500_v0  ;;  %v11061_v44 = vsub.f32 %v10921_v52, %v5325_v11  ;;  %v5470_v19 = vmul.f32 %v5410_v30, %v10882_v26  ;;  %v5536_v14 = vmul.f32 %v6314_v32, %v5535_v38  ;;  %5435 = vadd.xlane.f32.xlu0 %v5387_v47 }
 0x55d   : > { %vm5548_vm3 = vweird.f32 %v6316_v28  ;;  %v5321_v0 = vmul.f32 %v10882_v26, %v11029_v21 }
 0x55e   : > { %v5543_v50 = vmul.f32 %v6316_v28, %v5542_v4  ;;  %v6318_v24 = vpop.eup %6317  ;;  %v5389_v12 = vmul.f32 %v11061_v44, %v11061_v44  ;;  %v5502_v35 = vadd.f32 1e-05, %v5470_v19  ;;  %v5540_v52 = vsel %vm5539_vm4, %v6314_v32, %v5536_v14  ;;  %vm5549_vm6 = vmor %vm5547_vm5, %vm5548_vm3 }
 0x55f   : > { %v5552_v49 = vmul.f32 %v6318_v24, %v11050_v20  ;;  %v5851_v43 = vmul.f32 %v5540_v52, %v10889_v9  ;;  %vm5558_vm7 = vweird.f32 %v6318_v24  ;;  %v11093_v30 = vsub.f32 %v10859_v54, %v5321_v0 }
 0x560   : > { %v5544_v59 = vmul.f32 0.5, %v5543_v50  ;;  %5439 = vadd.xlane.f32.xlu2 %v5389_v12  ;;  %v5201_v29 = vpop.f32.mrf.mxu1  ;;  %6319 = vrsqrt.f32 %v5502_v35  ;;  %v6424_v50 = vld [vmem:[%s6559_s13 + $0xf8] sm:$0xff]  ;;  %vm5559_vm9 = vmor %vm5557_vm8, %vm5558_vm7  ;;  %vm5567_vm11 = vweird.f32 %v5502_v35 }
 0x561   : > { %v5553_v10 = vmul.f32 %v6318_v24, %v5552_v49  ;;  %v5275_v16 = vpop.xlane.xlu1 %5274  ;;  %v5202_v36 = vadd.f32 %v5201_v29, %v5089_v23  ;;  %5883 = vst [vmem:[%s11072_s24] sm:$0xff] %v5851_v43  ;;  %v5385_v12 = vmul.f32 %v11093_v30, %v11093_v30 }
 0x562   : > { %v5545_v2 = vsub.f32 1.5, %v5544_v59  ;;  %v5326_v8 = vmul.f32 %v10882_v26, %v5275_v16 }
 0x563   : > { %v5554_v37 = vmul.f32 0.5, %v5553_v10  ;;  %v11081_v11 = vadd.f32 %v6424_v50, %v5202_v36  ;;  %v5412_v38 = vpop.xlane.xlu0 %5411 }
 0x564   : > { %v5546_v62 = vmul.f32 %v6316_v28, %v5545_v2  ;;  %v11084_v9 = vsub.f32 %v10931_v33, %v5326_v8  ;;  %v5324_v2 = vmul.f32 %v10882_v26, %v11044_v25 }
 0x565   : > { %v5555_v47 = vsub.f32 1.5, %v5554_v37  ;;  %5298 = vadd.xlane.f32.xlu1 %v11081_v11 }
 0x566   : > { %v5550_v4 = vsel %vm5549_vm6, %v6316_v28, %v5546_v62  ;;  %v5471_v28 = vmul.f32 %v5412_v38, %v10882_v26  ;;  %v6320_v59 = vpop.eup %6319 }
 0x567   : > { %v5852_v32 = vmul.f32 %v5550_v4, %v10899_v41  ;;  %v5390_v41 = vmul.f32 %v11084_v9, %v11084_v9  ;;  %v5556_v21 = vmul.f32 %v6318_v24, %v5555_v47  ;;  %v5562_v33 = vmul.f32 %v6320_v59, %v5502_v35 }
 0x568   : > { %v5503_v18 = vadd.f32 1e-05, %v5471_v28  ;;  %vm5568_vm10 = vweird.f32 %v6320_v59 }
 0x569   : > { %5884 = vst [vmem:[%s11072_s24 + $0x8] sm:$0xff] %v5852_v32  ;;  %5441 = vadd.xlane.f32.xlu0 %v5390_v41  ;;  %v5560_v31 = vsel %vm5559_vm9, %v6318_v24, %v5556_v21  ;;  %v5563_v14 = vmul.f32 %v6320_v59, %v5562_v33  ;;  %v5277_v49 = vpop.xlane.xlu2 %5276  ;;  %v11102_v24 = vsub.f32 %v10913_v56, %v5324_v2  ;;  %vm5569_vm12 = vmor %vm5567_vm11, %vm5568_vm10 }
 0x56a   : > { %v5853_v19 = vmul.f32 %v5560_v31, %v10910_v3  ;;  %6321 = vrsqrt.f32 %v5503_v18  ;;  %v5327_v43 = vmul.f32 %v10882_v26, %v5277_v49  ;;  %vm5577_vm14 = vweird.f32 %v5503_v18 }
 0x56b   : > { %v5564_v20 = vmul.f32 0.5, %v5563_v14  ;;  %v5388_v36 = vmul.f32 %v11102_v24, %v11102_v24 }
 0x56c   : > { %5885 = vst [vmem:[%s11072_s24 + $0x10] sm:$0xff] %v5853_v19  ;;  %v11114_v35 = vsub.f32 %v10940_v6, %v5327_v43 }
 0x56d   : > { %5431 = vadd.xlane.f32.xlu1 %v5385_v12  ;;  %v5565_v54 = vsub.f32 1.5, %v5564_v20 }
 0x56e   : > { %v5391_v50 = vmul.f32 %v11114_v35, %v11114_v35 }
 0x56f   : > { %v5566_v3 = vmul.f32 %v6320_v59, %v5565_v54 }
 0x570   : > { %v6322_v23 = vpop.eup %6321 }
 0x571   : > { %v5572_v52 = vmul.f32 %v6322_v23, %v5503_v18  ;;  %v5279_v62 = vpop.xlane.xlu0 %5278  ;;  %v5570_v25 = vsel %vm5569_vm12, %v6320_v59, %v5566_v3  ;;  %vm5578_vm13 = vweird.f32 %v6322_v23 }
 0x572   : > { %v5328_v29 = vmul.f32 %v10882_v26, %v5279_v62  ;;  %v5854_v10 = vmul.f32 %v5570_v25, %v10924_v63  ;;  %v5414_v8 = vpop.xlane.xlu1 %5413  ;;  %vm5579_vm15 = vmor %vm5577_vm14, %vm5578_vm13 }
 0x573   : > { %v5573_v16 = vmul.f32 %v6322_v23, %v5572_v52  ;;  %v5472_v63 = vmul.f32 %v5414_v8, %v10882_v26 }
 0x574   : > { %v11110_v4 = vsub.f32 %v10944_v5, %v5328_v29  ;;  %5886 = vst [vmem:[%s11072_s24 + $0x18] sm:$0xff] %v5854_v10 }
 0x575   : > { %v5574_v56 = vmul.f32 0.5, %v5573_v16  ;;  %5437 = vadd.xlane.f32.xlu1 %v5388_v36  ;;  %v5504_v5 = vadd.f32 1e-05, %v5472_v63 }
 0x576   : > { %v5392_v32 = vmul.f32 %v11110_v4, %v11110_v4 }
 0x577   : > { %v5575_v37 = vsub.f32 1.5, %v5574_v56  ;;  %6323 = vrsqrt.f32 %v5504_v5  ;;  %vm5587_vm1 = vweird.f32 %v5504_v5 }
 0x578   : > { %5445 = vadd.xlane.f32.xlu2 %v5392_v32 }
 0x579   : > { %v5576_v0 = vmul.f32 %v6322_v23, %v5575_v37  ;;  %v5416_v38 = vpop.xlane.xlu2 %5415 }
 0x57a   : > { %v5473_v28 = vmul.f32 %v5416_v38, %v10882_v26  ;;  %v5281_v41 = vpop.xlane.xlu1 %5280 }
 0x57b   : > { %v5580_v47 = vsel %vm5579_vm15, %v6322_v23, %v5576_v0  ;;  %v5329_v59 = vmul.f32 %v10882_v26, %v5281_v41 }
 0x57c   : > { %v5855_v6 = vmul.f32 %v5580_v47, %v10934_v46  ;;  %v5505_v21 = vadd.f32 1e-05, %v5473_v28 }
 0x57d   : > { %5443 = vadd.xlane.f32.xlu1 %v5391_v50  ;;  %v6324_v33 = vpop.eup %6323  ;;  %v11126_v18 = vsub.f32 %v10958_v13, %v5329_v59 }
 0x57e   : > { %5887 = vst [vmem:[%s11072_s24 + $0x20] sm:$0xff] %v5855_v6  ;;  %v5582_v31 = vmul.f32 %v6324_v33, %v5504_v5  ;;  %6325 = vrsqrt.f32 %v5505_v21  ;;  %vm5588_vm0 = vweird.f32 %v6324_v33  ;;  %vm5597_vm4 = vweird.f32 %v5505_v21 }
 0x57f   : > { %v5393_v19 = vmul.f32 %v11126_v18, %v11126_v18  ;;  %vm5589_vm2 = vmor %vm5587_vm1, %vm5588_vm0 }
 0x580   : > { %v5583_v14 = vmul.f32 %v6324_v33, %v5582_v31 }
 0x581   : > { %5447 = vadd.xlane.f32.xlu0 %v5393_v19  ;;  %v5283_v46 = vpop.xlane.xlu2 %5282 }
 0x582   : > { %v5584_v2 = vmul.f32 0.5, %v5583_v14  ;;  %v5330_v12 = vmul.f32 %v10882_v26, %v5283_v46 }
 0x584   : > { %v6326_v20 = vpop.eup %6325  ;;  %v5585_v54 = vsub.f32 1.5, %v5584_v2  ;;  %v11132_v49 = vsub.f32 %v10964_v17, %v5330_v12 }
 0x585   : > { %v5592_v13 = vmul.f32 %v6326_v20, %v5505_v21  ;;  %vm5598_vm3 = vweird.f32 %v6326_v20 }
 0x586   : > { %v5418_v23 = vpop.xlane.xlu0 %5417  ;;  %v5586_v3 = vmul.f32 %v6324_v33, %v5585_v54  ;;  %v5394_v62 = vmul.f32 %v11132_v49, %v11132_v49  ;;  %vm5599_vm5 = vmor %vm5597_vm4, %vm5598_vm3 }
 0x587   : > { %v5474_v52 = vmul.f32 %v5418_v23, %v10882_v26  ;;  %v5593_v25 = vmul.f32 %v6326_v20, %v5592_v13 }
 0x588   : > { %v5590_v43 = vsel %vm5589_vm2, %v6324_v33, %v5586_v3  ;;  %5449 = vadd.xlane.f32.xlu1 %v5394_v62 }
 0x589   : > { %v5506_v29 = vadd.f32 1e-05, %v5474_v52  ;;  %v5856_v10 = vmul.f32 %v5590_v43, %v10949_v45  ;;  %v5594_v16 = vmul.f32 0.5, %v5593_v25 }
 0x58b   : > { %6327 = vrsqrt.f32 %v5506_v29  ;;  %5888 = vst [vmem:[%s11072_s24 + $0x28] sm:$0xff] %v5856_v10  ;;  %v5595_v17 = vsub.f32 1.5, %v5594_v16  ;;  %vm5607_vm7 = vweird.f32 %v5506_v29 }
 0x58d   : > { %v5420_v36 = vpop.xlane.xlu1 %5419  ;;  %v5596_v56 = vmul.f32 %v6326_v20, %v5595_v17 }
 0x58e   : > { %v5475_v8 = vmul.f32 %v5420_v36, %v10882_v26  ;;  %v5285_v32 = vpop.xlane.xlu0 %5284 }
 0x58f   : > { %v5331_v37 = vmul.f32 %v10882_v26, %v5285_v32  ;;  %v5600_v63 = vsel %vm5599_vm5, %v6326_v20, %v5596_v56 }
 0x590   : > { %v5507_v0 = vadd.f32 1e-05, %v5475_v8  ;;  %v5857_v45 = vmul.f32 %v5600_v63, %v10955_v27 }
 0x591   : > { %v6328_v5 = vpop.eup %6327  ;;  %v11143_v50 = vsub.f32 %v10978_v60, %v5331_v37 }
 0x592   : > { %v5602_v47 = vmul.f32 %v6328_v5, %v5506_v29  ;;  %6329 = vrsqrt.f32 %v5507_v0  ;;  %5889 = vst [vmem:[%s11072_s24 + $0x30] sm:$0xff] %v5857_v45  ;;  %vm5608_vm6 = vweird.f32 %v6328_v5  ;;  %vm5617_vm10 = vweird.f32 %v5507_v0 }
 0x593   : > { %v5395_v6 = vmul.f32 %v11143_v50, %v11143_v50  ;;  %vm5609_vm8 = vmor %vm5607_vm7, %vm5608_vm6 }
 0x594   : > { %v5603_v38 = vmul.f32 %v6328_v5, %v5602_v47 }
 0x595   : > { %5451 = vadd.xlane.f32.xlu2 %v5395_v6  ;;  %v5287_v28 = vpop.xlane.xlu1 %5286 }
 0x596   : > { %v5604_v41 = vmul.f32 0.5, %v5603_v38  ;;  %v5332_v59 = vmul.f32 %v10882_v26, %v5287_v28 }
 0x598   : > { %v6330_v21 = vpop.eup %6329  ;;  %v5605_v33 = vsub.f32 1.5, %v5604_v41  ;;  %v11150_v27 = vsub.f32 %v10984_v42, %v5332_v59 }
 0x599   : > { %v5612_v60 = vmul.f32 %v6330_v21, %v5507_v0  ;;  %vm5618_vm9 = vweird.f32 %v6330_v21 }
 0x59a   : > { %v5606_v31 = vmul.f32 %v6328_v5, %v5605_v33  ;;  %v5396_v19 = vmul.f32 %v11150_v27, %v11150_v27  ;;  %vm5619_vm11 = vmor %vm5617_vm10, %vm5618_vm9 }
 0x59b   : > { %v5613_v14 = vmul.f32 %v6330_v21, %v5612_v60  ;;  %v5422_v2 = vpop.xlane.xlu2 %5421 }
 0x59c   : > { %v5610_v46 = vsel %vm5609_vm8, %v6328_v5, %v5606_v31  ;;  %5453 = vadd.xlane.f32.xlu0 %v5396_v19  ;;  %v5476_v54 = vmul.f32 %v5422_v2, %v10882_v26 }
 0x59d   : > { %v5858_v12 = vmul.f32 %v5610_v46, %v10968_v61  ;;  %v5614_v20 = vmul.f32 0.5, %v5613_v14 }
 0x59e   : > { %v5508_v13 = vadd.f32 1e-05, %v5476_v54 }
 0x59f   : > { %5890 = vst [vmem:[%s11072_s24 + $0x38] sm:$0xff] %v5858_v12  ;;  %v5615_v42 = vsub.f32 1.5, %v5614_v20 }
 0x5a0   : > { %6331 = vrsqrt.f32 %v5508_v13  ;;  %vm5627_vm13 = vweird.f32 %v5508_v13 }
 0x5a1   : > { %v5616_v23 = vmul.f32 %v6330_v21, %v5615_v42  ;;  %v5424_v3 = vpop.xlane.xlu0 %5423 }
 0x5a2   : > { %v5477_v52 = vmul.f32 %v5424_v3, %v10882_v26 }
 0x5a3   : > { %v5620_v62 = vsel %vm5619_vm11, %v6330_v21, %v5616_v23  ;;  %v5289_v61 = vpop.xlane.xlu2 %5288 }
 0x5a4   : > { %v5859_v25 = vmul.f32 %v5620_v62, %v10975_v39  ;;  %v5509_v43 = vadd.f32 1e-05, %v5477_v52  ;;  %v5333_v29 = vmul.f32 %v10882_v26, %v5289_v61  ;;  %v5426_v10 = vpop.xlane.xlu1 %5425 }
 0x5a5   : > { %v5478_v16 = vmul.f32 %v5426_v10, %v10882_v26 }
 0x5a6   : > { %5891 = vst [vmem:[%s11072_s24 + $0x40] sm:$0xff] %v5859_v25  ;;  %6333 = vrsqrt.f32 %v5509_v43  ;;  %v6332_v17 = vpop.eup %6331  ;;  %v11163_v36 = vsub.f32 %v11001_v40, %v5333_v29  ;;  %vm5637_vm0 = vweird.f32 %v5509_v43 }
 0x5a7   : > { %v5622_v56 = vmul.f32 %v6332_v17, %v5508_v13  ;;  %v5510_v8 = vadd.f32 1e-05, %v5478_v16  ;;  %vm5628_vm12 = vweird.f32 %v6332_v17 }
 0x5a8   : > { %v5397_v32 = vmul.f32 %v11163_v36, %v11163_v36  ;;  %vm5629_vm14 = vmor %vm5627_vm13, %vm5628_vm12 }
 0x5a9   : > { %v5291_v37 = vpop.xlane.xlu0 %5290  ;;  %v5623_v39 = vmul.f32 %v6332_v17, %v5622_v56  ;;  %6335 = vrsqrt.f32 %v5510_v8  ;;  %vm5647_vm3 = vweird.f32 %v5510_v8 }
 0x5aa   : > { %v5334_v63 = vmul.f32 %v10882_v26, %v5291_v37  ;;  %5455 = vadd.xlane.f32.xlu1 %v5397_v32 }
 0x5ab   : > { %v5624_v5 = vmul.f32 0.5, %v5623_v39  ;;  %v5428_v47 = vpop.xlane.xlu2 %5427 }
 0x5ac   : > { %v6334_v0 = vpop.eup %6333  ;;  %v11169_v45 = vsub.f32 %v11014_v53, %v5334_v63  ;;  %v5479_v40 = vmul.f32 %v5428_v47, %v10882_v26 }
 0x5ad   : > { %v5632_v6 = vmul.f32 %v6334_v0, %v5509_v43  ;;  %v5625_v38 = vsub.f32 1.5, %v5624_v5  ;;  %vm5638_vm15 = vweird.f32 %v6334_v0 }
 0x5ae   : > { %v5398_v28 = vmul.f32 %v11169_v45, %v11169_v45  ;;  %v5511_v59 = vadd.f32 1e-05, %v5479_v40  ;;  %vm5639_vm1 = vmor %vm5637_vm0, %vm5638_vm15 }
 0x5af   : > { %v5633_v41 = vmul.f32 %v6334_v0, %v5632_v6  ;;  %v6336_v21 = vpop.eup %6335  ;;  %v5626_v33 = vmul.f32 %v6332_v17, %v5625_v38 }
 0x5b0   : > { %5457 = vadd.xlane.f32.xlu2 %v5398_v28  ;;  %v5642_v53 = vmul.f32 %v6336_v21, %v5510_v8  ;;  %6337 = vrsqrt.f32 %v5511_v59  ;;  %vm5648_vm2 = vweird.f32 %v6336_v21  ;;  %vm5657_vm6 = vweird.f32 %v5511_v59 }
 0x5b1   : > { %v5634_v60 = vmul.f32 0.5, %v5633_v41  ;;  %v5430_v31 = vpop.xlane.xlu0 %5429  ;;  %v5630_v19 = vsel %vm5629_vm14, %v6332_v17, %v5626_v33  ;;  %vm5649_vm4 = vmor %vm5647_vm3, %vm5648_vm2 }
 0x5b2   : > { %v5293_v14 = vpop.xlane.xlu1 %5292  ;;  %v5480_v46 = vmul.f32 %v5430_v31, %v10882_v26  ;;  %v5860_v2 = vmul.f32 %v5630_v19, %v10989_v55  ;;  %v5643_v20 = vmul.f32 %v6336_v21, %v5642_v53 }
 0x5b3   : > { %v5635_v12 = vsub.f32 1.5, %v5634_v60  ;;  %v5335_v54 = vmul.f32 %v10882_v26, %v5293_v14 }
 0x5b4   : > { %v5512_v42 = vadd.f32 1e-05, %v5480_v46  ;;  %5892 = vst [vmem:[%s11072_s24 + $0x48] sm:$0xff] %v5860_v2  ;;  %v5644_v23 = vmul.f32 0.5, %v5643_v20 }
 0x5b5   : > { %v5636_v13 = vmul.f32 %v6334_v0, %v5635_v12  ;;  %v11179_v3 = vsub.f32 %v11026_v15, %v5335_v54 }
 0x5b6   : > { %6339 = vrsqrt.f32 %v5512_v42  ;;  %v6338_v52 = vpop.eup %6337  ;;  %v5645_v25 = vsub.f32 1.5, %v5644_v23  ;;  %vm5667_vm9 = vweird.f32 %v5512_v42 }
 0x5b7   : > { %v5640_v62 = vsel %vm5639_vm1, %v6334_v0, %v5636_v13  ;;  %v5399_v55 = vmul.f32 %v11179_v3, %v11179_v3  ;;  %v5652_v29 = vmul.f32 %v6338_v52, %v5511_v59  ;;  %vm5658_vm5 = vweird.f32 %v6338_v52 }
 0x5b8   : > { %v5861_v61 = vmul.f32 %v5640_v62, %v10995_v58  ;;  %v5646_v10 = vmul.f32 %v6336_v21, %v5645_v25  ;;  %vm5659_vm7 = vmor %vm5657_vm6, %vm5658_vm5 }
 0x5b9   : > { %5459 = vadd.xlane.f32.xlu0 %v5399_v55  ;;  %v5653_v15 = vmul.f32 %v6338_v52, %v5652_v29 }
 0x5ba   : > { %5893 = vst [vmem:[%s11072_s24 + $0x50] sm:$0xff] %v5861_v61  ;;  %v5650_v43 = vsel %vm5649_vm4, %v6336_v21, %v5646_v10 }
 0x5bb   : > { %v5862_v17 = vmul.f32 %v5650_v43, %v11004_v34  ;;  %v5654_v56 = vmul.f32 0.5, %v5653_v15 }
 0x5bc   : > { %v6340_v16 = vpop.eup %6339 }
 0x5bd   : > { %v5662_v32 = vmul.f32 %v6340_v16, %v5512_v42  ;;  %5894 = vst [vmem:[%s11072_s24 + $0x58] sm:$0xff] %v5862_v17  ;;  %v5655_v37 = vsub.f32 1.5, %v5654_v56  ;;  %v5295_v39 = vpop.xlane.xlu2 %5294  ;;  %vm5668_vm8 = vweird.f32 %v6340_v16 }
 0x5be   : > { %v5336_v58 = vmul.f32 %v10882_v26, %v5295_v39  ;;  %vm5669_vm10 = vmor %vm5667_vm9, %vm5668_vm8 }
 0x5bf   : > { %v5663_v63 = vmul.f32 %v6340_v16, %v5662_v32  ;;  %v5656_v0 = vmul.f32 %v6338_v52, %v5655_v37 }
 0x5c0   : > { %v11189_v5 = vsub.f32 %v11034_v7, %v5336_v58 }
 0x5c1   : > { %v5664_v8 = vmul.f32 0.5, %v5663_v63  ;;  %v5660_v47 = vsel %vm5659_vm7, %v6338_v52, %v5656_v0 }
 0x5c2   : > { %v5863_v34 = vmul.f32 %v5660_v47, %v11011_v22  ;;  %v5400_v40 = vmul.f32 %v11189_v5, %v11189_v5 }
 0x5c3   : > { %v5665_v6 = vsub.f32 1.5, %v5664_v8 }
 0x5c4   : > { %5895 = vst [vmem:[%s11072_s24 + $0x60] sm:$0xff] %v5863_v34  ;;  %5461 = vadd.xlane.f32.xlu1 %v5400_v40 }
 0x5c5   : > { %v5666_v38 = vmul.f32 %v6340_v16, %v5665_v6  ;;  %v5434_v28 = vpop.xlane.xlu2 %5433 }
 0x5c6   : > { %v5482_v59 = vmul.f32 %v5434_v28, %v10882_v26 }
 0x5c7   : > { %v5670_v41 = vsel %vm5669_vm10, %v6340_v16, %v5666_v38  ;;  %v5297_v21 = vpop.xlane.xlu0 %5296 }
 0x5c8   : > { %v5864_v7 = vmul.f32 %v5670_v41, %v11021_v1  ;;  %v5337_v22 = vmul.f32 %v10882_v26, %v5297_v21  ;;  %v5514_v33 = vadd.f32 1e-05, %v5482_v59 }
 0x5ca   : > { %5896 = vst [vmem:[%s11072_s24 + $0x68] sm:$0xff] %v5864_v7  ;;  %v11200_v60 = vsub.f32 %v11048_v48, %v5337_v22  ;;  %6341 = vrsqrt.f32 %v5514_v33  ;;  %vm5687_vm12 = vweird.f32 %v5514_v33 }
 0x5cc   : > { %v5401_v53 = vmul.f32 %v11200_v60, %v11200_v60 }
 0x5ce   : > { %5463 = vadd.xlane.f32.xlu2 %v5401_v53 }
 0x5cf   : > { %v5436_v31 = vpop.xlane.xlu0 %5435 }
 0x5d0   : > { %v6342_v14 = vpop.eup %6341  ;;  %v5483_v46 = vmul.f32 %v5436_v31, %v10882_v26 }
 0x5d1   : > { %v5682_v2 = vmul.f32 %v6342_v14, %v5514_v33  ;;  %vm5688_vm11 = vweird.f32 %v6342_v14 }
 0x5d2   : > { %v5515_v12 = vadd.f32 1e-05, %v5483_v46  ;;  %vm5689_vm13 = vmor %vm5687_vm12, %vm5688_vm11 }
 0x5d3   : > { %v5440_v19 = vpop.xlane.xlu2 %5439  ;;  %v5683_v54 = vmul.f32 %v6342_v14, %v5682_v2 }
 0x5d4   : > { %v5485_v1 = vmul.f32 %v5440_v19, %v10882_v26  ;;  %6343 = vrsqrt.f32 %v5515_v12  ;;  %vm5697_vm0 = vweird.f32 %v5515_v12 }
 0x5d5   : > { %v5684_v42 = vmul.f32 0.5, %v5683_v54 }
 0x5d6   : > { %v5517_v20 = vadd.f32 1e-05, %v5485_v1 }
 0x5d7   : > { %v5685_v23 = vsub.f32 1.5, %v5684_v42 }
 0x5d8   : > { %v5299_v48 = vpop.xlane.xlu1 %5298  ;;  %6345 = vrsqrt.f32 %v5517_v20  ;;  %vm5717_vm2 = vweird.f32 %v5517_v20 }
 0x5d9   : > { %v5338_v13 = vmul.f32 %v10882_v26, %v5299_v48  ;;  %v5686_v55 = vmul.f32 %v6342_v14, %v5685_v23 }
 0x5da   : > { %v6344_v61 = vpop.eup %6343 }
 0x5db   : > { %v11208_v62 = vsub.f32 %v11081_v11, %v5338_v13  ;;  %v5690_v43 = vsel %vm5689_vm13, %v6342_v14, %v5686_v55  ;;  %v5692_v16 = vmul.f32 %v6344_v61, %v5515_v12  ;;  %vm5698_vm14 = vweird.f32 %v6344_v61 }
 0x5dc   : > { %v5442_v52 = vpop.xlane.xlu0 %5441  ;;  %v5866_v17 = vmul.f32 %v5690_v43, %v11039_v57  ;;  %vm5699_vm1 = vmor %vm5697_vm0, %vm5698_vm14 }
 0x5dd   : > { %v5486_v25 = vmul.f32 %v5442_v52, %v10882_v26  ;;  %v5402_v29 = vmul.f32 %v11208_v62, %v11208_v62  ;;  %v5693_v11 = vmul.f32 %v6344_v61, %v5692_v16 }
 0x5de   : > { %v6346_v15 = vpop.eup %6345  ;;  %5898 = vst [vmem:[%s11072_s24 + $0x78] sm:$0xff] %v5866_v17 }
 0x5df   : > { %v5518_v10 = vadd.f32 1e-05, %v5486_v25  ;;  %5465 = vadd.xlane.f32.xlu0 %v5402_v29  ;;  %v5712_v56 = vmul.f32 %v6346_v15, %v5517_v20  ;;  %v5694_v63 = vmul.f32 0.5, %v5693_v11  ;;  %vm5718_vm15 = vweird.f32 %v6346_v15 }
 0x5e0   : > { %v5432_v32 = vpop.xlane.xlu1 %5431  ;;  %vm5719_vm3 = vmor %vm5717_vm2, %vm5718_vm15 }
 0x5e1   : > { %6347 = vrsqrt.f32 %v5518_v10  ;;  %v5481_v37 = vmul.f32 %v5432_v32, %v10882_v26  ;;  %v5713_v39 = vmul.f32 %v6346_v15, %v5712_v56  ;;  %v5695_v8 = vsub.f32 1.5, %v5694_v63 }
 0x5e2   : > { %vm5727_vm5 = vweird.f32 %v5518_v10 }
 0x5e3   : > { %v5513_v58 = vadd.f32 1e-05, %v5481_v37  ;;  %v5714_v0 = vmul.f32 0.5, %v5713_v39  ;;  %v5696_v6 = vmul.f32 %v6344_v61, %v5695_v8 }
 0x5e5   : > { %6349 = vrsqrt.f32 %v5513_v58  ;;  %v5715_v34 = vsub.f32 1.5, %v5714_v0  ;;  %v5700_v38 = vsel %vm5699_vm1, %v6344_v61, %v5696_v6  ;;  %vm5677_vm8 = vweird.f32 %v5513_v58 }
 0x5e6   : > { %v5867_v59 = vmul.f32 %v5700_v38, %v11053_v51 }
 0x5e7   : > { %v6348_v47 = vpop.eup %6347  ;;  %v5716_v40 = vmul.f32 %v6346_v15, %v5715_v34 }
 0x5e8   : > { %v5722_v57 = vmul.f32 %v6348_v47, %v5518_v10  ;;  %v5438_v28 = vpop.xlane.xlu1 %5437  ;;  %5899 = vst [vmem:[%s11072_s24 + $0x80] sm:$0xff] %v5867_v59  ;;  %vm5728_vm4 = vweird.f32 %v6348_v47 }
 0x5e9   : > { %v5484_v7 = vmul.f32 %v5438_v28, %v10882_v26  ;;  %v5720_v21 = vsel %vm5719_vm3, %v6346_v15, %v5716_v40  ;;  %vm5729_vm6 = vmor %vm5727_vm5, %vm5728_vm4 }
 0x5ea   : > { %v5723_v41 = vmul.f32 %v6348_v47, %v5722_v57  ;;  %v5869_v22 = vmul.f32 %v5720_v21, %v11061_v44 }
 0x5eb   : > { %v5446_v53 = vpop.xlane.xlu2 %5445  ;;  %v6350_v31 = vpop.eup %6349  ;;  %v5516_v19 = vadd.f32 1e-05, %v5484_v7 }
 0x5ec   : > { %v5724_v33 = vmul.f32 0.5, %v5723_v41  ;;  %v5488_v14 = vmul.f32 %v5446_v53, %v10882_v26  ;;  %v5672_v46 = vmul.f32 %v6350_v31, %v5513_v58  ;;  %5901 = vst [vmem:[%s11072_s24 + $0x90] sm:$0xff] %v5869_v22  ;;  %vm5678_vm7 = vweird.f32 %v6350_v31 }
 0x5ed   : > { %6351 = vrsqrt.f32 %v5516_v19  ;;  %vm5679_vm9 = vmor %vm5677_vm8, %vm5678_vm7  ;;  %vm5707_vm11 = vweird.f32 %v5516_v19 }
 0x5ee   : > { %v5725_v1 = vsub.f32 1.5, %v5724_v33  ;;  %v5520_v2 = vadd.f32 1e-05, %v5488_v14  ;;  %v5673_v51 = vmul.f32 %v6350_v31, %v5672_v46 }
 0x5f0   : > { %v5726_v12 = vmul.f32 %v6348_v47, %v5725_v1  ;;  %6353 = vrsqrt.f32 %v5520_v2  ;;  %v5674_v44 = vmul.f32 0.5, %v5673_v51  ;;  %v5444_v54 = vpop.xlane.xlu1 %5443  ;;  %vm5747_vm14 = vweird.f32 %v5520_v2 }
 0x5f1   : > { %v5487_v48 = vmul.f32 %v5444_v54, %v10882_v26 }
 0x5f2   : > { %v5730_v20 = vsel %vm5729_vm6, %v6348_v47, %v5726_v12  ;;  %v5675_v13 = vsub.f32 1.5, %v5674_v44 }
 0x5f3   : > { %v5870_v42 = vmul.f32 %v5730_v20, %v11084_v9  ;;  %v6352_v23 = vpop.eup %6351  ;;  %v5519_v52 = vadd.f32 1e-05, %v5487_v48 }
 0x5f4   : > { %v5676_v25 = vmul.f32 %v6350_v31, %v5675_v13  ;;  %v5702_v55 = vmul.f32 %v6352_v23, %v5516_v19  ;;  %v5448_v9 = vpop.xlane.xlu0 %5447  ;;  %vm5708_vm10 = vweird.f32 %v6352_v23 }
 0x5f5   : > { %5902 = vst [vmem:[%s11072_s24 + $0x98] sm:$0xff] %v5870_v42  ;;  %6355 = vrsqrt.f32 %v5519_v52  ;;  %v5489_v56 = vmul.f32 %v5448_v9, %v10882_v26  ;;  %vm5709_vm13 = vmor %vm5707_vm11, %vm5708_vm10  ;;  %vm5737_vm1 = vweird.f32 %v5519_v52 }
 0x5f6   : > { %v6354_v61 = vpop.eup %6353  ;;  %v5680_v29 = vsel %vm5679_vm9, %v6350_v31, %v5676_v25  ;;  %v5703_v10 = vmul.f32 %v6352_v23, %v5702_v55 }
 0x5f7   : > { %v5742_v15 = vmul.f32 %v6354_v61, %v5520_v2  ;;  %v5865_v43 = vmul.f32 %v5680_v29, %v11093_v30  ;;  %v5521_v37 = vadd.f32 1e-05, %v5489_v56  ;;  %vm5748_vm12 = vweird.f32 %v6354_v61 }
 0x5f8   : > { %v5704_v16 = vmul.f32 0.5, %v5703_v10  ;;  %vm5749_vm15 = vmor %vm5747_vm14, %vm5748_vm12 }
 0x5f9   : > { %v5743_v17 = vmul.f32 %v6354_v61, %v5742_v15  ;;  %5897 = vst [vmem:[%s11072_s24 + $0x70] sm:$0xff] %v5865_v43  ;;  %6357 = vrsqrt.f32 %v5521_v37  ;;  %vm5757_vm4 = vweird.f32 %v5521_v37 }
 0x5fa   : > { %v5705_v11 = vsub.f32 1.5, %v5704_v16 }
 0x5fb   : > { %v5744_v32 = vmul.f32 0.5, %v5743_v17  ;;  %v6356_v39 = vpop.eup %6355  ;;  %v5450_v34 = vpop.xlane.xlu1 %5449 }
 0x5fc   : > { %v5706_v63 = vmul.f32 %v6352_v23, %v5705_v11  ;;  %v5732_v58 = vmul.f32 %v6356_v39, %v5519_v52  ;;  %v5490_v57 = vmul.f32 %v5450_v34, %v10882_v26  ;;  %vm5738_vm0 = vweird.f32 %v6356_v39 }
 0x5fd   : > { %v5745_v0 = vsub.f32 1.5, %v5744_v32  ;;  %vm5739_vm2 = vmor %vm5737_vm1, %vm5738_vm0 }
 0x5fe   : > { %v5710_v30 = vsel %vm5709_vm13, %v6352_v23, %v5706_v63  ;;  %v5733_v8 = vmul.f32 %v6356_v39, %v5732_v58  ;;  %v5522_v41 = vadd.f32 1e-05, %v5490_v57 }
 0x5ff   : > { %v5746_v47 = vmul.f32 %v6354_v61, %v5745_v0  ;;  %v5868_v6 = vmul.f32 %v5710_v30, %v11102_v24  ;;  %v6358_v7 = vpop.eup %6357 }
 0x600   : > { %v5734_v40 = vmul.f32 0.5, %v5733_v8  ;;  %6359 = vrsqrt.f32 %v5522_v41  ;;  %v5752_v22 = vmul.f32 %v6358_v7, %v5521_v37  ;;  %vm5758_vm3 = vweird.f32 %v6358_v7 }
 0x601   : > { %v5750_v38 = vsel %vm5749_vm15, %v6354_v61, %v5746_v47  ;;  %5900 = vst [vmem:[%s11072_s24 + $0x88] sm:$0xff] %v5868_v6  ;;  %vm5759_vm5 = vmor %vm5757_vm4, %vm5758_vm3  ;;  %vm5767_vm7 = vweird.f32 %v5522_v41 }
 0x602   : > { %v5872_v28 = vmul.f32 %v5750_v38, %v11110_v4  ;;  %v5735_v59 = vsub.f32 1.5, %v5734_v40  ;;  %v5753_v33 = vmul.f32 %v6358_v7, %v5752_v22 }
 0x604   : > { %5904 = vst [vmem:[%s11072_s24 + $0xa8] sm:$0xff] %v5872_v28  ;;  %v5736_v21 = vmul.f32 %v6356_v39, %v5735_v59  ;;  %v5754_v31 = vmul.f32 0.5, %v5753_v33 }
 0x606   : > { %v5740_v24 = vsel %vm5739_vm2, %v6356_v39, %v5736_v21  ;;  %v6360_v19 = vpop.eup %6359  ;;  %v5755_v14 = vsub.f32 1.5, %v5754_v31 }
 0x607   : > { %v5871_v53 = vmul.f32 %v5740_v24, %v11114_v35  ;;  %v5762_v4 = vmul.f32 %v6360_v19, %v5522_v41  ;;  %vm5768_vm6 = vweird.f32 %v6360_v19 }
 0x608   : > { %v5452_v46 = vpop.xlane.xlu2 %5451  ;;  %v5756_v2 = vmul.f32 %v6358_v7, %v5755_v14  ;;  %vm5769_vm8 = vmor %vm5767_vm7, %vm5768_vm6 }
 0x609   : > { %5903 = vst [vmem:[%s11072_s24 + $0xa0] sm:$0xff] %v5871_v53  ;;  %v5491_v1 = vmul.f32 %v5452_v46, %v10882_v26  ;;  %v5763_v51 = vmul.f32 %v6360_v19, %v5762_v4 }
 0x60a   : > { %v5760_v44 = vsel %vm5759_vm5, %v6358_v7, %v5756_v2 }
 0x60b   : > { %v5523_v12 = vadd.f32 1e-05, %v5491_v1  ;;  %v5764_v20 = vmul.f32 0.5, %v5763_v51  ;;  %v5873_v54 = vmul.f32 %v5760_v44, %v11126_v18 }
 0x60d   : > { %6361 = vrsqrt.f32 %v5523_v12  ;;  %v5765_v35 = vsub.f32 1.5, %v5764_v20  ;;  %5905 = vst [vmem:[%s11072_s24 + $0xb0] sm:$0xff] %v5873_v54  ;;  %vm5777_vm10 = vweird.f32 %v5523_v12 }
 0x60f   : > { %v5454_v42 = vpop.xlane.xlu0 %5453  ;;  %v5766_v48 = vmul.f32 %v6360_v19, %v5765_v35 }
 0x610   : > { %v5492_v13 = vmul.f32 %v5454_v42, %v10882_v26 }
 0x611   : > { %v5770_v23 = vsel %vm5769_vm8, %v6360_v19, %v5766_v48 }
 0x612   : > { %v5524_v52 = vadd.f32 1e-05, %v5492_v13  ;;  %v5874_v55 = vmul.f32 %v5770_v23, %v11132_v49 }
 0x613   : > { %v6362_v25 = vpop.eup %6361 }
 0x614   : > { %v5772_v61 = vmul.f32 %v6362_v25, %v5523_v12  ;;  %6363 = vrsqrt.f32 %v5524_v52  ;;  %5906 = vst [vmem:[%s11072_s24 + $0xb8] sm:$0xff] %v5874_v55  ;;  %vm5778_vm9 = vweird.f32 %v6362_v25  ;;  %vm5787_vm13 = vweird.f32 %v5524_v52 }
 0x615   : > { %vm5779_vm11 = vmor %vm5777_vm10, %vm5778_vm9 }
 0x616   : > { %v5773_v18 = vmul.f32 %v6362_v25, %v5772_v61 }
 0x618   : > { %v5774_v29 = vmul.f32 0.5, %v5773_v18 }
 0x61a   : > { %v6364_v10 = vpop.eup %6363  ;;  %v5775_v15 = vsub.f32 1.5, %v5774_v29 }
 0x61b   : > { %v5782_v43 = vmul.f32 %v6364_v10, %v5524_v52  ;;  %vm5788_vm12 = vweird.f32 %v6364_v10 }
 0x61c   : > { %v5776_v9 = vmul.f32 %v6362_v25, %v5775_v15  ;;  %vm5789_vm14 = vmor %vm5787_vm13, %vm5788_vm12 }
 0x61d   : > { %v5783_v16 = vmul.f32 %v6364_v10, %v5782_v43  ;;  %v5456_v56 = vpop.xlane.xlu1 %5455 }
 0x61e   : > { %v5780_v17 = vsel %vm5779_vm11, %v6362_v25, %v5776_v9  ;;  %v5493_v32 = vmul.f32 %v5456_v56, %v10882_v26 }
 0x61f   : > { %v5875_v11 = vmul.f32 %v5780_v17, %v11143_v50  ;;  %v5784_v49 = vmul.f32 0.5, %v5783_v16 }
 0x620   : > { %v5525_v39 = vadd.f32 1e-05, %v5493_v32 }
 0x621   : > { %5907 = vst [vmem:[%s11072_s24 + $0xc0] sm:$0xff] %v5875_v11  ;;  %v5785_v37 = vsub.f32 1.5, %v5784_v49 }
 0x622   : > { %6365 = vrsqrt.f32 %v5525_v39  ;;  %vm5797_vm0 = vweird.f32 %v5525_v39 }
 0x623   : > { %v5786_v63 = vmul.f32 %v6364_v10, %v5785_v37  ;;  %v5458_v58 = vpop.xlane.xlu2 %5457 }
 0x624   : > { %v5494_v0 = vmul.f32 %v5458_v58, %v10882_v26 }
 0x625   : > { %v5790_v30 = vsel %vm5789_vm14, %v6364_v10, %v5786_v63 }
 0x626   : > { %v5876_v8 = vmul.f32 %v5790_v30, %v11150_v27  ;;  %v5526_v47 = vadd.f32 1e-05, %v5494_v0 }
 0x628   : > { %5908 = vst [vmem:[%s11072_s24 + $0xc8] sm:$0xff] %v5876_v8  ;;  %6367 = vrsqrt.f32 %v5526_v47  ;;  %v6366_v50 = vpop.eup %6365  ;;  %vm5807_vm3 = vweird.f32 %v5526_v47 }
 0x629   : > { %v5792_v34 = vmul.f32 %v6366_v50, %v5525_v39  ;;  %vm5798_vm15 = vweird.f32 %v6366_v50 }
 0x62a   : > { %vm5799_vm1 = vmor %vm5797_vm0, %vm5798_vm15 }
 0x62b   : > { %v5793_v6 = vmul.f32 %v6366_v50, %v5792_v34 }
 0x62c   : > { %v5460_v57 = vpop.xlane.xlu0 %5459 }
 0x62d   : > { %v5495_v40 = vmul.f32 %v5460_v57, %v10882_v26  ;;  %v5794_v28 = vmul.f32 0.5, %v5793_v6 }
 0x62e   : > { %v6368_v38 = vpop.eup %6367 }
 0x62f   : > { %v5802_v41 = vmul.f32 %v6368_v38, %v5526_v47  ;;  %v5527_v59 = vadd.f32 1e-05, %v5495_v40  ;;  %v5795_v7 = vsub.f32 1.5, %v5794_v28  ;;  %vm5808_vm2 = vweird.f32 %v6368_v38 }
 0x630   : > { %vm5809_vm4 = vmor %vm5807_vm3, %vm5808_vm2 }
 0x631   : > { %v5803_v21 = vmul.f32 %v6368_v38, %v5802_v41  ;;  %6369 = vrsqrt.f32 %v5527_v59  ;;  %v5796_v22 = vmul.f32 %v6366_v50, %v5795_v7  ;;  %vm5817_vm6 = vweird.f32 %v5527_v59 }
 0x633   : > { %v5804_v27 = vmul.f32 0.5, %v5803_v21  ;;  %v5800_v24 = vsel %vm5799_vm1, %v6366_v50, %v5796_v22 }
 0x634   : > { %v5877_v33 = vmul.f32 %v5800_v24, %v11163_v36 }
 0x635   : > { %v5805_v53 = vsub.f32 1.5, %v5804_v27 }
 0x636   : > { %5909 = vst [vmem:[%s11072_s24 + $0xd0] sm:$0xff] %v5877_v33 }
 0x637   : > { %v6370_v31 = vpop.eup %6369  ;;  %v5806_v19 = vmul.f32 %v6368_v38, %v5805_v53  ;;  %v5462_v4 = vpop.xlane.xlu1 %5461 }
 0x638   : > { %v5812_v14 = vmul.f32 %v6370_v31, %v5527_v59  ;;  %v5496_v1 = vmul.f32 %v5462_v4, %v10882_v26  ;;  %vm5818_vm5 = vweird.f32 %v6370_v31 }
 0x639   : > { %v5810_v46 = vsel %vm5809_vm4, %v6368_v38, %v5806_v19  ;;  %vm5819_vm7 = vmor %vm5817_vm6, %vm5818_vm5 }
 0x63a   : > { %v5878_v2 = vmul.f32 %v5810_v46, %v11169_v45  ;;  %v5813_v51 = vmul.f32 %v6370_v31, %v5812_v14  ;;  %v5528_v12 = vadd.f32 1e-05, %v5496_v1 }
 0x63c   : > { %5910 = vst [vmem:[%s11072_s24 + $0xd8] sm:$0xff] %v5878_v2  ;;  %v5814_v44 = vmul.f32 0.5, %v5813_v51  ;;  %6371 = vrsqrt.f32 %v5528_v12  ;;  %vm5827_vm9 = vweird.f32 %v5528_v12 }
 0x63e   : > { %v5815_v36 = vsub.f32 1.5, %v5814_v44 }
 0x640   : > { %v5816_v20 = vmul.f32 %v6370_v31, %v5815_v36 }
 0x641   : > { %v5464_v35 = vpop.xlane.xlu2 %5463 }
 0x642   : > { %v5820_v54 = vsel %vm5819_vm7, %v6370_v31, %v5816_v20  ;;  %v6372_v42 = vpop.eup %6371  ;;  %v5497_v13 = vmul.f32 %v5464_v35, %v10882_v26 }
 0x643   : > { %v5879_v48 = vmul.f32 %v5820_v54, %v11179_v3  ;;  %v5822_v23 = vmul.f32 %v6372_v42, %v5528_v12  ;;  %vm5828_vm8 = vweird.f32 %v6372_v42 }
 0x644   : > { %v5529_v45 = vadd.f32 1e-05, %v5497_v13  ;;  %vm5829_vm10 = vmor %vm5827_vm9, %vm5828_vm8 }
 0x645   : > { %5911 = vst [vmem:[%s11072_s24 + $0xe0] sm:$0xff] %v5879_v48  ;;  %v5823_v52 = vmul.f32 %v6372_v42, %v5822_v23 }
 0x646   : > { %6373 = vrsqrt.f32 %v5529_v45  ;;  %vm5837_vm12 = vweird.f32 %v5529_v45 }
 0x647   : > { %v5824_v25 = vmul.f32 0.5, %v5823_v52 }
 0x649   : > { %v5825_v55 = vsub.f32 1.5, %v5824_v25 }
 0x64b   : > { %v5826_v61 = vmul.f32 %v6372_v42, %v5825_v55 }
 0x64c   : > { %v6374_v18 = vpop.eup %6373 }
 0x64d   : > { %v5830_v29 = vsel %vm5829_vm10, %v6372_v42, %v5826_v61  ;;  %v5832_v10 = vmul.f32 %v6374_v18, %v5529_v45  ;;  %vm5838_vm11 = vweird.f32 %v6374_v18 }
 0x64e   : > { %v5880_v15 = vmul.f32 %v5830_v29, %v11189_v5  ;;  %vm5839_vm13 = vmor %vm5837_vm12, %vm5838_vm11 }
 0x64f   : > { %v5833_v3 = vmul.f32 %v6374_v18, %v5832_v10 }
 0x650   : > { %5912 = vst [vmem:[%s11072_s24 + $0xe8] sm:$0xff] %v5880_v15 }
 0x651   : > { %v5834_v16 = vmul.f32 0.5, %v5833_v3 }
 0x652   : > { %v5466_v43 = vpop.xlane.xlu0 %5465 }
 0x653   : > { %v5498_v9 = vmul.f32 %v5466_v43, %v10882_v26  ;;  %v5835_v56 = vsub.f32 1.5, %v5834_v16 }
 0x655   : > { %v5530_v17 = vadd.f32 1e-05, %v5498_v9  ;;  %v5836_v11 = vmul.f32 %v6374_v18, %v5835_v56 }
 0x657   : > { %6375 = vrsqrt.f32 %v5530_v17  ;;  %v5840_v49 = vsel %vm5839_vm13, %v6374_v18, %v5836_v11  ;;  %vm5847_vm15 = vweird.f32 %v5530_v17 }
 0x658   : > { %v5881_v32 = vmul.f32 %v5840_v49, %v11200_v60 }
 0x65a   : > { %5913 = vst [vmem:[%s11072_s24 + $0xf0] sm:$0xff] %v5881_v32 }
 0x65d   : > { %v6376_v37 = vpop.eup %6375 }
 0x65e   : > { %v5842_v5 = vmul.f32 %v6376_v37, %v5530_v17  ;;  %vm5848_vm14 = vweird.f32 %v6376_v37 }
 0x65f   : > { %vm5849_vm0 = vmor %vm5847_vm15, %vm5848_vm14 }
 0x660   : > { %v5843_v39 = vmul.f32 %v6376_v37, %v5842_v5 }
 0x662   : > { %v5844_v63 = vmul.f32 0.5, %v5843_v39 }
 0x664   : > { %v5845_v58 = vsub.f32 1.5, %v5844_v63 }
 0x666   : > { %v5846_v26 = vmul.f32 %v6376_v37, %v5845_v58 }
 0x668   : > { %v5850_v0 = vsel %vm5849_vm0, %v6376_v37, %v5846_v26 }
 0x669   : > { %v5882_v30 = vmul.f32 %v5850_v0, %v11208_v62 }
 0x66b   : > { %5914 = vst [vmem:[%s11072_s24 + $0xf8] sm:$0xff] %v5882_v30 }
 0x66c PF: > { %s13_s12 = sadd.s32 1, %s6431_s12  }
 0x66d   : > { %p10_p4 = scmp.ge.s32.totalorder %s13_s12, 4  }
 0x66f   :  { %12 = sbr.rel (!%p10_p4) target bundleno = 1 (0x1), region = 62 }

</bundles_post_ra>
